<compile_context>
chip_gen: v7x
topology: tpu7x:2x2x1
jax: 0.10.0
libtpu: 0.0.40
codegen_flags: <defaults>
</compile_context>

<pallas_src>
import functools

import jax
import jax.numpy as jnp
from jax.experimental import pallas as pl
from jax.experimental.pallas import tpu as pltpu


def _cdiv(a, b):
    return (a + b - 1) // b


def _round_up(x, m):
    return _cdiv(x, m) * m


_VMEM_LIMIT = 32 * 1024 * 1024  # >= v5e's 16 MiB default scoped VMEM, < v7x physical


# ----------------------------- Pallas kernels ------------------------------

def conv_pool_kernel(x00_ref, x01_ref, x10_ref, x11_ref, w_ref, b_ref, o_ref,
                     *, negative_slope):
    """Fused Conv2d + BN(eval) + LeakyReLU + MaxPool2d(2) for one M-block.

    Each x??_ref holds the im2col rows of one 2x2 pool tap.  The BN scale is
    folded into w_ref's columns, so  maxpool(leaky(bn(conv)))  ==
    leaky(max_i(dot_i) + bias)  exactly (both max-commuting steps are applied
    after the per-channel affine, as in PyTorch).
    """
    w = w_ref[...]
    y = jnp.maximum(
        jnp.dot(x00_ref[...], w, preferred_element_type=jnp.float32),
        jnp.dot(x01_ref[...], w, preferred_element_type=jnp.float32))
    y = jnp.maximum(y, jnp.dot(x10_ref[...], w, preferred_element_type=jnp.float32))
    y = jnp.maximum(y, jnp.dot(x11_ref[...], w, preferred_element_type=jnp.float32))
    y = y + b_ref[...]
    y = jnp.where(y >= 0, y, negative_slope * y)
    o_ref[...] = y.astype(o_ref.dtype)


def fc_fused_kernel(x_ref, w1_ref, b1_ref, w2_ref, b2_ref, o_ref):
    """fc2(fc1(x)) in one kernel: the 500-wide hidden never leaves VMEM."""
    h = jnp.dot(x_ref[...], w1_ref[...], preferred_element_type=jnp.float32)
    h = (h + b1_ref[...]).astype(jnp.bfloat16)
    o = jnp.dot(h, w2_ref[...], preferred_element_type=jnp.float32)
    o_ref[...] = o + b2_ref[...]


# ------------------------------- wrappers -----------------------------------

def conv_pool_matmul(taps, w_p, b_p, *, negative_slope):
    """taps: 4 arrays (M, K) bf16 (one per 2x2 pool tap); w_p: (K, Np) bf16 with
    the BN scale folded in; b_p: (1, Np) f32.  Returns (M, Np) bf16 pooled
    activations.  1-D 'parallel' grid over M only; K and N live in one block."""
    M, K = taps[0].shape
    Kw, Np = w_p.shape
    assert Kw == K, (Kw, K)

    nblk = 4 if M >= 512 else 2          # >=2 steps/TensorCore on v7x, DMA overlap on v5e/v6e
    tm = _round_up(_cdiv(M, nblk), 8)
    grid = (pl.cdiv(M, tm),)             # partial trailing block, no M padding copy

    lhs = pl.BlockSpec((tm, K), lambda i: (i, 0))
    return pl.pallas_call(
        functools.partial(conv_pool_kernel, negative_slope=negative_slope),
        out_shape=jax.ShapeDtypeStruct((M, Np), jnp.bfloat16),
        grid_spec=pltpu.PrefetchScalarGridSpec(
            num_scalar_prefetch=0,
            grid=grid,
            in_specs=[lhs, lhs, lhs, lhs,
                      pl.BlockSpec((K, Np), lambda i: (0, 0)),
                      pl.BlockSpec((1, Np), lambda i: (0, 0))],
            out_specs=pl.BlockSpec((tm, Np), lambda i: (i, 0)),
        ),
        compiler_params=pltpu.CompilerParams(
            dimension_semantics=("parallel",),
            vmem_limit_bytes=_VMEM_LIMIT),
    )(*taps, w_p, b_p)


def conv_pool_block(x, cp, *, k, pad, cin, cin_pad, negative_slope=0.2):
    """One fused stage: Conv2d(stride=1,padding=pad) + BatchNorm2d(eval) +
    LeakyReLU(0.2) + MaxPool2d(2, floor).  x is NHWC bf16; only its first `cin`
    channels are used (upstream stages keep a 128-padded channel dim).
    Returns (B, Ho//2, Wo//2, Np) bf16 with the conv channels in [..., :cout]."""
    B, H, W = x.shape[0], x.shape[1], x.shape[2]
    Ho, Wo = H + 2 * pad - k + 1, W + 2 * pad - k + 1
    ho2, wo2 = Ho // 2, Wo // 2
    K = k * k * cin_pad
    Kp = _round_up(K, 128)

    # zero-pad: spatial conv padding + channel pad (cin -> cin_pad)
    xp = jnp.pad(x[..., :cin],
                 ((0, 0), (pad, pad), (pad, pad), (0, cin_pad - cin)))

    # 4 tap patch matrices; tap (di, dj) gathers the im2col rows of conv output
    # positions (2p+di, 2q+dj).  Patch channel order is (ki, kj, cin) to match
    # the packed weight.  A zero block pads K to a multiple of 128 at no extra
    # HBM cost (it is generated inside the concat fusion).
    taps = []
    for di in (0, 1):
        for dj in (0, 1):
            cols = [xp[:, di + ki: di + ki + 2 * ho2: 2,
                        dj + kj: dj + kj + 2 * wo2: 2, :]
                    for ki in range(k) for kj in range(k)]
            if Kp > K:
                cols.append(jnp.zeros((B, ho2, wo2, Kp - K), xp.dtype))
            taps.append(jnp.concatenate(cols, axis=-1)
                        .reshape(B * ho2 * wo2, Kp))

    y = conv_pool_matmul(taps, cp["w"], cp["bias"], negative_slope=negative_slope)
    return y.reshape(B, ho2, wo2, y.shape[-1])


def fc_fused(x, fp, *, n_out):
    """fc2(fc1(x)) as a single grid-less Pallas call.  x: (B, 4864) bf16 in NHWC
    flatten order (fc1's rows were permuted to match at pack time)."""
    B, K = x.shape
    K1, _ = fp["w1"].shape
    assert K == K1, (K, K1)
    Mp = _round_up(B, 8)
    xp = jnp.pad(x.astype(jnp.bfloat16), ((0, Mp - B), (0, 0)))
    out = pl.pallas_call(
        fc_fused_kernel,
        out_shape=jax.ShapeDtypeStruct((Mp, fp["w2"].shape[1]), jnp.float32),
        compiler_params=pltpu.CompilerParams(vmem_limit_bytes=_VMEM_LIMIT),
    )(xp, fp["w1"], fp["b1"], fp["w2"], fp["b2"])
    return out[:B, :n_out]


# --------------------------- parameter handling ------------------------------

def init_params(key):
    ks = jax.random.split(key, 16)

    def nrm(k, shape, s=0.05):
        return jax.random.normal(k, shape, jnp.float32) * s

    p = {}
    # conv stage 1: Conv2d(3, 32, k=4, s=1, p=2) + BN(32)
    p["w1"], p["b1"] = nrm(ks[0], (32, 3, 4, 4)), nrm(ks[1], (32,))
    p["g1"], p["be1"] = 1.0 + nrm(ks[2], (32,), 0.1), nrm(ks[3], (32,))
    p["m1"], p["v1"] = jnp.zeros((32,), jnp.float32), jnp.ones((32,), jnp.float32)
    # conv stage 2: Conv2d(32, 64, k=4, s=1, p=2) + BN(64)
    p["w2"], p["b2"] = nrm(ks[4], (64, 32, 4, 4)), nrm(ks[5], (64,))
    p["g2"], p["be2"] = 1.0 + nrm(ks[6], (64,), 0.1), nrm(ks[7], (64,))
    p["m2"], p["v2"] = jnp.zeros((64,), jnp.float32), jnp.ones((64,), jnp.float32)
    # conv stage 3: Conv2d(64, 64, k=3, s=1, p=1) + BN(64)
    p["w3"], p["b3"] = nrm(ks[8], (64, 64, 3, 3)), nrm(ks[9], (64,))
    p["g3"], p["be3"] = 1.0 + nrm(ks[10], (64,), 0.1), nrm(ks[11], (64,))
    p["m3"], p["v3"] = jnp.zeros((64,), jnp.float32), jnp.ones((64,), jnp.float32)
    # fc1: Linear(64*4*19, 500); fc2: Linear(500, 5*62)
    p["fc1_w"], p["fc1_b"] = nrm(ks[12], (64 * 4 * 19, 500), 0.02), nrm(ks[13], (500,))
    p["fc2_w"], p["fc2_b"] = nrm(ks[14], (500, 5 * 62), 0.02), nrm(ks[15], (310,))
    return p


def prepare_params(p, eps=1e-5):
    """One-time packing: PyTorch-layout f32 params -> padded bf16 matmul operands.
    BN scale is folded into the conv weights; fc1 rows are permuted to NHWC order."""

    def conv_pack(w, b, g, be, m, v, cin_pad):
        cout, cin, kh, kw = w.shape
        scale = g / jnp.sqrt(v + eps)                       # (cout,)
        bias = be + scale * (b - m)                         # (cout,)
        wp = jnp.pad(w, ((0, 0), (0, cin_pad - cin), (0, 0), (0, 0)))
        # (Cout, Cin_p, K, K) -> (K, K, Cin_p, Cout) -> (K*K*Cin_p, Cout): im2col order
        wm = jnp.transpose(wp, (2, 3, 1, 0)).reshape(kh * kw * cin_pad, cout)
        wm = wm * scale[None, :]                            # fold BN scale into weights
        Kd = kh * kw * cin_pad
        Kp, Np = _round_up(Kd, 128), _round_up(cout, 128)
        return dict(
            w=jnp.pad(wm, ((0, Kp - Kd), (0, Np - cout))).astype(jnp.bfloat16),
            bias=jnp.pad(bias, (0, Np - cout)).reshape(1, Np).astype(jnp.float32))

    def fc_pack(w1, b1, w2, b2, chw=(64, 4, 19)):
        K1, N1 = w1.shape          # 4864, 500   (4864 = 38*128: no K padding needed)
        K2, N2 = w2.shape          # 500, 310
        C, H, W = chw
        # rows of w1 follow PyTorch's (C,H,W) flatten; permute once to the NHWC
        # (H,W,C) flatten the kernel-side reshape produces.
        w1 = w1.reshape(C, H, W, N1).transpose(1, 2, 0, 3).reshape(K1, N1)
        N1p, N2p = _round_up(N1, 128), _round_up(N2, 128)
        return dict(
            w1=jnp.pad(w1, ((0, 0), (0, N1p - N1))).astype(jnp.bfloat16),
            b1=jnp.pad(b1, (0, N1p - N1)).reshape(1, N1p).astype(jnp.float32),
            w2=jnp.pad(w2, ((0, N1p - K2), (0, N2p - N2))).astype(jnp.bfloat16),
            b2=jnp.pad(b2, (0, N2p - N2)).reshape(1, N2p).astype(jnp.float32))

    return dict(
        c1=conv_pack(p["w1"], p["b1"], p["g1"], p["be1"], p["m1"], p["v1"], cin_pad=8),
        c2=conv_pack(p["w2"], p["b2"], p["g2"], p["be2"], p["m2"], p["v2"], cin_pad=32),
        c3=conv_pack(p["w3"], p["b3"], p["g3"], p["be3"], p["m3"], p["v3"], cin_pad=64),
        fc=fc_pack(p["fc1_w"], p["fc1_b"], p["fc2_w"], p["fc2_b"]))


# ------------------------------ model forward --------------------------------

def convnet_forward(prep, x_nchw):
    B = x_nchw.shape[0]
    x = jnp.transpose(x_nchw, (0, 2, 3, 1)).astype(jnp.bfloat16)        # NCHW -> NHWC
    x = conv_pool_block(x, prep["c1"], k=4, pad=2, cin=3, cin_pad=8)    # (B,15,75,128[:32])
    x = conv_pool_block(x, prep["c2"], k=4, pad=2, cin=32, cin_pad=32)  # (B, 8,38,128[:64])
    x = conv_pool_block(x, prep["c3"], k=3, pad=1, cin=64, cin_pad=64)  # (B, 4,19,128[:64])
    x = x[..., :64].reshape(B, -1)                                      # NHWC flatten (B,4864)
    out = fc_fused(x, prep["fc"], n_out=310)                            # (B, 310) f32
    return out.reshape(B * 5, 62)                                       # (B*5, 62)


if __name__ == "__main__":
    key = jax.random.PRNGKey(0)
    pkey, xkey = jax.random.split(key)
    params = init_params(pkey)
    prep = prepare_params(params)   # one-time weight packing (outside the hot path)
    # Spatial size 30x150 is forced by fc1's in_features = 64*4*19.
    x = jax.random.normal(xkey, (2, 3, 30, 150), jnp.float32)

    fwd = jax.jit(convnet_forward)
    out = jax.block_until_ready(fwd(prep, x))

    assert out.shape == (2 * 5, 62), out.shape
    assert out.dtype == jnp.float32
    assert bool(jnp.all(jnp.isfinite(out)))
    print("KERNEL_OK")
</pallas_src>

<mosaic_0001>
module attributes {stable_mosaic.version = 11 : i64} {
  func.func @conv_pool_kernel(%arg0: i32, %arg1: memref<568x128xbf16, #tpu.memory_space<vmem>>, %arg2: memref<568x128xbf16, #tpu.memory_space<vmem>>, %arg3: memref<568x128xbf16, #tpu.memory_space<vmem>>, %arg4: memref<568x128xbf16, #tpu.memory_space<vmem>>, %arg5: memref<128x128xbf16, #tpu.memory_space<vmem>>, %arg6: memref<1x128xf32, #tpu.memory_space<vmem>>, %arg7: memref<568x128xbf16, #tpu.memory_space<vmem>>) attributes {dimension_semantics = [#tpu.dimension_semantics<parallel>], iteration_bounds = array<i64: 4>, scalar_prefetch = 0 : i64, scratch_operands = 0 : i64, tpu.core_type = #tpu.core_type<tc>, window_params = [{transform_indices = @transform_0, window_bounds = array<i64: 568, 128>}, {transform_indices = @transform_1, window_bounds = array<i64: 568, 128>}, {transform_indices = @transform_2, window_bounds = array<i64: 568, 128>}, {transform_indices = @transform_3, window_bounds = array<i64: 568, 128>}, {pipeline_mode = #tpu.pipeline_mode<synchronous>, transform_indices = @transform_4, window_bounds = array<i64: 128, 128>}, {pipeline_mode = #tpu.pipeline_mode<synchronous>, transform_indices = @transform_5, window_bounds = array<i64: 1, 128>}, {transform_indices = @transform_6, window_bounds = array<i64: 568, 128>}]} {
    %c0 = arith.constant 0 : index
    %c0_0 = arith.constant 0 : index
    %0 = vector.load %arg5[%c0, %c0_0] : memref<128x128xbf16, #tpu.memory_space<vmem>>, vector<128x128xbf16>
    %c0_1 = arith.constant 0 : index
    %c0_2 = arith.constant 0 : index
    %1 = vector.load %arg1[%c0_1, %c0_2] : memref<568x128xbf16, #tpu.memory_space<vmem>>, vector<568x128xbf16>
    %cst = arith.constant dense<0.000000e+00> : vector<568x128xf32>
    %2 = tpu.matmul %1, %0, %cst {dimension_numbers = #tpu.dot_dimension_numbers<[1], [0], [0], [1], [0, 0, 1, 1], [], []>} : vector<568x128xbf16>, vector<128x128xbf16>, vector<568x128xf32> -> vector<568x128xf32>
    %c0_3 = arith.constant 0 : index
    %c0_4 = arith.constant 0 : index
    %3 = vector.load %arg2[%c0_3, %c0_4] : memref<568x128xbf16, #tpu.memory_space<vmem>>, vector<568x128xbf16>
    %cst_5 = arith.constant dense<0.000000e+00> : vector<568x128xf32>
    %4 = tpu.matmul %3, %0, %cst_5 {dimension_numbers = #tpu.dot_dimension_numbers<[1], [0], [0], [1], [0, 0, 1, 1], [], []>} : vector<568x128xbf16>, vector<128x128xbf16>, vector<568x128xf32> -> vector<568x128xf32>
    %5 = arith.maximumf %2, %4 : vector<568x128xf32>
    %c0_6 = arith.constant 0 : index
    %c0_7 = arith.constant 0 : index
    %6 = vector.load %arg3[%c0_6, %c0_7] : memref<568x128xbf16, #tpu.memory_space<vmem>>, vector<568x128xbf16>
    %cst_8 = arith.constant dense<0.000000e+00> : vector<568x128xf32>
    %7 = tpu.matmul %6, %0, %cst_8 {dimension_numbers = #tpu.dot_dimension_numbers<[1], [0], [0], [1], [0, 0, 1, 1], [], []>} : vector<568x128xbf16>, vector<128x128xbf16>, vector<568x128xf32> -> vector<568x128xf32>
    %8 = arith.maximumf %5, %7 : vector<568x128xf32>
    %c0_9 = arith.constant 0 : index
    %c0_10 = arith.constant 0 : index
    %9 = vector.load %arg4[%c0_9, %c0_10] : memref<568x128xbf16, #tpu.memory_space<vmem>>, vector<568x128xbf16>
    %cst_11 = arith.constant dense<0.000000e+00> : vector<568x128xf32>
    %10 = tpu.matmul %9, %0, %cst_11 {dimension_numbers = #tpu.dot_dimension_numbers<[1], [0], [0], [1], [0, 0, 1, 1], [], []>} : vector<568x128xbf16>, vector<128x128xbf16>, vector<568x128xf32> -> vector<568x128xf32>
    %11 = arith.maximumf %8, %10 : vector<568x128xf32>
    %c0_12 = arith.constant 0 : index
    %c0_13 = arith.constant 0 : index
    %12 = vector.load %arg6[%c0_12, %c0_13] : memref<1x128xf32, #tpu.memory_space<vmem>>, vector<1x128xf32>
    %13 = vector.broadcast %12 : vector<1x128xf32> to vector<568x128xf32>
    %14 = arith.addf %11, %13 : vector<568x128xf32>
    %cst_14 = arith.constant 0.000000e+00 : f32
    %15 = vector.broadcast %cst_14 : f32 to vector<568x128xf32>
    %16 = arith.cmpf oge, %14, %15 : vector<568x128xf32>
    %cst_15 = arith.constant 2.000000e-01 : f32
    %17 = vector.broadcast %cst_15 : f32 to vector<568x128xf32>
    %18 = arith.mulf %17, %14 : vector<568x128xf32>
    %19 = arith.select %16, %14, %18 : vector<568x128xi1>, vector<568x128xf32>
    %20 = arith.truncf %19 : vector<568x128xf32> to vector<568x128xbf16>
    %c0_16 = arith.constant 0 : index
    %c0_17 = arith.constant 0 : index
    %21 = vector.load %arg7[%c0_16, %c0_17] : memref<568x128xbf16, #tpu.memory_space<vmem>>, vector<568x128xbf16>
    tpu.vector_store %arg7[%c0_16, %c0_17], %20 {strides = array<i32>} : memref<568x128xbf16, #tpu.memory_space<vmem>>, vector<568x128xbf16>,
    return
  }
  func.func @transform_0(%arg0: i32) -> (i32, i32) {
    %c0_i32 = arith.constant 0 : i32
    %c0_i32_0 = arith.constant 0 : i32
    return %arg0, %c0_i32 : i32, i32
  }
  func.func @transform_1(%arg0: i32) -> (i32, i32) {
    %c0_i32 = arith.constant 0 : i32
    %c0_i32_0 = arith.constant 0 : i32
    return %arg0, %c0_i32 : i32, i32
  }
  func.func @transform_2(%arg0: i32) -> (i32, i32) {
    %c0_i32 = arith.constant 0 : i32
    %c0_i32_0 = arith.constant 0 : i32
    return %arg0, %c0_i32 : i32, i32
  }
  func.func @transform_3(%arg0: i32) -> (i32, i32) {
    %c0_i32 = arith.constant 0 : i32
    %c0_i32_0 = arith.constant 0 : i32
    return %arg0, %c0_i32 : i32, i32
  }
  func.func @transform_4(%arg0: i32) -> (i32, i32) {
    %c0_i32 = arith.constant 0 : i32
    %c0_i32_0 = arith.constant 0 : i32
    %c0_i32_1 = arith.constant 0 : i32
    return %c0_i32, %c0_i32_0 : i32, i32
  }
  func.func @transform_5(%arg0: i32) -> (i32, i32) {
    %c0_i32 = arith.constant 0 : i32
    %c0_i32_0 = arith.constant 0 : i32
    %c0_i32_1 = arith.constant 0 : i32
    return %c0_i32, %c0_i32_0 : i32, i32
  }
  func.func @transform_6(%arg0: i32) -> (i32, i32) {
    %c0_i32 = arith.constant 0 : i32
    %c0_i32_0 = arith.constant 0 : i32
    return %arg0, %c0_i32 : i32, i32
  }
}

module attributes {stable_mosaic.version = 11 : i64} {
  func.func @conv_pool_kernel(%arg0: i32, %arg1: memref<152x512xbf16, #tpu.memory_space<vmem>>, %arg2: memref<152x512xbf16, #tpu.memory_space<vmem>>, %arg3: memref<152x512xbf16, #tpu.memory_space<vmem>>, %arg4: memref<152x512xbf16, #tpu.memory_space<vmem>>, %arg5: memref<512x128xbf16, #tpu.memory_space<vmem>>, %arg6: memref<1x128xf32, #tpu.memory_space<vmem>>, %arg7: memref<152x128xbf16, #tpu.memory_space<vmem>>) attributes {dimension_semantics = [#tpu.dimension_semantics<parallel>], iteration_bounds = array<i64: 4>, scalar_prefetch = 0 : i64, scratch_operands = 0 : i64, tpu.core_type = #tpu.core_type<tc>, window_params = [{transform_indices = @transform_0, window_bounds = array<i64: 152, 512>}, {transform_indices = @transform_1, window_bounds = array<i64: 152, 512>}, {transform_indices = @transform_2, window_bounds = array<i64: 152, 512>}, {transform_indices = @transform_3, window_bounds = array<i64: 152, 512>}, {pipeline_mode = #tpu.pipeline_mode<synchronous>, transform_indices = @transform_4, window_bounds = array<i64: 512, 128>}, {pipeline_mode = #tpu.pipeline_mode<synchronous>, transform_indices = @transform_5, window_bounds = array<i64: 1, 128>}, {transform_indices = @transform_6, window_bounds = array<i64: 152, 128>}]} {
    %c0 = arith.constant 0 : index
    %c0_0 = arith.constant 0 : index
    %0 = vector.load %arg5[%c0, %c0_0] : memref<512x128xbf16, #tpu.memory_space<vmem>>, vector<512x128xbf16>
    %c0_1 = arith.constant 0 : index
    %c0_2 = arith.constant 0 : index
    %1 = vector.load %arg1[%c0_1, %c0_2] : memref<152x512xbf16, #tpu.memory_space<vmem>>, vector<152x512xbf16>
    %cst = arith.constant dense<0.000000e+00> : vector<152x128xf32>
    %2 = tpu.matmul %1, %0, %cst {dimension_numbers = #tpu.dot_dimension_numbers<[1], [0], [0], [1], [0, 0, 1, 1], [], []>} : vector<152x512xbf16>, vector<512x128xbf16>, vector<152x128xf32> -> vector<152x128xf32>
    %c0_3 = arith.constant 0 : index
    %c0_4 = arith.constant 0 : index
    %3 = vector.load %arg2[%c0_3, %c0_4] : memref<152x512xbf16, #tpu.memory_space<vmem>>, vector<152x512xbf16>
    %cst_5 = arith.constant dense<0.000000e+00> : vector<152x128xf32>
    %4 = tpu.matmul %3, %0, %cst_5 {dimension_numbers = #tpu.dot_dimension_numbers<[1], [0], [0], [1], [0, 0, 1, 1], [], []>} : vector<152x512xbf16>, vector<512x128xbf16>, vector<152x128xf32> -> vector<152x128xf32>
    %5 = arith.maximumf %2, %4 : vector<152x128xf32>
    %c0_6 = arith.constant 0 : index
    %c0_7 = arith.constant 0 : index
    %6 = vector.load %arg3[%c0_6, %c0_7] : memref<152x512xbf16, #tpu.memory_space<vmem>>, vector<152x512xbf16>
    %cst_8 = arith.constant dense<0.000000e+00> : vector<152x128xf32>
    %7 = tpu.matmul %6, %0, %cst_8 {dimension_numbers = #tpu.dot_dimension_numbers<[1], [0], [0], [1], [0, 0, 1, 1], [], []>} : vector<152x512xbf16>, vector<512x128xbf16>, vector<152x128xf32> -> vector<152x128xf32>
    %8 = arith.maximumf %5, %7 : vector<152x128xf32>
    %c0_9 = arith.constant 0 : index
    %c0_10 = arith.constant 0 : index
    %9 = vector.load %arg4[%c0_9, %c0_10] : memref<152x512xbf16, #tpu.memory_space<vmem>>, vector<152x512xbf16>
    %cst_11 = arith.constant dense<0.000000e+00> : vector<152x128xf32>
    %10 = tpu.matmul %9, %0, %cst_11 {dimension_numbers = #tpu.dot_dimension_numbers<[1], [0], [0], [1], [0, 0, 1, 1], [], []>} : vector<152x512xbf16>, vector<512x128xbf16>, vector<152x128xf32> -> vector<152x128xf32>
    %11 = arith.maximumf %8, %10 : vector<152x128xf32>
    %c0_12 = arith.constant 0 : index
    %c0_13 = arith.constant 0 : index
    %12 = vector.load %arg6[%c0_12, %c0_13] : memref<1x128xf32, #tpu.memory_space<vmem>>, vector<1x128xf32>
    %13 = vector.broadcast %12 : vector<1x128xf32> to vector<152x128xf32>
    %14 = arith.addf %11, %13 : vector<152x128xf32>
    %cst_14 = arith.constant 0.000000e+00 : f32
    %15 = vector.broadcast %cst_14 : f32 to vector<152x128xf32>
    %16 = arith.cmpf oge, %14, %15 : vector<152x128xf32>
    %cst_15 = arith.constant 2.000000e-01 : f32
    %17 = vector.broadcast %cst_15 : f32 to vector<152x128xf32>
    %18 = arith.mulf %17, %14 : vector<152x128xf32>
    %19 = arith.select %16, %14, %18 : vector<152x128xi1>, vector<152x128xf32>
    %20 = arith.truncf %19 : vector<152x128xf32> to vector<152x128xbf16>
    %c0_16 = arith.constant 0 : index
    %c0_17 = arith.constant 0 : index
    %21 = vector.load %arg7[%c0_16, %c0_17] : memref<152x128xbf16, #tpu.memory_space<vmem>>, vector<152x128xbf16>
    tpu.vector_store %arg7[%c0_16, %c0_17], %20 {strides = array<i32>} : memref<152x128xbf16, #tpu.memory_space<vmem>>, vector<152x128xbf16>,
    return
  }
  func.func @transform_0(%arg0: i32) -> (i32, i32) {
    %c0_i32 = arith.constant 0 : i32
    %c0_i32_0 = arith.constant 0 : i32
    return %arg0, %c0_i32 : i32, i32
  }
  func.func @transform_1(%arg0: i32) -> (i32, i32) {
    %c0_i32 = arith.constant 0 : i32
    %c0_i32_0 = arith.constant 0 : i32
    return %arg0, %c0_i32 : i32, i32
  }
  func.func @transform_2(%arg0: i32) -> (i32, i32) {
    %c0_i32 = arith.constant 0 : i32
    %c0_i32_0 = arith.constant 0 : i32
    return %arg0, %c0_i32 : i32, i32
  }
  func.func @transform_3(%arg0: i32) -> (i32, i32) {
    %c0_i32 = arith.constant 0 : i32
    %c0_i32_0 = arith.constant 0 : i32
    return %arg0, %c0_i32 : i32, i32
  }
  func.func @transform_4(%arg0: i32) -> (i32, i32) {
    %c0_i32 = arith.constant 0 : i32
    %c0_i32_0 = arith.constant 0 : i32
    %c0_i32_1 = arith.constant 0 : i32
    return %c0_i32, %c0_i32_0 : i32, i32
  }
  func.func @transform_5(%arg0: i32) -> (i32, i32) {
    %c0_i32 = arith.constant 0 : i32
    %c0_i32_0 = arith.constant 0 : i32
    %c0_i32_1 = arith.constant 0 : i32
    return %c0_i32, %c0_i32_0 : i32, i32
  }
  func.func @transform_6(%arg0: i32) -> (i32, i32) {
    %c0_i32 = arith.constant 0 : i32
    %c0_i32_0 = arith.constant 0 : i32
    return %arg0, %c0_i32 : i32, i32
  }
}

module attributes {stable_mosaic.version = 11 : i64} {
  func.func @conv_pool_kernel(%arg0: i32, %arg1: memref<80x640xbf16, #tpu.memory_space<vmem>>, %arg2: memref<80x640xbf16, #tpu.memory_space<vmem>>, %arg3: memref<80x640xbf16, #tpu.memory_space<vmem>>, %arg4: memref<80x640xbf16, #tpu.memory_space<vmem>>, %arg5: memref<640x128xbf16, #tpu.memory_space<vmem>>, %arg6: memref<1x128xf32, #tpu.memory_space<vmem>>, %arg7: memref<80x128xbf16, #tpu.memory_space<vmem>>) attributes {dimension_semantics = [#tpu.dimension_semantics<parallel>], iteration_bounds = array<i64: 2>, scalar_prefetch = 0 : i64, scratch_operands = 0 : i64, tpu.core_type = #tpu.core_type<tc>, window_params = [{transform_indices = @transform_0, window_bounds = array<i64: 80, 640>}, {transform_indices = @transform_1, window_bounds = array<i64: 80, 640>}, {transform_indices = @transform_2, window_bounds = array<i64: 80, 640>}, {transform_indices = @transform_3, window_bounds = array<i64: 80, 640>}, {pipeline_mode = #tpu.pipeline_mode<synchronous>, transform_indices = @transform_4, window_bounds = array<i64: 640, 128>}, {pipeline_mode = #tpu.pipeline_mode<synchronous>, transform_indices = @transform_5, window_bounds = array<i64: 1, 128>}, {transform_indices = @transform_6, window_bounds = array<i64: 80, 128>}]} {
    %c0 = arith.constant 0 : index
    %c0_0 = arith.constant 0 : index
    %0 = vector.load %arg5[%c0, %c0_0] : memref<640x128xbf16, #tpu.memory_space<vmem>>, vector<640x128xbf16>
    %c0_1 = arith.constant 0 : index
    %c0_2 = arith.constant 0 : index
    %1 = vector.load %arg1[%c0_1, %c0_2] : memref<80x640xbf16, #tpu.memory_space<vmem>>, vector<80x640xbf16>
    %cst = arith.constant dense<0.000000e+00> : vector<80x128xf32>
    %2 = tpu.matmul %1, %0, %cst {dimension_numbers = #tpu.dot_dimension_numbers<[1], [0], [0], [1], [0, 0, 1, 1], [], []>} : vector<80x640xbf16>, vector<640x128xbf16>, vector<80x128xf32> -> vector<80x128xf32>
    %c0_3 = arith.constant 0 : index
    %c0_4 = arith.constant 0 : index
    %3 = vector.load %arg2[%c0_3, %c0_4] : memref<80x640xbf16, #tpu.memory_space<vmem>>, vector<80x640xbf16>
    %cst_5 = arith.constant dense<0.000000e+00> : vector<80x128xf32>
    %4 = tpu.matmul %3, %0, %cst_5 {dimension_numbers = #tpu.dot_dimension_numbers<[1], [0], [0], [1], [0, 0, 1, 1], [], []>} : vector<80x640xbf16>, vector<640x128xbf16>, vector<80x128xf32> -> vector<80x128xf32>
    %5 = arith.maximumf %2, %4 : vector<80x128xf32>
    %c0_6 = arith.constant 0 : index
    %c0_7 = arith.constant 0 : index
    %6 = vector.load %arg3[%c0_6, %c0_7] : memref<80x640xbf16, #tpu.memory_space<vmem>>, vector<80x640xbf16>
    %cst_8 = arith.constant dense<0.000000e+00> : vector<80x128xf32>
    %7 = tpu.matmul %6, %0, %cst_8 {dimension_numbers = #tpu.dot_dimension_numbers<[1], [0], [0], [1], [0, 0, 1, 1], [], []>} : vector<80x640xbf16>, vector<640x128xbf16>, vector<80x128xf32> -> vector<80x128xf32>
    %8 = arith.maximumf %5, %7 : vector<80x128xf32>
    %c0_9 = arith.constant 0 : index
    %c0_10 = arith.constant 0 : index
    %9 = vector.load %arg4[%c0_9, %c0_10] : memref<80x640xbf16, #tpu.memory_space<vmem>>, vector<80x640xbf16>
    %cst_11 = arith.constant dense<0.000000e+00> : vector<80x128xf32>
    %10 = tpu.matmul %9, %0, %cst_11 {dimension_numbers = #tpu.dot_dimension_numbers<[1], [0], [0], [1], [0, 0, 1, 1], [], []>} : vector<80x640xbf16>, vector<640x128xbf16>, vector<80x128xf32> -> vector<80x128xf32>
    %11 = arith.maximumf %8, %10 : vector<80x128xf32>
    %c0_12 = arith.constant 0 : index
    %c0_13 = arith.constant 0 : index
    %12 = vector.load %arg6[%c0_12, %c0_13] : memref<1x128xf32, #tpu.memory_space<vmem>>, vector<1x128xf32>
    %13 = vector.broadcast %12 : vector<1x128xf32> to vector<80x128xf32>
    %14 = arith.addf %11, %13 : vector<80x128xf32>
    %cst_14 = arith.constant 0.000000e+00 : f32
    %15 = vector.broadcast %cst_14 : f32 to vector<80x128xf32>
    %16 = arith.cmpf oge, %14, %15 : vector<80x128xf32>
    %cst_15 = arith.constant 2.000000e-01 : f32
    %17 = vector.broadcast %cst_15 : f32 to vector<80x128xf32>
    %18 = arith.mulf %17, %14 : vector<80x128xf32>
    %19 = arith.select %16, %14, %18 : vector<80x128xi1>, vector<80x128xf32>
    %20 = arith.truncf %19 : vector<80x128xf32> to vector<80x128xbf16>
    %c0_16 = arith.constant 0 : index
    %c0_17 = arith.constant 0 : index
    %21 = vector.load %arg7[%c0_16, %c0_17] : memref<80x128xbf16, #tpu.memory_space<vmem>>, vector<80x128xbf16>
    tpu.vector_store %arg7[%c0_16, %c0_17], %20 {strides = array<i32>} : memref<80x128xbf16, #tpu.memory_space<vmem>>, vector<80x128xbf16>,
    return
  }
  func.func @transform_0(%arg0: i32) -> (i32, i32) {
    %c0_i32 = arith.constant 0 : i32
    %c0_i32_0 = arith.constant 0 : i32
    return %arg0, %c0_i32 : i32, i32
  }
  func.func @transform_1(%arg0: i32) -> (i32, i32) {
    %c0_i32 = arith.constant 0 : i32
    %c0_i32_0 = arith.constant 0 : i32
    return %arg0, %c0_i32 : i32, i32
  }
  func.func @transform_2(%arg0: i32) -> (i32, i32) {
    %c0_i32 = arith.constant 0 : i32
    %c0_i32_0 = arith.constant 0 : i32
    return %arg0, %c0_i32 : i32, i32
  }
  func.func @transform_3(%arg0: i32) -> (i32, i32) {
    %c0_i32 = arith.constant 0 : i32
    %c0_i32_0 = arith.constant 0 : i32
    return %arg0, %c0_i32 : i32, i32
  }
  func.func @transform_4(%arg0: i32) -> (i32, i32) {
    %c0_i32 = arith.constant 0 : i32
    %c0_i32_0 = arith.constant 0 : i32
    %c0_i32_1 = arith.constant 0 : i32
    return %c0_i32, %c0_i32_0 : i32, i32
  }
  func.func @transform_5(%arg0: i32) -> (i32, i32) {
    %c0_i32 = arith.constant 0 : i32
    %c0_i32_0 = arith.constant 0 : i32
    %c0_i32_1 = arith.constant 0 : i32
    return %c0_i32, %c0_i32_0 : i32, i32
  }
  func.func @transform_6(%arg0: i32) -> (i32, i32) {
    %c0_i32 = arith.constant 0 : i32
    %c0_i32_0 = arith.constant 0 : i32
    return %arg0, %c0_i32 : i32, i32
  }
}

module attributes {stable_mosaic.version = 11 : i64} {
  func.func @fc_fused_kernel(%arg0: memref<8x4864xbf16, #tpu.memory_space<vmem>>, %arg1: memref<4864x512xbf16, #tpu.memory_space<vmem>>, %arg2: memref<1x512xf32, #tpu.memory_space<vmem>>, %arg3: memref<512x384xbf16, #tpu.memory_space<vmem>>, %arg4: memref<1x384xf32, #tpu.memory_space<vmem>>, %arg5: memref<8x384xf32, #tpu.memory_space<vmem>>) attributes {dimension_semantics = [], scalar_prefetch = 0 : i64, scratch_operands = 0 : i64, tpu.core_type = #tpu.core_type<tc>} {
    %c0 = arith.constant 0 : index
    %c0_0 = arith.constant 0 : index
    %0 = vector.load %arg0[%c0, %c0_0] : memref<8x4864xbf16, #tpu.memory_space<vmem>>, vector<8x4864xbf16>
    %c0_1 = arith.constant 0 : index
    %c0_2 = arith.constant 0 : index
    %1 = vector.load %arg1[%c0_1, %c0_2] : memref<4864x512xbf16, #tpu.memory_space<vmem>>, vector<4864x512xbf16>
    %cst = arith.constant dense<0.000000e+00> : vector<8x512xf32>
    %2 = tpu.matmul %0, %1, %cst {dimension_numbers = #tpu.dot_dimension_numbers<[1], [0], [0], [1], [0, 0, 1, 1], [], []>} : vector<8x4864xbf16>, vector<4864x512xbf16>, vector<8x512xf32> -> vector<8x512xf32>
    %c0_3 = arith.constant 0 : index
    %c0_4 = arith.constant 0 : index
    %3 = vector.load %arg2[%c0_3, %c0_4] : memref<1x512xf32, #tpu.memory_space<vmem>>, vector<1x512xf32>
    %4 = vector.broadcast %3 : vector<1x512xf32> to vector<8x512xf32>
    %5 = arith.addf %2, %4 : vector<8x512xf32>
    %6 = arith.truncf %5 : vector<8x512xf32> to vector<8x512xbf16>
    %c0_5 = arith.constant 0 : index
    %c0_6 = arith.constant 0 : index
    %7 = vector.load %arg3[%c0_5, %c0_6] : memref<512x384xbf16, #tpu.memory_space<vmem>>, vector<512x384xbf16>
    %cst_7 = arith.constant dense<0.000000e+00> : vector<8x384xf32>
    %8 = tpu.matmul %6, %7, %cst_7 {dimension_numbers = #tpu.dot_dimension_numbers<[1], [0], [0], [1], [0, 0, 1, 1], [], []>} : vector<8x512xbf16>, vector<512x384xbf16>, vector<8x384xf32> -> vector<8x384xf32>
    %c0_8 = arith.constant 0 : index
    %c0_9 = arith.constant 0 : index
    %9 = vector.load %arg4[%c0_8, %c0_9] : memref<1x384xf32, #tpu.memory_space<vmem>>, vector<1x384xf32>
    %10 = vector.broadcast %9 : vector<1x384xf32> to vector<8x384xf32>
    %11 = arith.addf %8, %10 : vector<8x384xf32>
    %c0_10 = arith.constant 0 : index
    %c0_11 = arith.constant 0 : index
    %12 = vector.load %arg5[%c0_10, %c0_11] : memref<8x384xf32, #tpu.memory_space<vmem>>, vector<8x384xf32>
    tpu.vector_store %arg5[%c0_10, %c0_11], %11 {strides = array<i32>} : memref<8x384xf32, #tpu.memory_space<vmem>>, vector<8x384xf32>,
    return
  }
}

</mosaic_0001>

<bundles_post_ra>
// kernel: convnet_forward.4
= control target key start
LH: loop header
LB: loop body
LE: loop exit
PB: predicated region body
PF: predicated region fallthrough
CT: control target
= control target key end

     0   :  { %s5669_s21 = smov 0   ;;  %s5671_s22 = smov 0   ;;  %s6946_s0 = inlined_call_operand.vmem [shape: bf16[2250,128], index: 0, kind: input, shape index: {}]   ;;  %s6947_s1 = inlined_call_operand.vmem [shape: bf16[2250,128], index: 1, kind: input, shape index: {}]   ;;  %s6948_s2 = inlined_call_operand.vmem [shape: bf16[2250,128], index: 2, kind: input, shape index: {}]   ;;  %s6949_s3 = inlined_call_operand.vmem [shape: bf16[2250,128], index: 3, kind: input, shape index: {}]   ;;  %s6950_s4 = inlined_call_operand.vmem [shape: bf16[128,128], index: 4, kind: input, shape index: {}]   ;;  %s6951_s5 = inlined_call_operand.vmem [shape: f32[1,128], index: 5, kind: input, shape index: {}]   ;;  %s6952_s6 = inlined_call_operand.vmem [shape: bf16[2250,128], index: 6, kind: output, shape index: {}]  }
   0x1   :  { %s5673_s23 = smov 0  }
   0x2 LB: > { %s5682_s24 = sadd.s32 4294967295, %s5600_s23   ;;  %s5684_s25 = sadd.s32 1, %s5600_s23   ;;  %s5600_s23 = sphi %s5673_s23, %s7315_s23   ;;  %s5596_s22 = sphi %s5671_s22, %s7314_s22   ;;  %s5592_s21 = sphi %s5669_s21, %s7313_s21  }
   0x3   : > { %s166_s26 = ssub.s32 %s5600_s23, %s5684_s25  ;;  %s169_s27 = sadd.s32 1, %s5596_s22 }
   0x4   : > { %p167_p0 = scmp.eq.s32.totalorder %s166_s26, 0  ;;  %p179_p1 = scmp.ne.s32.totalorder %s5596_s22, %s5592_s21 }
   0x5   : > { %p180_p2 = scmp.eq.s32.totalorder %s5682_s24, 3  ;;  %p4249_p3 = scmp.ge.s32.totalorder %s5600_s23, 1 }
   0x6   : > { %s5692_s28 = scalar_select %p167_p0, %s5596_s22, %s169_s27  }
   0x7   : > { %p5694_p4 = por %p180_p2, %p179_p1  ;;  %p278_p5 = scmp.lt.s32.totalorder %s5600_s23, 5 }
   0x9   : > { %p279_p6 = pnand %p4249_p3, %p278_p5 }
   0xb   : > { %282 = sbr.rel (%p279_p6) target bundleno = 649 (0x289), region = 44 }
  0x12   : > { %v5393_v0 = vld [vmem:[%s6950_s4] sm:$0xff]   ;;  %s5702_s8 = smul.u32 71, %s5682_s24  ;;  %v5707_v1 = vld [vmem:[%s6950_s4 + $0x8] sm:$0xff]   ;;  %v5715_v2 = vld [vmem:[%s6950_s4 + $0x10] sm:$0xff]  }
  0x13   : > { %4952 = vmatprep.subr.bf16.mxu0 %v5393_v0  ;;  %5040 = vmatprep.subr.bf16.mxu1 %v5393_v0  ;;  %v5725_v3 = vld [vmem:[%s6950_s4 + $0x18] sm:$0xff]   ;;  %v5750_v6 = vld [vmem:[%s6950_s4 + $0x20] sm:$0xff]   ;;  %v5759_v7 = vld [vmem:[%s6950_s4 + $0x28] sm:$0xff]   ;;  %s4564_s10 = smul.u32 (%p5694_p4), 284, %s5682_s24 }
  0x14   : > { %p343_p7 = scmp.lt.s32.totalorder %s5702_s8, 281  ;;  %4953 = vmatpush3.bf16.msra.mxu0 %v5393_v0  ;;  %5041 = vmatpush3.bf16.msra.mxu1 %v5393_v0  ;;  %v5768_v8 = vld [vmem:[%s6950_s4 + $0x30] sm:$0xff]   ;;  %v5777_v9 = vld [vmem:[%s6950_s4 + $0x38] sm:$0xff]   ;;  %s3752_s9 = ssub.s32 (%p5694_p4), 282, %s5702_s8 }
  0x15   : > { %4954 = vmatprep.subr.bf16.mxu0 %v5707_v1  ;;  %5042 = vmatprep.subr.bf16.mxu1 %v5707_v1  ;;  %p3753_p8 = scmp.lt.s32.totalorder (%p5694_p4), %s3752_s9, 71 }
  0x16   : > { %s344_s13 = scalar_select %p343_p7, %s5702_s8, 281 }
  0x18   : > { %s5718_s14 = sshll.u32 %s344_s13, 2  ;;  %4955 = vmatpush3.bf16.msra.mxu0 %v5707_v1  ;;  %5043 = vmatpush3.bf16.msra.mxu1 %v5707_v1  ;;  %s6754_s13 = scalar_lea.vmem (%p5694_p4), %s6952_s6, %s4564_s10  }
  0x19   : > { %s5731_s19 = scalar_lea.vmem %s6946_s0, %s5718_s14  ;;  %s5737_s26 = scalar_lea.vmem %s6947_s1, %s5718_s14  ;;  %4956 = vmatprep.subr.bf16.mxu0 %v5715_v2  ;;  %5044 = vmatprep.subr.bf16.mxu1 %v5715_v2 }
  0x1a   : > { %v5401_v4 = vld [vmem:[%s5731_s19] sm:$0xff]   ;;  %v5403_v10 = vld [vmem:[%s5731_s19 + $0x8] sm:$0xff]   ;;  %v5405_v12 = vld [vmem:[%s5731_s19 + $0x10] sm:$0xff]   ;;  %s5844_s17 = scalar_lea.vmem %s6948_s2, %s5718_s14  ;;  %s5851_s23 = scalar_lea.vmem %s6949_s3, %s5718_s14 }
  0x1b   : > { %v5402_v5 = vld [vmem:[%s5737_s26] sm:$0xff]   ;;  %4968 = vmatprep.mubr.bf16.mxu0 %v5401_v4  ;;  %v5404_v11 = vld [vmem:[%s5737_s26 + $0x8] sm:$0xff]   ;;  %v5406_v13 = vld [vmem:[%s5737_s26 + $0x10] sm:$0xff]  }
  0x1c   : > { %4957 = vmatpush3.bf16.msra.mxu0 %v5715_v2  ;;  %5045 = vmatpush3.bf16.msra.mxu1 %v5715_v2  ;;  %v5407_v14 = vld [vmem:[%s5731_s19 + $0x18] sm:$0xff]   ;;  %v5409_v16 = vld [vmem:[%s5731_s19 + $0x20] sm:$0xff]   ;;  %v5411_v18 = vld [vmem:[%s5731_s19 + $0x28] sm:$0xff]  }
  0x1d   : > { %4958 = vmatprep.subr.bf16.mxu0 %v5725_v3  ;;  %5046 = vmatprep.subr.bf16.mxu1 %v5725_v3  ;;  %v5408_v15 = vld [vmem:[%s5737_s26 + $0x18] sm:$0xff]   ;;  %v5410_v17 = vld [vmem:[%s5737_s26 + $0x20] sm:$0xff]   ;;  %v5412_v19 = vld [vmem:[%s5737_s26 + $0x28] sm:$0xff]  }
  0x1e   : > { %5056 = vmatprep.mubr.bf16.mxu1 %v5402_v5  ;;  %v5413_v20 = vld [vmem:[%s5731_s19 + $0x30] sm:$0xff]   ;;  %v5415_v22 = vld [vmem:[%s5731_s19 + $0x38] sm:$0xff]   ;;  %v5417_v24 = vld [vmem:[%s5731_s19 + $0x40] sm:$0xff]  }
  0x1f   : > { %v5414_v21 = vld [vmem:[%s5737_s26 + $0x30] sm:$0xff]   ;;  %v5416_v23 = vld [vmem:[%s5737_s26 + $0x38] sm:$0xff]   ;;  %v5418_v25 = vld [vmem:[%s5737_s26 + $0x40] sm:$0xff]  }
  0x20   : > { %4959 = vmatpush3.bf16.msra.mxu0 %v5725_v3  ;;  %5047 = vmatpush3.bf16.msra.mxu1 %v5725_v3  ;;  %v5419_v26 = vld [vmem:[%s5731_s19 + $0x48] sm:$0xff]   ;;  %v5421_v28 = vld [vmem:[%s5731_s19 + $0x50] sm:$0xff]   ;;  %v5423_v30 = vld [vmem:[%s5731_s19 + $0x58] sm:$0xff]  }
  0x21   : > { %4960 = vmatprep.subr.bf16.mxu0 %v5750_v6  ;;  %5048 = vmatprep.subr.bf16.mxu1 %v5750_v6  ;;  %v5420_v27 = vld [vmem:[%s5737_s26 + $0x48] sm:$0xff]   ;;  %v5422_v29 = vld [vmem:[%s5737_s26 + $0x50] sm:$0xff]   ;;  %v5424_v31 = vld [vmem:[%s5737_s26 + $0x58] sm:$0xff]  }
  0x22   : > { %v5425_v32 = vld [vmem:[%s5731_s19 + $0x60] sm:$0xff]   ;;  %v5427_v34 = vld [vmem:[%s5731_s19 + $0x68] sm:$0xff]   ;;  %v5429_v36 = vld [vmem:[%s5731_s19 + $0x70] sm:$0xff]  }
  0x23   : > { %v5426_v33 = vld [vmem:[%s5737_s26 + $0x60] sm:$0xff]   ;;  %v5428_v35 = vld [vmem:[%s5737_s26 + $0x68] sm:$0xff]   ;;  %v5430_v37 = vld [vmem:[%s5737_s26 + $0x70] sm:$0xff]  }
  0x24   : > { %4961 = vmatpush3.bf16.msra.mxu0 %v5750_v6  ;;  %5049 = vmatpush3.bf16.msra.mxu1 %v5750_v6  ;;  %v5431_v38 = vld [vmem:[%s5731_s19 + $0x78] sm:$0xff]   ;;  %v5433_v40 = vld [vmem:[%s5731_s19 + $0x80] sm:$0xff]   ;;  %v5435_v42 = vld [vmem:[%s5731_s19 + $0x88] sm:$0xff]  }
  0x25   : > { %4962 = vmatprep.subr.bf16.mxu0 %v5759_v7  ;;  %5050 = vmatprep.subr.bf16.mxu1 %v5759_v7  ;;  %v5432_v39 = vld [vmem:[%s5737_s26 + $0x78] sm:$0xff]   ;;  %v5434_v41 = vld [vmem:[%s5737_s26 + $0x80] sm:$0xff]   ;;  %v5436_v43 = vld [vmem:[%s5737_s26 + $0x88] sm:$0xff]  }
  0x26   : > { %v5437_v44 = vld [vmem:[%s5731_s19 + $0x90] sm:$0xff]   ;;  %v5439_v46 = vld [vmem:[%s5731_s19 + $0x98] sm:$0xff]   ;;  %v5441_v48 = vld [vmem:[%s5731_s19 + $0xa0] sm:$0xff]  }
  0x27   : > { %v5438_v45 = vld [vmem:[%s5737_s26 + $0x90] sm:$0xff]   ;;  %v5440_v47 = vld [vmem:[%s5737_s26 + $0x98] sm:$0xff]   ;;  %v5442_v49 = vld [vmem:[%s5737_s26 + $0xa0] sm:$0xff]  }
  0x28   : > { %4963 = vmatpush3.bf16.msra.mxu0 %v5759_v7  ;;  %5051 = vmatpush3.bf16.msra.mxu1 %v5759_v7  ;;  %v5443_v50 = vld [vmem:[%s5731_s19 + $0xa8] sm:$0xff]   ;;  %v5445_v52 = vld [vmem:[%s5731_s19 + $0xb0] sm:$0xff]   ;;  %v5447_v54 = vld [vmem:[%s5731_s19 + $0xb8] sm:$0xff]  }
  0x29   : > { %4964 = vmatprep.subr.bf16.mxu0 %v5768_v8  ;;  %5052 = vmatprep.subr.bf16.mxu1 %v5768_v8  ;;  %v5444_v51 = vld [vmem:[%s5737_s26 + $0xa8] sm:$0xff]   ;;  %v5446_v53 = vld [vmem:[%s5737_s26 + $0xb0] sm:$0xff]   ;;  %v5448_v55 = vld [vmem:[%s5737_s26 + $0xb8] sm:$0xff]  }
  0x2a   : > { %v5449_v56 = vld [vmem:[%s5731_s19 + $0xc0] sm:$0xff]   ;;  %v5451_v58 = vld [vmem:[%s5731_s19 + $0xc8] sm:$0xff]   ;;  %v5453_v60 = vld [vmem:[%s5731_s19 + $0xd0] sm:$0xff]  }
  0x2b   : > { %v5450_v57 = vld [vmem:[%s5737_s26 + $0xc0] sm:$0xff]   ;;  %v5452_v59 = vld [vmem:[%s5737_s26 + $0xc8] sm:$0xff]   ;;  %v5454_v61 = vld [vmem:[%s5737_s26 + $0xd0] sm:$0xff]  }
  0x2c   : > { %4965 = vmatpush3.bf16.msra.mxu0 %v5768_v8  ;;  %5053 = vmatpush3.bf16.msra.mxu1 %v5768_v8  ;;  %v5455_v62 = vld [vmem:[%s5731_s19 + $0xd8] sm:$0xff]   ;;  %v5461_v4 = vld [vmem:[%s5731_s19 + $0xf0] sm:$0xff]  }
  0x2d   : > { %4966 = vmatprep.subr.bf16.mxu0 %v5777_v9  ;;  %5054 = vmatprep.subr.bf16.mxu1 %v5777_v9  ;;  %v5456_v63 = vld [vmem:[%s5737_s26 + $0xd8] sm:$0xff]   ;;  %v5462_v5 = vld [vmem:[%s5737_s26 + $0xf0] sm:$0xff]  }
  0x30   : > { %4967 = vmatpush3.bf16.msra.mxu0 %v5777_v9  ;;  %5055 = vmatpush3.bf16.msra.mxu1 %v5777_v9 }
  0x31   : > { %5128 = vmatprep.subr.bf16.mxu0 %v5393_v0  ;;  %5216 = vmatprep.subr.bf16.mxu1 %v5393_v0 }
  0x33   : > { %4969 = vmatmul.mubr.bf16.vlgmr.msra.gmra.mrb[0].mxu0 %v5403_v10  ;;  %5057 = vmatmul.mubr.bf16.vlgmr.msra.gmra.mrb[0].mxu1 %v5404_v11  ;;  %v5467_v10 = vld [vmem:[%s5731_s19 + $0x108] sm:$0xff]  }
  0x34   : > { %5129 = vmatpush3.bf16.msra.mxu0 %v5393_v0  ;;  %5217 = vmatpush3.bf16.msra.mxu1 %v5393_v0  ;;  %v5457_v0 = vld [vmem:[%s5731_s19 + $0xe0] sm:$0xff]   ;;  %v5468_v11 = vld [vmem:[%s5737_s26 + $0x108] sm:$0xff]  }
  0x35   : > { %4972 = vmatprep.mubr.bf16.mxu0 %v5405_v12  ;;  %5060 = vmatprep.mubr.bf16.mxu1 %v5406_v13  ;;  %v5469_v12 = vld [vmem:[%s5731_s19 + $0x110] sm:$0xff]  }
  0x36   : > { %5130 = vmatprep.subr.bf16.mxu0 %v5707_v1  ;;  %5218 = vmatprep.subr.bf16.mxu1 %v5707_v1  ;;  %v5470_v13 = vld [vmem:[%s5737_s26 + $0x110] sm:$0xff]  }
  0x38   : > { %5131 = vmatpush3.bf16.msra.mxu0 %v5707_v1  ;;  %5219 = vmatpush3.bf16.msra.mxu1 %v5707_v1  ;;  %v5458_v1 = vld [vmem:[%s5737_s26 + $0xe0] sm:$0xff]  }
  0x39   : > { %5132 = vmatprep.subr.bf16.mxu0 %v5715_v2  ;;  %5220 = vmatprep.subr.bf16.mxu1 %v5715_v2 }
  0x3b   : > { %4973 = vmatmul.mubr.bf16.gmra.mrb[4].mxu0 %v5407_v14  ;;  %5061 = vmatmul.mubr.bf16.gmra.mrb[4].mxu1 %v5408_v15  ;;  %v5471_v14 = vld [vmem:[%s5731_s19 + $0x118] ss:$0 sps:$4 sm:$0xff]  }
  0x3c   : > { %4976 = vmatprep.mubr.bf16.mxu0 %v5409_v16  ;;  %5064 = vmatprep.mubr.bf16.mxu1 %v5410_v17  ;;  %v5472_v15 = vld [vmem:[%s5737_s26 + $0x118] ss:$0 sps:$4 sm:$0xff]   ;;  %v5473_v16 = vld [vmem:[%s5844_s17] sm:$0xff]  }
  0x3d   : > { %5133 = vmatpush3.bf16.msra.mxu0 %v5715_v2  ;;  %5221 = vmatpush3.bf16.msra.mxu1 %v5715_v2  ;;  %v5459_v2 = vld [vmem:[%s5731_s19 + $0xe8] sm:$0xff]   ;;  %v5474_v17 = vld [vmem:[%s5851_s23] sm:$0xff]  }
  0x3e   : > { %5134 = vmatprep.subr.bf16.mxu0 %v5725_v3  ;;  %5222 = vmatprep.subr.bf16.mxu1 %v5725_v3 }
  0x41   : > { %5135 = vmatpush3.bf16.msra.mxu0 %v5725_v3  ;;  %5223 = vmatpush3.bf16.msra.mxu1 %v5725_v3  ;;  %v5460_v3 = vld [vmem:[%s5737_s26 + $0xe8] sm:$0xff]  }
  0x42   : > { %5136 = vmatprep.subr.bf16.mxu0 %v5750_v6  ;;  %5224 = vmatprep.subr.bf16.mxu1 %v5750_v6 }
  0x43   : > { %4977 = vmatmul.mubr.bf16.gmra.mrb[8].mxu0 %v5411_v18  ;;  %5065 = vmatmul.mubr.bf16.gmra.mrb[8].mxu1 %v5412_v19  ;;  %v5475_v18 = vld [vmem:[%s5844_s17 + $0x8] sm:$0xff]  }
  0x44   : > { %4980 = vmatprep.mubr.bf16.mxu0 %v5413_v20  ;;  %5068 = vmatprep.mubr.bf16.mxu1 %v5414_v21  ;;  %v5476_v19 = vld [vmem:[%s5851_s23 + $0x8] sm:$0xff]   ;;  %v5477_v20 = vld [vmem:[%s5844_s17 + $0x10] sm:$0xff]  }
  0x45   : > { %5137 = vmatpush3.bf16.msra.mxu0 %v5750_v6  ;;  %5225 = vmatpush3.bf16.msra.mxu1 %v5750_v6  ;;  %v5463_v6 = vld [vmem:[%s5731_s19 + $0xf8] sm:$0xff]   ;;  %v5478_v21 = vld [vmem:[%s5851_s23 + $0x10] sm:$0xff]  }
  0x46   : > { %5138 = vmatprep.subr.bf16.mxu0 %v5759_v7  ;;  %5226 = vmatprep.subr.bf16.mxu1 %v5759_v7 }
  0x49   : > { %5139 = vmatpush3.bf16.msra.mxu0 %v5759_v7  ;;  %5227 = vmatpush3.bf16.msra.mxu1 %v5759_v7  ;;  %v5464_v7 = vld [vmem:[%s5737_s26 + $0xf8] sm:$0xff]  }
  0x4a   : > { %5140 = vmatprep.subr.bf16.mxu0 %v5768_v8  ;;  %5228 = vmatprep.subr.bf16.mxu1 %v5768_v8 }
  0x4b   : > { %4981 = vmatmul.mubr.bf16.gmra.mrb[12].mxu0 %v5415_v22  ;;  %5069 = vmatmul.mubr.bf16.gmra.mrb[12].mxu1 %v5416_v23  ;;  %v5479_v22 = vld [vmem:[%s5844_s17 + $0x18] sm:$0xff]  }
  0x4c   : > { %4984 = vmatprep.mubr.bf16.mxu0 %v5417_v24  ;;  %5072 = vmatprep.mubr.bf16.mxu1 %v5418_v25  ;;  %v5480_v23 = vld [vmem:[%s5851_s23 + $0x18] sm:$0xff]   ;;  %v5481_v24 = vld [vmem:[%s5844_s17 + $0x20] sm:$0xff]  }
  0x4d   : > { %5141 = vmatpush3.bf16.msra.mxu0 %v5768_v8  ;;  %5229 = vmatpush3.bf16.msra.mxu1 %v5768_v8  ;;  %v5465_v8 = vld [vmem:[%s5731_s19 + $0x100] sm:$0xff]  }
  0x4e   : > { %5142 = vmatprep.subr.bf16.mxu0 %v5777_v9  ;;  %5230 = vmatprep.subr.bf16.mxu1 %v5777_v9  ;;  %v5482_v25 = vld [vmem:[%s5851_s23 + $0x20] sm:$0xff]  }
  0x51   : > { %5143 = vmatpush3.bf16.msra.mxu0 %v5777_v9  ;;  %5231 = vmatpush3.bf16.msra.mxu1 %v5777_v9  ;;  %v5466_v9 = vld [vmem:[%s5737_s26 + $0x100] sm:$0xff]   ;;  %s335_s26 = sand.u32 1, %s5592_s21  }
  0x52   : > { %s6413_s27 = smul.u32 284, %s335_s26 }
  0x53   : > { %4985 = vmatmul.mubr.bf16.gmra.mrb[16].mxu0 %v5419_v26  ;;  %5073 = vmatmul.mubr.bf16.gmra.mrb[16].mxu1 %v5420_v27  ;;  %v5483_v26 = vld [vmem:[%s5844_s17 + $0x28] sm:$0xff]  }
  0x54   : > { %4988 = vmatprep.mubr.bf16.mxu0 %v5421_v28  ;;  %5076 = vmatprep.mubr.bf16.mxu1 %v5422_v29  ;;  %v5484_v27 = vld [vmem:[%s5851_s23 + $0x28] sm:$0xff]   ;;  %v5485_v28 = vld [vmem:[%s5844_s17 + $0x30] sm:$0xff]   ;;  %s6432_s21 = scalar_lea.vmem [#allocation2], %s6413_s27  }
  0x55   : > { %v5486_v29 = vld [vmem:[%s5851_s23 + $0x30] sm:$0xff]  }
  0x5b   : > { %4989 = vmatmul.mubr.bf16.gmra.mrb[20].mxu0 %v5423_v30  ;;  %5077 = vmatmul.mubr.bf16.gmra.mrb[20].mxu1 %v5424_v31  ;;  %v5487_v30 = vld [vmem:[%s5844_s17 + $0x38] sm:$0xff]  }
  0x5c   : > { %4992 = vmatprep.mubr.bf16.mxu0 %v5425_v32  ;;  %5080 = vmatprep.mubr.bf16.mxu1 %v5426_v33  ;;  %v5488_v31 = vld [vmem:[%s5851_s23 + $0x38] sm:$0xff]   ;;  %v5489_v32 = vld [vmem:[%s5844_s17 + $0x40] sm:$0xff]  }
  0x5d   : > { %v5490_v33 = vld [vmem:[%s5851_s23 + $0x40] sm:$0xff]  }
  0x63   : > { %4993 = vmatmul.mubr.bf16.gmra.mrb[24].mxu0 %v5427_v34  ;;  %5081 = vmatmul.mubr.bf16.gmra.mrb[24].mxu1 %v5428_v35  ;;  %v5491_v34 = vld [vmem:[%s5844_s17 + $0x48] sm:$0xff]  }
  0x64   : > { %4996 = vmatprep.mubr.bf16.mxu0 %v5429_v36  ;;  %5084 = vmatprep.mubr.bf16.mxu1 %v5430_v37  ;;  %v5492_v35 = vld [vmem:[%s5851_s23 + $0x48] sm:$0xff]   ;;  %v5493_v36 = vld [vmem:[%s5844_s17 + $0x50] sm:$0xff]  }
  0x65   : > { %v5494_v37 = vld [vmem:[%s5851_s23 + $0x50] sm:$0xff]  }
  0x6b   : > { %4997 = vmatmul.mubr.bf16.gmra.mrb[28].mxu0 %v5431_v38  ;;  %5085 = vmatmul.mubr.bf16.gmra.mrb[28].mxu1 %v5432_v39  ;;  %v5495_v38 = vld [vmem:[%s5844_s17 + $0x58] sm:$0xff]  }
  0x6c   : > { %5000 = vmatprep.mubr.bf16.mxu0 %v5433_v40  ;;  %5088 = vmatprep.mubr.bf16.mxu1 %v5434_v41  ;;  %v5496_v39 = vld [vmem:[%s5851_s23 + $0x58] sm:$0xff]   ;;  %v5497_v40 = vld [vmem:[%s5844_s17 + $0x60] sm:$0xff]  }
  0x6d   : > { %v5498_v41 = vld [vmem:[%s5851_s23 + $0x60] sm:$0xff]  }
  0x73   : > { %5001 = vmatmul.mubr.bf16.gmra.mrb[32].mxu0 %v5435_v42  ;;  %5089 = vmatmul.mubr.bf16.gmra.mrb[32].mxu1 %v5436_v43  ;;  %v5499_v42 = vld [vmem:[%s5844_s17 + $0x68] sm:$0xff]  }
  0x74   : > { %5004 = vmatprep.mubr.bf16.mxu0 %v5437_v44  ;;  %5092 = vmatprep.mubr.bf16.mxu1 %v5438_v45  ;;  %v5500_v43 = vld [vmem:[%s5851_s23 + $0x68] sm:$0xff]   ;;  %v5501_v44 = vld [vmem:[%s5844_s17 + $0x70] sm:$0xff]  }
  0x75   : > { %v5502_v45 = vld [vmem:[%s5851_s23 + $0x70] sm:$0xff]  }
  0x7b   : > { %5005 = vmatmul.mubr.bf16.gmra.mrb[36].mxu0 %v5439_v46  ;;  %5093 = vmatmul.mubr.bf16.gmra.mrb[36].mxu1 %v5440_v47  ;;  %v5503_v46 = vld [vmem:[%s5844_s17 + $0x78] sm:$0xff]  }
  0x7c   : > { %5008 = vmatprep.mubr.bf16.mxu0 %v5441_v48  ;;  %5096 = vmatprep.mubr.bf16.mxu1 %v5442_v49  ;;  %v5504_v47 = vld [vmem:[%s5851_s23 + $0x78] sm:$0xff]   ;;  %v5505_v48 = vld [vmem:[%s5844_s17 + $0x80] sm:$0xff]  }
  0x7d   : > { %v5506_v49 = vld [vmem:[%s5851_s23 + $0x80] sm:$0xff]  }
  0x83   : > { %5009 = vmatmul.mubr.bf16.gmra.mrb[40].mxu0 %v5443_v50  ;;  %5097 = vmatmul.mubr.bf16.gmra.mrb[40].mxu1 %v5444_v51  ;;  %v5507_v50 = vld [vmem:[%s5844_s17 + $0x88] sm:$0xff]  }
  0x84   : > { %5012 = vmatprep.mubr.bf16.mxu0 %v5445_v52  ;;  %5100 = vmatprep.mubr.bf16.mxu1 %v5446_v53  ;;  %v5508_v51 = vld [vmem:[%s5851_s23 + $0x88] sm:$0xff]   ;;  %v5509_v52 = vld [vmem:[%s5844_s17 + $0x90] sm:$0xff]  }
  0x85   : > { %v5510_v53 = vld [vmem:[%s5851_s23 + $0x90] sm:$0xff]  }
  0x8b   : > { %5013 = vmatmul.mubr.bf16.gmra.mrb[44].mxu0 %v5447_v54  ;;  %5101 = vmatmul.mubr.bf16.gmra.mrb[44].mxu1 %v5448_v55 }
  0x8c   : > { %5016 = vmatprep.mubr.bf16.mxu0 %v5449_v56  ;;  %5104 = vmatprep.mubr.bf16.mxu1 %v5450_v57 }
  0x93   : > { %5017 = vmatmul.mubr.bf16.gmra.mrb[48].mxu0 %v5451_v58  ;;  %5105 = vmatmul.mubr.bf16.gmra.mrb[48].mxu1 %v5452_v59  ;;  %v5511_v59 = vld [vmem:[%s5844_s17 + $0x98] sm:$0xff]  }
  0x94   : > { %5020 = vmatprep.mubr.bf16.mxu0 %v5453_v60  ;;  %5108 = vmatprep.mubr.bf16.mxu1 %v5454_v61  ;;  %v5512_v60 = vld [vmem:[%s5851_s23 + $0x98] sm:$0xff]  }
  0x9b   : > { %5021 = vmatmul.mubr.bf16.gmra.mrb[52].mxu0 %v5455_v62  ;;  %5109 = vmatmul.mubr.bf16.gmra.mrb[52].mxu1 %v5456_v63 }
  0x9c   : > { %5024 = vmatprep.mubr.bf16.mxu0 %v5457_v0  ;;  %5112 = vmatprep.mubr.bf16.mxu1 %v5458_v1  ;;  %v5513_v0 = vld [vmem:[%s5844_s17 + $0xa0] sm:$0xff]  }
  0x9d   : > { %v5514_v1 = vld [vmem:[%s5851_s23 + $0xa0] sm:$0xff]  }
  0xa3   : > { %5025 = vmatmul.mubr.bf16.gmra.mrb[56].mxu0 %v5459_v2  ;;  %5113 = vmatmul.mubr.bf16.gmra.mrb[56].mxu1 %v5460_v3 }
  0xa4   : > { %5028 = vmatprep.mubr.bf16.mxu0 %v5461_v4  ;;  %5116 = vmatprep.mubr.bf16.mxu1 %v5462_v5 }
  0xab   : > { %5029 = vmatmul.mubr.bf16.gmra.mrb[60].mxu0 %v5463_v6  ;;  %5117 = vmatmul.mubr.bf16.gmra.mrb[60].mxu1 %v5464_v7 }
  0xac   : > { %5032 = vmatprep.mubr.bf16.mxu0 %v5465_v8  ;;  %5120 = vmatprep.mubr.bf16.mxu1 %v5466_v9  ;;  %v5536_v8 = vld [vmem:[%s5851_s23 + $0xf8] sm:$0xff]  }
  0xb3   : > { %5033 = vmatmul.mubr.bf16.gmra.mrb[64].mxu0 %v5467_v10  ;;  %5121 = vmatmul.mubr.bf16.gmra.mrb[64].mxu1 %v5468_v11  ;;  %v5515_v11 = vld [vmem:[%s5844_s17 + $0xa8] sm:$0xff]  }
  0xb4   : > { %5036 = vmatprep.mubr.bf16.mxu0 %v5469_v12  ;;  %5124 = vmatprep.mubr.bf16.mxu1 %v5470_v13  ;;  %v5516_v12 = vld [vmem:[%s5851_s23 + $0xa8] sm:$0xff]   ;;  %v5535_v13 = vld [vmem:[%s5844_s17 + $0xf8] sm:$0xff]  }
  0xbb   : > { %5037 = vmatmul.mubr.bf16.gmra.mrb[68].mxu0 %v5471_v14  ;;  %5125 = vmatmul.mubr.bf16.gmra.mrb[68].mxu1 %v5472_v15 }
  0xbc   : > { %5144 = vmatprep.mubr.bf16.mxu0 %v5473_v16  ;;  %5232 = vmatprep.mubr.bf16.mxu1 %v5474_v17  ;;  %v5517_v16 = vld [vmem:[%s5844_s17 + $0xb0] sm:$0xff]  }
  0xbd   : > { %v5518_v17 = vld [vmem:[%s5851_s23 + $0xb0] sm:$0xff]  }
  0xc3   : > { %5145 = vmatmul.mubr.bf16.vlgmr.msra.gmra.mrb[72].mxu0 %v5475_v18  ;;  %5233 = vmatmul.mubr.bf16.vlgmr.msra.gmra.mrb[72].mxu1 %v5476_v19 }
  0xc4   : > { %5148 = vmatprep.mubr.bf16.mxu0 %v5477_v20  ;;  %5236 = vmatprep.mubr.bf16.mxu1 %v5478_v21 }
  0xcb   : > { %5149 = vmatmul.mubr.bf16.gmra.mrb[76].mxu0 %v5479_v22  ;;  %5237 = vmatmul.mubr.bf16.gmra.mrb[76].mxu1 %v5480_v23 }
  0xcc   : > { %5152 = vmatprep.mubr.bf16.mxu0 %v5481_v24  ;;  %5240 = vmatprep.mubr.bf16.mxu1 %v5482_v25 }
  0xd3   : > { %5153 = vmatmul.mubr.bf16.gmra.mrb[80].mxu0 %v5483_v26  ;;  %5241 = vmatmul.mubr.bf16.gmra.mrb[80].mxu1 %v5484_v27  ;;  %v5519_v27 = vld [vmem:[%s5844_s17 + $0xb8] sm:$0xff]  }
  0xd4   : > { %5156 = vmatprep.mubr.bf16.mxu0 %v5485_v28  ;;  %5244 = vmatprep.mubr.bf16.mxu1 %v5486_v29  ;;  %v5520_v28 = vld [vmem:[%s5851_s23 + $0xb8] sm:$0xff]  }
  0xdb   : > { %5157 = vmatmul.mubr.bf16.gmra.mrb[84].mxu0 %v5487_v30  ;;  %5245 = vmatmul.mubr.bf16.gmra.mrb[84].mxu1 %v5488_v31 }
  0xdc   : > { %5160 = vmatprep.mubr.bf16.mxu0 %v5489_v32  ;;  %5248 = vmatprep.mubr.bf16.mxu1 %v5490_v33  ;;  %v5521_v32 = vld [vmem:[%s5844_s17 + $0xc0] sm:$0xff]  }
  0xdd   : > { %v5522_v33 = vld [vmem:[%s5851_s23 + $0xc0] sm:$0xff]  }
  0xe3   : > { %5161 = vmatmul.mubr.bf16.gmra.mrb[88].mxu0 %v5491_v34  ;;  %5249 = vmatmul.mubr.bf16.gmra.mrb[88].mxu1 %v5492_v35 }
  0xe4   : > { %5164 = vmatprep.mubr.bf16.mxu0 %v5493_v36  ;;  %5252 = vmatprep.mubr.bf16.mxu1 %v5494_v37 }
  0xeb   : > { %5165 = vmatmul.mubr.bf16.gmra.mrb[92].mxu0 %v5495_v38  ;;  %5253 = vmatmul.mubr.bf16.gmra.mrb[92].mxu1 %v5496_v39 }
  0xec   : > { %5168 = vmatprep.mubr.bf16.mxu0 %v5497_v40  ;;  %5256 = vmatprep.mubr.bf16.mxu1 %v5498_v41  ;;  %v5532_v40 = vld [vmem:[%s5851_s23 + $0xe8] sm:$0xff]  }
  0xf3   : > { %5169 = vmatmul.mubr.bf16.gmra.mrb[96].mxu0 %v5499_v42  ;;  %5257 = vmatmul.mubr.bf16.gmra.mrb[96].mxu1 %v5500_v43  ;;  %v5523_v43 = vld [vmem:[%s5844_s17 + $0xc8] sm:$0xff]  }
  0xf4   : > { %5172 = vmatprep.mubr.bf16.mxu0 %v5501_v44  ;;  %5260 = vmatprep.mubr.bf16.mxu1 %v5502_v45  ;;  %v5524_v44 = vld [vmem:[%s5851_s23 + $0xc8] sm:$0xff]  }
  0xf5   : > { %v5531_v45 = vld [vmem:[%s5844_s17 + $0xe8] sm:$0xff]  }
  0xfb   : > { %5173 = vmatmul.mubr.bf16.gmra.mrb[100].mxu0 %v5503_v46  ;;  %5261 = vmatmul.mubr.bf16.gmra.mrb[100].mxu1 %v5504_v47 }
  0xfc   : > { %5176 = vmatprep.mubr.bf16.mxu0 %v5505_v48  ;;  %5264 = vmatprep.mubr.bf16.mxu1 %v5506_v49  ;;  %v5525_v48 = vld [vmem:[%s5844_s17 + $0xd0] sm:$0xff]  }
  0xfd   : > { %v5526_v49 = vld [vmem:[%s5851_s23 + $0xd0] sm:$0xff]  }
 0x103   : > { %5177 = vmatmul.mubr.bf16.gmra.mrb[104].mxu0 %v5507_v50  ;;  %5265 = vmatmul.mubr.bf16.gmra.mrb[104].mxu1 %v5508_v51 }
 0x104   : > { %5180 = vmatprep.mubr.bf16.mxu0 %v5509_v52  ;;  %5268 = vmatprep.mubr.bf16.mxu1 %v5510_v53 }
 0x106   : > { %v5933_v54 = vpop.f32.mrb[0].mxu0  ;;  %v5935_v55 = vpop.f32.mrb[0].mxu1 }
 0x107   : > { %v5939_v57 = vpop.f32.mrb[1].mxu0  ;;  %v5941_v58 = vpop.f32.mrb[1].mxu1 }
 0x108   : > { %v5947_v62 = vpop.f32.mrb[2].mxu0  ;;  %v5949_v63 = vpop.f32.mrb[2].mxu1 }
 0x109   : > { %v5955_v3 = vpop.f32.mrb[3].mxu0  ;;  %v5957_v4 = vpop.f32.mrb[3].mxu1 }
 0x10b   : > { %5181 = vmatmul.mubr.bf16.gmra.mrb[108].mxu0 %v5511_v59  ;;  %5269 = vmatmul.mubr.bf16.gmra.mrb[108].mxu1 %v5512_v60 }
 0x10c   : > { %5184 = vmatprep.mubr.bf16.mxu0 %v5513_v0  ;;  %5272 = vmatprep.mubr.bf16.mxu1 %v5514_v1 }
 0x10e   : > { %v5961_v6 = vpop.f32.mrb[4].mxu0  ;;  %v5963_v7 = vpop.f32.mrb[4].mxu1 }
 0x10f   : > { %v5967_v9 = vpop.f32.mrb[5].mxu0  ;;  %v5969_v10 = vpop.f32.mrb[5].mxu1 }
 0x110   : > { %v5975_v14 = vpop.f32.mrb[6].mxu0  ;;  %v5977_v15 = vpop.f32.mrb[6].mxu1 }
 0x111   : > { %v5983_v19 = vpop.f32.mrb[7].mxu0  ;;  %v5985_v20 = vpop.f32.mrb[7].mxu1 }
 0x113   : > { %5185 = vmatmul.mubr.bf16.gmra.mrb[112].mxu0 %v5515_v11  ;;  %5273 = vmatmul.mubr.bf16.gmra.mrb[112].mxu1 %v5516_v12  ;;  %v5527_v12 = vld [vmem:[%s5844_s17 + $0xd8] sm:$0xff]  }
 0x114   : > { %5188 = vmatprep.mubr.bf16.mxu0 %v5517_v16  ;;  %5276 = vmatprep.mubr.bf16.mxu1 %v5518_v17  ;;  %v5528_v16 = vld [vmem:[%s5851_s23 + $0xd8] sm:$0xff]  }
 0x116   : > { %v5989_v22 = vpop.f32.mrb[8].mxu0  ;;  %v5991_v23 = vpop.f32.mrb[8].mxu1 }
 0x117   : > { %v5995_v25 = vpop.f32.mrb[9].mxu0  ;;  %v5997_v26 = vpop.f32.mrb[9].mxu1 }
 0x118   : > { %v6003_v30 = vpop.f32.mrb[10].mxu0  ;;  %v6005_v31 = vpop.f32.mrb[10].mxu1 }
 0x119   : > { %v6011_v35 = vpop.f32.mrb[11].mxu0  ;;  %v6013_v36 = vpop.f32.mrb[11].mxu1 }
 0x11b   : > { %5189 = vmatmul.mubr.bf16.gmra.mrb[116].mxu0 %v5519_v27  ;;  %5277 = vmatmul.mubr.bf16.gmra.mrb[116].mxu1 %v5520_v28 }
 0x11c   : > { %5192 = vmatprep.mubr.bf16.mxu0 %v5521_v32  ;;  %5280 = vmatprep.mubr.bf16.mxu1 %v5522_v33  ;;  %v5529_v32 = vld [vmem:[%s5844_s17 + $0xe0] sm:$0xff]  }
 0x11d   : > { %v5530_v33 = vld [vmem:[%s5851_s23 + $0xe0] sm:$0xff]  }
 0x11e   : > { %v6017_v38 = vpop.f32.mrb[12].mxu0  ;;  %v6019_v39 = vpop.f32.mrb[12].mxu1 }
 0x11f   : > { %v6023_v41 = vpop.f32.mrb[13].mxu0  ;;  %v6025_v42 = vpop.f32.mrb[13].mxu1 }
 0x120   : > { %v6031_v46 = vpop.f32.mrb[14].mxu0  ;;  %v6033_v47 = vpop.f32.mrb[14].mxu1 }
 0x121   : > { %v6039_v51 = vpop.f32.mrb[15].mxu0  ;;  %v6041_v52 = vpop.f32.mrb[15].mxu1 }
 0x123   : > { %5193 = vmatmul.mubr.bf16.gmra.mrb[120].mxu0 %v5523_v43  ;;  %5281 = vmatmul.mubr.bf16.gmra.mrb[120].mxu1 %v5524_v44 }
 0x124   : > { %5196 = vmatprep.mubr.bf16.mxu0 %v5525_v48  ;;  %5284 = vmatprep.mubr.bf16.mxu1 %v5526_v49 }
 0x126   : > { %v6045_v59 = vpop.f32.mrb[16].mxu0  ;;  %v6047_v60 = vpop.f32.mrb[16].mxu1 }
 0x127   : > { %v6051_v1 = vpop.f32.mrb[17].mxu0  ;;  %v6053_v11 = vpop.f32.mrb[17].mxu1 }
 0x128   : > { %v6059_v27 = vpop.f32.mrb[18].mxu0  ;;  %v6061_v28 = vpop.f32.mrb[18].mxu1 }
 0x129   : > { %v6067_v44 = vpop.f32.mrb[19].mxu0  ;;  %v6069_v48 = vpop.f32.mrb[19].mxu1 }
 0x12b   : > { %5197 = vmatmul.mubr.bf16.gmra.mrb[124].mxu0 %v5527_v12  ;;  %5285 = vmatmul.mubr.bf16.gmra.mrb[124].mxu1 %v5528_v16 }
 0x12c   : > { %5200 = vmatprep.mubr.bf16.mxu0 %v5529_v32  ;;  %5288 = vmatprep.mubr.bf16.mxu1 %v5530_v33  ;;  %v5533_v32 = vld [vmem:[%s5844_s17 + $0xf0] sm:$0xff]  }
 0x12d   : > { %v5534_v33 = vld [vmem:[%s5851_s23 + $0xf0] sm:$0xff]  }
 0x12e   : > { %v6073_v17 = vpop.f32.mrb[20].mxu0  ;;  %v6075_v0 = vpop.f32.mrb[20].mxu1 }
 0x12f   : > { %v6079_v53 = vpop.f32.mrb[21].mxu0  ;;  %v6081_v50 = vpop.f32.mrb[21].mxu1 }
 0x130   : > { %v6087_v12 = vpop.f32.mrb[22].mxu0  ;;  %v6089_v16 = vpop.f32.mrb[22].mxu1 }
 0x131   : > { %v6095_v37 = vpop.f32.mrb[23].mxu0  ;;  %v6097_v34 = vpop.f32.mrb[23].mxu1 }
 0x132   : > { %7049 = vst [vmem:[#allocation3_spill] sm:$0xff] %v6097_v34 }
 0x133   : > { %5201 = vmatmul.mubr.bf16.gmra.mrb[128].mxu0 %v5531_v45  ;;  %5289 = vmatmul.mubr.bf16.gmra.mrb[128].mxu1 %v5532_v40 }
 0x134   : > { %5204 = vmatprep.mubr.bf16.mxu0 %v5533_v32  ;;  %5292 = vmatprep.mubr.bf16.mxu1 %v5534_v33  ;;  %v5537_v32 = vld [vmem:[%s5844_s17 + $0x100] sm:$0xff]  }
 0x135   : > { %v5538_v33 = vld [vmem:[%s5851_s23 + $0x100] sm:$0xff]  }
 0x136   : > { %v6101_v49 = vpop.f32.mrb[24].mxu0  ;;  %v6103_v24 = vpop.f32.mrb[24].mxu1 }
 0x137   : > { %7050 = vst [vmem:[#allocation4_spill] sm:$0xff] %v6101_v49  ;;  %7051 = vst [vmem:[#allocation5_spill] sm:$0xff] %v6103_v24  ;;  %v6107_v21 = vpop.f32.mrb[25].mxu0  ;;  %v6109_v18 = vpop.f32.mrb[25].mxu1 }
 0x138   : > { %7052 = vst [vmem:[#allocation6_spill] sm:$0xff] %v6107_v21  ;;  %7053 = vst [vmem:[#allocation7_spill] sm:$0xff] %v6109_v18  ;;  %v6115_v45 = vpop.f32.mrb[26].mxu0  ;;  %v6117_v40 = vpop.f32.mrb[26].mxu1  ;;  %v5539_v18 = vld [vmem:[%s5844_s17 + $0x108] sm:$0xff]  }
 0x139   : > { %7054 = vst [vmem:[#allocation8_spill] sm:$0xff] %v6115_v45  ;;  %7055 = vst [vmem:[#allocation9_spill] sm:$0xff] %v6117_v40  ;;  %v6123_v5 = vpop.f32.mrb[27].mxu0  ;;  %v6125_v2 = vpop.f32.mrb[27].mxu1  ;;  %v5540_v21 = vld [vmem:[%s5851_s23 + $0x108] sm:$0xff]  }
 0x13a   : > { %7056 = vst [vmem:[#allocation10_spill] sm:$0xff] %v6123_v5  ;;  %7057 = vst [vmem:[#allocation11_spill] sm:$0xff] %v6125_v2 }
 0x13b   : > { %5205 = vmatmul.mubr.bf16.gmra.mrb[132].mxu0 %v5535_v13  ;;  %5293 = vmatmul.mubr.bf16.gmra.mrb[132].mxu1 %v5536_v8 }
 0x13c   : > { %5208 = vmatprep.mubr.bf16.mxu0 %v5537_v32  ;;  %5296 = vmatprep.mubr.bf16.mxu1 %v5538_v33  ;;  %v5541_v32 = vld [vmem:[%s5844_s17 + $0x110] sm:$0xff]  }
 0x13d   : > { %v5542_v33 = vld [vmem:[%s5851_s23 + $0x110] sm:$0xff]  }
 0x13e   : > { %v6129_v29 = vpop.f32.mrb[28].mxu0  ;;  %v6131_v56 = vpop.f32.mrb[28].mxu1 }
 0x13f   : > { %7058 = vst [vmem:[#allocation12_spill] sm:$0xff] %v6129_v29  ;;  %7059 = vst [vmem:[#allocation13_spill] sm:$0xff] %v6131_v56  ;;  %v6135_v40 = vpop.f32.mrb[29].mxu0  ;;  %v6137_v45 = vpop.f32.mrb[29].mxu1 }
 0x140   : > { %7060 = vst [vmem:[#allocation14_spill] sm:$0xff] %v6135_v40  ;;  %7061 = vst [vmem:[#allocation15_spill] sm:$0xff] %v6137_v45  ;;  %v6143_v13 = vpop.f32.mrb[30].mxu0  ;;  %v6145_v8 = vpop.f32.mrb[30].mxu1 }
 0x141   : > { %7062 = vst [vmem:[#allocation16_spill] sm:$0xff] %v6143_v13  ;;  %7063 = vst [vmem:[#allocation17_spill] sm:$0xff] %v6145_v8  ;;  %v6151_v56 = vpop.f32.mrb[31].mxu0  ;;  %v6153_v29 = vpop.f32.mrb[31].mxu1  ;;  %v5543_v8 = vld [vmem:[%s5844_s17 + $0x118] ss:$0 sps:$4 sm:$0xff]  }
 0x142   : > { %7064 = vst [vmem:[#allocation18_spill] sm:$0xff] %v6151_v56  ;;  %7065 = vst [vmem:[#allocation19_spill] sm:$0xff] %v6153_v29  ;;  %v5544_v13 = vld [vmem:[%s5851_s23 + $0x118] ss:$0 sps:$4 sm:$0xff]  }
 0x143   : > { %5209 = vmatmul.mubr.bf16.gmra.mrb[136].mxu0 %v5539_v18  ;;  %5297 = vmatmul.mubr.bf16.gmra.mrb[136].mxu1 %v5540_v21 }
 0x144   : > { %5212 = vmatprep.mubr.bf16.mxu0 %v5541_v32  ;;  %5300 = vmatprep.mubr.bf16.mxu1 %v5542_v33 }
 0x146   : > { %v6157_v61 = vpop.f32.mrb[32].mxu0  ;;  %v6159_v45 = vpop.f32.mrb[32].mxu1 }
 0x147   : > { %7066 = vst [vmem:[#allocation20_spill] sm:$0xff] %v6157_v61  ;;  %7067 = vst [vmem:[#allocation21_spill] sm:$0xff] %v6159_v45  ;;  %v6163_v5 = vpop.f32.mrb[33].mxu0  ;;  %v6165_v43 = vpop.f32.mrb[33].mxu1 }
 0x148   : > { %7068 = vst [vmem:[#allocation22_spill] sm:$0xff] %v6163_v5  ;;  %7069 = vst [vmem:[#allocation23_spill] sm:$0xff] %v6165_v43  ;;  %v6171_v18 = vpop.f32.mrb[34].mxu0  ;;  %v6173_v21 = vpop.f32.mrb[34].mxu1 }
 0x149   : > { %7070 = vst [vmem:[#allocation24_spill] sm:$0xff] %v6171_v18  ;;  %7071 = vst [vmem:[#allocation25_spill] sm:$0xff] %v6173_v21  ;;  %v6177_v33 = vpop.f32.mrb[35].mxu0  ;;  %v6179_v29 = vpop.f32.mrb[35].mxu1 }
 0x14a   : > { %7072 = vst [vmem:[#allocation26_spill] sm:$0xff] %v6177_v33  ;;  %7073 = vst [vmem:[#allocation27_spill] sm:$0xff] %v6179_v29 }
 0x14b   : > { %5213 = vmatmul.mubr.bf16.gmra.mrb[140].mxu0 %v5543_v8  ;;  %5301 = vmatmul.mubr.bf16.gmra.mrb[140].mxu1 %v5544_v13  ;;  %v7144_v13 = vmax.f32 %v5933_v54, %v5935_v55 }
 0x14e   : > { %v6183_v45 = vpop.f32.mrb[36].mxu0  ;;  %v6185_v61 = vpop.f32.mrb[36].mxu1 }
 0x14f   : > { %7074 = vst [vmem:[#allocation28_spill] sm:$0xff] %v6183_v45  ;;  %7075 = vst [vmem:[#allocation29_spill] sm:$0xff] %v6185_v61  ;;  %v6189_v43 = vpop.f32.mrb[37].mxu0  ;;  %v6191_v5 = vpop.f32.mrb[37].mxu1 }
 0x150   : > { %7076 = vst [vmem:[#allocation30_spill] sm:$0xff] %v6189_v43  ;;  %7077 = vst [vmem:[#allocation31_spill] sm:$0xff] %v6191_v5  ;;  %v6195_v21 = vpop.f32.mrb[38].mxu0  ;;  %v6197_v18 = vpop.f32.mrb[38].mxu1 }
 0x151   : > { %7078 = vst [vmem:[#allocation32_spill] sm:$0xff] %v6195_v21  ;;  %7079 = vst [vmem:[#allocation33_spill] sm:$0xff] %v6197_v18  ;;  %v6201_v8 = vpop.f32.mrb[39].mxu0  ;;  %v6203_v40 = vpop.f32.mrb[39].mxu1 }
 0x152   : > { %7080 = vst [vmem:[#allocation34_spill] sm:$0xff] %v6201_v8  ;;  %7081 = vst [vmem:[#allocation35_spill] sm:$0xff] %v6203_v40 }
 0x156   : > { %v6207_v61 = vpop.f32.mrb[40].mxu0  ;;  %v6209_v45 = vpop.f32.mrb[40].mxu1 }
 0x157   : > { %7082 = vst [vmem:[#allocation36_spill] sm:$0xff] %v6207_v61  ;;  %7083 = vst [vmem:[#allocation37_spill] sm:$0xff] %v6209_v45  ;;  %v6213_v5 = vpop.f32.mrb[41].mxu0  ;;  %v6215_v43 = vpop.f32.mrb[41].mxu1 }
 0x158   : > { %7084 = vst [vmem:[#allocation38_spill] sm:$0xff] %v6213_v5  ;;  %7085 = vst [vmem:[#allocation39_spill] sm:$0xff] %v6215_v43  ;;  %v6219_v18 = vpop.f32.mrb[42].mxu0  ;;  %v6221_v21 = vpop.f32.mrb[42].mxu1 }
 0x159   : > { %7086 = vst [vmem:[#allocation40_spill] sm:$0xff] %v6219_v18  ;;  %7087 = vst [vmem:[#allocation41_spill] sm:$0xff] %v6221_v21  ;;  %v6225_v40 = vpop.f32.mrb[43].mxu0  ;;  %v6227_v8 = vpop.f32.mrb[43].mxu1 }
 0x15a   : > { %7088 = vst [vmem:[#allocation42_spill] sm:$0xff] %v6225_v40  ;;  %7089 = vst [vmem:[#allocation43_spill] sm:$0xff] %v6227_v8 }
 0x15e   : > { %v6231_v45 = vpop.f32.mrb[44].mxu0  ;;  %v6233_v61 = vpop.f32.mrb[44].mxu1 }
 0x15f   : > { %7090 = vst [vmem:[#allocation44_spill] sm:$0xff] %v6231_v45  ;;  %7091 = vst [vmem:[#allocation45_spill] sm:$0xff] %v6233_v61  ;;  %v6237_v43 = vpop.f32.mrb[45].mxu0  ;;  %v6239_v5 = vpop.f32.mrb[45].mxu1 }
 0x160   : > { %7092 = vst [vmem:[#allocation46_spill] sm:$0xff] %v6237_v43  ;;  %7093 = vst [vmem:[#allocation47_spill] sm:$0xff] %v6239_v5  ;;  %v6243_v21 = vpop.f32.mrb[46].mxu0  ;;  %v6245_v18 = vpop.f32.mrb[46].mxu1 }
 0x161   : > { %7094 = vst [vmem:[#allocation48_spill] sm:$0xff] %v6243_v21  ;;  %7095 = vst [vmem:[#allocation49_spill] sm:$0xff] %v6245_v18  ;;  %v6249_v8 = vpop.f32.mrb[47].mxu0  ;;  %v6251_v40 = vpop.f32.mrb[47].mxu1 }
 0x162   : > { %7096 = vst [vmem:[#allocation50_spill] sm:$0xff] %v6249_v8  ;;  %7097 = vst [vmem:[#allocation51_spill] sm:$0xff] %v6251_v40 }
 0x166   : > { %v6255_v61 = vpop.f32.mrb[48].mxu0  ;;  %v6257_v45 = vpop.f32.mrb[48].mxu1 }
 0x167   : > { %7098 = vst [vmem:[#allocation52_spill] sm:$0xff] %v6255_v61  ;;  %7099 = vst [vmem:[#allocation53_spill] sm:$0xff] %v6257_v45  ;;  %v6261_v5 = vpop.f32.mrb[49].mxu0  ;;  %v6263_v43 = vpop.f32.mrb[49].mxu1 }
 0x168   : > { %7100 = vst [vmem:[#allocation54_spill] sm:$0xff] %v6261_v5  ;;  %7101 = vst [vmem:[#allocation55_spill] sm:$0xff] %v6263_v43  ;;  %v6267_v18 = vpop.f32.mrb[50].mxu0  ;;  %v6269_v21 = vpop.f32.mrb[50].mxu1 }
 0x169   : > { %7102 = vst [vmem:[#allocation56_spill] sm:$0xff] %v6267_v18  ;;  %7103 = vst [vmem:[#allocation57_spill] sm:$0xff] %v6269_v21  ;;  %v6273_v40 = vpop.f32.mrb[51].mxu0  ;;  %v6275_v8 = vpop.f32.mrb[51].mxu1 }
 0x16a   : > { %7104 = vst [vmem:[#allocation58_spill] sm:$0xff] %v6273_v40  ;;  %7105 = vst [vmem:[#allocation59_spill] sm:$0xff] %v6275_v8 }
 0x16e   : > { %v6279_v45 = vpop.f32.mrb[52].mxu0  ;;  %v6281_v61 = vpop.f32.mrb[52].mxu1 }
 0x16f   : > { %7106 = vst [vmem:[#allocation60_spill] sm:$0xff] %v6279_v45  ;;  %7107 = vst [vmem:[#allocation61_spill] sm:$0xff] %v6281_v61  ;;  %v6285_v43 = vpop.f32.mrb[53].mxu0  ;;  %v6287_v5 = vpop.f32.mrb[53].mxu1 }
 0x170   : > { %7108 = vst [vmem:[#allocation62_spill] sm:$0xff] %v6285_v43  ;;  %7109 = vst [vmem:[#allocation63_spill] sm:$0xff] %v6287_v5  ;;  %v6291_v21 = vpop.f32.mrb[54].mxu0  ;;  %v6293_v18 = vpop.f32.mrb[54].mxu1 }
 0x171   : > { %7110 = vst [vmem:[#allocation64_spill] sm:$0xff] %v6291_v21  ;;  %7111 = vst [vmem:[#allocation65_spill] sm:$0xff] %v6293_v18  ;;  %v6297_v8 = vpop.f32.mrb[55].mxu0  ;;  %v6299_v40 = vpop.f32.mrb[55].mxu1 }
 0x172   : > { %7112 = vst [vmem:[#allocation66_spill] sm:$0xff] %v6297_v8  ;;  %7113 = vst [vmem:[#allocation67_spill] sm:$0xff] %v6299_v40 }
 0x176   : > { %v6303_v61 = vpop.f32.mrb[56].mxu0  ;;  %v6305_v45 = vpop.f32.mrb[56].mxu1 }
 0x177   : > { %7114 = vst [vmem:[#allocation68_spill] sm:$0xff] %v6303_v61  ;;  %7115 = vst [vmem:[#allocation69_spill] sm:$0xff] %v6305_v45  ;;  %v6309_v5 = vpop.f32.mrb[57].mxu0  ;;  %v6311_v43 = vpop.f32.mrb[57].mxu1 }
 0x178   : > { %7116 = vst [vmem:[#allocation70_spill] sm:$0xff] %v6309_v5  ;;  %7117 = vst [vmem:[#allocation71_spill] sm:$0xff] %v6311_v43  ;;  %v6315_v18 = vpop.f32.mrb[58].mxu0  ;;  %v6317_v21 = vpop.f32.mrb[58].mxu1 }
 0x179   : > { %7118 = vst [vmem:[#allocation72_spill] sm:$0xff] %v6315_v18  ;;  %7119 = vst [vmem:[#allocation73_spill] sm:$0xff] %v6317_v21  ;;  %v6321_v40 = vpop.f32.mrb[59].mxu0  ;;  %v6323_v8 = vpop.f32.mrb[59].mxu1 }
 0x17a   : > { %7120 = vst [vmem:[#allocation74_spill] sm:$0xff] %v6321_v40  ;;  %7121 = vst [vmem:[#allocation75_spill] sm:$0xff] %v6323_v8 }
 0x17e   : > { %v6327_v45 = vpop.f32.mrb[60].mxu0  ;;  %v6329_v61 = vpop.f32.mrb[60].mxu1 }
 0x17f   : > { %7122 = vst [vmem:[#allocation76_spill] sm:$0xff] %v6327_v45  ;;  %7123 = vst [vmem:[#allocation77_spill] sm:$0xff] %v6329_v61  ;;  %v6333_v43 = vpop.f32.mrb[61].mxu0  ;;  %v6335_v5 = vpop.f32.mrb[61].mxu1 }
 0x180   : > { %7124 = vst [vmem:[#allocation78_spill] sm:$0xff] %v6333_v43  ;;  %7125 = vst [vmem:[#allocation79_spill] sm:$0xff] %v6335_v5  ;;  %v6339_v21 = vpop.f32.mrb[62].mxu0  ;;  %v6341_v18 = vpop.f32.mrb[62].mxu1 }
 0x181   : > { %7126 = vst [vmem:[#allocation80_spill] sm:$0xff] %v6339_v21  ;;  %7127 = vst [vmem:[#allocation81_spill] sm:$0xff] %v6341_v18  ;;  %v6345_v8 = vpop.f32.mrb[63].mxu0  ;;  %v6347_v40 = vpop.f32.mrb[63].mxu1 }
 0x182   : > { %7128 = vst [vmem:[#allocation82_spill] sm:$0xff] %v6345_v8  ;;  %7129 = vst [vmem:[#allocation83_spill] sm:$0xff] %v6347_v40 }
 0x186   : > { %v6351_v61 = vpop.f32.mrb[64].mxu0  ;;  %v6353_v45 = vpop.f32.mrb[64].mxu1 }
 0x187   : > { %7130 = vst [vmem:[#allocation84_spill] sm:$0xff] %v6351_v61  ;;  %7131 = vst [vmem:[#allocation85_spill] sm:$0xff] %v6353_v45  ;;  %v6357_v5 = vpop.f32.mrb[65].mxu0  ;;  %v6359_v43 = vpop.f32.mrb[65].mxu1 }
 0x188   : > { %7132 = vst [vmem:[#allocation86_spill] sm:$0xff] %v6357_v5  ;;  %7133 = vst [vmem:[#allocation87_spill] sm:$0xff] %v6359_v43  ;;  %v6363_v18 = vpop.f32.mrb[66].mxu0  ;;  %v6365_v21 = vpop.f32.mrb[66].mxu1 }
 0x189   : > { %7134 = vst [vmem:[#allocation88_spill] sm:$0xff] %v6363_v18  ;;  %7135 = vst [vmem:[#allocation89_spill] sm:$0xff] %v6365_v21  ;;  %v6369_v40 = vpop.f32.mrb[67].mxu0  ;;  %v6371_v8 = vpop.f32.mrb[67].mxu1 }
 0x18a   : > { %7136 = vst [vmem:[#allocation90_spill] sm:$0xff] %v6369_v40  ;;  %7137 = vst [vmem:[#allocation91_spill] sm:$0xff] %v6371_v8 }
 0x18e   : > { %v6375_v45 = vpop.f32.mrb[68].mxu0  ;;  %v6377_v61 = vpop.f32.mrb[68].mxu1 }
 0x18f   : > { %7138 = vst [vmem:[#allocation92_spill] sm:$0xff] %v6375_v45  ;;  %7139 = vst [vmem:[#allocation93_spill] sm:$0xff] %v6377_v61  ;;  %v6381_v43 = vpop.f32.mrb[69].mxu0  ;;  %v6383_v5 = vpop.f32.mrb[69].mxu1 }
 0x190   : > { %7140 = vst [vmem:[#allocation94_spill] sm:$0xff] %v6381_v43  ;;  %7141 = vst [vmem:[#allocation95_spill] sm:$0xff] %v6383_v5  ;;  %v5039_v21 = vpop.f32.mrb[70].mxu0  ;;  %v5127_v18 = vpop.f32.mrb[70].mxu1 }
 0x191   : > { %v6387_v29 = vpop.f32.mrb[71].mxu0  ;;  %v6389_v33 = vpop.f32.mrb[71].mxu1  ;;  %v6399_v18 = vld [vmem:[%s6951_s5] ss:$0 sm:$0xff]  ;;  %v7145_v21 = vmax.f32 %v5939_v57, %v5941_v58 }
 0x192   : > { %7142 = vst [vmem:[#allocation96_spill] sm:$0xff] %v6387_v29  ;;  %7143 = vst [vmem:[#allocation97_spill] sm:$0xff] %v6389_v33  ;;  %v7146_v33 = vmax.f32 %v5947_v62, %v5949_v63 }
 0x196   : > { %v5146_v8 = vpop.f32.mrb[72].mxu0  ;;  %v5234_v40 = vpop.f32.mrb[72].mxu1 }
 0x197   : > { %v2352_v61 = vmax.f32 %v7144_v13, %v5146_v8  ;;  %v2064_v45 = vpop.f32.mrb[73].mxu0  ;;  %v2740_v56 = vpop.f32.mrb[73].mxu1  ;;  %v7147_v8 = vmax.f32 %v5955_v3, %v5957_v4  ;;  %v7148_v4 = vmax.f32 %v5961_v6, %v5963_v7  ;;  %v7150_v6 = vmax.f32 %v5975_v14, %v5977_v15 }
 0x198   : > { %v2350_v2 = vmax.f32 %v7145_v21, %v2064_v45  ;;  %v5147_v5 = vpop.f32.mrb[74].mxu0  ;;  %v5235_v43 = vpop.f32.mrb[74].mxu1 }
 0x199   : > { %v3028_v32 = vmax.f32 %v2352_v61, %v5234_v40  ;;  %v2353_v29 = vmax.f32 %v7146_v33, %v5147_v5  ;;  %v2067_v54 = vpop.f32.mrb[75].mxu0  ;;  %v2743_v55 = vpop.f32.mrb[75].mxu1 }
 0x19a   : > { %v3026_v13 = vmax.f32 %v2350_v2, %v2740_v56  ;;  %v2351_v24 = vmax.f32 %v7147_v8, %v2067_v54 }
 0x19b   : > { %v3106_v49 = vadd.f32 %v6399_v18, %v3028_v32  ;;  %v3029_v34 = vmax.f32 %v2353_v29, %v5235_v43 }
 0x19c   : > { %v3104_v57 = vadd.f32 %v6399_v18, %v3026_v13  ;;  %v3027_v58 = vmax.f32 %v2351_v24, %v2743_v55 }
 0x19d   : > { %vm3177_vm0 = vcmp.ge.f32.partialorder %v3106_v49, 0.0  ;;  %v3248_v61 = vmul.f32 0.2, %v3106_v49  ;;  %v3107_v62 = vadd.f32 %v6399_v18, %v3029_v34  ;;  %v7149_v34 = vmax.f32 %v5967_v9, %v5969_v10 }
 0x19e   : > { %vm3175_vm1 = vcmp.ge.f32.partialorder %v3104_v57, 0.0  ;;  %v3246_v63 = vmul.f32 0.2, %v3104_v57  ;;  %v3105_v56 = vadd.f32 %v6399_v18, %v3027_v58  ;;  %v5150_v2 = vpop.f32.mrb[76].mxu0  ;;  %v5238_v5 = vpop.f32.mrb[76].mxu1  ;;  %v7151_v9 = vmax.f32 %v5983_v19, %v5985_v20 }
 0x19f   : > { %vm3178_vm2 = vcmp.ge.f32.partialorder %v3107_v62, 0.0  ;;  %v3249_v3 = vmul.f32 0.2, %v3107_v62  ;;  %v2356_v29 = vmax.f32 %v7148_v4, %v5150_v2  ;;  %v2080_v43 = vpop.f32.mrb[77].mxu0  ;;  %v2756_v24 = vpop.f32.mrb[77].mxu1  ;;  %v3319_v45 = vsel %vm3177_vm0, %v3106_v49, %v3248_v61 }
 0x1a0   : > { %vm3176_vm3 = vcmp.ge.f32.partialorder %v3105_v56, 0.0  ;;  %v3247_v40 = vmul.f32 0.2, %v3105_v56  ;;  %v2354_v32 = vmax.f32 %v7149_v34, %v2080_v43  ;;  %v5151_v33 = vpop.f32.mrb[78].mxu0  ;;  %v5239_v21 = vpop.f32.mrb[78].mxu1  ;;  %v3317_v54 = vsel %vm3175_vm1, %v3104_v57, %v3246_v63 }
 0x1a1   : > { %v3320_v55 = vsel %vm3178_vm2, %v3107_v62, %v3249_v3  ;;  %v3032_v13 = vmax.f32 %v2356_v29, %v5238_v5  ;;  %v2357_v7 = vmax.f32 %v7150_v6, %v5151_v33  ;;  %v2083_v8 = vpop.f32.mrb[79].mxu0  ;;  %v2759_v58 = vpop.f32.mrb[79].mxu1  ;;  %v7152_v3 = vmax.f32 %v5989_v22, %v5991_v23 }
 0x1a2   : > { %v4575_v49 = vpack.c.bf16 %v3320_v55, %v3319_v45  ;;  %v3318_v61 = vsel %vm3176_vm3, %v3105_v56, %v3247_v40  ;;  %v3030_v2 = vmax.f32 %v2354_v32, %v2756_v24  ;;  %v2355_v10 = vmax.f32 %v7151_v9, %v2083_v8 }
 0x1a3   : > { %v4570_v4 = vpack.c.bf16 %v3318_v61, %v3317_v54  ;;  %v3110_v43 = vadd.f32 %v6399_v18, %v3032_v13  ;;  %v3033_v34 = vmax.f32 %v2357_v7, %v5239_v21  ;;  %v7153_v33 = vmax.f32 %v5995_v25, %v5997_v26 }
 0x1a4   : > { %4742 = vst [vmem:[%s6432_s21 + $0x8] sm:$0xff] %v4575_v49   ;;  %v3108_v14 = vadd.f32 %v6399_v18, %v3030_v2  ;;  %v3031_v15 = vmax.f32 %v2355_v10, %v2759_v58  ;;  %v7154_v22 = vmax.f32 %v6003_v30, %v6005_v31  ;;  %v7155_v25 = vmax.f32 %v6011_v35, %v6013_v36 }
 0x1a5   : > { %4571 = vst [vmem:[%s6432_s21] sm:$0xff] %v4570_v4   ;;  %vm3181_vm4 = vcmp.ge.f32.partialorder %v3110_v43, 0.0  ;;  %v3252_v57 = vmul.f32 0.2, %v3110_v43  ;;  %v3111_v62 = vadd.f32 %v6399_v18, %v3033_v34 }
 0x1a6   : > { %vm3179_vm5 = vcmp.ge.f32.partialorder %v3108_v14, 0.0  ;;  %v3250_v19 = vmul.f32 0.2, %v3108_v14  ;;  %v3109_v20 = vadd.f32 %v6399_v18, %v3031_v15  ;;  %v5154_v63 = vpop.f32.mrb[80].mxu0  ;;  %v5242_v56 = vpop.f32.mrb[80].mxu1 }
 0x1a7   : > { %vm3182_vm6 = vcmp.ge.f32.partialorder %v3111_v62, 0.0  ;;  %v3253_v5 = vmul.f32 0.2, %v3111_v62  ;;  %v2360_v29 = vmax.f32 %v7152_v3, %v5154_v63  ;;  %v2096_v24 = vpop.f32.mrb[81].mxu0  ;;  %v2772_v45 = vpop.f32.mrb[81].mxu1  ;;  %v3323_v40 = vsel %vm3181_vm4, %v3110_v43, %v3252_v57 }
 0x1a8   : > { %vm3180_vm7 = vcmp.ge.f32.partialorder %v3109_v20, 0.0  ;;  %v3251_v32 = vmul.f32 0.2, %v3109_v20  ;;  %v2358_v21 = vmax.f32 %v7153_v33, %v2096_v24  ;;  %v5155_v54 = vpop.f32.mrb[82].mxu0  ;;  %v5243_v55 = vpop.f32.mrb[82].mxu1  ;;  %v3321_v13 = vsel %vm3179_vm5, %v3108_v14, %v3250_v19 }
 0x1a9   : > { %v3324_v6 = vsel %vm3182_vm6, %v3111_v62, %v3253_v5  ;;  %v3036_v7 = vmax.f32 %v2360_v29, %v5242_v56  ;;  %v2361_v23 = vmax.f32 %v7154_v22, %v5155_v54  ;;  %v2099_v8 = vpop.f32.mrb[83].mxu0  ;;  %v2775_v58 = vpop.f32.mrb[83].mxu1  ;;  %v7156_v62 = vmax.f32 %v6017_v38, %v6019_v39 }
 0x1aa   : > { %v4585_v49 = vpack.c.bf16 %v3324_v6, %v3323_v40  ;;  %v3322_v61 = vsel %vm3180_vm7, %v3109_v20, %v3251_v32  ;;  %v3034_v2 = vmax.f32 %v2358_v21, %v2772_v45  ;;  %v2359_v26 = vmax.f32 %v7155_v25, %v2099_v8 }
 0x1ab   : > { %v4580_v9 = vpack.c.bf16 %v3322_v61, %v3321_v13  ;;  %v3114_v10 = vadd.f32 %v6399_v18, %v3036_v7  ;;  %v3037_v4 = vmax.f32 %v2361_v23, %v5243_v55  ;;  %v7157_v3 = vmax.f32 %v6023_v41, %v6025_v42 }
 0x1ac   : > { %4744 = vst [vmem:[%s6432_s21 + $0x18] sm:$0xff] %v4585_v49   ;;  %v3112_v43 = vadd.f32 %v6399_v18, %v3034_v2  ;;  %v3035_v34 = vmax.f32 %v2359_v26, %v2775_v58  ;;  %v7158_v38 = vmax.f32 %v6031_v46, %v6033_v47  ;;  %v7159_v41 = vmax.f32 %v6039_v51, %v6041_v52 }
 0x1ad   : > { %4743 = vst [vmem:[%s6432_s21 + $0x10] sm:$0xff] %v4580_v9   ;;  %vm3185_vm8 = vcmp.ge.f32.partialorder %v3114_v10, 0.0  ;;  %v3256_v30 = vmul.f32 0.2, %v3114_v10  ;;  %v3115_v31 = vadd.f32 %v6399_v18, %v3037_v4  ;;  %v7160_v25 = vmax.f32 %v6045_v59, %v6047_v60 }
 0x1ae   : > { %vm3183_vm9 = vcmp.ge.f32.partialorder %v3112_v43, 0.0  ;;  %v3254_v14 = vmul.f32 0.2, %v3112_v43  ;;  %v3113_v15 = vadd.f32 %v6399_v18, %v3035_v34  ;;  %v5158_v57 = vpop.f32.mrb[84].mxu0  ;;  %v5246_v35 = vpop.f32.mrb[84].mxu1  ;;  %v7161_v34 = vmax.f32 %v6051_v1, %v6053_v11 }
 0x1af   : > { %vm3186_vm10 = vcmp.ge.f32.partialorder %v3115_v31, 0.0  ;;  %v3257_v36 = vmul.f32 0.2, %v3115_v31  ;;  %v2364_v19 = vmax.f32 %v7156_v62, %v5158_v57  ;;  %v2112_v20 = vpop.f32.mrb[85].mxu0  ;;  %v2788_v63 = vpop.f32.mrb[85].mxu1  ;;  %v3327_v56 = vsel %vm3185_vm8, %v3114_v10, %v3256_v30 }
 0x1b0   : > { %vm3184_vm11 = vcmp.ge.f32.partialorder %v3113_v15, 0.0  ;;  %v3255_v5 = vmul.f32 0.2, %v3113_v15  ;;  %v2362_v29 = vmax.f32 %v7157_v3, %v2112_v20  ;;  %v5159_v24 = vpop.f32.mrb[86].mxu0  ;;  %v5247_v45 = vpop.f32.mrb[86].mxu1  ;;  %v3325_v40 = vsel %vm3183_vm9, %v3112_v43, %v3254_v14 }
 0x1b1   : > { %v3328_v32 = vsel %vm3186_vm10, %v3115_v31, %v3257_v36  ;;  %v3040_v33 = vmax.f32 %v2364_v19, %v5246_v35  ;;  %v2365_v39 = vmax.f32 %v7158_v38, %v5159_v24  ;;  %v2115_v21 = vpop.f32.mrb[87].mxu0  ;;  %v2791_v54 = vpop.f32.mrb[87].mxu1  ;;  %v7162_v59 = vmax.f32 %v6059_v27, %v6061_v28 }
 0x1b2   : > { %v4595_v55 = vpack.c.bf16 %v3328_v32, %v3327_v56  ;;  %v3326_v13 = vsel %vm3184_vm11, %v3113_v15, %v3255_v5  ;;  %v3038_v6 = vmax.f32 %v2362_v29, %v2788_v63  ;;  %v2363_v42 = vmax.f32 %v7159_v41, %v2115_v21 }
 0x1b3   : > { %v4590_v7 = vpack.c.bf16 %v3326_v13, %v3325_v40  ;;  %v3118_v22 = vadd.f32 %v6399_v18, %v3040_v33  ;;  %v3041_v23 = vmax.f32 %v2365_v39, %v5247_v45  ;;  %v7163_v1 = vmax.f32 %v6067_v44, %v6069_v48 }
 0x1b4   : > { %4746 = vst [vmem:[%s6432_s21 + $0x28] sm:$0xff] %v4595_v55   ;;  %v3116_v8 = vadd.f32 %v6399_v18, %v3038_v6  ;;  %v3039_v58 = vmax.f32 %v2363_v42, %v2791_v54  ;;  %v7164_v33 = vmax.f32 %v6073_v17, %v6075_v0  ;;  %v7165_v13 = vmax.f32 %v6079_v53, %v6081_v50  ;;  %v7167_v50 = vld [vmem:[#allocation3_spill] sm:$0xff] }
 0x1b5   : > { %4745 = vst [vmem:[%s6432_s21 + $0x20] sm:$0xff] %v4590_v7   ;;  %vm3189_vm12 = vcmp.ge.f32.partialorder %v3118_v22, 0.0  ;;  %v3260_v46 = vmul.f32 0.2, %v3118_v22  ;;  %v3119_v47 = vadd.f32 %v6399_v18, %v3041_v23  ;;  %v7166_v0 = vmax.f32 %v6087_v12, %v6089_v16 }
 0x1b6   : > { %vm3187_vm13 = vcmp.ge.f32.partialorder %v3116_v8, 0.0  ;;  %v3258_v49 = vmul.f32 0.2, %v3116_v8  ;;  %v3117_v61 = vadd.f32 %v6399_v18, %v3039_v58  ;;  %v5162_v2 = vpop.f32.mrb[88].mxu0  ;;  %v5250_v51 = vpop.f32.mrb[88].mxu1  ;;  %v7168_v53 = vmax.f32 %v6095_v37, %v7167_v50 }
 0x1b7   : > { %vm3190_vm14 = vcmp.ge.f32.partialorder %v3119_v47, 0.0  ;;  %v3261_v52 = vmul.f32 0.2, %v3119_v47  ;;  %v2368_v26 = vmax.f32 %v7160_v25, %v5162_v2  ;;  %v2128_v9 = vpop.f32.mrb[89].mxu0  ;;  %v2804_v10 = vpop.f32.mrb[89].mxu1  ;;  %v3331_v4 = vsel %vm3189_vm12, %v3118_v22, %v3260_v46 }
 0x1b8   : > { %vm3188_vm15 = vcmp.ge.f32.partialorder %v3117_v61, 0.0  ;;  %v3259_v43 = vmul.f32 0.2, %v3117_v61  ;;  %v2366_v30 = vmax.f32 %v7161_v34, %v2128_v9  ;;  %v5163_v31 = vpop.f32.mrb[90].mxu0  ;;  %v5251_v14 = vpop.f32.mrb[90].mxu1  ;;  %v3329_v15 = vsel %vm3187_vm13, %v3116_v8, %v3258_v49  ;;  %v7169_v34 = vld [vmem:[#allocation4_spill] sm:$0xff] }
 0x1b9   : > { %v3332_v57 = vsel %vm3190_vm14, %v3119_v47, %v3261_v52  ;;  %v3044_v35 = vmax.f32 %v2368_v26, %v5250_v51  ;;  %v2369_v60 = vmax.f32 %v7162_v59, %v5163_v31  ;;  %v2131_v36 = vpop.f32.mrb[91].mxu0  ;;  %v2807_v62 = vpop.f32.mrb[91].mxu1 }
 0x1ba   : > { %v4605_v19 = vpack.c.bf16 %v3332_v57, %v3331_v4  ;;  %v3330_v20 = vsel %vm3188_vm15, %v3117_v61, %v3259_v43  ;;  %v3042_v63 = vmax.f32 %v2366_v30, %v2804_v10  ;;  %v2367_v11 = vmax.f32 %v7163_v1, %v2131_v36  ;;  %v7170_v30 = vld [vmem:[#allocation5_spill] sm:$0xff]  ;;  %v7173_v36 = vld [vmem:[#allocation7_spill] sm:$0xff] }
 0x1bb   : > { %v4600_v56 = vpack.c.bf16 %v3330_v20, %v3329_v15  ;;  %v3122_v5 = vadd.f32 %v6399_v18, %v3044_v35  ;;  %v3045_v3 = vmax.f32 %v2369_v60, %v5251_v14  ;;  %v7171_v31 = vmax.f32 %v7169_v34, %v7170_v30  ;;  %v7172_v60 = vld [vmem:[#allocation6_spill] sm:$0xff] }
 0x1bc   : > { %4748 = vst [vmem:[%s6432_s21 + $0x38] sm:$0xff] %v4605_v19   ;;  %v3120_v29 = vadd.f32 %v6399_v18, %v3042_v63  ;;  %v3043_v24 = vmax.f32 %v2367_v11, %v2807_v62  ;;  %v7174_v62 = vmax.f32 %v7172_v60, %v7173_v36 }
 0x1bd   : > { %4747 = vst [vmem:[%s6432_s21 + $0x30] sm:$0xff] %v4600_v56   ;;  %vm3193_vm0 = vcmp.ge.f32.partialorder %v3122_v5, 0.0  ;;  %v3264_v27 = vmul.f32 0.2, %v3122_v5  ;;  %v3123_v28 = vadd.f32 %v6399_v18, %v3045_v3  ;;  %v7176_v3 = vld [vmem:[#allocation9_spill] sm:$0xff] }
 0x1be   : > { %vm3191_vm1 = vcmp.ge.f32.partialorder %v3120_v29, 0.0  ;;  %v3262_v45 = vmul.f32 0.2, %v3120_v29  ;;  %v3121_v40 = vadd.f32 %v6399_v18, %v3043_v24  ;;  %v5166_v32 = vpop.f32.mrb[92].mxu0  ;;  %v5254_v44 = vpop.f32.mrb[92].mxu1 }
 0x1bf   : > { %vm3194_vm2 = vcmp.ge.f32.partialorder %v3123_v28, 0.0  ;;  %v3265_v48 = vmul.f32 0.2, %v3123_v28  ;;  %v2372_v38 = vmax.f32 %v7164_v33, %v5166_v32  ;;  %v2144_v39 = vpop.f32.mrb[93].mxu0  ;;  %v2820_v21 = vpop.f32.mrb[93].mxu1  ;;  %v3335_v54 = vsel %vm3193_vm0, %v3122_v5, %v3264_v27  ;;  %v7175_v5 = vld [vmem:[#allocation8_spill] sm:$0xff] }
 0x1c0   : > { %vm3192_vm3 = vcmp.ge.f32.partialorder %v3121_v40, 0.0  ;;  %v3263_v55 = vmul.f32 0.2, %v3121_v40  ;;  %v2370_v6 = vmax.f32 %v7165_v13, %v2144_v39  ;;  %v5167_v41 = vpop.f32.mrb[94].mxu0  ;;  %v5255_v42 = vpop.f32.mrb[94].mxu1  ;;  %v3333_v7 = vsel %vm3191_vm1, %v3120_v29, %v3262_v45 }
 0x1c1   : > { %v3336_v22 = vsel %vm3194_vm2, %v3123_v28, %v3265_v48  ;;  %v3048_v23 = vmax.f32 %v2372_v38, %v5254_v44  ;;  %v2373_v17 = vmax.f32 %v7166_v0, %v5167_v41  ;;  %v2147_v8 = vpop.f32.mrb[95].mxu0  ;;  %v2823_v58 = vpop.f32.mrb[95].mxu1  ;;  %v7177_v29 = vmax.f32 %v7175_v5, %v7176_v3  ;;  %v7178_v44 = vld [vmem:[#allocation10_spill] sm:$0xff]  ;;  %v7179_v48 = vld [vmem:[#allocation11_spill] sm:$0xff] }
 0x1c2   : > { %v4615_v46 = vpack.c.bf16 %v3336_v22, %v3335_v54  ;;  %v3334_v47 = vsel %vm3192_vm3, %v3121_v40, %v3263_v55  ;;  %v3046_v49 = vmax.f32 %v2370_v6, %v2820_v21  ;;  %v2371_v61 = vmax.f32 %v7168_v53, %v2147_v8  ;;  %v7182_v8 = vld [vmem:[#allocation13_spill] sm:$0xff] }
 0x1c3   : > { %v4610_v2 = vpack.c.bf16 %v3334_v47, %v3333_v7  ;;  %v3126_v51 = vadd.f32 %v6399_v18, %v3048_v23  ;;  %v3049_v52 = vmax.f32 %v2373_v17, %v5255_v42  ;;  %v7180_v33 = vmax.f32 %v7178_v44, %v7179_v48  ;;  %v7181_v17 = vld [vmem:[#allocation12_spill] sm:$0xff] }
 0x1c4   : > { %4750 = vst [vmem:[%s6432_s21 + $0x48] sm:$0xff] %v4615_v46   ;;  %v3124_v25 = vadd.f32 %v6399_v18, %v3046_v49  ;;  %v3047_v26 = vmax.f32 %v2371_v61, %v2823_v58  ;;  %v7183_v58 = vmax.f32 %v7181_v17, %v7182_v8  ;;  %v7184_v61 = vld [vmem:[#allocation14_spill] sm:$0xff] }
 0x1c5   : > { %4749 = vst [vmem:[%s6432_s21 + $0x40] sm:$0xff] %v4610_v2   ;;  %vm3197_vm4 = vcmp.ge.f32.partialorder %v3126_v51, 0.0  ;;  %v3268_v12 = vmul.f32 0.2, %v3126_v51  ;;  %v3127_v16 = vadd.f32 %v6399_v18, %v3049_v52  ;;  %v7185_v2 = vld [vmem:[#allocation15_spill] sm:$0xff] }
 0x1c6   : > { %vm3195_vm5 = vcmp.ge.f32.partialorder %v3124_v25, 0.0  ;;  %v3266_v9 = vmul.f32 0.2, %v3124_v25  ;;  %v3125_v10 = vadd.f32 %v6399_v18, %v3047_v26  ;;  %v5170_v4 = vpop.f32.mrb[96].mxu0  ;;  %v5258_v37 = vpop.f32.mrb[96].mxu1 }
 0x1c7   : > { %vm3198_vm6 = vcmp.ge.f32.partialorder %v3127_v16, 0.0  ;;  %v3269_v43 = vmul.f32 0.2, %v3127_v16  ;;  %v2376_v14 = vmax.f32 %v7171_v31, %v5170_v4  ;;  %v2160_v15 = vpop.f32.mrb[97].mxu0  ;;  %v2836_v57 = vpop.f32.mrb[97].mxu1  ;;  %v3339_v35 = vsel %vm3197_vm4, %v3126_v51, %v3268_v12  ;;  %v7188_v4 = vld [vmem:[#allocation17_spill] sm:$0xff] }
 0x1c8   : > { %vm3196_vm7 = vcmp.ge.f32.partialorder %v3125_v10, 0.0  ;;  %v3267_v59 = vmul.f32 0.2, %v3125_v10  ;;  %v2374_v19 = vmax.f32 %v7174_v62, %v2160_v15  ;;  %v5171_v20 = vpop.f32.mrb[98].mxu0  ;;  %v5259_v63 = vpop.f32.mrb[98].mxu1  ;;  %v3337_v1 = vsel %vm3195_vm5, %v3124_v25, %v3266_v9 }
 0x1c9   : > { %v3340_v11 = vsel %vm3198_vm6, %v3127_v16, %v3269_v43  ;;  %v3052_v56 = vmax.f32 %v2376_v14, %v5258_v37  ;;  %v2377_v24 = vmax.f32 %v7177_v29, %v5171_v20  ;;  %v2163_v27 = vpop.f32.mrb[99].mxu0  ;;  %v2839_v28 = vpop.f32.mrb[99].mxu1  ;;  %v7186_v51 = vmax.f32 %v7184_v61, %v7185_v2 }
 0x1ca   : > { %v4625_v45 = vpack.c.bf16 %v3340_v11, %v3339_v35  ;;  %v3338_v40 = vsel %vm3196_vm7, %v3125_v10, %v3267_v59  ;;  %v3050_v32 = vmax.f32 %v2374_v19, %v2836_v57  ;;  %v2375_v38 = vmax.f32 %v7180_v33, %v2163_v27  ;;  %v7187_v10 = vld [vmem:[#allocation16_spill] sm:$0xff]  ;;  %v7190_v57 = vld [vmem:[#allocation18_spill] sm:$0xff]  ;;  %v7191_v35 = vld [vmem:[#allocation19_spill] sm:$0xff] }
 0x1cb   : > { %v4620_v39 = vpack.c.bf16 %v3338_v40, %v3337_v1  ;;  %v3130_v21 = vadd.f32 %v6399_v18, %v3052_v56  ;;  %v3053_v54 = vmax.f32 %v2377_v24, %v5259_v63  ;;  %v7189_v37 = vmax.f32 %v7187_v10, %v7188_v4  ;;  %v7193_v27 = vld [vmem:[#allocation20_spill] sm:$0xff] }
 0x1cc   : > { %4752 = vst [vmem:[%s6432_s21 + $0x58] sm:$0xff] %v4625_v45   ;;  %v3128_v55 = vadd.f32 %v6399_v18, %v3050_v32  ;;  %v3051_v13 = vmax.f32 %v2375_v38, %v2839_v28  ;;  %v7192_v59 = vmax.f32 %v7190_v57, %v7191_v35  ;;  %v7194_v28 = vld [vmem:[#allocation21_spill] sm:$0xff]  ;;  %v7196_v38 = vld [vmem:[#allocation22_spill] sm:$0xff] }
 0x1cd   : > { %4751 = vst [vmem:[%s6432_s21 + $0x50] sm:$0xff] %v4620_v39   ;;  %vm3201_vm8 = vcmp.ge.f32.partialorder %v3130_v21, 0.0  ;;  %v3272_v6 = vmul.f32 0.2, %v3130_v21  ;;  %v3131_v41 = vadd.f32 %v6399_v18, %v3053_v54  ;;  %v7195_v45 = vmax.f32 %v7193_v27, %v7194_v28  ;;  %v7197_v39 = vld [vmem:[#allocation23_spill] sm:$0xff] }
 0x1ce   : > { %vm3199_vm9 = vcmp.ge.f32.partialorder %v3128_v55, 0.0  ;;  %v3270_v42 = vmul.f32 0.2, %v3128_v55  ;;  %v3129_v7 = vadd.f32 %v6399_v18, %v3051_v13  ;;  %v5174_v22 = vpop.f32.mrb[100].mxu0  ;;  %v5262_v23 = vpop.f32.mrb[100].mxu1 }
 0x1cf   : > { %vm3202_vm10 = vcmp.ge.f32.partialorder %v3131_v41, 0.0  ;;  %v3273_v0 = vmul.f32 0.2, %v3131_v41  ;;  %v2380_v46 = vmax.f32 %v7183_v58, %v5174_v22  ;;  %v2176_v47 = vpop.f32.mrb[101].mxu0  ;;  %v2852_v49 = vpop.f32.mrb[101].mxu1  ;;  %v3343_v50 = vsel %vm3201_vm8, %v3130_v21, %v3272_v6  ;;  %v7200_v22 = vld [vmem:[#allocation25_spill] sm:$0xff] }
 0x1d0   : > { %vm3200_vm11 = vcmp.ge.f32.partialorder %v3129_v7, 0.0  ;;  %v3271_v53 = vmul.f32 0.2, %v3129_v7  ;;  %v2378_v52 = vmax.f32 %v7186_v51, %v2176_v47  ;;  %v5175_v25 = vpop.f32.mrb[102].mxu0  ;;  %v5263_v26 = vpop.f32.mrb[102].mxu1  ;;  %v3341_v12 = vsel %vm3199_vm9, %v3128_v55, %v3270_v42 }
 0x1d1   : > { %v3344_v16 = vsel %vm3202_vm10, %v3131_v41, %v3273_v0  ;;  %v3056_v9 = vmax.f32 %v2380_v46, %v5262_v23  ;;  %v2381_v43 = vmax.f32 %v7189_v37, %v5175_v25  ;;  %v2179_v34 = vpop.f32.mrb[103].mxu0  ;;  %v2855_v30 = vpop.f32.mrb[103].mxu1  ;;  %v7198_v21 = vmax.f32 %v7196_v38, %v7197_v39 }
 0x1d2   : > { %v4635_v31 = vpack.c.bf16 %v3344_v16, %v3343_v50  ;;  %v3342_v14 = vsel %vm3200_vm11, %v3129_v7, %v3271_v53  ;;  %v3054_v15 = vmax.f32 %v2378_v52, %v2852_v49  ;;  %v2379_v60 = vmax.f32 %v7192_v59, %v2179_v34  ;;  %v7199_v7 = vld [vmem:[#allocation24_spill] sm:$0xff]  ;;  %v7202_v49 = vld [vmem:[#allocation26_spill] sm:$0xff]  ;;  %v7203_v50 = vld [vmem:[#allocation27_spill] sm:$0xff] }
 0x1d3   : > { %v4630_v36 = vpack.c.bf16 %v3342_v14, %v3341_v12  ;;  %v3134_v62 = vadd.f32 %v6399_v18, %v3056_v9  ;;  %v3057_v19 = vmax.f32 %v2381_v43, %v5263_v26  ;;  %v7201_v23 = vmax.f32 %v7199_v7, %v7200_v22  ;;  %v7205_v34 = vld [vmem:[#allocation28_spill] sm:$0xff] }
 0x1d4   : > { %4754 = vst [vmem:[%s6432_s21 + $0x68] sm:$0xff] %v4635_v31   ;;  %v3132_v20 = vadd.f32 %v6399_v18, %v3054_v15  ;;  %v3055_v63 = vmax.f32 %v2379_v60, %v2855_v30  ;;  %v7204_v53 = vmax.f32 %v7202_v49, %v7203_v50  ;;  %v7206_v30 = vld [vmem:[#allocation29_spill] sm:$0xff]  ;;  %v7208_v60 = vld [vmem:[#allocation30_spill] sm:$0xff] }
 0x1d5   : > { %4753 = vst [vmem:[%s6432_s21 + $0x60] sm:$0xff] %v4630_v36   ;;  %vm3205_vm12 = vcmp.ge.f32.partialorder %v3134_v62, 0.0  ;;  %v3276_v1 = vmul.f32 0.2, %v3134_v62  ;;  %v3135_v11 = vadd.f32 %v6399_v18, %v3057_v19  ;;  %v7207_v31 = vmax.f32 %v7205_v34, %v7206_v30  ;;  %v7209_v36 = vld [vmem:[#allocation31_spill] sm:$0xff] }
 0x1d6   : > { %vm3203_vm13 = vcmp.ge.f32.partialorder %v3132_v20, 0.0  ;;  %v3274_v56 = vmul.f32 0.2, %v3132_v20  ;;  %v3133_v5 = vadd.f32 %v6399_v18, %v3055_v63  ;;  %v5178_v3 = vpop.f32.mrb[104].mxu0  ;;  %v5266_v29 = vpop.f32.mrb[104].mxu1 }
 0x1d7   : > { %vm3206_vm14 = vcmp.ge.f32.partialorder %v3135_v11, 0.0  ;;  %v3277_v24 = vmul.f32 0.2, %v3135_v11  ;;  %v2384_v40 = vmax.f32 %v7195_v45, %v5178_v3  ;;  %v2192_v32 = vpop.f32.mrb[105].mxu0  ;;  %v2868_v44 = vpop.f32.mrb[105].mxu1  ;;  %v3347_v48 = vsel %vm3205_vm12, %v3134_v62, %v3276_v1  ;;  %v7212_v3 = vld [vmem:[#allocation33_spill] sm:$0xff] }
 0x1d8   : > { %vm3204_vm15 = vcmp.ge.f32.partialorder %v3133_v5, 0.0  ;;  %v3275_v33 = vmul.f32 0.2, %v3133_v5  ;;  %v2382_v54 = vmax.f32 %v7198_v21, %v2192_v32  ;;  %v5179_v55 = vpop.f32.mrb[106].mxu0  ;;  %v5267_v13 = vpop.f32.mrb[106].mxu1  ;;  %v3345_v6 = vsel %vm3203_vm13, %v3132_v20, %v3274_v56 }
 0x1d9   : > { %v3348_v41 = vsel %vm3206_vm14, %v3135_v11, %v3277_v24  ;;  %v3060_v42 = vmax.f32 %v2384_v40, %v5266_v29  ;;  %v2385_v0 = vmax.f32 %v7201_v23, %v5179_v55  ;;  %v2195_v17 = vpop.f32.mrb[107].mxu0  ;;  %v2871_v8 = vpop.f32.mrb[107].mxu1  ;;  %v7210_v62 = vmax.f32 %v7208_v60, %v7209_v36 }
 0x1da   : > { %v4645_v58 = vpack.c.bf16 %v3348_v41, %v3347_v48  ;;  %v3346_v46 = vsel %vm3204_vm15, %v3133_v5, %v3275_v33  ;;  %v3058_v47 = vmax.f32 %v2382_v54, %v2868_v44  ;;  %v2383_v61 = vmax.f32 %v7204_v53, %v2195_v17  ;;  %v7211_v5 = vld [vmem:[#allocation32_spill] sm:$0xff]  ;;  %v7214_v44 = vld [vmem:[#allocation34_spill] sm:$0xff]  ;;  %v7215_v48 = vld [vmem:[#allocation35_spill] sm:$0xff] }
 0x1db   : > { %v4640_v2 = vpack.c.bf16 %v3346_v46, %v3345_v6  ;;  %v3138_v51 = vadd.f32 %v6399_v18, %v3060_v42  ;;  %v3061_v52 = vmax.f32 %v2385_v0, %v5267_v13  ;;  %v7213_v29 = vmax.f32 %v7211_v5, %v7212_v3  ;;  %v7217_v17 = vld [vmem:[#allocation36_spill] sm:$0xff] }
 0x1dc   : > { %4756 = vst [vmem:[%s6432_s21 + $0x78] sm:$0xff] %v4645_v58   ;;  %v3136_v25 = vadd.f32 %v6399_v18, %v3058_v47  ;;  %v3059_v26 = vmax.f32 %v2383_v61, %v2871_v8  ;;  %v7216_v33 = vmax.f32 %v7214_v44, %v7215_v48  ;;  %v7218_v8 = vld [vmem:[#allocation37_spill] sm:$0xff]  ;;  %v7220_v61 = vld [vmem:[#allocation38_spill] sm:$0xff] }
 0x1dd   : > { %4755 = vst [vmem:[%s6432_s21 + $0x70] sm:$0xff] %v4640_v2   ;;  %vm3209_vm0 = vcmp.ge.f32.partialorder %v3138_v51, 0.0  ;;  %v3280_v12 = vmul.f32 0.2, %v3138_v51  ;;  %v3139_v16 = vadd.f32 %v6399_v18, %v3061_v52  ;;  %v7219_v58 = vmax.f32 %v7217_v17, %v7218_v8  ;;  %v7221_v2 = vld [vmem:[#allocation39_spill] sm:$0xff] }
 0x1de   : > { %vm3207_vm1 = vcmp.ge.f32.partialorder %v3136_v25, 0.0  ;;  %v3278_v9 = vmul.f32 0.2, %v3136_v25  ;;  %v3137_v10 = vadd.f32 %v6399_v18, %v3059_v26  ;;  %v5182_v4 = vpop.f32.mrb[108].mxu0  ;;  %v5270_v37 = vpop.f32.mrb[108].mxu1 }
 0x1df   : > { %vm3210_vm2 = vcmp.ge.f32.partialorder %v3139_v16, 0.0  ;;  %v3281_v43 = vmul.f32 0.2, %v3139_v16  ;;  %v2388_v14 = vmax.f32 %v7207_v31, %v5182_v4  ;;  %v2208_v15 = vpop.f32.mrb[109].mxu0  ;;  %v2884_v57 = vpop.f32.mrb[109].mxu1  ;;  %v3351_v35 = vsel %vm3209_vm0, %v3138_v51, %v3280_v12  ;;  %v7224_v4 = vld [vmem:[#allocation41_spill] sm:$0xff] }
 0x1e0   : > { %vm3208_vm3 = vcmp.ge.f32.partialorder %v3137_v10, 0.0  ;;  %v3279_v59 = vmul.f32 0.2, %v3137_v10  ;;  %v2386_v19 = vmax.f32 %v7210_v62, %v2208_v15  ;;  %v5183_v20 = vpop.f32.mrb[110].mxu0  ;;  %v5271_v63 = vpop.f32.mrb[110].mxu1  ;;  %v3349_v1 = vsel %vm3207_vm1, %v3136_v25, %v3278_v9 }
 0x1e1   : > { %v3352_v11 = vsel %vm3210_vm2, %v3139_v16, %v3281_v43  ;;  %v3064_v56 = vmax.f32 %v2388_v14, %v5270_v37  ;;  %v2389_v24 = vmax.f32 %v7213_v29, %v5183_v20  ;;  %v2211_v27 = vpop.f32.mrb[111].mxu0  ;;  %v2887_v28 = vpop.f32.mrb[111].mxu1  ;;  %v7222_v51 = vmax.f32 %v7220_v61, %v7221_v2 }
 0x1e2   : > { %v4655_v45 = vpack.c.bf16 %v3352_v11, %v3351_v35  ;;  %v3350_v40 = vsel %vm3208_vm3, %v3137_v10, %v3279_v59  ;;  %v3062_v32 = vmax.f32 %v2386_v19, %v2884_v57  ;;  %v2387_v38 = vmax.f32 %v7216_v33, %v2211_v27  ;;  %v7223_v10 = vld [vmem:[#allocation40_spill] sm:$0xff]  ;;  %v7226_v57 = vld [vmem:[#allocation42_spill] sm:$0xff]  ;;  %v7227_v35 = vld [vmem:[#allocation43_spill] sm:$0xff] }
 0x1e3   : > { %v4650_v39 = vpack.c.bf16 %v3350_v40, %v3349_v1  ;;  %v3142_v21 = vadd.f32 %v6399_v18, %v3064_v56  ;;  %v3065_v54 = vmax.f32 %v2389_v24, %v5271_v63  ;;  %v7225_v37 = vmax.f32 %v7223_v10, %v7224_v4  ;;  %v7229_v27 = vld [vmem:[#allocation44_spill] sm:$0xff] }
 0x1e4   : > { %4758 = vst [vmem:[%s6432_s21 + $0x88] sm:$0xff] %v4655_v45   ;;  %v3140_v55 = vadd.f32 %v6399_v18, %v3062_v32  ;;  %v3063_v13 = vmax.f32 %v2387_v38, %v2887_v28  ;;  %v7228_v59 = vmax.f32 %v7226_v57, %v7227_v35  ;;  %v7230_v28 = vld [vmem:[#allocation45_spill] sm:$0xff]  ;;  %v7232_v38 = vld [vmem:[#allocation46_spill] sm:$0xff] }
 0x1e5   : > { %4757 = vst [vmem:[%s6432_s21 + $0x80] sm:$0xff] %v4650_v39   ;;  %vm3213_vm4 = vcmp.ge.f32.partialorder %v3142_v21, 0.0  ;;  %v3284_v6 = vmul.f32 0.2, %v3142_v21  ;;  %v3143_v41 = vadd.f32 %v6399_v18, %v3065_v54  ;;  %v7231_v45 = vmax.f32 %v7229_v27, %v7230_v28  ;;  %v7233_v39 = vld [vmem:[#allocation47_spill] sm:$0xff] }
 0x1e6   : > { %vm3211_vm5 = vcmp.ge.f32.partialorder %v3140_v55, 0.0  ;;  %v3282_v42 = vmul.f32 0.2, %v3140_v55  ;;  %v3141_v7 = vadd.f32 %v6399_v18, %v3063_v13  ;;  %v5186_v22 = vpop.f32.mrb[112].mxu0  ;;  %v5274_v23 = vpop.f32.mrb[112].mxu1 }
 0x1e7   : > { %vm3214_vm6 = vcmp.ge.f32.partialorder %v3143_v41, 0.0  ;;  %v3285_v0 = vmul.f32 0.2, %v3143_v41  ;;  %v2392_v46 = vmax.f32 %v7219_v58, %v5186_v22  ;;  %v2224_v47 = vpop.f32.mrb[113].mxu0  ;;  %v2900_v49 = vpop.f32.mrb[113].mxu1  ;;  %v3355_v50 = vsel %vm3213_vm4, %v3142_v21, %v3284_v6  ;;  %v7236_v22 = vld [vmem:[#allocation49_spill] sm:$0xff] }
 0x1e8   : > { %vm3212_vm7 = vcmp.ge.f32.partialorder %v3141_v7, 0.0  ;;  %v3283_v53 = vmul.f32 0.2, %v3141_v7  ;;  %v2390_v52 = vmax.f32 %v7222_v51, %v2224_v47  ;;  %v5187_v25 = vpop.f32.mrb[114].mxu0  ;;  %v5275_v26 = vpop.f32.mrb[114].mxu1  ;;  %v3353_v12 = vsel %vm3211_vm5, %v3140_v55, %v3282_v42 }
 0x1e9   : > { %v3356_v16 = vsel %vm3214_vm6, %v3143_v41, %v3285_v0  ;;  %v3068_v9 = vmax.f32 %v2392_v46, %v5274_v23  ;;  %v2393_v43 = vmax.f32 %v7225_v37, %v5187_v25  ;;  %v2227_v34 = vpop.f32.mrb[115].mxu0  ;;  %v2903_v30 = vpop.f32.mrb[115].mxu1  ;;  %v7234_v21 = vmax.f32 %v7232_v38, %v7233_v39 }
 0x1ea   : > { %v4665_v31 = vpack.c.bf16 %v3356_v16, %v3355_v50  ;;  %v3354_v14 = vsel %vm3212_vm7, %v3141_v7, %v3283_v53  ;;  %v3066_v15 = vmax.f32 %v2390_v52, %v2900_v49  ;;  %v2391_v60 = vmax.f32 %v7228_v59, %v2227_v34  ;;  %v7235_v7 = vld [vmem:[#allocation48_spill] sm:$0xff]  ;;  %v7238_v49 = vld [vmem:[#allocation50_spill] sm:$0xff]  ;;  %v7239_v50 = vld [vmem:[#allocation51_spill] sm:$0xff] }
 0x1eb   : > { %v4660_v36 = vpack.c.bf16 %v3354_v14, %v3353_v12  ;;  %v3146_v62 = vadd.f32 %v6399_v18, %v3068_v9  ;;  %v3069_v19 = vmax.f32 %v2393_v43, %v5275_v26  ;;  %v7237_v23 = vmax.f32 %v7235_v7, %v7236_v22  ;;  %v7241_v34 = vld [vmem:[#allocation52_spill] sm:$0xff] }
 0x1ec   : > { %4760 = vst [vmem:[%s6432_s21 + $0x98] sm:$0xff] %v4665_v31   ;;  %v3144_v20 = vadd.f32 %v6399_v18, %v3066_v15  ;;  %v3067_v63 = vmax.f32 %v2391_v60, %v2903_v30  ;;  %v7240_v53 = vmax.f32 %v7238_v49, %v7239_v50  ;;  %v7242_v30 = vld [vmem:[#allocation53_spill] sm:$0xff]  ;;  %v7244_v60 = vld [vmem:[#allocation54_spill] sm:$0xff] }
 0x1ed   : > { %4759 = vst [vmem:[%s6432_s21 + $0x90] sm:$0xff] %v4660_v36   ;;  %vm3217_vm8 = vcmp.ge.f32.partialorder %v3146_v62, 0.0  ;;  %v3288_v1 = vmul.f32 0.2, %v3146_v62  ;;  %v3147_v11 = vadd.f32 %v6399_v18, %v3069_v19  ;;  %v7243_v31 = vmax.f32 %v7241_v34, %v7242_v30  ;;  %v7245_v36 = vld [vmem:[#allocation55_spill] sm:$0xff] }
 0x1ee   : > { %vm3215_vm9 = vcmp.ge.f32.partialorder %v3144_v20, 0.0  ;;  %v3286_v56 = vmul.f32 0.2, %v3144_v20  ;;  %v3145_v5 = vadd.f32 %v6399_v18, %v3067_v63  ;;  %v5190_v3 = vpop.f32.mrb[116].mxu0  ;;  %v5278_v29 = vpop.f32.mrb[116].mxu1 }
 0x1ef   : > { %vm3218_vm10 = vcmp.ge.f32.partialorder %v3147_v11, 0.0  ;;  %v3289_v24 = vmul.f32 0.2, %v3147_v11  ;;  %v2396_v40 = vmax.f32 %v7231_v45, %v5190_v3  ;;  %v2240_v32 = vpop.f32.mrb[117].mxu0  ;;  %v2916_v44 = vpop.f32.mrb[117].mxu1  ;;  %v3359_v48 = vsel %vm3217_vm8, %v3146_v62, %v3288_v1  ;;  %v7248_v3 = vld [vmem:[#allocation57_spill] sm:$0xff] }
 0x1f0   : > { %vm3216_vm11 = vcmp.ge.f32.partialorder %v3145_v5, 0.0  ;;  %v3287_v33 = vmul.f32 0.2, %v3145_v5  ;;  %v2394_v54 = vmax.f32 %v7234_v21, %v2240_v32  ;;  %v5191_v55 = vpop.f32.mrb[118].mxu0  ;;  %v5279_v13 = vpop.f32.mrb[118].mxu1  ;;  %v3357_v6 = vsel %vm3215_vm9, %v3144_v20, %v3286_v56 }
 0x1f1   : > { %v3360_v41 = vsel %vm3218_vm10, %v3147_v11, %v3289_v24  ;;  %v3072_v42 = vmax.f32 %v2396_v40, %v5278_v29  ;;  %v2397_v0 = vmax.f32 %v7237_v23, %v5191_v55  ;;  %v2243_v17 = vpop.f32.mrb[119].mxu0  ;;  %v2919_v8 = vpop.f32.mrb[119].mxu1  ;;  %v7246_v62 = vmax.f32 %v7244_v60, %v7245_v36 }
 0x1f2   : > { %v4675_v58 = vpack.c.bf16 %v3360_v41, %v3359_v48  ;;  %v3358_v46 = vsel %vm3216_vm11, %v3145_v5, %v3287_v33  ;;  %v3070_v47 = vmax.f32 %v2394_v54, %v2916_v44  ;;  %v2395_v61 = vmax.f32 %v7240_v53, %v2243_v17  ;;  %v7247_v5 = vld [vmem:[#allocation56_spill] sm:$0xff]  ;;  %v7250_v44 = vld [vmem:[#allocation58_spill] sm:$0xff]  ;;  %v7251_v48 = vld [vmem:[#allocation59_spill] sm:$0xff] }
 0x1f3   : > { %v4670_v2 = vpack.c.bf16 %v3358_v46, %v3357_v6  ;;  %v3150_v51 = vadd.f32 %v6399_v18, %v3072_v42  ;;  %v3073_v52 = vmax.f32 %v2397_v0, %v5279_v13  ;;  %v7249_v29 = vmax.f32 %v7247_v5, %v7248_v3  ;;  %v7253_v17 = vld [vmem:[#allocation60_spill] sm:$0xff] }
 0x1f4   : > { %4762 = vst [vmem:[%s6432_s21 + $0xa8] sm:$0xff] %v4675_v58   ;;  %v3148_v25 = vadd.f32 %v6399_v18, %v3070_v47  ;;  %v3071_v26 = vmax.f32 %v2395_v61, %v2919_v8  ;;  %v7252_v33 = vmax.f32 %v7250_v44, %v7251_v48  ;;  %v7254_v8 = vld [vmem:[#allocation61_spill] sm:$0xff]  ;;  %v7256_v61 = vld [vmem:[#allocation62_spill] sm:$0xff] }
 0x1f5   : > { %4761 = vst [vmem:[%s6432_s21 + $0xa0] sm:$0xff] %v4670_v2   ;;  %vm3221_vm12 = vcmp.ge.f32.partialorder %v3150_v51, 0.0  ;;  %v3292_v12 = vmul.f32 0.2, %v3150_v51  ;;  %v3151_v16 = vadd.f32 %v6399_v18, %v3073_v52  ;;  %v7255_v58 = vmax.f32 %v7253_v17, %v7254_v8  ;;  %v7257_v2 = vld [vmem:[#allocation63_spill] sm:$0xff] }
 0x1f6   : > { %vm3219_vm13 = vcmp.ge.f32.partialorder %v3148_v25, 0.0  ;;  %v3290_v9 = vmul.f32 0.2, %v3148_v25  ;;  %v3149_v10 = vadd.f32 %v6399_v18, %v3071_v26  ;;  %v5194_v4 = vpop.f32.mrb[120].mxu0  ;;  %v5282_v37 = vpop.f32.mrb[120].mxu1 }
 0x1f7   : > { %vm3222_vm14 = vcmp.ge.f32.partialorder %v3151_v16, 0.0  ;;  %v3293_v43 = vmul.f32 0.2, %v3151_v16  ;;  %v2400_v14 = vmax.f32 %v7243_v31, %v5194_v4  ;;  %v2256_v15 = vpop.f32.mrb[121].mxu0  ;;  %v2932_v57 = vpop.f32.mrb[121].mxu1  ;;  %v3363_v35 = vsel %vm3221_vm12, %v3150_v51, %v3292_v12  ;;  %v7260_v4 = vld [vmem:[#allocation65_spill] sm:$0xff] }
 0x1f8   : > { %vm3220_vm15 = vcmp.ge.f32.partialorder %v3149_v10, 0.0  ;;  %v3291_v59 = vmul.f32 0.2, %v3149_v10  ;;  %v2398_v19 = vmax.f32 %v7246_v62, %v2256_v15  ;;  %v5195_v20 = vpop.f32.mrb[122].mxu0  ;;  %v5283_v63 = vpop.f32.mrb[122].mxu1  ;;  %v3361_v1 = vsel %vm3219_vm13, %v3148_v25, %v3290_v9 }
 0x1f9   : > { %v3364_v11 = vsel %vm3222_vm14, %v3151_v16, %v3293_v43  ;;  %v3076_v56 = vmax.f32 %v2400_v14, %v5282_v37  ;;  %v2401_v24 = vmax.f32 %v7249_v29, %v5195_v20  ;;  %v2259_v27 = vpop.f32.mrb[123].mxu0  ;;  %v2935_v28 = vpop.f32.mrb[123].mxu1  ;;  %v7258_v51 = vmax.f32 %v7256_v61, %v7257_v2  ;;  %v6683_v2 = vld [vmem:[%s6951_s5] ss:$0 sm:$0xff] }
 0x1fa   : > { %v4685_v45 = vpack.c.bf16 %v3364_v11, %v3363_v35  ;;  %v3362_v40 = vsel %vm3220_vm15, %v3149_v10, %v3291_v59  ;;  %v3074_v32 = vmax.f32 %v2398_v19, %v2932_v57  ;;  %v2399_v38 = vmax.f32 %v7252_v33, %v2259_v27  ;;  %v7259_v10 = vld [vmem:[#allocation64_spill] sm:$0xff]  ;;  %v7262_v57 = vld [vmem:[#allocation66_spill] sm:$0xff]  ;;  %v7263_v35 = vld [vmem:[#allocation67_spill] sm:$0xff] }
 0x1fb   : > { %v4680_v39 = vpack.c.bf16 %v3362_v40, %v3361_v1  ;;  %v3154_v21 = vadd.f32 %v6399_v18, %v3076_v56  ;;  %v3077_v54 = vmax.f32 %v2401_v24, %v5283_v63  ;;  %v7261_v37 = vmax.f32 %v7259_v10, %v7260_v4  ;;  %v7265_v27 = vld [vmem:[#allocation68_spill] sm:$0xff] }
 0x1fc   : > { %4764 = vst [vmem:[%s6432_s21 + $0xb8] sm:$0xff] %v4685_v45   ;;  %v3152_v55 = vadd.f32 %v6399_v18, %v3074_v32  ;;  %v3075_v13 = vmax.f32 %v2399_v38, %v2935_v28  ;;  %v7264_v59 = vmax.f32 %v7262_v57, %v7263_v35  ;;  %v7266_v28 = vld [vmem:[#allocation69_spill] sm:$0xff]  ;;  %v7268_v38 = vld [vmem:[#allocation70_spill] sm:$0xff] }
 0x1fd   : > { %4763 = vst [vmem:[%s6432_s21 + $0xb0] sm:$0xff] %v4680_v39   ;;  %vm3225_vm0 = vcmp.ge.f32.partialorder %v3154_v21, 0.0  ;;  %v3296_v6 = vmul.f32 0.2, %v3154_v21  ;;  %v3155_v41 = vadd.f32 %v6399_v18, %v3077_v54  ;;  %v7267_v45 = vmax.f32 %v7265_v27, %v7266_v28  ;;  %v7269_v39 = vld [vmem:[#allocation71_spill] sm:$0xff] }
 0x1fe   : > { %vm3223_vm1 = vcmp.ge.f32.partialorder %v3152_v55, 0.0  ;;  %v3294_v42 = vmul.f32 0.2, %v3152_v55  ;;  %v3153_v7 = vadd.f32 %v6399_v18, %v3075_v13  ;;  %v5198_v22 = vpop.f32.mrb[124].mxu0  ;;  %v5286_v23 = vpop.f32.mrb[124].mxu1 }
 0x1ff   : > { %vm3226_vm2 = vcmp.ge.f32.partialorder %v3155_v41, 0.0  ;;  %v3297_v0 = vmul.f32 0.2, %v3155_v41  ;;  %v2404_v46 = vmax.f32 %v7255_v58, %v5198_v22  ;;  %v2272_v47 = vpop.f32.mrb[125].mxu0  ;;  %v2948_v49 = vpop.f32.mrb[125].mxu1  ;;  %v3367_v50 = vsel %vm3225_vm0, %v3154_v21, %v3296_v6 }
 0x200   : > { %vm3224_vm3 = vcmp.ge.f32.partialorder %v3153_v7, 0.0  ;;  %v3295_v53 = vmul.f32 0.2, %v3153_v7  ;;  %v2402_v52 = vmax.f32 %v7258_v51, %v2272_v47  ;;  %v5199_v25 = vpop.f32.mrb[126].mxu0  ;;  %v5287_v26 = vpop.f32.mrb[126].mxu1  ;;  %v3365_v12 = vsel %vm3223_vm1, %v3152_v55, %v3294_v42  ;;  %v7271_v42 = vld [vmem:[#allocation72_spill] sm:$0xff] }
 0x201   : > { %v3368_v16 = vsel %vm3226_vm2, %v3155_v41, %v3297_v0  ;;  %v3080_v9 = vmax.f32 %v2404_v46, %v5286_v23  ;;  %v2405_v43 = vmax.f32 %v7261_v37, %v5199_v25  ;;  %v2275_v34 = vpop.f32.mrb[127].mxu0  ;;  %v2951_v30 = vpop.f32.mrb[127].mxu1  ;;  %v7270_v21 = vmax.f32 %v7268_v38, %v7269_v39  ;;  %v7274_v47 = vld [vmem:[#allocation74_spill] sm:$0xff] }
 0x202   : > { %v4695_v31 = vpack.c.bf16 %v3368_v16, %v3367_v50  ;;  %v3366_v14 = vsel %vm3224_vm3, %v3153_v7, %v3295_v53  ;;  %v3078_v15 = vmax.f32 %v2402_v52, %v2948_v49  ;;  %v2403_v60 = vmax.f32 %v7264_v59, %v2275_v34  ;;  %v7272_v7 = vld [vmem:[#allocation73_spill] sm:$0xff]  ;;  %v7275_v49 = vld [vmem:[#allocation75_spill] sm:$0xff]  ;;  %v7277_v34 = vld [vmem:[#allocation76_spill] sm:$0xff] }
 0x203   : > { %v4690_v36 = vpack.c.bf16 %v3366_v14, %v3365_v12  ;;  %v3158_v62 = vadd.f32 %v6399_v18, %v3080_v9  ;;  %v3081_v19 = vmax.f32 %v2405_v43, %v5287_v26  ;;  %v7273_v22 = vmax.f32 %v7271_v42, %v7272_v7 }
 0x204   : > { %4766 = vst [vmem:[%s6432_s21 + $0xc8] sm:$0xff] %v4695_v31   ;;  %v3156_v20 = vadd.f32 %v6399_v18, %v3078_v15  ;;  %v3079_v63 = vmax.f32 %v2403_v60, %v2951_v30  ;;  %v7276_v50 = vmax.f32 %v7274_v47, %v7275_v49  ;;  %v7278_v30 = vld [vmem:[#allocation77_spill] sm:$0xff]  ;;  %v7280_v60 = vld [vmem:[#allocation78_spill] sm:$0xff] }
 0x205   : > { %4765 = vst [vmem:[%s6432_s21 + $0xc0] sm:$0xff] %v4690_v36   ;;  %vm3229_vm4 = vcmp.ge.f32.partialorder %v3158_v62, 0.0  ;;  %v3300_v1 = vmul.f32 0.2, %v3158_v62  ;;  %v3159_v11 = vadd.f32 %v6399_v18, %v3081_v19  ;;  %v7279_v31 = vmax.f32 %v7277_v34, %v7278_v30  ;;  %v7281_v36 = vld [vmem:[#allocation79_spill] sm:$0xff] }
 0x206   : > { %vm3227_vm5 = vcmp.ge.f32.partialorder %v3156_v20, 0.0  ;;  %v3298_v56 = vmul.f32 0.2, %v3156_v20  ;;  %v3157_v5 = vadd.f32 %v6399_v18, %v3079_v63  ;;  %v5202_v3 = vpop.f32.mrb[128].mxu0  ;;  %v5290_v29 = vpop.f32.mrb[128].mxu1 }
 0x207   : > { %vm3230_vm6 = vcmp.ge.f32.partialorder %v3159_v11, 0.0  ;;  %v3301_v24 = vmul.f32 0.2, %v3159_v11  ;;  %v2408_v40 = vmax.f32 %v7267_v45, %v5202_v3  ;;  %v2288_v32 = vpop.f32.mrb[129].mxu0  ;;  %v2964_v44 = vpop.f32.mrb[129].mxu1  ;;  %v3371_v48 = vsel %vm3229_vm4, %v3158_v62, %v3300_v1  ;;  %v7284_v3 = vld [vmem:[#allocation81_spill] sm:$0xff] }
 0x208   : > { %vm3228_vm7 = vcmp.ge.f32.partialorder %v3157_v5, 0.0  ;;  %v3299_v33 = vmul.f32 0.2, %v3157_v5  ;;  %v2406_v54 = vmax.f32 %v7270_v21, %v2288_v32  ;;  %v5203_v55 = vpop.f32.mrb[130].mxu0  ;;  %v5291_v18 = vpop.f32.mrb[130].mxu1  ;;  %v3369_v13 = vsel %vm3227_vm5, %v3156_v20, %v3298_v56 }
 0x209   : > { %v3372_v6 = vsel %vm3230_vm6, %v3159_v11, %v3301_v24  ;;  %v3084_v41 = vmax.f32 %v2408_v40, %v5290_v29  ;;  %v2409_v23 = vmax.f32 %v7273_v22, %v5203_v55  ;;  %v2291_v0 = vpop.f32.mrb[131].mxu0  ;;  %v2967_v17 = vpop.f32.mrb[131].mxu1  ;;  %v7282_v62 = vmax.f32 %v7280_v60, %v7281_v36 }
 0x20a   : > { %v4705_v8 = vpack.c.bf16 %v3372_v6, %v3371_v48  ;;  %v3370_v58 = vsel %vm3228_vm7, %v3157_v5, %v3299_v33  ;;  %v3082_v46 = vmax.f32 %v2406_v54, %v2964_v44  ;;  %v2407_v53 = vmax.f32 %v7276_v50, %v2291_v0  ;;  %v7283_v5 = vld [vmem:[#allocation80_spill] sm:$0xff]  ;;  %v7286_v44 = vld [vmem:[#allocation82_spill] sm:$0xff]  ;;  %v7287_v48 = vld [vmem:[#allocation83_spill] sm:$0xff] }
 0x20b   : > { %v4700_v61 = vpack.c.bf16 %v3370_v58, %v3369_v13  ;;  %v3162_v51 = vadd.f32 %v6683_v2, %v3084_v41  ;;  %v3085_v52 = vmax.f32 %v2409_v23, %v5291_v18  ;;  %v7285_v29 = vmax.f32 %v7283_v5, %v7284_v3  ;;  %v7289_v0 = vld [vmem:[#allocation84_spill] sm:$0xff] }
 0x20c   : > { %4768 = vst [vmem:[%s6432_s21 + $0xd8] sm:$0xff] %v4705_v8   ;;  %v3160_v25 = vadd.f32 %v6683_v2, %v3082_v46  ;;  %v3083_v26 = vmax.f32 %v2407_v53, %v2967_v17  ;;  %v7288_v33 = vmax.f32 %v7286_v44, %v7287_v48  ;;  %v7290_v17 = vld [vmem:[#allocation85_spill] sm:$0xff]  ;;  %v7292_v53 = vld [vmem:[#allocation86_spill] sm:$0xff] }
 0x20d   : > { %4767 = vst [vmem:[%s6432_s21 + $0xd0] sm:$0xff] %v4700_v61   ;;  %vm3233_vm8 = vcmp.ge.f32.partialorder %v3162_v51, 0.0  ;;  %v3304_v12 = vmul.f32 0.2, %v3162_v51  ;;  %v3163_v16 = vadd.f32 %v6683_v2, %v3085_v52  ;;  %v7291_v8 = vmax.f32 %v7289_v0, %v7290_v17  ;;  %v7293_v61 = vld [vmem:[#allocation87_spill] sm:$0xff]  ;;  %v7307_v17 = vld [vmem:[#allocation96_spill] sm:$0xff] }
 0x20e   : > { %vm3231_vm9 = vcmp.ge.f32.partialorder %v3160_v25, 0.0  ;;  %v3302_v9 = vmul.f32 0.2, %v3160_v25  ;;  %v3161_v10 = vadd.f32 %v6683_v2, %v3083_v26  ;;  %v5206_v4 = vpop.f32.mrb[132].mxu0  ;;  %v5294_v37 = vpop.f32.mrb[132].mxu1 }
 0x20f   : > { %vm3234_vm10 = vcmp.ge.f32.partialorder %v3163_v16, 0.0  ;;  %v3305_v43 = vmul.f32 0.2, %v3163_v16  ;;  %v2412_v14 = vmax.f32 %v7279_v31, %v5206_v4  ;;  %v2304_v15 = vpop.f32.mrb[133].mxu0  ;;  %v2980_v57 = vpop.f32.mrb[133].mxu1  ;;  %v3375_v35 = vsel %vm3233_vm8, %v3162_v51, %v3304_v12  ;;  %v7296_v4 = vld [vmem:[#allocation89_spill] sm:$0xff] }
 0x210   : > { %vm3232_vm11 = vcmp.ge.f32.partialorder %v3161_v10, 0.0  ;;  %v3303_v59 = vmul.f32 0.2, %v3161_v10  ;;  %v2410_v19 = vmax.f32 %v7282_v62, %v2304_v15  ;;  %v5207_v20 = vpop.f32.mrb[134].mxu0  ;;  %v5295_v63 = vpop.f32.mrb[134].mxu1  ;;  %v3373_v1 = vsel %vm3231_vm9, %v3160_v25, %v3302_v9 }
 0x211   : > { %v3376_v11 = vsel %vm3234_vm10, %v3163_v16, %v3305_v43  ;;  %v3088_v56 = vmax.f32 %v2412_v14, %v5294_v37  ;;  %v2413_v24 = vmax.f32 %v7285_v29, %v5207_v20  ;;  %v2307_v27 = vpop.f32.mrb[135].mxu0  ;;  %v2983_v28 = vpop.f32.mrb[135].mxu1  ;;  %v7294_v51 = vmax.f32 %v7292_v53, %v7293_v61 }
 0x212   : > { %v4715_v45 = vpack.c.bf16 %v3376_v11, %v3375_v35  ;;  %v3374_v40 = vsel %vm3232_vm11, %v3161_v10, %v3303_v59  ;;  %v3086_v32 = vmax.f32 %v2410_v19, %v2980_v57  ;;  %v2411_v38 = vmax.f32 %v7288_v33, %v2307_v27  ;;  %v7295_v10 = vld [vmem:[#allocation88_spill] sm:$0xff]  ;;  %v7298_v57 = vld [vmem:[#allocation90_spill] sm:$0xff]  ;;  %v7299_v35 = vld [vmem:[#allocation91_spill] sm:$0xff] }
 0x213   : > { %v4710_v39 = vpack.c.bf16 %v3374_v40, %v3373_v1  ;;  %v3166_v21 = vadd.f32 %v6683_v2, %v3088_v56  ;;  %v3089_v54 = vmax.f32 %v2413_v24, %v5295_v63  ;;  %v7297_v37 = vmax.f32 %v7295_v10, %v7296_v4  ;;  %v7301_v27 = vld [vmem:[#allocation92_spill] sm:$0xff]  ;;  %v7304_v33 = vld [vmem:[#allocation94_spill] sm:$0xff] }
 0x214   : > { %4770 = vst [vmem:[%s6432_s21 + $0xe8] sm:$0xff] %v4715_v45   ;;  %v3164_v55 = vadd.f32 %v6683_v2, %v3086_v32  ;;  %v3087_v18 = vmax.f32 %v2411_v38, %v2983_v28  ;;  %v7300_v59 = vmax.f32 %v7298_v57, %v7299_v35  ;;  %v7302_v28 = vld [vmem:[#allocation93_spill] sm:$0xff]  ;;  %v7305_v38 = vld [vmem:[#allocation95_spill] sm:$0xff] }
 0x215   : > { %4769 = vst [vmem:[%s6432_s21 + $0xe0] sm:$0xff] %v4710_v39   ;;  %vm3237_vm12 = vcmp.ge.f32.partialorder %v3166_v21, 0.0  ;;  %v3308_v13 = vmul.f32 0.2, %v3166_v21  ;;  %v3167_v6 = vadd.f32 %v6683_v2, %v3089_v54  ;;  %v7303_v45 = vmax.f32 %v7301_v27, %v7302_v28 }
 0x216   : > { %vm3235_vm13 = vcmp.ge.f32.partialorder %v3164_v55, 0.0  ;;  %v3306_v41 = vmul.f32 0.2, %v3164_v55  ;;  %v3165_v42 = vadd.f32 %v6683_v2, %v3087_v18  ;;  %v5210_v7 = vpop.f32.mrb[136].mxu0  ;;  %v5298_v22 = vpop.f32.mrb[136].mxu1  ;;  %v7306_v39 = vmax.f32 %v7304_v33, %v7305_v38 }
 0x217   : > { %vm3238_vm14 = vcmp.ge.f32.partialorder %v3167_v6, 0.0  ;;  %v3309_v23 = vmul.f32 0.2, %v3167_v6  ;;  %v2416_v58 = vmax.f32 %v7291_v8, %v5210_v7  ;;  %v2320_v46 = vpop.f32.mrb[137].mxu0  ;;  %v2996_v47 = vpop.f32.mrb[137].mxu1  ;;  %v3379_v49 = vsel %vm3237_vm12, %v3166_v21, %v3308_v13  ;;  %v7308_v8 = vld [vmem:[#allocation97_spill] sm:$0xff] }
 0x218   : > { %vm3236_vm15 = vcmp.ge.f32.partialorder %v3165_v42, 0.0  ;;  %v3307_v50 = vmul.f32 0.2, %v3165_v42  ;;  %v2414_v52 = vmax.f32 %v7294_v51, %v2320_v46  ;;  %v5211_v25 = vpop.f32.mrb[138].mxu0  ;;  %v5299_v26 = vpop.f32.mrb[138].mxu1  ;;  %v3377_v12 = vsel %vm3235_vm13, %v3164_v55, %v3306_v41 }
 0x219   : > { %v3380_v16 = vsel %vm3238_vm14, %v3167_v6, %v3309_v23  ;;  %v3092_v9 = vmax.f32 %v2416_v58, %v5298_v22  ;;  %v2417_v43 = vmax.f32 %v7297_v37, %v5211_v25  ;;  %v2323_v34 = vpop.f32.mrb[139].mxu0  ;;  %v2999_v30 = vpop.f32.mrb[139].mxu1  ;;  %v7309_v58 = vmax.f32 %v7307_v17, %v7308_v8 }
 0x21a   : > { %v4725_v31 = vpack.c.bf16 %v3380_v16, %v3379_v49  ;;  %v3378_v14 = vsel %vm3236_vm15, %v3165_v42, %v3307_v50  ;;  %v3090_v15 = vmax.f32 %v2414_v52, %v2996_v47  ;;  %v2415_v60 = vmax.f32 %v7300_v59, %v2323_v34 }
 0x21b   : > { %v4720_v36 = vpack.c.bf16 %v3378_v14, %v3377_v12  ;;  %v3170_v62 = vadd.f32 %v6683_v2, %v3092_v9  ;;  %v3093_v19 = vmax.f32 %v2417_v43, %v5299_v26 }
 0x21c   : > { %4772 = vst [vmem:[%s6432_s21 + $0xf8] sm:$0xff] %v4725_v31   ;;  %v3168_v20 = vadd.f32 %v6683_v2, %v3090_v15  ;;  %v3091_v63 = vmax.f32 %v2415_v60, %v2999_v30 }
 0x21d   : > { %4771 = vst [vmem:[%s6432_s21 + $0xf0] sm:$0xff] %v4720_v36   ;;  %v3312_v1 = vmul.f32 0.2, %v3170_v62  ;;  %v3171_v11 = vadd.f32 %v6683_v2, %v3093_v19  ;;  %vm3241_vm0 = vcmp.ge.f32.partialorder %v3170_v62, 0.0 }
 0x21e   : > { %vm3239_vm1 = vcmp.ge.f32.partialorder %v3168_v20, 0.0  ;;  %v3310_v56 = vmul.f32 0.2, %v3168_v20  ;;  %v3169_v5 = vadd.f32 %v6683_v2, %v3091_v63  ;;  %v5214_v3 = vpop.f32.mrb[140].mxu0  ;;  %v5302_v29 = vpop.f32.mrb[140].mxu1 }
 0x21f   : > { %vm3242_vm2 = vcmp.ge.f32.partialorder %v3171_v11, 0.0  ;;  %v3313_v24 = vmul.f32 0.2, %v3171_v11  ;;  %v2420_v40 = vmax.f32 %v7303_v45, %v5214_v3  ;;  %v2336_v32 = vpop.f32.mrb[141].mxu0  ;;  %v3012_v44 = vpop.f32.mrb[141].mxu1  ;;  %v3383_v18 = vsel %vm3241_vm0, %v3170_v62, %v3312_v1 }
 0x220   : > { %vm3240_vm3 = vcmp.ge.f32.partialorder %v3169_v5, 0.0  ;;  %v3311_v48 = vmul.f32 0.2, %v3169_v5  ;;  %v2418_v21 = vmax.f32 %v7306_v39, %v2336_v32  ;;  %v5215_v54 = vpop.f32.mrb[142].mxu0  ;;  %v5303_v55 = vpop.f32.mrb[142].mxu1  ;;  %v3381_v13 = vsel %vm3239_vm1, %v3168_v20, %v3310_v56 }
 0x221   : > { %v3384_v6 = vsel %vm3242_vm2, %v3171_v11, %v3313_v24  ;;  %v3096_v41 = vmax.f32 %v2420_v40, %v5302_v29  ;;  %v2339_v42 = vpop.f32.mrb[143].mxu0  ;;  %v3015_v7 = vpop.f32.mrb[143].mxu1 }
 0x222   : > { %v4735_v22 = vpack.c.bf16 %v3384_v6, %v3383_v18  ;;  %v3382_v23 = vsel %vm3240_vm3, %v3169_v5, %v3311_v48  ;;  %v3094_v0 = vmax.f32 %v2418_v21, %v3012_v44  ;;  %v2419_v46 = vmax.f32 %v7309_v58, %v2339_v42 }
 0x223   : > { %v4730_v47 = vpack.c.bf16 %v3382_v23, %v3381_v13  ;;  %v3174_v49 = vadd.f32 %v6683_v2, %v3096_v41 }
 0x224   : > { %4774 = vst [vmem:[%s6432_s21 + $0x108] sm:$0xff] %v4735_v22   ;;  %v3172_v50 = vadd.f32 %v6683_v2, %v3094_v0  ;;  %v3095_v53 = vmax.f32 %v2419_v46, %v3015_v7 }
 0x225   : > { %4773 = vst [vmem:[%s6432_s21 + $0x100] sm:$0xff] %v4730_v47   ;;  %vm3245_vm4 = vcmp.ge.f32.partialorder %v3174_v49, 0.0  ;;  %v3316_v61 = vmul.f32 0.2, %v3174_v49 }
 0x226   : > { %v3314_v51 = vmul.f32 0.2, %v3172_v50  ;;  %v3173_v52 = vadd.f32 %v6683_v2, %v3095_v53  ;;  %vm3243_vm5 = vcmp.ge.f32.partialorder %v3172_v50, 0.0 }
 0x227   : > { %v3387_v25 = vsel %vm3245_vm4, %v3174_v49, %v3316_v61  ;;  %3750 = sbr.rel (!%p5694_p4) target bundleno = 649 (0x289), region = 48 }
 0x228   : > { %v4563_v26 = vpack.c.bf16 %v3387_v25, %v3387_v25  ;;  %vm3244_vm6 = vcmp.ge.f32.partialorder %v3173_v52, 0.0  ;;  %v3315_v12 = vmul.f32 0.2, %v3173_v52  ;;  %v3385_v16 = vsel %vm3243_vm5, %v3172_v50, %v3314_v51 }
 0x22a   : > { %3743 = vst [vmem:[%s6432_s21 + $0x118] sm:$0xf] %v4563_v26  ;;  %v3386_v9 = vsel %vm3244_vm6, %v3173_v52, %v3315_v12 }
 0x22b   : > { %v4740_v10 = vpack.c.bf16 %v3386_v9, %v3385_v16 }
 0x22d   : > { %4775 = vst [vmem:[%s6432_s21 + $0x110] sm:$0xff] %v4740_v10  }
 0x22e   : > { %s7317_s9 = smov (!%p3753_p8, %s3752_s9), 71 }
 0x22f   : > { %s4478_s15 = sshll.u32 %s7317_s9, 6 }
 0x230   : > { %p4481_p9 = scmp.eq.s32.totalorder %s4478_s15, 0 }
 0x231   : > { %s6760_s16 = sshrl.u32 (!%p4481_p9), %s7317_s9, 6 }
 0x232   : > { %3761 = sbr.rel (%p4481_p9) target bundleno = 649 (0x289), region = 52  ;;  %p4482_p10 = scmp.le.s32.totalorder (!%p4481_p9), %s6760_s16, 0 }
 0x239   : > { %4184 = sbr.rel (%p4482_p10) target bundleno = 628 (0x274), region = 133  ;;  %s7310_s24 = smov (!%p4482_p10), %s6754_s13 }
 0x23a   : > { %s7311_s29 = smov (!%p4482_p10), %s6432_s21  ;;  %s6769_s8 = smov (!%p4482_p10), 0  }
 0x23b   : > { %s6771_s17 = smov (!%p4482_p10), 0  }
 0x240 LB: >> { %v3777_v2 = vld [vmem:[%s5608_s29] sm:$0xf]  ;;  %v3779_v4 = vld [vmem:[%s5608_s29 + $0x4] sm:$0xf]  ;;  %v3781_v37 = vld [vmem:[%s5608_s29 + $0x8] sm:$0xf]  ;;  %s5616_s17 = sphi %s6771_s17, %s3771_s17   ;;  %s5612_s8 = sphi %s6769_s8, %s7312_s8   ;;  %s5608_s29 = sphi %s7311_s29, %s3910_s29   ;;  %s5604_s24 = sphi %s7310_s24, %s3911_s24  }
 0x241   : >> { %3778 = vst [vmem:[%s5604_s24] sm:$0xf] %v3777_v2  ;;  %3780 = vst [vmem:[%s5604_s24 + $0x4] sm:$0xf] %v3779_v4  ;;  %v3783_v43 = vld [vmem:[%s5608_s29 + $0xc] sm:$0xf]  ;;  %s3905_s18 = sadd.s32 1, %s5612_s8 }
 0x242   : >> { %3782 = vst [vmem:[%s5604_s24 + $0x8] sm:$0xf] %v3781_v37  ;;  %v3785_v34 = vld [vmem:[%s5608_s29 + $0x10] sm:$0xf]  ;;  %v3787_v30 = vld [vmem:[%s5608_s29 + $0x14] sm:$0xf]  ;;  %p3906_p11 = scmp.ge.s32.totalorder %s3905_s18, %s6760_s16 }
 0x243   : >> { %3784 = vst [vmem:[%s5604_s24 + $0xc] sm:$0xf] %v3783_v43  ;;  %3786 = vst [vmem:[%s5604_s24 + $0x10] sm:$0xf] %v3785_v34  ;;  %v3789_v31 = vld [vmem:[%s5608_s29 + $0x18] sm:$0xf] }
 0x244   : >> { %3788 = vst [vmem:[%s5604_s24 + $0x14] sm:$0xf] %v3787_v30  ;;  %v3791_v14 = vld [vmem:[%s5608_s29 + $0x1c] sm:$0xf]  ;;  %v3793_v15 = vld [vmem:[%s5608_s29 + $0x20] sm:$0xf] }
 0x245   : >> { %3790 = vst [vmem:[%s5604_s24 + $0x18] sm:$0xf] %v3789_v31  ;;  %3792 = vst [vmem:[%s5604_s24 + $0x1c] sm:$0xf] %v3791_v14  ;;  %v3795_v57 = vld [vmem:[%s5608_s29 + $0x24] sm:$0xf] }
 0x246   : >> { %3794 = vst [vmem:[%s5604_s24 + $0x20] sm:$0xf] %v3793_v15  ;;  %v3797_v35 = vld [vmem:[%s5608_s29 + $0x28] sm:$0xf]  ;;  %v3799_v59 = vld [vmem:[%s5608_s29 + $0x2c] sm:$0xf] }
 0x247   : >> { %3796 = vst [vmem:[%s5604_s24 + $0x24] sm:$0xf] %v3795_v57  ;;  %3798 = vst [vmem:[%s5604_s24 + $0x28] sm:$0xf] %v3797_v35  ;;  %v3801_v60 = vld [vmem:[%s5608_s29 + $0x30] sm:$0xf] }
 0x248   : >> { %3800 = vst [vmem:[%s5604_s24 + $0x2c] sm:$0xf] %v3799_v59  ;;  %v3803_v36 = vld [vmem:[%s5608_s29 + $0x34] sm:$0xf]  ;;  %v3805_v62 = vld [vmem:[%s5608_s29 + $0x38] sm:$0xf] }
 0x249   : >> { %3802 = vst [vmem:[%s5604_s24 + $0x30] sm:$0xf] %v3801_v60  ;;  %3804 = vst [vmem:[%s5604_s24 + $0x34] sm:$0xf] %v3803_v36  ;;  %v3807_v19 = vld [vmem:[%s5608_s29 + $0x3c] sm:$0xf] }
 0x24a   : >> { %3806 = vst [vmem:[%s5604_s24 + $0x38] sm:$0xf] %v3805_v62  ;;  %v3809_v20 = vld [vmem:[%s5608_s29 + $0x40] sm:$0xf]  ;;  %v3811_v63 = vld [vmem:[%s5608_s29 + $0x44] sm:$0xf] }
 0x24b   : >> { %3808 = vst [vmem:[%s5604_s24 + $0x3c] sm:$0xf] %v3807_v19  ;;  %3810 = vst [vmem:[%s5604_s24 + $0x40] sm:$0xf] %v3809_v20  ;;  %v3813_v1 = vld [vmem:[%s5608_s29 + $0x48] sm:$0xf] }
 0x24c   : >> { %3812 = vst [vmem:[%s5604_s24 + $0x44] sm:$0xf] %v3811_v63  ;;  %v3815_v11 = vld [vmem:[%s5608_s29 + $0x4c] sm:$0xf]  ;;  %v3817_v56 = vld [vmem:[%s5608_s29 + $0x50] sm:$0xf] }
 0x24d   : >> { %3814 = vst [vmem:[%s5604_s24 + $0x48] sm:$0xf] %v3813_v1  ;;  %3816 = vst [vmem:[%s5604_s24 + $0x4c] sm:$0xf] %v3815_v11  ;;  %v3819_v5 = vld [vmem:[%s5608_s29 + $0x54] sm:$0xf] }
 0x24e   : >> { %3818 = vst [vmem:[%s5604_s24 + $0x50] sm:$0xf] %v3817_v56  ;;  %v3821_v3 = vld [vmem:[%s5608_s29 + $0x58] sm:$0xf]  ;;  %v3823_v29 = vld [vmem:[%s5608_s29 + $0x5c] sm:$0xf] }
 0x24f   : >> { %3820 = vst [vmem:[%s5604_s24 + $0x54] sm:$0xf] %v3819_v5  ;;  %3822 = vst [vmem:[%s5604_s24 + $0x58] sm:$0xf] %v3821_v3  ;;  %v3825_v24 = vld [vmem:[%s5608_s29 + $0x60] sm:$0xf] }
 0x250   : >> { %3824 = vst [vmem:[%s5604_s24 + $0x5c] sm:$0xf] %v3823_v29  ;;  %v3827_v27 = vld [vmem:[%s5608_s29 + $0x64] sm:$0xf]  ;;  %v3829_v28 = vld [vmem:[%s5608_s29 + $0x68] sm:$0xf] }
 0x251   : >> { %3826 = vst [vmem:[%s5604_s24 + $0x60] sm:$0xf] %v3825_v24  ;;  %3828 = vst [vmem:[%s5604_s24 + $0x64] sm:$0xf] %v3827_v27  ;;  %v3831_v45 = vld [vmem:[%s5608_s29 + $0x6c] sm:$0xf] }
 0x252   : >> { %3830 = vst [vmem:[%s5604_s24 + $0x68] sm:$0xf] %v3829_v28  ;;  %v3833_v40 = vld [vmem:[%s5608_s29 + $0x70] sm:$0xf]  ;;  %v3835_v32 = vld [vmem:[%s5608_s29 + $0x74] sm:$0xf] }
 0x253   : >> { %3832 = vst [vmem:[%s5604_s24 + $0x6c] sm:$0xf] %v3831_v45  ;;  %3834 = vst [vmem:[%s5604_s24 + $0x70] sm:$0xf] %v3833_v40  ;;  %v3837_v44 = vld [vmem:[%s5608_s29 + $0x78] sm:$0xf] }
 0x254   : >> { %3836 = vst [vmem:[%s5604_s24 + $0x74] sm:$0xf] %v3835_v32  ;;  %v3839_v48 = vld [vmem:[%s5608_s29 + $0x7c] sm:$0xf]  ;;  %v3841_v33 = vld [vmem:[%s5608_s29 + $0x80] sm:$0xf] }
 0x255   : >> { %3838 = vst [vmem:[%s5604_s24 + $0x78] sm:$0xf] %v3837_v44  ;;  %3840 = vst [vmem:[%s5604_s24 + $0x7c] sm:$0xf] %v3839_v48  ;;  %v3843_v38 = vld [vmem:[%s5608_s29 + $0x84] sm:$0xf] }
 0x256   : >> { %3842 = vst [vmem:[%s5604_s24 + $0x80] sm:$0xf] %v3841_v33  ;;  %v3845_v39 = vld [vmem:[%s5608_s29 + $0x88] sm:$0xf]  ;;  %v3847_v21 = vld [vmem:[%s5608_s29 + $0x8c] sm:$0xf] }
 0x257   : >> { %3844 = vst [vmem:[%s5604_s24 + $0x84] sm:$0xf] %v3843_v38  ;;  %3846 = vst [vmem:[%s5604_s24 + $0x88] sm:$0xf] %v3845_v39  ;;  %v3849_v54 = vld [vmem:[%s5608_s29 + $0x90] sm:$0xf] }
 0x258   : >> { %3848 = vst [vmem:[%s5604_s24 + $0x8c] sm:$0xf] %v3847_v21  ;;  %v3851_v55 = vld [vmem:[%s5608_s29 + $0x94] sm:$0xf]  ;;  %v3853_v18 = vld [vmem:[%s5608_s29 + $0x98] sm:$0xf] }
 0x259   : >> { %3850 = vst [vmem:[%s5604_s24 + $0x90] sm:$0xf] %v3849_v54  ;;  %3852 = vst [vmem:[%s5604_s24 + $0x94] sm:$0xf] %v3851_v55  ;;  %v3855_v13 = vld [vmem:[%s5608_s29 + $0x9c] sm:$0xf] }
 0x25a   : >> { %3854 = vst [vmem:[%s5604_s24 + $0x98] sm:$0xf] %v3853_v18  ;;  %v3857_v6 = vld [vmem:[%s5608_s29 + $0xa0] sm:$0xf]  ;;  %v3859_v41 = vld [vmem:[%s5608_s29 + $0xa4] sm:$0xf] }
 0x25b   : >> { %3856 = vst [vmem:[%s5604_s24 + $0x9c] sm:$0xf] %v3855_v13  ;;  %3858 = vst [vmem:[%s5604_s24 + $0xa0] sm:$0xf] %v3857_v6  ;;  %v3861_v42 = vld [vmem:[%s5608_s29 + $0xa8] sm:$0xf] }
 0x25c   : >> { %3860 = vst [vmem:[%s5604_s24 + $0xa4] sm:$0xf] %v3859_v41  ;;  %v3863_v7 = vld [vmem:[%s5608_s29 + $0xac] sm:$0xf]  ;;  %v3865_v22 = vld [vmem:[%s5608_s29 + $0xb0] sm:$0xf] }
 0x25d   : >> { %3862 = vst [vmem:[%s5604_s24 + $0xa8] sm:$0xf] %v3861_v42  ;;  %3864 = vst [vmem:[%s5604_s24 + $0xac] sm:$0xf] %v3863_v7  ;;  %v3867_v23 = vld [vmem:[%s5608_s29 + $0xb4] sm:$0xf] }
 0x25e   : >> { %3866 = vst [vmem:[%s5604_s24 + $0xb0] sm:$0xf] %v3865_v22  ;;  %v3869_v0 = vld [vmem:[%s5608_s29 + $0xb8] sm:$0xf]  ;;  %v3871_v17 = vld [vmem:[%s5608_s29 + $0xbc] sm:$0xf] }
 0x25f   : >> { %3868 = vst [vmem:[%s5604_s24 + $0xb4] sm:$0xf] %v3867_v23  ;;  %3870 = vst [vmem:[%s5604_s24 + $0xb8] sm:$0xf] %v3869_v0  ;;  %v3873_v8 = vld [vmem:[%s5608_s29 + $0xc0] sm:$0xf] }
 0x260   : >> { %3872 = vst [vmem:[%s5604_s24 + $0xbc] sm:$0xf] %v3871_v17  ;;  %v3875_v58 = vld [vmem:[%s5608_s29 + $0xc4] sm:$0xf]  ;;  %v3877_v46 = vld [vmem:[%s5608_s29 + $0xc8] sm:$0xf] }
 0x261   : >> { %3874 = vst [vmem:[%s5604_s24 + $0xc0] sm:$0xf] %v3873_v8  ;;  %3876 = vst [vmem:[%s5604_s24 + $0xc4] sm:$0xf] %v3875_v58  ;;  %v3879_v47 = vld [vmem:[%s5608_s29 + $0xcc] sm:$0xf] }
 0x262   : >> { %3878 = vst [vmem:[%s5604_s24 + $0xc8] sm:$0xf] %v3877_v46  ;;  %v3881_v49 = vld [vmem:[%s5608_s29 + $0xd0] sm:$0xf]  ;;  %v3883_v50 = vld [vmem:[%s5608_s29 + $0xd4] sm:$0xf] }
 0x263   : >> { %3880 = vst [vmem:[%s5604_s24 + $0xcc] sm:$0xf] %v3879_v47  ;;  %3882 = vst [vmem:[%s5604_s24 + $0xd0] sm:$0xf] %v3881_v49  ;;  %v3885_v53 = vld [vmem:[%s5608_s29 + $0xd8] sm:$0xf] }
 0x264   : >> { %3884 = vst [vmem:[%s5604_s24 + $0xd4] sm:$0xf] %v3883_v50  ;;  %v3887_v61 = vld [vmem:[%s5608_s29 + $0xdc] sm:$0xf]  ;;  %v3889_v51 = vld [vmem:[%s5608_s29 + $0xe0] sm:$0xf] }
 0x265   : >> { %3886 = vst [vmem:[%s5604_s24 + $0xd8] sm:$0xf] %v3885_v53  ;;  %3888 = vst [vmem:[%s5604_s24 + $0xdc] sm:$0xf] %v3887_v61  ;;  %v3891_v52 = vld [vmem:[%s5608_s29 + $0xe4] sm:$0xf] }
 0x266   : >> { %3890 = vst [vmem:[%s5604_s24 + $0xe0] sm:$0xf] %v3889_v51  ;;  %v3893_v25 = vld [vmem:[%s5608_s29 + $0xe8] sm:$0xf]  ;;  %v3895_v26 = vld [vmem:[%s5608_s29 + $0xec] sm:$0xf] }
 0x267   : >> { %3892 = vst [vmem:[%s5604_s24 + $0xe4] sm:$0xf] %v3891_v52  ;;  %3894 = vst [vmem:[%s5604_s24 + $0xe8] sm:$0xf] %v3893_v25  ;;  %v3897_v12 = vld [vmem:[%s5608_s29 + $0xf0] sm:$0xf] }
 0x268   : >> { %3896 = vst [vmem:[%s5604_s24 + $0xec] sm:$0xf] %v3895_v26  ;;  %v3899_v16 = vld [vmem:[%s5608_s29 + $0xf4] sm:$0xf]  ;;  %v3901_v9 = vld [vmem:[%s5608_s29 + $0xf8] sm:$0xf] }
 0x269   : >> { %3898 = vst [vmem:[%s5604_s24 + $0xf0] sm:$0xf] %v3897_v12  ;;  %3900 = vst [vmem:[%s5604_s24 + $0xf4] sm:$0xf] %v3899_v16  ;;  %v3903_v10 = vld [vmem:[%s5608_s29 + $0xfc] sm:$0xf] }
 0x26a   : >> { %3902 = vst [vmem:[%s5604_s24 + $0xf8] sm:$0xf] %v3901_v9  ;;  %3904 = vst [vmem:[%s5604_s24 + $0xfc] sm:$0xf] %v3903_v10  ;;  %s7319_s18 = smov (%p3906_p11, %s3905_s18), 0  ;;  %s3771_s17 = sadd.s32 1, %s5616_s17  }
 0x26b   : >> { %s4483_s20 = sshll.u32 %s7319_s18, 8  ;;  %p3770_p12 = scmp.ge.s32.totalorder %s3771_s17, %s6760_s16 }
 0x26c   : >> { %s3910_s29 = scalar_lea.vmem %s6432_s21, %s4483_s20 [#allocation2]   ;;  %s3911_s24 = scalar_lea.vmem %s6754_s13, %s4483_s20  }
 0x26d   : >> { %s7312_s8 = smov %s7319_s18  ;;  %3773 = sbr.rel (!%p3770_p12) target bundleno = 576 (0x240), region = 139 }
 0x274 PF: > { %s6928_s23 = sand.u32 63, %s7317_s9   ;;  %s4565_s14 = sshll.u32 %s6760_s16, 8 }
 0x275   : > { %s3916_s19 = scalar_lea.vmem %s6432_s21, %s4565_s14 [#allocation2]   ;;  %s3918_s26 = scalar_lea.vmem %s6754_s13, %s4565_s14  }
 0x276   : > { %p4488_p13 = scmp.le.s32.totalorder %s6928_s23, 0 }
 0x277   : > { %s5618_s27 = smov (!%p4488_p13), %s3918_s26   ;;  %s5622_s30 = smov (!%p4488_p13), %s3916_s19  }
 0x278   : > { %4198 = sbr.rel (%p4488_p13) target bundleno = 649 (0x289), region = 144  ;;  %s5626_s7 = smov (!%p4488_p13), 0  }
 0x279   : > { %s5630_s10 = smov (!%p4488_p13), 0  }
 0x27f LB: >> { %v3928_v2 = vld [vmem:[%s5624_s30] sm:$0xf]  ;;  %s3930_s9 = sadd.s32 1, %s5628_s7  ;;  %s3922_s10 = sadd.s32 1, %s5632_s10   ;;  %s5632_s10 = sphi %s5630_s10, %s3922_s10   ;;  %s5628_s7 = sphi %s5626_s7, %s5627_s7   ;;  %s5624_s30 = sphi %s5622_s30, %s3935_s30   ;;  %s5620_s27 = sphi %s5618_s27, %s3936_s27  }
 0x280   : >> { %3929 = vst [vmem:[%s5620_s27] sm:$0xf] %v3928_v2  ;;  %p3931_p0 = scmp.ge.s32.totalorder %s3930_s9, %s6928_s23  ;;  %p3921_p1 = scmp.ge.s32.totalorder %s3922_s10, %s6928_s23 }
 0x282   : >> { %s7321_s9 = smov (%p3931_p0, %s3930_s9), 0  ;;  %3924 = sbr.rel (!%p3921_p1) target bundleno = 639 (0x27f), region = 150 }
 0x283   : >> { %s4489_s21 = sshll.u32 %s7321_s9, 2  ;;  %s5627_s7 = smov %s7321_s9  }
 0x284   : >> { %s3935_s30 = scalar_lea.vmem %s3916_s19, %s4489_s21 [#allocation2]   ;;  %s3936_s27 = scalar_lea.vmem %s3918_s26, %s4489_s21  }
 0x289 PF: > { %p13_p2 = scmp.ge.s32.totalorder %s5684_s25, 6   ;;  %s7313_s21 = smov %s5596_s22 }
 0x28a   : > { %s7314_s22 = smov %s5692_s28  ;;  %s7315_s23 = smov %s5684_s25 }
 0x28b   :  { %15 = sbr.rel (!%p13_p2) target bundleno = 2 (0x2), region = 161 }

// kernel: convnet_forward.5
= control target key start
LH: loop header
LB: loop body
LE: loop exit
PB: predicated region body
PF: predicated region fallthrough
CT: control target
= control target key end

     0   :  { %s3969_s21 = smov 0   ;;  %s4719_s0 = inlined_call_operand.vmem [shape: bf16[608,512], index: 0, kind: input, shape index: {}]   ;;  %s4720_s1 = inlined_call_operand.vmem [shape: bf16[608,512], index: 1, kind: input, shape index: {}]   ;;  %s4721_s2 = inlined_call_operand.vmem [shape: bf16[608,512], index: 2, kind: input, shape index: {}]   ;;  %s4722_s3 = inlined_call_operand.vmem [shape: bf16[608,512], index: 3, kind: input, shape index: {}]   ;;  %s4723_s4 = inlined_call_operand.vmem [shape: bf16[512,128], index: 4, kind: input, shape index: {}]   ;;  %s4724_s5 = inlined_call_operand.vmem [shape: f32[1,128], index: 5, kind: input, shape index: {}]   ;;  %s4725_s6 = inlined_call_operand.vmem [shape: bf16[608,128], index: 6, kind: output, shape index: {}]  }
   0x1 LB: > { %s2742_s22 = sadd.s32 4294967295, %s3932_s21   ;;  %p2746_p0 = scmp.ge.s32.totalorder %s3932_s21, 1  ;;  %s3932_s21 = sphi %s3969_s21, %s16_s21  }
   0x2   : > { %p250_p1 = scmp.lt.s32.totalorder %s3932_s21, 5 }
   0x4   : > { %p251_p2 = pnand %p2746_p0, %p250_p1 }
   0x5   : > { %v3980_v0 = vld [vmem:[%s4723_s4 + $0x40] sm:$0xff] (!%p251_p2)   ;;  %v4003_v4 = vld [vmem:[%s4723_s4 + $0x48] sm:$0xff] (!%p251_p2)   ;;  %v4027_v8 = vld [vmem:[%s4723_s4 + $0x50] sm:$0xff] (!%p251_p2)   ;;  %s299_s7 = smul.u32 (!%p251_p2), 19, %s2742_s22 }
   0x6   : > { %254 = sbr.rel (%p251_p2) target bundleno = 579 (0x243), region = 44  ;;  %v3985_v1 = vld [vmem:[%s4723_s4 + $0xc0] sm:$0xff] (!%p251_p2)   ;;  %3046 = vmatprep.subr.bf16.mxu0 (!%p251_p2), %v3980_v0  ;;  %v4009_v5 = vld [vmem:[%s4723_s4 + $0xc8] sm:$0xff] (!%p251_p2)   ;;  %v4033_v9 = vld [vmem:[%s4723_s4 + $0xd0] sm:$0xff] (!%p251_p2)  }
   0x7   : > { %v3991_v2 = vld [vmem:[%s4723_s4] sm:$0xff] (!%p251_p2)   ;;  %3122 = vmatprep.subr.bf16.mxu1 (!%p251_p2), %v3985_v1  ;;  %v4015_v6 = vld [vmem:[%s4723_s4 + $0x8] sm:$0xff] (!%p251_p2)   ;;  %v4039_v10 = vld [vmem:[%s4723_s4 + $0x10] sm:$0xff] (!%p251_p2)   ;;  %p300_p3 = scmp.lt.s32.totalorder (!%p251_p2), %s299_s7, 75 }
   0x8   : > { %v3997_v3 = vld [vmem:[%s4723_s4 + $0x80] sm:$0xff] (!%p251_p2)   ;;  %3047 = vmatpush3.bf16.msra.mxu0 (!%p251_p2), %v3991_v2  ;;  %v4021_v7 = vld [vmem:[%s4723_s4 + $0x88] sm:$0xff] (!%p251_p2)   ;;  %v4045_v11 = vld [vmem:[%s4723_s4 + $0x90] sm:$0xff] (!%p251_p2)  }
   0x9   : > { %3123 = vmatpush3.bf16.msra.mxu1 (!%p251_p2), %v3997_v3  ;;  %3048 = vmatprep.subr.bf16.mxu0 (!%p251_p2), %v4003_v4  ;;  %v4051_v12 = vld [vmem:[%s4723_s4 + $0x58] sm:$0xff] (!%p251_p2)   ;;  %v4077_v16 = vld [vmem:[%s4723_s4 + $0x60] sm:$0xff] (!%p251_p2)   ;;  %v4101_v20 = vld [vmem:[%s4723_s4 + $0x68] sm:$0xff] (!%p251_p2)  }
   0xa   : > { %3124 = vmatprep.subr.bf16.mxu1 (!%p251_p2), %v4009_v5  ;;  %v4057_v13 = vld [vmem:[%s4723_s4 + $0xd8] sm:$0xff] (!%p251_p2)   ;;  %v4083_v17 = vld [vmem:[%s4723_s4 + $0xe0] sm:$0xff] (!%p251_p2)   ;;  %v4107_v21 = vld [vmem:[%s4723_s4 + $0xe8] sm:$0xff] (!%p251_p2)  }
   0xb   : > { %v4063_v14 = vld [vmem:[%s4723_s4 + $0x18] sm:$0xff] (!%p251_p2)   ;;  %v4089_v18 = vld [vmem:[%s4723_s4 + $0x20] sm:$0xff] (!%p251_p2)   ;;  %v4113_v22 = vld [vmem:[%s4723_s4 + $0x28] sm:$0xff] (!%p251_p2)  }
   0xc   : > { %3049 = vmatpush3.bf16.msra.mxu0 (!%p251_p2), %v4015_v6  ;;  %v4071_v15 = vld [vmem:[%s4723_s4 + $0x98] sm:$0xff] (!%p251_p2)   ;;  %v4095_v19 = vld [vmem:[%s4723_s4 + $0xa0] sm:$0xff] (!%p251_p2)   ;;  %v4121_v23 = vld [vmem:[%s4723_s4 + $0xa8] sm:$0xff] (!%p251_p2)  }
   0xd   : > { %3125 = vmatpush3.bf16.msra.mxu1 %v4021_v7  ;;  %3050 = vmatprep.subr.bf16.mxu0 %v4027_v8  ;;  %s4738_s7 = smov (!%p300_p3, %s299_s7), 75  ;;  %v4127_v24 = vld [vmem:[%s4723_s4 + $0x70] sm:$0xff]   ;;  %v4154_v28 = vld [vmem:[%s4723_s4 + $0x78] sm:$0xff]  }
   0xe   : > { %3126 = vmatprep.subr.bf16.mxu1 %v4033_v9  ;;  %v4133_v25 = vld [vmem:[%s4723_s4 + $0xf0] sm:$0xff]   ;;  %s4142_s10 = sshll.u32 %s4738_s7, 4  ;;  %v4160_v29 = vld [vmem:[%s4723_s4 + $0xf8] sm:$0xff]   ;;  %s2755_s13 = sshll.u32 %s4738_s7, 2 }
   0xf   : > { %v4139_v26 = vld [vmem:[%s4723_s4 + $0x30] sm:$0xff]   ;;  %s4166_s18 = scalar_lea.vmem %s4719_s0, %s4142_s10  ;;  %v4172_v30 = vld [vmem:[%s4723_s4 + $0x38] sm:$0xff]   ;;  %s4221_s27 = scalar_lea.vmem %s4720_s1, %s4142_s10 }
  0x10   : > { %3051 = vmatpush3.bf16.msra.mxu0 %v4039_v10  ;;  %v4148_v27 = vld [vmem:[%s4723_s4 + $0xb0] sm:$0xff]   ;;  %v4178_v31 = vld [vmem:[%s4723_s4 + $0xb8] sm:$0xff]   ;;  %s4254_s30 = scalar_lea.vmem %s4721_s2, %s4142_s10  ;;  %s4319_s11 = scalar_lea.vmem %s4722_s3, %s4142_s10 }
  0x11   : > { %3127 = vmatpush3.bf16.msra.mxu1 %v4045_v11  ;;  %3052 = vmatprep.subr.bf16.mxu0 %v4051_v12  ;;  %v3694_v32 = vld [vmem:[%s4166_s18] ss:$16 sps:$4 sm:$0xff]   ;;  %v3696_v33 = vld [vmem:[%s4166_s18 + $0x4] ss:$16 sps:$4 sm:$0xff]   ;;  %v3697_v34 = vld [vmem:[%s4166_s18 + $0x8] ss:$16 sps:$4 sm:$0xff]   ;;  %s4670_s15 = scalar_lea.vmem %s4725_s6, %s2755_s13 }
  0x12   : > { %3128 = vmatprep.subr.bf16.mxu1 %v4057_v13  ;;  %v3699_v35 = vld [vmem:[%s4166_s18 + $0xc] ss:$16 sps:$4 sm:$0xff]   ;;  %854 = vmatprep.mubr.bf16.mxu0 %v3696_v33  ;;  %v3700_v36 = vld [vmem:[%s4166_s18 + $0x24] ss:$16 sps:$4 sm:$0xff]   ;;  %v3704_v38 = vld [vmem:[%s4166_s18 + $0x20] ss:$16 sps:$4 sm:$0xff]  }
  0x13   : > { %966 = vmatprep.mubr.bf16.mxu1 %v3699_v35  ;;  %v3702_v37 = vld [vmem:[%s4166_s18 + $0x2c] ss:$16 sps:$4 sm:$0xff]   ;;  %v3705_v39 = vld [vmem:[%s4166_s18 + $0x28] ss:$16 sps:$4 sm:$0xff]   ;;  %v3706_v40 = vld [vmem:[%s4166_s18 + $0x44] ss:$16 sps:$4 sm:$0xff]  }
  0x14   : > { %3053 = vmatpush3.bf16.msra.mxu0 %v4063_v14  ;;  %v3708_v41 = vld [vmem:[%s4166_s18 + $0x4c] ss:$16 sps:$4 sm:$0xff]   ;;  %v3710_v42 = vld [vmem:[%s4166_s18 + $0x40] ss:$16 sps:$4 sm:$0xff]   ;;  %v3711_v43 = vld [vmem:[%s4166_s18 + $0x48] ss:$16 sps:$4 sm:$0xff]  }
  0x15   : > { %3129 = vmatpush3.bf16.msra.mxu1 %v4071_v15  ;;  %3054 = vmatprep.subr.bf16.mxu0 %v4077_v16  ;;  %v3712_v44 = vld [vmem:[%s4166_s18 + $0x64] ss:$16 sps:$4 sm:$0xff]   ;;  %v3714_v45 = vld [vmem:[%s4166_s18 + $0x6c] ss:$16 sps:$4 sm:$0xff]   ;;  %v3716_v46 = vld [vmem:[%s4166_s18 + $0x60] ss:$16 sps:$4 sm:$0xff]  }
  0x16   : > { %3130 = vmatprep.subr.bf16.mxu1 %v4083_v17  ;;  %v3717_v47 = vld [vmem:[%s4166_s18 + $0x68] ss:$16 sps:$4 sm:$0xff]   ;;  %v3718_v48 = vld [vmem:[%s4166_s18 + $0x84] ss:$16 sps:$4 sm:$0xff]   ;;  %v3720_v49 = vld [vmem:[%s4166_s18 + $0x8c] ss:$16 sps:$4 sm:$0xff]  }
  0x17   : > { %v3722_v50 = vld [vmem:[%s4166_s18 + $0x80] ss:$16 sps:$4 sm:$0xff]   ;;  %v3723_v51 = vld [vmem:[%s4166_s18 + $0x88] ss:$16 sps:$4 sm:$0xff]   ;;  %v3724_v52 = vld [vmem:[%s4166_s18 + $0xa4] ss:$16 sps:$4 sm:$0xff]  }
  0x18   : > { %3055 = vmatpush3.bf16.msra.mxu0 %v4089_v18  ;;  %v3726_v53 = vld [vmem:[%s4166_s18 + $0xac] ss:$16 sps:$4 sm:$0xff]   ;;  %v3728_v54 = vld [vmem:[%s4166_s18 + $0xa0] ss:$16 sps:$4 sm:$0xff]   ;;  %v3729_v55 = vld [vmem:[%s4166_s18 + $0xa8] ss:$16 sps:$4 sm:$0xff]  }
  0x19   : > { %3131 = vmatpush3.bf16.msra.mxu1 %v4095_v19  ;;  %3056 = vmatprep.subr.bf16.mxu0 %v4101_v20  ;;  %v3730_v56 = vld [vmem:[%s4166_s18 + $0xc4] ss:$16 sps:$4 sm:$0xff]   ;;  %v3732_v57 = vld [vmem:[%s4166_s18 + $0xcc] ss:$16 sps:$4 sm:$0xff]   ;;  %v3734_v58 = vld [vmem:[%s4166_s18 + $0xc0] ss:$16 sps:$4 sm:$0xff]  }
  0x1a   : > { %3132 = vmatprep.subr.bf16.mxu1 %v4107_v21  ;;  %v3735_v59 = vld [vmem:[%s4166_s18 + $0xc8] ss:$16 sps:$4 sm:$0xff]   ;;  %v3736_v60 = vld [vmem:[%s4166_s18 + $0xe4] ss:$16 sps:$4 sm:$0xff]   ;;  %v3738_v61 = vld [vmem:[%s4166_s18 + $0xec] ss:$16 sps:$4 sm:$0xff]  }
  0x1b   : > { %v3740_v62 = vld [vmem:[%s4166_s18 + $0xe0] ss:$16 sps:$4 sm:$0xff]   ;;  %v3741_v63 = vld [vmem:[%s4166_s18 + $0xe8] ss:$16 sps:$4 sm:$0xff]   ;;  %v3744_v33 = vld [vmem:[%s4166_s18 + $0x10c] ss:$16 sps:$4 sm:$0xff]  }
  0x1c   : > { %3057 = vmatpush3.bf16.msra.mxu0 %v4113_v22  ;;  %v3746_v35 = vld [vmem:[%s4166_s18 + $0x100] ss:$16 sps:$4 sm:$0xff]  }
  0x1d   : > { %3133 = vmatpush3.bf16.msra.mxu1 %v4121_v23  ;;  %3058 = vmatprep.subr.bf16.mxu0 %v4127_v24 }
  0x1e   : > { %3134 = vmatprep.subr.bf16.mxu1 %v4133_v25 }
  0x20   : > { %3059 = vmatpush3.bf16.msra.mxu0 %v4139_v26 }
  0x21   : > { %3135 = vmatpush3.bf16.msra.mxu1 %v4148_v27  ;;  %3060 = vmatprep.subr.bf16.mxu0 %v4154_v28 }
  0x22   : > { %3136 = vmatprep.subr.bf16.mxu1 %v4160_v29 }
  0x24   : > { %3061 = vmatpush3.bf16.msra.mxu0 %v4172_v30 }
  0x25   : > { %3137 = vmatpush3.bf16.msra.mxu1 %v4178_v31  ;;  %3198 = vmatprep.subr.bf16.mxu0 %v3980_v0 }
  0x26   : > { %3274 = vmatprep.subr.bf16.mxu1 %v3985_v1 }
  0x27   : > { %855 = vmatmul.mubr.bf16.vlgmr.msra.gmra.mrb[0].mxu0 %v3694_v32  ;;  %v3742_v32 = vld [vmem:[%s4166_s18 + $0x104] ss:$16 sps:$4 sm:$0xff]  }
  0x28   : > { %967 = vmatmul.mubr.bf16.vlgmr.msra.gmra.mrb[0].mxu1 %v3697_v34  ;;  %3199 = vmatpush3.bf16.msra.mxu0 %v3991_v2  ;;  %v434_v34 = vld [vmem:[%s4166_s18 + $0x120] sm:$0xff] }
  0x29   : > { %3275 = vmatpush3.bf16.msra.mxu1 %v3997_v3  ;;  %862 = vmatprep.mubr.bf16.mxu0 %v3700_v36  ;;  %v435_v36 = vld [vmem:[%s4166_s18 + $0x128] sm:$0xff] }
  0x2a   : > { %974 = vmatprep.mubr.bf16.mxu1 %v3702_v37  ;;  %3200 = vmatprep.subr.bf16.mxu0 %v4003_v4  ;;  %v3747_v37 = vld [vmem:[%s4166_s18 + $0x108] ss:$16 sps:$4 sm:$0xff]  }
  0x2b   : > { %3276 = vmatprep.subr.bf16.mxu1 %v4009_v5 }
  0x2c   : > { %3201 = vmatpush3.bf16.msra.mxu0 %v4015_v6 }
  0x2d   : > { %3277 = vmatpush3.bf16.msra.mxu1 %v4021_v7  ;;  %3202 = vmatprep.subr.bf16.mxu0 %v4027_v8 }
  0x2e   : > { %3278 = vmatprep.subr.bf16.mxu1 %v4033_v9 }
  0x2f   : > { %863 = vmatmul.mubr.bf16.gmra.mrb[4].mxu0 %v3704_v38  ;;  %v2793_v38 = vcombine.high %v434_v34, %v434_v34 }
  0x30   : > { %975 = vmatmul.mubr.bf16.gmra.mrb[4].mxu1 %v3705_v39  ;;  %870 = vmatprep.mubr.bf16.mxu0 %v3706_v40  ;;  %v2795_v39 = vcombine.high %v435_v36, %v435_v36  ;;  %v2792_v40 = vcombine.low %v434_v34, %v434_v34  ;;  %v3788_v34 = vld [vmem:[%s4221_s27 + $0xc4] ss:$16 sps:$4 sm:$0xff]  }
  0x31   : > { %982 = vmatprep.mubr.bf16.mxu1 %v3708_v41  ;;  %3203 = vmatpush3.bf16.msra.mxu0 %v4039_v10  ;;  %v2794_v41 = vcombine.low %v435_v36, %v435_v36  ;;  %v3793_v36 = vld [vmem:[%s4221_s27 + $0xc8] ss:$16 sps:$4 sm:$0xff]  }
  0x32   : > { %3279 = vmatpush3.bf16.msra.mxu1 %v4045_v11  ;;  %3204 = vmatprep.subr.bf16.mxu0 %v4051_v12 }
  0x33   : > { %3280 = vmatprep.subr.bf16.mxu1 %v4057_v13 }
  0x35   : > { %3205 = vmatpush3.bf16.msra.mxu0 %v4063_v14 }
  0x36   : > { %3281 = vmatpush3.bf16.msra.mxu1 %v4071_v15  ;;  %3206 = vmatprep.subr.bf16.mxu0 %v4077_v16 }
  0x37   : > { %871 = vmatmul.mubr.bf16.gmra.mrb[8].mxu0 %v3710_v42  ;;  %3282 = vmatprep.subr.bf16.mxu1 %v4083_v17  ;;  %v3754_v42 = vld [vmem:[%s4221_s27 + $0x4] ss:$16 sps:$4 sm:$0xff]  }
  0x38   : > { %983 = vmatmul.mubr.bf16.gmra.mrb[8].mxu1 %v3711_v43  ;;  %878 = vmatprep.mubr.bf16.mxu0 %v3712_v44  ;;  %v3757_v43 = vld [vmem:[%s4221_s27 + $0xc] ss:$16 sps:$4 sm:$0xff]   ;;  %v3752_v44 = vld [vmem:[%s4221_s27] ss:$16 sps:$4 sm:$0xff]  }
  0x39   : > { %990 = vmatprep.mubr.bf16.mxu1 %v3714_v45  ;;  %3207 = vmatpush3.bf16.msra.mxu0 %v4089_v18  ;;  %v3755_v45 = vld [vmem:[%s4221_s27 + $0x8] ss:$16 sps:$4 sm:$0xff]  }
  0x3a   : > { %3283 = vmatpush3.bf16.msra.mxu1 %v4095_v19  ;;  %3208 = vmatprep.subr.bf16.mxu0 %v4101_v20 }
  0x3b   : > { %3284 = vmatprep.subr.bf16.mxu1 %v4107_v21 }
  0x3d   : > { %3209 = vmatpush3.bf16.msra.mxu0 %v4113_v22 }
  0x3e   : > { %3285 = vmatpush3.bf16.msra.mxu1 %v4121_v23  ;;  %3210 = vmatprep.subr.bf16.mxu0 %v4127_v24 }
  0x3f   : > { %879 = vmatmul.mubr.bf16.gmra.mrb[12].mxu0 %v3716_v46  ;;  %3286 = vmatprep.subr.bf16.mxu1 %v4133_v25  ;;  %v3758_v46 = vld [vmem:[%s4221_s27 + $0x24] ss:$16 sps:$4 sm:$0xff]  }
  0x40   : > { %991 = vmatmul.mubr.bf16.gmra.mrb[12].mxu1 %v3717_v47  ;;  %886 = vmatprep.mubr.bf16.mxu0 %v3718_v48  ;;  %v3760_v47 = vld [vmem:[%s4221_s27 + $0x2c] ss:$16 sps:$4 sm:$0xff]   ;;  %v3762_v48 = vld [vmem:[%s4221_s27 + $0x20] ss:$16 sps:$4 sm:$0xff]  }
  0x41   : > { %998 = vmatprep.mubr.bf16.mxu1 %v3720_v49  ;;  %3211 = vmatpush3.bf16.msra.mxu0 %v4139_v26  ;;  %v3763_v49 = vld [vmem:[%s4221_s27 + $0x28] ss:$16 sps:$4 sm:$0xff]  }
  0x42   : > { %3287 = vmatpush3.bf16.msra.mxu1 %v4148_v27  ;;  %3212 = vmatprep.subr.bf16.mxu0 %v4154_v28 }
  0x43   : > { %3288 = vmatprep.subr.bf16.mxu1 %v4160_v29 }
  0x45   : > { %3213 = vmatpush3.bf16.msra.mxu0 %v4172_v30 }
  0x46   : > { %3289 = vmatpush3.bf16.msra.mxu1 %v4178_v31  ;;  %3350 = vmatprep.subr.bf16.mxu0 %v3980_v0 }
  0x47   : > { %887 = vmatmul.mubr.bf16.gmra.mrb[16].mxu0 %v3722_v50  ;;  %3426 = vmatprep.subr.bf16.mxu1 %v3985_v1  ;;  %v3764_v50 = vld [vmem:[%s4221_s27 + $0x44] ss:$16 sps:$4 sm:$0xff]  }
  0x48   : > { %999 = vmatmul.mubr.bf16.gmra.mrb[16].mxu1 %v3723_v51  ;;  %894 = vmatprep.mubr.bf16.mxu0 %v3724_v52  ;;  %v3766_v51 = vld [vmem:[%s4221_s27 + $0x4c] ss:$16 sps:$4 sm:$0xff]   ;;  %v3768_v52 = vld [vmem:[%s4221_s27 + $0x40] ss:$16 sps:$4 sm:$0xff]  }
  0x49   : > { %1006 = vmatprep.mubr.bf16.mxu1 %v3726_v53  ;;  %v3769_v53 = vld [vmem:[%s4221_s27 + $0x48] ss:$16 sps:$4 sm:$0xff]  }
  0x4f   : > { %895 = vmatmul.mubr.bf16.gmra.mrb[20].mxu0 %v3728_v54  ;;  %v3770_v54 = vld [vmem:[%s4221_s27 + $0x64] ss:$16 sps:$4 sm:$0xff]  }
  0x50   : > { %1007 = vmatmul.mubr.bf16.gmra.mrb[20].mxu1 %v3729_v55  ;;  %902 = vmatprep.mubr.bf16.mxu0 %v3730_v56  ;;  %v3772_v55 = vld [vmem:[%s4221_s27 + $0x6c] ss:$16 sps:$4 sm:$0xff]   ;;  %v3774_v56 = vld [vmem:[%s4221_s27 + $0x60] ss:$16 sps:$4 sm:$0xff]  }
  0x51   : > { %1014 = vmatprep.mubr.bf16.mxu1 %v3732_v57  ;;  %v3775_v57 = vld [vmem:[%s4221_s27 + $0x68] ss:$16 sps:$4 sm:$0xff]  }
  0x57   : > { %903 = vmatmul.mubr.bf16.gmra.mrb[24].mxu0 %v3734_v58  ;;  %v3776_v58 = vld [vmem:[%s4221_s27 + $0x84] ss:$16 sps:$4 sm:$0xff]  }
  0x58   : > { %1015 = vmatmul.mubr.bf16.gmra.mrb[24].mxu1 %v3735_v59  ;;  %910 = vmatprep.mubr.bf16.mxu0 %v3736_v60  ;;  %v3778_v59 = vld [vmem:[%s4221_s27 + $0x8c] ss:$16 sps:$4 sm:$0xff]   ;;  %v3780_v60 = vld [vmem:[%s4221_s27 + $0x80] ss:$16 sps:$4 sm:$0xff]  }
  0x59   : > { %1022 = vmatprep.mubr.bf16.mxu1 %v3738_v61  ;;  %v3781_v61 = vld [vmem:[%s4221_s27 + $0x88] ss:$16 sps:$4 sm:$0xff]  }
  0x5f   : > { %911 = vmatmul.mubr.bf16.gmra.mrb[28].mxu0 %v3740_v62  ;;  %v3782_v62 = vld [vmem:[%s4221_s27 + $0xa4] ss:$16 sps:$4 sm:$0xff]  }
  0x60   : > { %1023 = vmatmul.mubr.bf16.gmra.mrb[28].mxu1 %v3741_v63  ;;  %918 = vmatprep.mubr.bf16.mxu0 %v3742_v32  ;;  %v3784_v63 = vld [vmem:[%s4221_s27 + $0xac] ss:$16 sps:$4 sm:$0xff]   ;;  %v3786_v32 = vld [vmem:[%s4221_s27 + $0xa0] ss:$16 sps:$4 sm:$0xff]  }
  0x61   : > { %1030 = vmatprep.mubr.bf16.mxu1 %v3744_v33  ;;  %v3787_v33 = vld [vmem:[%s4221_s27 + $0xa8] ss:$16 sps:$4 sm:$0xff]  }
  0x67   : > { %919 = vmatmul.mubr.bf16.gmra.mrb[32].mxu0 %v3746_v35  ;;  %v3790_v35 = vld [vmem:[%s4221_s27 + $0xcc] ss:$16 sps:$4 sm:$0xff]  }
  0x68   : > { %1031 = vmatmul.mubr.bf16.gmra.mrb[32].mxu1 %v3747_v37  ;;  %926 = vmatprep.mubr.bf16.mxu0 %v2793_v38  ;;  %v3796_v37 = vld [vmem:[%s4221_s27 + $0xec] ss:$16 sps:$4 sm:$0xff]   ;;  %v3798_v38 = vld [vmem:[%s4221_s27 + $0xe0] ss:$16 sps:$4 sm:$0xff]  }
  0x69   : > { %1038 = vmatprep.mubr.bf16.mxu1 %v2795_v39  ;;  %v3799_v39 = vld [vmem:[%s4221_s27 + $0xe8] ss:$16 sps:$4 sm:$0xff]  }
  0x6f   : > { %927 = vmatmul.mubr.bf16.gmra.mrb[36].mxu0 %v2792_v40  ;;  %v3800_v40 = vld [vmem:[%s4221_s27 + $0x104] ss:$16 sps:$4 sm:$0xff]  }
  0x70   : > { %1039 = vmatmul.mubr.bf16.gmra.mrb[36].mxu1 %v2794_v41  ;;  %1310 = vmatprep.mubr.bf16.mxu0 %v3754_v42  ;;  %v3802_v41 = vld [vmem:[%s4221_s27 + $0x10c] ss:$16 sps:$4 sm:$0xff]   ;;  %v1082_v42 = vld [vmem:[%s4221_s27 + $0x120] sm:$0xff] }
  0x71   : > { %1422 = vmatprep.mubr.bf16.mxu1 %v3757_v43  ;;  %v1083_v43 = vld [vmem:[%s4221_s27 + $0x128] sm:$0xff] }
  0x77   : > { %1311 = vmatmul.mubr.bf16.vlgmr.msra.gmra.mrb[40].mxu0 %v3752_v44  ;;  %v3804_v44 = vld [vmem:[%s4221_s27 + $0x100] ss:$16 sps:$4 sm:$0xff]  }
  0x78   : > { %1423 = vmatmul.mubr.bf16.vlgmr.msra.gmra.mrb[40].mxu1 %v3755_v45  ;;  %3351 = vmatpush3.bf16.msra.mxu0 %v3991_v2  ;;  %v3805_v45 = vld [vmem:[%s4221_s27 + $0x108] ss:$16 sps:$4 sm:$0xff]  }
  0x79   : > { %3427 = vmatpush3.bf16.msra.mxu1 %v3997_v3  ;;  %1318 = vmatprep.mubr.bf16.mxu0 %v3758_v46  ;;  %v2865_v46 = vcombine.high %v1082_v42, %v1082_v42 }
  0x7a   : > { %1430 = vmatprep.mubr.bf16.mxu1 %v3760_v47  ;;  %3352 = vmatprep.subr.bf16.mxu0 %v4003_v4  ;;  %v2867_v47 = vcombine.high %v1083_v43, %v1083_v43 }
  0x7b   : > { %3428 = vmatprep.subr.bf16.mxu1 %v4009_v5 }
  0x7c   : > { %3353 = vmatpush3.bf16.msra.mxu0 %v4015_v6 }
  0x7d   : > { %3429 = vmatpush3.bf16.msra.mxu1 %v4021_v7  ;;  %3354 = vmatprep.subr.bf16.mxu0 %v4027_v8 }
  0x7e   : > { %3430 = vmatprep.subr.bf16.mxu1 %v4033_v9 }
  0x7f   : > { %1319 = vmatmul.mubr.bf16.gmra.mrb[44].mxu0 %v3762_v48  ;;  %v2864_v48 = vcombine.low %v1082_v42, %v1082_v42 }
  0x80   : > { %1431 = vmatmul.mubr.bf16.gmra.mrb[44].mxu1 %v3763_v49  ;;  %1326 = vmatprep.mubr.bf16.mxu0 %v3764_v50  ;;  %v2866_v49 = vcombine.low %v1083_v43, %v1083_v43  ;;  %v3812_v50 = vld [vmem:[%s4254_s30 + $0x4] ss:$16 sps:$4 sm:$0xff]   ;;  %v3863_v43 = vld [vmem:[%s4254_s30 + $0x108] ss:$16 sps:$4 sm:$0xff]  }
  0x81   : > { %1438 = vmatprep.mubr.bf16.mxu1 %v3766_v51  ;;  %3355 = vmatpush3.bf16.msra.mxu0 %v4039_v10  ;;  %v3815_v51 = vld [vmem:[%s4254_s30 + $0xc] ss:$16 sps:$4 sm:$0xff]  }
  0x82   : > { %3431 = vmatpush3.bf16.msra.mxu1 %v4045_v11  ;;  %3356 = vmatprep.subr.bf16.mxu0 %v4051_v12 }
  0x83   : > { %3432 = vmatprep.subr.bf16.mxu1 %v4057_v13 }
  0x85   : > { %3357 = vmatpush3.bf16.msra.mxu0 %v4063_v14 }
  0x86   : > { %3433 = vmatpush3.bf16.msra.mxu1 %v4071_v15  ;;  %3358 = vmatprep.subr.bf16.mxu0 %v4077_v16 }
  0x87   : > { %1327 = vmatmul.mubr.bf16.gmra.mrb[48].mxu0 %v3768_v52  ;;  %3434 = vmatprep.subr.bf16.mxu1 %v4083_v17  ;;  %v3810_v52 = vld [vmem:[%s4254_s30] ss:$16 sps:$4 sm:$0xff]  }
  0x88   : > { %1439 = vmatmul.mubr.bf16.gmra.mrb[48].mxu1 %v3769_v53  ;;  %1334 = vmatprep.mubr.bf16.mxu0 %v3770_v54  ;;  %v3813_v53 = vld [vmem:[%s4254_s30 + $0x8] ss:$16 sps:$4 sm:$0xff]   ;;  %v3816_v54 = vld [vmem:[%s4254_s30 + $0x24] ss:$16 sps:$4 sm:$0xff]  }
  0x89   : > { %1446 = vmatprep.mubr.bf16.mxu1 %v3772_v55  ;;  %3359 = vmatpush3.bf16.msra.mxu0 %v4089_v18  ;;  %v3818_v55 = vld [vmem:[%s4254_s30 + $0x2c] ss:$16 sps:$4 sm:$0xff]  }
  0x8a   : > { %3435 = vmatpush3.bf16.msra.mxu1 %v4095_v19  ;;  %3360 = vmatprep.subr.bf16.mxu0 %v4101_v20 }
  0x8b   : > { %3436 = vmatprep.subr.bf16.mxu1 %v4107_v21 }
  0x8d   : > { %3361 = vmatpush3.bf16.msra.mxu0 %v4113_v22 }
  0x8e   : > { %3437 = vmatpush3.bf16.msra.mxu1 %v4121_v23  ;;  %3362 = vmatprep.subr.bf16.mxu0 %v4127_v24 }
  0x8f   : > { %1335 = vmatmul.mubr.bf16.gmra.mrb[52].mxu0 %v3774_v56  ;;  %3438 = vmatprep.subr.bf16.mxu1 %v4133_v25  ;;  %v3820_v56 = vld [vmem:[%s4254_s30 + $0x20] ss:$16 sps:$4 sm:$0xff]  }
  0x90   : > { %1447 = vmatmul.mubr.bf16.gmra.mrb[52].mxu1 %v3775_v57  ;;  %1342 = vmatprep.mubr.bf16.mxu0 %v3776_v58  ;;  %v3821_v57 = vld [vmem:[%s4254_s30 + $0x28] ss:$16 sps:$4 sm:$0xff]   ;;  %v3822_v58 = vld [vmem:[%s4254_s30 + $0x44] ss:$16 sps:$4 sm:$0xff]  }
  0x91   : > { %1454 = vmatprep.mubr.bf16.mxu1 %v3778_v59  ;;  %3363 = vmatpush3.bf16.msra.mxu0 %v4139_v26 }
  0x92   : > { %3439 = vmatpush3.bf16.msra.mxu1 %v4148_v27  ;;  %3364 = vmatprep.subr.bf16.mxu0 %v4154_v28 }
  0x93   : > { %3440 = vmatprep.subr.bf16.mxu1 %v4160_v29 }
  0x95   : > { %3365 = vmatpush3.bf16.msra.mxu0 %v4172_v30 }
  0x96   : > { %3441 = vmatpush3.bf16.msra.mxu1 %v4178_v31  ;;  %3502 = vmatprep.subr.bf16.mxu0 %v3980_v0  ;;  %v3792_v0 = vld [vmem:[%s4221_s27 + $0xc0] ss:$16 sps:$4 sm:$0xff]  }
  0x97   : > { %1343 = vmatmul.mubr.bf16.gmra.mrb[56].mxu0 %v3780_v60  ;;  %3578 = vmatprep.subr.bf16.mxu1 %v3985_v1  ;;  %v3794_v1 = vld [vmem:[%s4221_s27 + $0xe4] ss:$16 sps:$4 sm:$0xff]  }
  0x98   : > { %1455 = vmatmul.mubr.bf16.gmra.mrb[56].mxu1 %v3781_v61  ;;  %1350 = vmatprep.mubr.bf16.mxu0 %v3782_v62  ;;  %v3860_v62 = vld [vmem:[%s4254_s30 + $0x10c] ss:$16 sps:$4 sm:$0xff]  }
  0x99   : > { %1462 = vmatprep.mubr.bf16.mxu1 %v3784_v63 }
  0x9f   : > { %1351 = vmatmul.mubr.bf16.gmra.mrb[60].mxu0 %v3786_v32 }
  0xa0   : > { %1463 = vmatmul.mubr.bf16.gmra.mrb[60].mxu1 %v3787_v33  ;;  %1358 = vmatprep.mubr.bf16.mxu0 %v3788_v34 }
  0xa1   : > { %1470 = vmatprep.mubr.bf16.mxu1 %v3790_v35 }
  0xa7   : > { %1359 = vmatmul.mubr.bf16.gmra.mrb[64].mxu0 %v3792_v0  ;;  %v1557_v0 = vld [vmem:[%s4254_s30 + $0x120] sm:$0xff] }
  0xa8   : > { %1471 = vmatmul.mubr.bf16.gmra.mrb[64].mxu1 %v3793_v36  ;;  %1366 = vmatprep.mubr.bf16.mxu0 %v3794_v1  ;;  %v1558_v1 = vld [vmem:[%s4254_s30 + $0x128] sm:$0xff] }
  0xa9   : > { %1478 = vmatprep.mubr.bf16.mxu1 %v3796_v37 }
  0xaf   : > { %1367 = vmatmul.mubr.bf16.gmra.mrb[68].mxu0 %v3798_v38 }
  0xb0   : > { %1479 = vmatmul.mubr.bf16.gmra.mrb[68].mxu1 %v3799_v39  ;;  %1374 = vmatprep.mubr.bf16.mxu0 %v3800_v40  ;;  %v3862_v39 = vld [vmem:[%s4254_s30 + $0x100] ss:$16 sps:$4 sm:$0xff]  }
  0xb1   : > { %1486 = vmatprep.mubr.bf16.mxu1 %v3802_v41 }
  0xb7   : > { %1375 = vmatmul.mubr.bf16.gmra.mrb[72].mxu0 %v3804_v44  ;;  %v2905_v44 = vcombine.high %v1557_v0, %v1557_v0 }
  0xb8   : > { %1487 = vmatmul.mubr.bf16.gmra.mrb[72].mxu1 %v3805_v45  ;;  %1382 = vmatprep.mubr.bf16.mxu0 %v2865_v46 }
  0xb9   : > { %1494 = vmatprep.mubr.bf16.mxu1 %v2867_v47 }
  0xbf   : > { %1383 = vmatmul.mubr.bf16.gmra.mrb[76].mxu0 %v2864_v48  ;;  %v2907_v48 = vcombine.high %v1558_v1, %v1558_v1 }
  0xc0   : > { %1495 = vmatmul.mubr.bf16.gmra.mrb[76].mxu1 %v2866_v49  ;;  %1785 = vmatprep.mubr.bf16.mxu0 %v3812_v50 }
  0xc1   : > { %1897 = vmatprep.mubr.bf16.mxu1 %v3815_v51 }
  0xc7   : > { %1786 = vmatmul.mubr.bf16.vlgmr.msra.gmra.mrb[80].mxu0 %v3810_v52 }
  0xc8   : > { %1898 = vmatmul.mubr.bf16.vlgmr.msra.gmra.mrb[80].mxu1 %v3813_v53  ;;  %3503 = vmatpush3.bf16.msra.mxu0 %v3991_v2  ;;  %v3824_v2 = vld [vmem:[%s4254_s30 + $0x4c] ss:$16 sps:$4 sm:$0xff]  }
  0xc9   : > { %3579 = vmatpush3.bf16.msra.mxu1 %v3997_v3  ;;  %1793 = vmatprep.mubr.bf16.mxu0 %v3816_v54  ;;  %v3826_v3 = vld [vmem:[%s4254_s30 + $0x40] ss:$16 sps:$4 sm:$0xff]  }
  0xca   : > { %1905 = vmatprep.mubr.bf16.mxu1 %v3818_v55  ;;  %3504 = vmatprep.subr.bf16.mxu0 %v4003_v4  ;;  %v3827_v4 = vld [vmem:[%s4254_s30 + $0x48] ss:$16 sps:$4 sm:$0xff]  }
  0xcb   : > { %3580 = vmatprep.subr.bf16.mxu1 %v4009_v5  ;;  %v3828_v5 = vld [vmem:[%s4254_s30 + $0x64] ss:$16 sps:$4 sm:$0xff]  }
  0xcc   : > { %3505 = vmatpush3.bf16.msra.mxu0 %v4015_v6  ;;  %v3830_v6 = vld [vmem:[%s4254_s30 + $0x6c] ss:$16 sps:$4 sm:$0xff]  }
  0xcd   : > { %3581 = vmatpush3.bf16.msra.mxu1 %v4021_v7  ;;  %3506 = vmatprep.subr.bf16.mxu0 %v4027_v8  ;;  %v3832_v7 = vld [vmem:[%s4254_s30 + $0x60] ss:$16 sps:$4 sm:$0xff]   ;;  %v3833_v8 = vld [vmem:[%s4254_s30 + $0x68] ss:$16 sps:$4 sm:$0xff]  }
  0xce   : > { %3582 = vmatprep.subr.bf16.mxu1 %v4033_v9  ;;  %v3834_v9 = vld [vmem:[%s4254_s30 + $0x84] ss:$16 sps:$4 sm:$0xff]  }
  0xcf   : > { %1794 = vmatmul.mubr.bf16.gmra.mrb[84].mxu0 %v3820_v56 }
  0xd0   : > { %1906 = vmatmul.mubr.bf16.gmra.mrb[84].mxu1 %v3821_v57  ;;  %1801 = vmatprep.mubr.bf16.mxu0 %v3822_v58  ;;  %v2904_v57 = vcombine.low %v1557_v0, %v1557_v0 }
  0xd1   : > { %1913 = vmatprep.mubr.bf16.mxu1 %v3824_v2  ;;  %3507 = vmatpush3.bf16.msra.mxu0 %v4039_v10  ;;  %v3836_v10 = vld [vmem:[%s4254_s30 + $0x8c] ss:$16 sps:$4 sm:$0xff]  }
  0xd2   : > { %3583 = vmatpush3.bf16.msra.mxu1 %v4045_v11  ;;  %3508 = vmatprep.subr.bf16.mxu0 %v4051_v12  ;;  %v3838_v11 = vld [vmem:[%s4254_s30 + $0x80] ss:$16 sps:$4 sm:$0xff]   ;;  %v3839_v12 = vld [vmem:[%s4254_s30 + $0x88] ss:$16 sps:$4 sm:$0xff]  }
  0xd3   : > { %3584 = vmatprep.subr.bf16.mxu1 %v4057_v13  ;;  %v3840_v13 = vld [vmem:[%s4254_s30 + $0xa4] ss:$16 sps:$4 sm:$0xff]  }
  0xd5   : > { %3509 = vmatpush3.bf16.msra.mxu0 %v4063_v14  ;;  %v3842_v14 = vld [vmem:[%s4254_s30 + $0xac] ss:$16 sps:$4 sm:$0xff]  }
  0xd6   : > { %3585 = vmatpush3.bf16.msra.mxu1 %v4071_v15  ;;  %3510 = vmatprep.subr.bf16.mxu0 %v4077_v16  ;;  %v3844_v15 = vld [vmem:[%s4254_s30 + $0xa0] ss:$16 sps:$4 sm:$0xff]   ;;  %v3845_v16 = vld [vmem:[%s4254_s30 + $0xa8] ss:$16 sps:$4 sm:$0xff]  }
  0xd7   : > { %1802 = vmatmul.mubr.bf16.gmra.mrb[88].mxu0 %v3826_v3  ;;  %3586 = vmatprep.subr.bf16.mxu1 %v4083_v17  ;;  %v3846_v17 = vld [vmem:[%s4254_s30 + $0xc4] ss:$16 sps:$4 sm:$0xff]  }
  0xd8   : > { %1914 = vmatmul.mubr.bf16.gmra.mrb[88].mxu1 %v3827_v4  ;;  %1809 = vmatprep.mubr.bf16.mxu0 %v3828_v5  ;;  %v2906_v4 = vcombine.low %v1558_v1, %v1558_v1  ;;  %v3870_v5 = vld [vmem:[%s4319_s11 + $0x4] ss:$16 sps:$4 sm:$0xff]  }
  0xd9   : > { %1921 = vmatprep.mubr.bf16.mxu1 %v3830_v6  ;;  %3511 = vmatpush3.bf16.msra.mxu0 %v4089_v18  ;;  %v3848_v18 = vld [vmem:[%s4254_s30 + $0xcc] ss:$16 sps:$4 sm:$0xff]   ;;  %v3880_v1 = vld [vmem:[%s4319_s11 + $0x44] ss:$16 sps:$4 sm:$0xff]  }
  0xda   : > { %3587 = vmatpush3.bf16.msra.mxu1 %v4095_v19  ;;  %3512 = vmatprep.subr.bf16.mxu0 %v4101_v20  ;;  %v3850_v19 = vld [vmem:[%s4254_s30 + $0xc0] ss:$16 sps:$4 sm:$0xff]   ;;  %v3851_v20 = vld [vmem:[%s4254_s30 + $0xc8] ss:$16 sps:$4 sm:$0xff]  }
  0xdb   : > { %3588 = vmatprep.subr.bf16.mxu1 %v4107_v21  ;;  %v3852_v21 = vld [vmem:[%s4254_s30 + $0xe4] ss:$16 sps:$4 sm:$0xff]  }
  0xdd   : > { %3513 = vmatpush3.bf16.msra.mxu0 %v4113_v22  ;;  %v3854_v22 = vld [vmem:[%s4254_s30 + $0xec] ss:$16 sps:$4 sm:$0xff]  }
  0xde   : > { %3589 = vmatpush3.bf16.msra.mxu1 %v4121_v23  ;;  %3514 = vmatprep.subr.bf16.mxu0 %v4127_v24 }
  0xdf   : > { %1810 = vmatmul.mubr.bf16.gmra.mrb[92].mxu0 %v3832_v7  ;;  %3590 = vmatprep.subr.bf16.mxu1 %v4133_v25 }
  0xe0   : > { %1922 = vmatmul.mubr.bf16.gmra.mrb[92].mxu1 %v3833_v8  ;;  %1817 = vmatprep.mubr.bf16.mxu0 %v3834_v9  ;;  %v3873_v9 = vld [vmem:[%s4319_s11 + $0xc] ss:$16 sps:$4 sm:$0xff]  }
  0xe1   : > { %1929 = vmatprep.mubr.bf16.mxu1 %v3836_v10  ;;  %3515 = vmatpush3.bf16.msra.mxu0 %v4139_v26  ;;  %v3856_v26 = vld [vmem:[%s4254_s30 + $0xe0] ss:$16 sps:$4 sm:$0xff]  }
  0xe2   : > { %3591 = vmatpush3.bf16.msra.mxu1 %v4148_v27  ;;  %3516 = vmatprep.subr.bf16.mxu0 %v4154_v28 }
  0xe3   : > { %3592 = vmatprep.subr.bf16.mxu1 %v4160_v29 }
  0xe5   : > { %3517 = vmatpush3.bf16.msra.mxu0 %v4172_v30  ;;  %v3857_v30 = vld [vmem:[%s4254_s30 + $0xe8] ss:$16 sps:$4 sm:$0xff]  }
  0xe6   : > { %3593 = vmatpush3.bf16.msra.mxu1 %v4178_v31  ;;  %v3858_v31 = vld [vmem:[%s4254_s30 + $0x104] ss:$16 sps:$4 sm:$0xff]  }
  0xe7   : > { %1818 = vmatmul.mubr.bf16.gmra.mrb[96].mxu0 %v3838_v11 }
  0xe8   : > { %1930 = vmatmul.mubr.bf16.gmra.mrb[96].mxu1 %v3839_v12  ;;  %1825 = vmatprep.mubr.bf16.mxu0 %v3840_v13 }
  0xe9   : > { %1937 = vmatprep.mubr.bf16.mxu1 %v3842_v14 }
  0xef   : > { %1826 = vmatmul.mubr.bf16.gmra.mrb[100].mxu0 %v3844_v15 }
  0xf0   : > { %1938 = vmatmul.mubr.bf16.gmra.mrb[100].mxu1 %v3845_v16  ;;  %1833 = vmatprep.mubr.bf16.mxu0 %v3846_v17 }
  0xf1   : > { %1945 = vmatprep.mubr.bf16.mxu1 %v3848_v18  ;;  %v3868_v18 = vld [vmem:[%s4319_s11] ss:$16 sps:$4 sm:$0xff]  }
  0xf7   : > { %1834 = vmatmul.mubr.bf16.gmra.mrb[104].mxu0 %v3850_v19 }
  0xf8   : > { %1946 = vmatmul.mubr.bf16.gmra.mrb[104].mxu1 %v3851_v20  ;;  %1841 = vmatprep.mubr.bf16.mxu0 %v3852_v21 }
  0xf9   : > { %1953 = vmatprep.mubr.bf16.mxu1 %v3854_v22  ;;  %v3871_v22 = vld [vmem:[%s4319_s11 + $0x8] ss:$16 sps:$4 sm:$0xff]  }
  0xfa   : > { %v3062_v23 = vpop.f32.mrb[0].mxu0 }
  0xfb   : > { %v3138_v24 = vpop.f32.mrb[0].mxu1  ;;  %v3063_v25 = vpop.f32.mrb[1].mxu0 }
  0xfc   : > { %v3064_v27 = vadd.f32 %v3063_v25, %v3062_v23  ;;  %v3139_v28 = vpop.f32.mrb[1].mxu1  ;;  %v3065_v29 = vpop.f32.mrb[2].mxu0  ;;  %v3874_v23 = vld [vmem:[%s4319_s11 + $0x24] ss:$16 sps:$4 sm:$0xff]  }
  0xfd   : > { %v3140_v59 = vadd.f32 %v3139_v28, %v3138_v24  ;;  %v3141_v60 = vpop.f32.mrb[2].mxu1  ;;  %v3066_v61 = vpop.f32.mrb[3].mxu0 }
  0xfe   : > { %v3067_v63 = vadd.f32 %v3066_v61, %v3065_v29  ;;  %v3142_v32 = vpop.f32.mrb[3].mxu1 }
  0xff   : > { %v4406_v33 = vadd.f32 %v3140_v59, %v3064_v27  ;;  %v3143_v34 = vadd.f32 %v3142_v32, %v3141_v60  ;;  %1842 = vmatmul.mubr.bf16.gmra.mrb[108].mxu0 %v3856_v26  ;;  %v3876_v27 = vld [vmem:[%s4319_s11 + $0x2c] ss:$16 sps:$4 sm:$0xff]  }
 0x100   : > { %1954 = vmatmul.mubr.bf16.gmra.mrb[108].mxu1 %v3857_v30  ;;  %1849 = vmatprep.mubr.bf16.mxu0 %v3858_v31 }
 0x101   : > { %v4408_v35 = vadd.f32 %v3143_v34, %v3067_v63  ;;  %1961 = vmatprep.mubr.bf16.mxu1 %v3860_v62  ;;  %v3878_v63 = vld [vmem:[%s4319_s11 + $0x20] ss:$16 sps:$4 sm:$0xff]  }
 0x102   : > { %v3068_v36 = vpop.f32.mrb[4].mxu0 }
 0x103   : > { %v3144_v37 = vpop.f32.mrb[4].mxu1  ;;  %v3069_v38 = vpop.f32.mrb[5].mxu0 }
 0x104   : > { %v3070_v40 = vadd.f32 %v3069_v38, %v3068_v36  ;;  %v3145_v41 = vpop.f32.mrb[5].mxu1  ;;  %v3071_v42 = vpop.f32.mrb[6].mxu0  ;;  %v3879_v36 = vld [vmem:[%s4319_s11 + $0x28] ss:$16 sps:$4 sm:$0xff]  }
 0x105   : > { %v3146_v45 = vadd.f32 %v3145_v41, %v3144_v37  ;;  %v3147_v46 = vpop.f32.mrb[6].mxu1  ;;  %v3072_v47 = vpop.f32.mrb[7].mxu0 }
 0x106   : > { %v3073_v49 = vadd.f32 %v3072_v47, %v3071_v42  ;;  %v3148_v50 = vpop.f32.mrb[7].mxu1 }
 0x107   : > { %v4414_v51 = vadd.f32 %v3146_v45, %v3070_v40  ;;  %v3149_v52 = vadd.f32 %v3148_v50, %v3147_v46  ;;  %1850 = vmatmul.mubr.bf16.gmra.mrb[112].mxu0 %v3862_v39  ;;  %v3882_v40 = vld [vmem:[%s4319_s11 + $0x4c] ss:$16 sps:$4 sm:$0xff]  }
 0x108   : > { %1962 = vmatmul.mubr.bf16.gmra.mrb[112].mxu1 %v3863_v43  ;;  %1857 = vmatprep.mubr.bf16.mxu0 %v2905_v44 }
 0x109   : > { %v4416_v53 = vadd.f32 %v3149_v52, %v3073_v49  ;;  %1969 = vmatprep.mubr.bf16.mxu1 %v2907_v48  ;;  %v3884_v49 = vld [vmem:[%s4319_s11 + $0x40] ss:$16 sps:$4 sm:$0xff]  }
 0x10a   : > { %v3074_v54 = vpop.f32.mrb[8].mxu0 }
 0x10b   : > { %v3150_v55 = vpop.f32.mrb[8].mxu1  ;;  %v3075_v56 = vpop.f32.mrb[9].mxu0 }
 0x10c   : > { %v3076_v58 = vadd.f32 %v3075_v56, %v3074_v54  ;;  %v3151_v2 = vpop.f32.mrb[9].mxu1  ;;  %v3077_v3 = vpop.f32.mrb[10].mxu0  ;;  %v3886_v56 = vld [vmem:[%s4319_s11 + $0x64] ss:$16 sps:$4 sm:$0xff]  }
 0x10d   : > { %v3152_v6 = vadd.f32 %v3151_v2, %v3150_v55  ;;  %v3153_v7 = vpop.f32.mrb[10].mxu1  ;;  %v3078_v8 = vpop.f32.mrb[11].mxu0  ;;  %v3885_v55 = vld [vmem:[%s4319_s11 + $0x48] ss:$16 sps:$4 sm:$0xff]  }
 0x10e   : > { %v3079_v10 = vadd.f32 %v3078_v8, %v3077_v3  ;;  %v3154_v11 = vpop.f32.mrb[11].mxu1  ;;  %v3888_v3 = vld [vmem:[%s4319_s11 + $0x6c] ss:$16 sps:$4 sm:$0xff]  }
 0x10f   : > { %v4420_v12 = vadd.f32 %v3152_v6, %v3076_v58  ;;  %v3155_v13 = vadd.f32 %v3154_v11, %v3153_v7  ;;  %1858 = vmatmul.mubr.bf16.gmra.mrb[116].mxu0 %v2904_v57 }
 0x110   : > { %1970 = vmatmul.mubr.bf16.gmra.mrb[116].mxu1 %v2906_v4  ;;  %2260 = vmatprep.mubr.bf16.mxu0 %v3870_v5 }
 0x111   : > { %v4422_v14 = vadd.f32 %v3155_v13, %v3079_v10  ;;  %2372 = vmatprep.mubr.bf16.mxu1 %v3873_v9  ;;  %v3890_v13 = vld [vmem:[%s4319_s11 + $0x60] ss:$16 sps:$4 sm:$0xff]  }
 0x112   : > { %v3080_v15 = vpop.f32.mrb[12].mxu0 }
 0x113   : > { %v3156_v16 = vpop.f32.mrb[12].mxu1  ;;  %v3081_v17 = vpop.f32.mrb[13].mxu0 }
 0x114   : > { %v3082_v19 = vadd.f32 %v3081_v17, %v3080_v15  ;;  %v3157_v20 = vpop.f32.mrb[13].mxu1  ;;  %v3083_v21 = vpop.f32.mrb[14].mxu0 }
 0x115   : > { %v3158_v24 = vadd.f32 %v3157_v20, %v3156_v16  ;;  %v3159_v25 = vpop.f32.mrb[14].mxu1  ;;  %v3084_v26 = vpop.f32.mrb[15].mxu0 }
 0x116   : > { %v3085_v28 = vadd.f32 %v3084_v26, %v3083_v21  ;;  %v3160_v29 = vpop.f32.mrb[15].mxu1 }
 0x117   : > { %v4428_v30 = vadd.f32 %v3158_v24, %v3082_v19  ;;  %v3161_v31 = vadd.f32 %v3160_v29, %v3159_v25  ;;  %2261 = vmatmul.mubr.bf16.vlgmr.msra.gmra.mrb[120].mxu0 %v3868_v18  ;;  %v3891_v18 = vld [vmem:[%s4319_s11 + $0x68] ss:$16 sps:$4 sm:$0xff]   ;;  %v3892_v19 = vld [vmem:[%s4319_s11 + $0x84] ss:$16 sps:$4 sm:$0xff]  }
 0x118   : > { %2373 = vmatmul.mubr.bf16.vlgmr.msra.gmra.mrb[120].mxu1 %v3871_v22  ;;  %2268 = vmatprep.mubr.bf16.mxu0 %v3874_v23  ;;  %v3894_v23 = vld [vmem:[%s4319_s11 + $0x8c] ss:$16 sps:$4 sm:$0xff]  }
 0x119   : > { %v4430_v59 = vadd.f32 %v3161_v31, %v3085_v28  ;;  %2380 = vmatprep.mubr.bf16.mxu1 %v3876_v27 }
 0x11a   : > { %v3086_v60 = vpop.f32.mrb[16].mxu0 }
 0x11b   : > { %v3162_v61 = vpop.f32.mrb[16].mxu1  ;;  %v3087_v62 = vpop.f32.mrb[17].mxu0 }
 0x11c   : > { %v3088_v32 = vadd.f32 %v3087_v62, %v3086_v60  ;;  %v3163_v34 = vpop.f32.mrb[17].mxu1  ;;  %v3089_v0 = vpop.f32.mrb[18].mxu0 }
 0x11d   : > { %v3164_v37 = vadd.f32 %v3163_v34, %v3162_v61  ;;  %v3165_v38 = vpop.f32.mrb[18].mxu1  ;;  %v3090_v39 = vpop.f32.mrb[19].mxu0  ;;  %v3896_v61 = vld [vmem:[%s4319_s11 + $0x80] ss:$16 sps:$4 sm:$0xff]   ;;  %v3897_v34 = vld [vmem:[%s4319_s11 + $0x88] ss:$16 sps:$4 sm:$0xff]  }
 0x11e   : > { %v3091_v41 = vadd.f32 %v3090_v39, %v3089_v0  ;;  %v3166_v42 = vpop.f32.mrb[19].mxu1  ;;  %v3898_v0 = vld [vmem:[%s4319_s11 + $0xa4] ss:$16 sps:$4 sm:$0xff]  }
 0x11f   : > { %v4436_v43 = vadd.f32 %v3164_v37, %v3088_v32  ;;  %v3167_v44 = vadd.f32 %v3166_v42, %v3165_v38  ;;  %2269 = vmatmul.mubr.bf16.gmra.mrb[124].mxu0 %v3878_v63  ;;  %v3900_v38 = vld [vmem:[%s4319_s11 + $0xac] ss:$16 sps:$4 sm:$0xff]  }
 0x120   : > { %2381 = vmatmul.mubr.bf16.gmra.mrb[124].mxu1 %v3879_v36  ;;  %2276 = vmatprep.mubr.bf16.mxu0 %v3880_v1 }
 0x121   : > { %v4438_v45 = vadd.f32 %v3167_v44, %v3091_v41  ;;  %2388 = vmatprep.mubr.bf16.mxu1 %v3882_v40 }
 0x122   : > { %v3092_v46 = vpop.f32.mrb[20].mxu0 }
 0x123   : > { %v3168_v47 = vpop.f32.mrb[20].mxu1  ;;  %v3093_v48 = vpop.f32.mrb[21].mxu0 }
 0x124   : > { %v3094_v50 = vadd.f32 %v3093_v48, %v3092_v46  ;;  %v3169_v52 = vpop.f32.mrb[21].mxu1  ;;  %v3095_v54 = vpop.f32.mrb[22].mxu0 }
 0x125   : > { %v3170_v57 = vadd.f32 %v3169_v52, %v3168_v47  ;;  %v3171_v58 = vpop.f32.mrb[22].mxu1  ;;  %v3096_v2 = vpop.f32.mrb[23].mxu0 }
 0x126   : > { %v3097_v4 = vadd.f32 %v3096_v2, %v3095_v54  ;;  %v3172_v5 = vpop.f32.mrb[23].mxu1 }
 0x127   : > { %v4444_v6 = vadd.f32 %v3170_v57, %v3094_v50  ;;  %v3173_v7 = vadd.f32 %v3172_v5, %v3171_v58  ;;  %2277 = vmatmul.mubr.bf16.gmra.mrb[128].mxu0 %v3884_v49  ;;  %v3902_v49 = vld [vmem:[%s4319_s11 + $0xa0] ss:$16 sps:$4 sm:$0xff]  }
 0x128   : > { %2389 = vmatmul.mubr.bf16.gmra.mrb[128].mxu1 %v3885_v55  ;;  %2284 = vmatprep.mubr.bf16.mxu0 %v3886_v56  ;;  %v3903_v55 = vld [vmem:[%s4319_s11 + $0xa8] ss:$16 sps:$4 sm:$0xff]   ;;  %v3904_v56 = vld [vmem:[%s4319_s11 + $0xc4] ss:$16 sps:$4 sm:$0xff]  }
 0x129   : > { %v4446_v8 = vadd.f32 %v3173_v7, %v3097_v4  ;;  %2396 = vmatprep.mubr.bf16.mxu1 %v3888_v3  ;;  %v3906_v3 = vld [vmem:[%s4319_s11 + $0xcc] ss:$16 sps:$4 sm:$0xff]  }
 0x12a   : > { %v3098_v9 = vpop.f32.mrb[24].mxu0 }
 0x12b   : > { %v3174_v10 = vpop.f32.mrb[24].mxu1  ;;  %v3099_v11 = vpop.f32.mrb[25].mxu0 }
 0x12c   : > { %v3100_v15 = vadd.f32 %v3099_v11, %v3098_v9  ;;  %v3175_v16 = vpop.f32.mrb[25].mxu1  ;;  %v3101_v17 = vpop.f32.mrb[26].mxu0 }
 0x12d   : > { %v3176_v20 = vadd.f32 %v3175_v16, %v3174_v10  ;;  %v3177_v21 = vpop.f32.mrb[26].mxu1  ;;  %v3102_v22 = vpop.f32.mrb[27].mxu0  ;;  %v3908_v16 = vld [vmem:[%s4319_s11 + $0xc0] ss:$16 sps:$4 sm:$0xff]  }
 0x12e   : > { %v3103_v24 = vadd.f32 %v3102_v22, %v3101_v17  ;;  %v3178_v25 = vpop.f32.mrb[27].mxu1 }
 0x12f   : > { %v4452_v26 = vadd.f32 %v3176_v20, %v3100_v15  ;;  %v3179_v27 = vadd.f32 %v3178_v25, %v3177_v21  ;;  %2285 = vmatmul.mubr.bf16.gmra.mrb[132].mxu0 %v3890_v13  ;;  %v3909_v20 = vld [vmem:[%s4319_s11 + $0xc8] ss:$16 sps:$4 sm:$0xff]   ;;  %v3910_v21 = vld [vmem:[%s4319_s11 + $0xe4] ss:$16 sps:$4 sm:$0xff]   ;;  %v3912_v25 = vld [vmem:[%s4319_s11 + $0xec] ss:$16 sps:$4 sm:$0xff]  }
 0x130   : > { %2397 = vmatmul.mubr.bf16.gmra.mrb[132].mxu1 %v3891_v18  ;;  %2292 = vmatprep.mubr.bf16.mxu0 %v3892_v19 }
 0x131   : > { %v4454_v28 = vadd.f32 %v3179_v27, %v3103_v24  ;;  %2404 = vmatprep.mubr.bf16.mxu1 %v3894_v23 }
 0x132   : > { %v3104_v29 = vpop.f32.mrb[28].mxu0 }
 0x133   : > { %v3180_v31 = vpop.f32.mrb[28].mxu1  ;;  %v3105_v60 = vpop.f32.mrb[29].mxu0 }
 0x134   : > { %v3106_v62 = vadd.f32 %v3105_v60, %v3104_v29  ;;  %v3181_v63 = vpop.f32.mrb[29].mxu1  ;;  %v3107_v32 = vpop.f32.mrb[30].mxu0 }
 0x135   : > { %v3182_v36 = vadd.f32 %v3181_v63, %v3180_v31  ;;  %v3183_v1 = vpop.f32.mrb[30].mxu1  ;;  %v3108_v37 = vpop.f32.mrb[31].mxu0 }
 0x136   : > { %v3109_v39 = vadd.f32 %v3108_v37, %v3107_v32  ;;  %v3184_v40 = vpop.f32.mrb[31].mxu1 }
 0x137   : > { %v4460_v41 = vadd.f32 %v3182_v36, %v3106_v62  ;;  %v3185_v42 = vadd.f32 %v3184_v40, %v3183_v1  ;;  %2293 = vmatmul.mubr.bf16.gmra.mrb[136].mxu0 %v3896_v61  ;;  %v3914_v62 = vld [vmem:[%s4319_s11 + $0xe0] ss:$16 sps:$4 sm:$0xff]   ;;  %v3916_v36 = vld [vmem:[%s4319_s11 + $0x104] ss:$16 sps:$4 sm:$0xff]  }
 0x138   : > { %2405 = vmatmul.mubr.bf16.gmra.mrb[136].mxu1 %v3897_v34  ;;  %2300 = vmatprep.mubr.bf16.mxu0 %v3898_v0  ;;  %v3915_v0 = vld [vmem:[%s4319_s11 + $0xe8] ss:$16 sps:$4 sm:$0xff]  }
 0x139   : > { %v4462_v44 = vadd.f32 %v3185_v42, %v3109_v39  ;;  %2412 = vmatprep.mubr.bf16.mxu1 %v3900_v38  ;;  %v3918_v39 = vld [vmem:[%s4319_s11 + $0x10c] ss:$16 sps:$4 sm:$0xff]  }
 0x13a   : > { %v3110_v46 = vpop.f32.mrb[32].mxu0 }
 0x13b   : > { %v3186_v47 = vpop.f32.mrb[32].mxu1  ;;  %v3111_v48 = vpop.f32.mrb[33].mxu0 }
 0x13c   : > { %v3112_v50 = vadd.f32 %v3111_v48, %v3110_v46  ;;  %v3187_v52 = vpop.f32.mrb[33].mxu1  ;;  %v3113_v54 = vpop.f32.mrb[34].mxu0 }
 0x13d   : > { %v3188_v57 = vadd.f32 %v3187_v52, %v3186_v47  ;;  %v3189_v58 = vpop.f32.mrb[34].mxu1  ;;  %v3114_v2 = vpop.f32.mrb[35].mxu0 }
 0x13e   : > { %v3115_v4 = vadd.f32 %v3114_v2, %v3113_v54  ;;  %v3190_v5 = vpop.f32.mrb[35].mxu1  ;;  %v2033_v54 = vld [vmem:[%s4319_s11 + $0x128] sm:$0xff] }
 0x13f   : > { %v4468_v7 = vadd.f32 %v3188_v57, %v3112_v50  ;;  %v3191_v9 = vadd.f32 %v3190_v5, %v3189_v58  ;;  %2301 = vmatmul.mubr.bf16.gmra.mrb[140].mxu0 %v3902_v49  ;;  %v2032_v50 = vld [vmem:[%s4319_s11 + $0x120] sm:$0xff]  ;;  %v3921_v5 = vld [vmem:[%s4319_s11 + $0x108] ss:$16 sps:$4 sm:$0xff]  }
 0x140   : > { %2413 = vmatmul.mubr.bf16.gmra.mrb[140].mxu1 %v3903_v55  ;;  %2308 = vmatprep.mubr.bf16.mxu0 %v3904_v56  ;;  %v3920_v58 = vld [vmem:[%s4319_s11 + $0x100] ss:$16 sps:$4 sm:$0xff]  }
 0x141   : > { %v4470_v10 = vadd.f32 %v3191_v9, %v3115_v4  ;;  %2420 = vmatprep.mubr.bf16.mxu1 %v3906_v3  ;;  %v2945_v9 = vcombine.high %v2032_v50, %v2032_v50 }
 0x142   : > { %v3116_v11 = vpop.f32.mrb[36].mxu0 }
 0x143   : > { %v3192_v13 = vpop.f32.mrb[36].mxu1  ;;  %v3117_v15 = vpop.f32.mrb[37].mxu0 }
 0x144   : > { %v3118_v17 = vadd.f32 %v3117_v15, %v3116_v11  ;;  %v3193_v18 = vpop.f32.mrb[37].mxu1  ;;  %v3119_v19 = vpop.f32.mrb[38].mxu0 }
 0x145   : > { %v3194_v22 = vadd.f32 %v3193_v18, %v3192_v13  ;;  %v3195_v23 = vpop.f32.mrb[38].mxu1  ;;  %v3120_v24 = vpop.f32.mrb[39].mxu0 }
 0x146   : > { %v3196_v27 = vpop.f32.mrb[39].mxu1 }
 0x147   : > { %v4476_v29 = vadd.f32 %v3194_v22, %v3118_v17  ;;  %2309 = vmatmul.mubr.bf16.gmra.mrb[144].mxu0 %v3908_v16  ;;  %v2947_v16 = vcombine.high %v2033_v54, %v2033_v54 }
 0x148   : > { %2421 = vmatmul.mubr.bf16.gmra.mrb[144].mxu1 %v3909_v20  ;;  %2316 = vmatprep.mubr.bf16.mxu0 %v3910_v21 }
 0x149   : > { %2428 = vmatprep.mubr.bf16.mxu1 %v3912_v25 }
 0x14a   : > { %v3214_v31 = vpop.f32.mrb[40].mxu0 }
 0x14b   : > { %v3290_v60 = vpop.f32.mrb[40].mxu1  ;;  %v3215_v61 = vpop.f32.mrb[41].mxu0 }
 0x14c   : > { %v3216_v63 = vadd.f32 %v3215_v61, %v3214_v31  ;;  %v3291_v32 = vpop.f32.mrb[41].mxu1  ;;  %v3217_v34 = vpop.f32.mrb[42].mxu0  ;;  %v2944_v31 = vcombine.low %v2032_v50, %v2032_v50 }
 0x14d   : > { %v3292_v1 = vadd.f32 %v3291_v32, %v3290_v60  ;;  %v3293_v37 = vpop.f32.mrb[42].mxu1  ;;  %v3218_v38 = vpop.f32.mrb[43].mxu0 }
 0x14e   : > { %v3219_v40 = vadd.f32 %v3218_v38, %v3217_v34  ;;  %v3294_v42 = vpop.f32.mrb[43].mxu1 }
 0x14f   : > { %v4482_v46 = vadd.f32 %v3292_v1, %v3216_v63  ;;  %v3295_v47 = vadd.f32 %v3294_v42, %v3293_v37  ;;  %2317 = vmatmul.mubr.bf16.gmra.mrb[148].mxu0 %v3914_v62  ;;  %v2946_v63 = vcombine.low %v2033_v54, %v2033_v54 }
 0x150   : > { %2429 = vmatmul.mubr.bf16.gmra.mrb[148].mxu1 %v3915_v0  ;;  %2324 = vmatprep.mubr.bf16.mxu0 %v3916_v36 }
 0x151   : > { %v1502_v48 = vmax.f32 %v4406_v33, %v4482_v46  ;;  %v4486_v49 = vadd.f32 %v3295_v47, %v3219_v40  ;;  %2436 = vmatprep.mubr.bf16.mxu1 %v3918_v39 }
 0x152   : > { %v3220_v52 = vpop.f32.mrb[44].mxu0 }
 0x153   : > { %v1503_v55 = vmax.f32 %v4408_v35, %v4486_v49  ;;  %v3296_v56 = vpop.f32.mrb[44].mxu1  ;;  %v3221_v57 = vpop.f32.mrb[45].mxu0 }
 0x154   : > { %v3222_v2 = vadd.f32 %v3221_v57, %v3220_v52  ;;  %v3297_v3 = vpop.f32.mrb[45].mxu1  ;;  %v3223_v4 = vpop.f32.mrb[46].mxu0 }
 0x155   : > { %v3298_v11 = vadd.f32 %v3297_v3, %v3296_v56  ;;  %v3299_v13 = vpop.f32.mrb[46].mxu1  ;;  %v3224_v15 = vpop.f32.mrb[47].mxu0 }
 0x156   : > { %v3225_v17 = vadd.f32 %v3224_v15, %v3223_v4  ;;  %v3300_v18 = vpop.f32.mrb[47].mxu1 }
 0x157   : > { %v4494_v19 = vadd.f32 %v3298_v11, %v3222_v2  ;;  %v3301_v20 = vadd.f32 %v3300_v18, %v3299_v13  ;;  %2325 = vmatmul.mubr.bf16.gmra.mrb[152].mxu0 %v3920_v58 }
 0x158   : > { %2437 = vmatmul.mubr.bf16.gmra.mrb[152].mxu1 %v3921_v5  ;;  %2332 = vmatprep.mubr.bf16.mxu0 %v2945_v9 }
 0x159   : > { %v1504_v21 = vmax.f32 %v4414_v51, %v4494_v19  ;;  %v4498_v22 = vadd.f32 %v3301_v20, %v3225_v17  ;;  %2444 = vmatprep.mubr.bf16.mxu1 %v2947_v16 }
 0x15a   : > { %v3226_v23 = vpop.f32.mrb[48].mxu0 }
 0x15b   : > { %v1505_v24 = vmax.f32 %v4416_v53, %v4498_v22  ;;  %v3302_v25 = vpop.f32.mrb[48].mxu1  ;;  %v3227_v27 = vpop.f32.mrb[49].mxu0 }
 0x15c   : > { %v3228_v60 = vadd.f32 %v3227_v27, %v3226_v23  ;;  %v3303_v61 = vpop.f32.mrb[49].mxu1  ;;  %v3229_v62 = vpop.f32.mrb[50].mxu0 }
 0x15d   : > { %v3304_v32 = vadd.f32 %v3303_v61, %v3302_v25  ;;  %v3305_v34 = vpop.f32.mrb[50].mxu1  ;;  %v3230_v0 = vpop.f32.mrb[51].mxu0 }
 0x15e   : > { %v3231_v36 = vadd.f32 %v3230_v0, %v3229_v62  ;;  %v3306_v1 = vpop.f32.mrb[51].mxu1 }
 0x15f   : > { %v4502_v37 = vadd.f32 %v3304_v32, %v3228_v60  ;;  %v3307_v38 = vadd.f32 %v3306_v1, %v3305_v34  ;;  %2333 = vmatmul.mubr.bf16.gmra.mrb[156].mxu0 %v2944_v31 }
 0x160   : > { %2445 = vmatmul.mubr.bf16.gmra.mrb[156].mxu1 %v2946_v63 }
 0x161   : > { %v1506_v39 = vmax.f32 %v4420_v12, %v4502_v37  ;;  %v4506_v40 = vadd.f32 %v3307_v38, %v3231_v36 }
 0x162   : > { %v3232_v42 = vpop.f32.mrb[52].mxu0 }
 0x163   : > { %v1507_v47 = vmax.f32 %v4422_v14, %v4506_v40  ;;  %v3308_v50 = vpop.f32.mrb[52].mxu1  ;;  %v3233_v52 = vpop.f32.mrb[53].mxu0 }
 0x164   : > { %v3234_v54 = vadd.f32 %v3233_v52, %v3232_v42  ;;  %v3309_v56 = vpop.f32.mrb[53].mxu1  ;;  %v3235_v57 = vpop.f32.mrb[54].mxu0 }
 0x165   : > { %v3310_v58 = vadd.f32 %v3309_v56, %v3308_v50  ;;  %v3311_v2 = vpop.f32.mrb[54].mxu1  ;;  %v3236_v3 = vpop.f32.mrb[55].mxu0 }
 0x166   : > { %v3237_v4 = vadd.f32 %v3236_v3, %v3235_v57  ;;  %v3312_v5 = vpop.f32.mrb[55].mxu1 }
 0x167   : > { %v4510_v9 = vadd.f32 %v3310_v58, %v3234_v54  ;;  %v3313_v11 = vadd.f32 %v3312_v5, %v3311_v2 }
 0x169   : > { %v1508_v13 = vmax.f32 %v4428_v30, %v4510_v9  ;;  %v4514_v15 = vadd.f32 %v3313_v11, %v3237_v4 }
 0x16a   : > { %v3238_v16 = vpop.f32.mrb[56].mxu0 }
 0x16b   : > { %v3314_v18 = vpop.f32.mrb[56].mxu1  ;;  %v3239_v20 = vpop.f32.mrb[57].mxu0 }
 0x16c   : > { %v3240_v23 = vadd.f32 %v3239_v20, %v3238_v16  ;;  %v3315_v25 = vpop.f32.mrb[57].mxu1  ;;  %v3241_v27 = vpop.f32.mrb[58].mxu0 }
 0x16d   : > { %v3316_v31 = vadd.f32 %v3315_v25, %v3314_v18  ;;  %v3317_v60 = vpop.f32.mrb[58].mxu1  ;;  %v3242_v61 = vpop.f32.mrb[59].mxu0 }
 0x16e   : > { %v3243_v62 = vadd.f32 %v3242_v61, %v3241_v27  ;;  %v3318_v63 = vpop.f32.mrb[59].mxu1 }
 0x16f   : > { %v4518_v32 = vadd.f32 %v3316_v31, %v3240_v23  ;;  %v3319_v34 = vadd.f32 %v3318_v63, %v3317_v60 }
 0x171   : > { %v4522_v36 = vadd.f32 %v3319_v34, %v3243_v62 }
 0x172   : > { %v3244_v1 = vpop.f32.mrb[60].mxu0 }
 0x173   : > { %v3320_v42 = vpop.f32.mrb[60].mxu1  ;;  %v3245_v50 = vpop.f32.mrb[61].mxu0 }
 0x174   : > { %v3246_v52 = vadd.f32 %v3245_v50, %v3244_v1  ;;  %v3321_v54 = vpop.f32.mrb[61].mxu1  ;;  %v3247_v56 = vpop.f32.mrb[62].mxu0 }
 0x175   : > { %v3322_v57 = vadd.f32 %v3321_v54, %v3320_v42  ;;  %v3323_v58 = vpop.f32.mrb[62].mxu1  ;;  %v3248_v2 = vpop.f32.mrb[63].mxu0 }
 0x176   : > { %v3249_v3 = vadd.f32 %v3248_v2, %v3247_v56  ;;  %v3324_v4 = vpop.f32.mrb[63].mxu1 }
 0x177   : > { %v4526_v5 = vadd.f32 %v3322_v57, %v3246_v52  ;;  %v3325_v11 = vadd.f32 %v3324_v4, %v3323_v58 }
 0x179   : > { %v4530_v18 = vadd.f32 %v3325_v11, %v3249_v3 }
 0x17a   : > { %v3250_v20 = vpop.f32.mrb[64].mxu0 }
 0x17b   : > { %v3326_v25 = vpop.f32.mrb[64].mxu1  ;;  %v3251_v27 = vpop.f32.mrb[65].mxu0 }
 0x17c   : > { %v3252_v31 = vadd.f32 %v3251_v27, %v3250_v20  ;;  %v3327_v60 = vpop.f32.mrb[65].mxu1  ;;  %v3253_v61 = vpop.f32.mrb[66].mxu0 }
 0x17d   : > { %v3328_v62 = vadd.f32 %v3327_v60, %v3326_v25  ;;  %v3329_v63 = vpop.f32.mrb[66].mxu1  ;;  %v3254_v34 = vpop.f32.mrb[67].mxu0 }
 0x17e   : > { %v3255_v1 = vadd.f32 %v3254_v34, %v3253_v61  ;;  %v3330_v42 = vpop.f32.mrb[67].mxu1 }
 0x17f   : > { %v4534_v50 = vadd.f32 %v3328_v62, %v3252_v31  ;;  %v3331_v52 = vadd.f32 %v3330_v42, %v3329_v63 }
 0x181   : > { %v4538_v56 = vadd.f32 %v3331_v52, %v3255_v1 }
 0x182   : > { %v3256_v57 = vpop.f32.mrb[68].mxu0 }
 0x183   : > { %v3332_v2 = vpop.f32.mrb[68].mxu1  ;;  %v3257_v3 = vpop.f32.mrb[69].mxu0 }
 0x184   : > { %v3258_v4 = vadd.f32 %v3257_v3, %v3256_v57  ;;  %v3333_v11 = vpop.f32.mrb[69].mxu1  ;;  %v3259_v20 = vpop.f32.mrb[70].mxu0 }
 0x185   : > { %v3334_v25 = vadd.f32 %v3333_v11, %v3332_v2  ;;  %v3335_v27 = vpop.f32.mrb[70].mxu1  ;;  %v3260_v60 = vpop.f32.mrb[71].mxu0 }
 0x186   : > { %v3261_v31 = vadd.f32 %v3260_v60, %v3259_v20  ;;  %v3336_v61 = vpop.f32.mrb[71].mxu1 }
 0x187   : > { %v4542_v62 = vadd.f32 %v3334_v25, %v3258_v4  ;;  %v3337_v63 = vadd.f32 %v3336_v61, %v3335_v27 }
 0x189   : > { %v4546_v1 = vadd.f32 %v3337_v63, %v3261_v31 }
 0x18a   : > { %v3262_v42 = vpop.f32.mrb[72].mxu0 }
 0x18b   : > { %v3338_v57 = vpop.f32.mrb[72].mxu1  ;;  %v3263_v3 = vpop.f32.mrb[73].mxu0 }
 0x18c   : > { %v3264_v58 = vadd.f32 %v3263_v3, %v3262_v42  ;;  %v3339_v2 = vpop.f32.mrb[73].mxu1  ;;  %v3265_v11 = vpop.f32.mrb[74].mxu0 }
 0x18d   : > { %v3340_v54 = vadd.f32 %v3339_v2, %v3338_v57  ;;  %v3341_v20 = vpop.f32.mrb[74].mxu1  ;;  %v3266_v60 = vpop.f32.mrb[75].mxu0 }
 0x18e   : > { %v3267_v4 = vadd.f32 %v3266_v60, %v3265_v11  ;;  %v3342_v25 = vpop.f32.mrb[75].mxu1 }
 0x18f   : > { %v4550_v27 = vadd.f32 %v3340_v54, %v3264_v58  ;;  %v3343_v61 = vadd.f32 %v3342_v25, %v3341_v20 }
 0x191   : > { %v4554_v63 = vadd.f32 %v3343_v61, %v3267_v4 }
 0x192   : > { %v3268_v34 = vpop.f32.mrb[76].mxu0 }
 0x193   : > { %v3344_v42 = vpop.f32.mrb[76].mxu1  ;;  %v3269_v3 = vpop.f32.mrb[77].mxu0 }
 0x194   : > { %v3270_v23 = vadd.f32 %v3269_v3, %v3268_v34  ;;  %v3345_v57 = vpop.f32.mrb[77].mxu1  ;;  %v3271_v2 = vpop.f32.mrb[78].mxu0 }
 0x195   : > { %v3346_v16 = vadd.f32 %v3345_v57, %v3344_v42  ;;  %v3347_v11 = vpop.f32.mrb[78].mxu1  ;;  %v3272_v60 = vpop.f32.mrb[79].mxu0 }
 0x196   : > { %v3348_v54 = vpop.f32.mrb[79].mxu1 }
 0x197   : > { %v4558_v58 = vadd.f32 %v3346_v16, %v3270_v23 }
 0x199   : > { %v1520_v20 = vmax.f32 %v4476_v29, %v4558_v58 }
 0x19a   : > { %v3366_v4 = vpop.f32.mrb[80].mxu0 }
 0x19b   : > { %v3442_v25 = vpop.f32.mrb[80].mxu1  ;;  %v3367_v61 = vpop.f32.mrb[81].mxu0 }
 0x19c   : > { %v3368_v31 = vadd.f32 %v3367_v61, %v3366_v4  ;;  %v3443_v38 = vpop.f32.mrb[81].mxu1  ;;  %v3369_v52 = vpop.f32.mrb[82].mxu0 }
 0x19d   : > { %v3444_v0 = vadd.f32 %v3443_v38, %v3442_v25  ;;  %v3445_v17 = vpop.f32.mrb[82].mxu1  ;;  %v3370_v34 = vpop.f32.mrb[83].mxu0 }
 0x19e   : > { %v3371_v3 = vadd.f32 %v3370_v34, %v3369_v52  ;;  %v3446_v2 = vpop.f32.mrb[83].mxu1 }
 0x19f   : > { %v1900_v42 = vadd.f32 %v3444_v0, %v3368_v31  ;;  %v3447_v57 = vadd.f32 %v3446_v2, %v3445_v17 }
 0x1a1   : > { %v4565_v16 = vmax.f32 %v1502_v48, %v1900_v42  ;;  %v1903_v23 = vadd.f32 %v3447_v57, %v3371_v3 }
 0x1a2   : > { %v3372_v11 = vpop.f32.mrb[84].mxu0 }
 0x1a3   : > { %v4570_v60 = vmax.f32 %v1503_v55, %v1903_v23  ;;  %v3448_v54 = vpop.f32.mrb[84].mxu1  ;;  %v3373_v38 = vpop.f32.mrb[85].mxu0 }
 0x1a4   : > { %v3374_v4 = vadd.f32 %v3373_v38, %v3372_v11  ;;  %v3449_v25 = vpop.f32.mrb[85].mxu1  ;;  %v3375_v52 = vpop.f32.mrb[86].mxu0 }
 0x1a5   : > { %v3450_v61 = vadd.f32 %v3449_v25, %v3448_v54  ;;  %v3451_v0 = vpop.f32.mrb[86].mxu1  ;;  %v3376_v17 = vpop.f32.mrb[87].mxu0 }
 0x1a6   : > { %v3377_v31 = vadd.f32 %v3376_v17, %v3375_v52  ;;  %v3452_v34 = vpop.f32.mrb[87].mxu1 }
 0x1a7   : > { %v1908_v33 = vadd.f32 %v3450_v61, %v3374_v4  ;;  %v3453_v46 = vadd.f32 %v3452_v34, %v3451_v0 }
 0x1a9   : > { %v4575_v48 = vmax.f32 %v1504_v21, %v1908_v33  ;;  %v1911_v35 = vadd.f32 %v3453_v46, %v3377_v31 }
 0x1aa   : > { %v3378_v49 = vpop.f32.mrb[88].mxu0 }
 0x1ab   : > { %v4580_v55 = vmax.f32 %v1505_v24, %v1911_v35  ;;  %v3454_v3 = vpop.f32.mrb[88].mxu1  ;;  %v3379_v2 = vpop.f32.mrb[89].mxu0 }
 0x1ac   : > { %v3380_v42 = vadd.f32 %v3379_v2, %v3378_v49  ;;  %v3455_v57 = vpop.f32.mrb[89].mxu1  ;;  %v3381_v23 = vpop.f32.mrb[90].mxu0 }
 0x1ad   : > { %v3456_v11 = vadd.f32 %v3455_v57, %v3454_v3  ;;  %v3457_v54 = vpop.f32.mrb[90].mxu1  ;;  %v3382_v38 = vpop.f32.mrb[91].mxu0 }
 0x1ae   : > { %v3383_v4 = vadd.f32 %v3382_v38, %v3381_v23  ;;  %v3458_v25 = vpop.f32.mrb[91].mxu1 }
 0x1af   : > { %v1916_v51 = vadd.f32 %v3456_v11, %v3380_v42  ;;  %v3459_v19 = vadd.f32 %v3458_v25, %v3457_v54 }
 0x1b1   : > { %v4585_v21 = vmax.f32 %v1506_v39, %v1916_v51  ;;  %v1919_v53 = vadd.f32 %v3459_v19, %v3383_v4 }
 0x1b2   : > { %v3384_v22 = vpop.f32.mrb[92].mxu0 }
 0x1b3   : > { %v4590_v24 = vmax.f32 %v1507_v47, %v1919_v53  ;;  %v3460_v52 = vpop.f32.mrb[92].mxu1  ;;  %v3385_v61 = vpop.f32.mrb[93].mxu0  ;;  %v4726_v47 = vmax.f32 %v4430_v59, %v4514_v15  ;;  %v4728_v53 = vmax.f32 %v4438_v45, %v4522_v36 }
 0x1b4   : > { %v3386_v0 = vadd.f32 %v3385_v61, %v3384_v22  ;;  %v3461_v17 = vpop.f32.mrb[93].mxu1  ;;  %v3387_v31 = vpop.f32.mrb[94].mxu0 }
 0x1b5   : > { %v3462_v34 = vadd.f32 %v3461_v17, %v3460_v52  ;;  %v3463_v33 = vpop.f32.mrb[94].mxu1  ;;  %v3388_v46 = vpop.f32.mrb[95].mxu0 }
 0x1b6   : > { %v3389_v35 = vadd.f32 %v3388_v46, %v3387_v31  ;;  %v3464_v49 = vpop.f32.mrb[95].mxu1 }
 0x1b7   : > { %v1924_v12 = vadd.f32 %v3462_v34, %v3386_v0  ;;  %v3465_v37 = vadd.f32 %v3464_v49, %v3463_v33 }
 0x1b9   : > { %v4595_v39 = vmax.f32 %v1508_v13, %v1924_v12  ;;  %v1927_v14 = vadd.f32 %v3465_v37, %v3389_v35  ;;  %v4727_v13 = vmax.f32 %v4436_v43, %v4518_v32  ;;  %v4729_v12 = vmax.f32 %v4444_v6, %v4526_v5 }
 0x1ba   : > { %v3390_v40 = vpop.f32.mrb[96].mxu0 }
 0x1bb   : > { %v4600_v3 = vmax.f32 %v4726_v47, %v1927_v14  ;;  %v3466_v2 = vpop.f32.mrb[96].mxu1  ;;  %v3391_v42 = vpop.f32.mrb[97].mxu0  ;;  %v4730_v14 = vmax.f32 %v4446_v8, %v4530_v18 }
 0x1bc   : > { %v3392_v57 = vadd.f32 %v3391_v42, %v3390_v40  ;;  %v3467_v23 = vpop.f32.mrb[97].mxu1  ;;  %v3393_v11 = vpop.f32.mrb[98].mxu0 }
 0x1bd   : > { %v3468_v54 = vadd.f32 %v3467_v23, %v3466_v2  ;;  %v3469_v38 = vpop.f32.mrb[98].mxu1  ;;  %v3394_v4 = vpop.f32.mrb[99].mxu0 }
 0x1be   : > { %v3395_v25 = vadd.f32 %v3394_v4, %v3393_v11  ;;  %v3470_v51 = vpop.f32.mrb[99].mxu1 }
 0x1bf   : > { %v1932_v30 = vadd.f32 %v3468_v54, %v3392_v57  ;;  %v3471_v9 = vadd.f32 %v3470_v51, %v3469_v38  ;;  %v4731_v51 = vmax.f32 %v4452_v26, %v4534_v50 }
 0x1c1   : > { %v4605_v19 = vmax.f32 %v4727_v13, %v1932_v30  ;;  %v1935_v59 = vadd.f32 %v3471_v9, %v3395_v25  ;;  %v4732_v9 = vmax.f32 %v4454_v28, %v4538_v56 }
 0x1c2   : > { %v3396_v15 = vpop.f32.mrb[100].mxu0 }
 0x1c3   : > { %v4610_v22 = vmax.f32 %v4728_v53, %v1935_v59  ;;  %v3472_v52 = vpop.f32.mrb[100].mxu1  ;;  %v3397_v61 = vpop.f32.mrb[101].mxu0 }
 0x1c4   : > { %v3398_v0 = vadd.f32 %v3397_v61, %v3396_v15  ;;  %v3473_v17 = vpop.f32.mrb[101].mxu1  ;;  %v3399_v31 = vpop.f32.mrb[102].mxu0 }
 0x1c5   : > { %v3474_v34 = vadd.f32 %v3473_v17, %v3472_v52  ;;  %v3475_v33 = vpop.f32.mrb[102].mxu1  ;;  %v3400_v46 = vpop.f32.mrb[103].mxu0 }
 0x1c6   : > { %v3401_v35 = vadd.f32 %v3400_v46, %v3399_v31  ;;  %v3476_v49 = vpop.f32.mrb[103].mxu1  ;;  %v4733_v46 = vmax.f32 %v4460_v41, %v4542_v62 }
 0x1c7   : > { %v1940_v43 = vadd.f32 %v3474_v34, %v3398_v0  ;;  %v3477_v32 = vadd.f32 %v3476_v49, %v3475_v33  ;;  %v4734_v49 = vmax.f32 %v4462_v44, %v4546_v1 }
 0x1c9   : > { %v4615_v37 = vmax.f32 %v4729_v12, %v1940_v43  ;;  %v1943_v45 = vadd.f32 %v3477_v32, %v3401_v35 }
 0x1ca   : > { %v3402_v36 = vpop.f32.mrb[104].mxu0 }
 0x1cb   : > { %v4620_v40 = vmax.f32 %v4730_v14, %v1943_v45  ;;  %v3478_v47 = vpop.f32.mrb[104].mxu1  ;;  %v3403_v2 = vpop.f32.mrb[105].mxu0 }
 0x1cc   : > { %v3404_v42 = vadd.f32 %v3403_v2, %v3402_v36  ;;  %v3479_v57 = vpop.f32.mrb[105].mxu1  ;;  %v3405_v23 = vpop.f32.mrb[106].mxu0 }
 0x1cd   : > { %v3480_v11 = vadd.f32 %v3479_v57, %v3478_v47  ;;  %v3481_v54 = vpop.f32.mrb[106].mxu1  ;;  %v3406_v38 = vpop.f32.mrb[107].mxu0 }
 0x1ce   : > { %v3407_v4 = vadd.f32 %v3406_v38, %v3405_v23  ;;  %v3482_v25 = vpop.f32.mrb[107].mxu1  ;;  %v4736_v38 = vmax.f32 %v4470_v10, %v4554_v63 }
 0x1cf   : > { %v1948_v6 = vadd.f32 %v3480_v11, %v3404_v42  ;;  %v3483_v5 = vadd.f32 %v3482_v25, %v3481_v54  ;;  %v4735_v11 = vmax.f32 %v4468_v7, %v4550_v27 }
 0x1d1   : > { %v4625_v30 = vmax.f32 %v4731_v51, %v1948_v6  ;;  %v1951_v8 = vadd.f32 %v3483_v5, %v3407_v4 }
 0x1d2   : > { %v3408_v18 = vpop.f32.mrb[108].mxu0 }
 0x1d3   : > { %v4630_v13 = vmax.f32 %v4732_v9, %v1951_v8  ;;  %v3484_v59 = vpop.f32.mrb[108].mxu1  ;;  %v3409_v15 = vpop.f32.mrb[109].mxu0 }
 0x1d4   : > { %v3410_v53 = vadd.f32 %v3409_v15, %v3408_v18  ;;  %v3485_v52 = vpop.f32.mrb[109].mxu1  ;;  %v3411_v61 = vpop.f32.mrb[110].mxu0 }
 0x1d5   : > { %v3486_v0 = vadd.f32 %v3485_v52, %v3484_v59  ;;  %v3487_v17 = vpop.f32.mrb[110].mxu1  ;;  %v3412_v31 = vpop.f32.mrb[111].mxu0 }
 0x1d6   : > { %v3413_v34 = vadd.f32 %v3412_v31, %v3411_v61  ;;  %v3488_v33 = vpop.f32.mrb[111].mxu1 }
 0x1d7   : > { %v1956_v26 = vadd.f32 %v3486_v0, %v3410_v53  ;;  %v3489_v50 = vadd.f32 %v3488_v33, %v3487_v17 }
 0x1d9   : > { %v4635_v35 = vmax.f32 %v4733_v46, %v1956_v26  ;;  %v1959_v28 = vadd.f32 %v3489_v50, %v3413_v34 }
 0x1da   : > { %v3414_v56 = vpop.f32.mrb[112].mxu0 }
 0x1db   : > { %v4640_v43 = vmax.f32 %v4734_v49, %v1959_v28  ;;  %v3490_v32 = vpop.f32.mrb[112].mxu1  ;;  %v3415_v12 = vpop.f32.mrb[113].mxu0  ;;  %v4660_v28 = vld [vmem:[%s4724_s5] ss:$0 sm:$0xff] }
 0x1dc   : > { %v3416_v45 = vadd.f32 %v3415_v12, %v3414_v56  ;;  %v3491_v36 = vpop.f32.mrb[113].mxu1  ;;  %v3417_v14 = vpop.f32.mrb[114].mxu0 }
 0x1dd   : > { %v3492_v47 = vadd.f32 %v3491_v36, %v3490_v32  ;;  %v3493_v2 = vpop.f32.mrb[114].mxu1  ;;  %v3418_v42 = vpop.f32.mrb[115].mxu0 }
 0x1de   : > { %v3419_v57 = vadd.f32 %v3418_v42, %v3417_v14  ;;  %v3494_v23 = vpop.f32.mrb[115].mxu1 }
 0x1df   : > { %v1964_v41 = vadd.f32 %v3492_v47, %v3416_v45  ;;  %v3495_v62 = vadd.f32 %v3494_v23, %v3493_v2 }
 0x1e1   : > { %v4645_v54 = vmax.f32 %v4735_v11, %v1964_v41  ;;  %v1967_v44 = vadd.f32 %v3495_v62, %v3419_v57 }
 0x1e2   : > { %v3420_v1 = vpop.f32.mrb[116].mxu0 }
 0x1e3   : > { %v4650_v4 = vmax.f32 %v4736_v38, %v1967_v44  ;;  %v3496_v25 = vpop.f32.mrb[116].mxu1  ;;  %v3421_v6 = vpop.f32.mrb[117].mxu0 }
 0x1e4   : > { %v3422_v5 = vadd.f32 %v3421_v6, %v3420_v1  ;;  %v3497_v51 = vpop.f32.mrb[117].mxu1  ;;  %v3423_v8 = vpop.f32.mrb[118].mxu0 }
 0x1e5   : > { %v3498_v18 = vadd.f32 %v3497_v51, %v3496_v25  ;;  %v3499_v9 = vpop.f32.mrb[118].mxu1  ;;  %v3424_v59 = vpop.f32.mrb[119].mxu0 }
 0x1e6   : > { %v3500_v15 = vpop.f32.mrb[119].mxu1 }
 0x1e7   : > { %v1972_v53 = vadd.f32 %v3498_v18, %v3422_v5 }
 0x1e9   : > { %v4655_v7 = vmax.f32 %v1520_v20, %v1972_v53 }
 0x1ea   : > { %v3518_v27 = vpop.f32.mrb[120].mxu0 }
 0x1eb   : > { %v3594_v52 = vpop.f32.mrb[120].mxu1  ;;  %v3519_v10 = vpop.f32.mrb[121].mxu0 }
 0x1ec   : > { %v3520_v63 = vadd.f32 %v3519_v10, %v3518_v27  ;;  %v3595_v61 = vpop.f32.mrb[121].mxu1  ;;  %v3521_v0 = vpop.f32.mrb[122].mxu0 }
 0x1ed   : > { %v3596_v17 = vadd.f32 %v3595_v61, %v3594_v52  ;;  %v3597_v31 = vpop.f32.mrb[122].mxu1  ;;  %v3522_v34 = vpop.f32.mrb[123].mxu0 }
 0x1ee   : > { %v3523_v33 = vadd.f32 %v3522_v34, %v3521_v0  ;;  %v3598_v26 = vpop.f32.mrb[123].mxu1 }
 0x1ef   : > { %v2375_v50 = vadd.f32 %v3596_v17, %v3520_v63  ;;  %v3599_v46 = vadd.f32 %v3598_v26, %v3597_v31 }
 0x1f1   : > { %v2452_v29 = vmax.f32 %v4565_v16, %v2375_v50  ;;  %v2378_v58 = vadd.f32 %v3599_v46, %v3523_v33 }
 0x1f2   : > { %v3524_v20 = vpop.f32.mrb[124].mxu0 }
 0x1f3   : > { %v2478_v56 = vadd.f32 %v4660_v28, %v2452_v29  ;;  %v2453_v49 = vmax.f32 %v4570_v60, %v2378_v58  ;;  %v3600_v32 = vpop.f32.mrb[124].mxu1  ;;  %v3525_v12 = vpop.f32.mrb[125].mxu0 }
 0x1f4   : > { %v3526_v45 = vadd.f32 %v3525_v12, %v3524_v20  ;;  %v3601_v36 = vpop.f32.mrb[125].mxu1  ;;  %v3527_v14 = vpop.f32.mrb[126].mxu0 }
 0x1f5   : > { %v2516_v47 = vmul.f32 0.2, %v2478_v56  ;;  %v2479_v2 = vadd.f32 %v4660_v28, %v2453_v49  ;;  %v3602_v42 = vadd.f32 %v3601_v36, %v3600_v32  ;;  %v3603_v57 = vpop.f32.mrb[126].mxu1  ;;  %v3528_v23 = vpop.f32.mrb[127].mxu0  ;;  %vm2497_vm0 = vcmp.ge.f32.partialorder %v2478_v56, 0.0 }
 0x1f6   : > { %v3529_v16 = vadd.f32 %v3528_v23, %v3527_v14  ;;  %v3604_v41 = vpop.f32.mrb[127].mxu1 }
 0x1f7   : > { %vm2498_vm1 = vcmp.ge.f32.partialorder %v2479_v2, 0.0  ;;  %v2517_v62 = vmul.f32 0.2, %v2479_v2  ;;  %v2383_v11 = vadd.f32 %v3602_v42, %v3526_v45  ;;  %v3605_v44 = vadd.f32 %v3604_v41, %v3603_v57 }
 0x1f8   : > { %v2535_v60 = vsel %vm2497_vm0, %v2478_v56, %v2516_v47 }
 0x1f9   : > { %v2536_v1 = vsel %vm2498_vm1, %v2479_v2, %v2517_v62  ;;  %v2454_v38 = vmax.f32 %v4575_v48, %v2383_v11  ;;  %v2386_v6 = vadd.f32 %v3605_v44, %v3529_v16 }
 0x1fa   : > { %v2996_v25 = vpack.c.bf16 %v2536_v1, %v2535_v60  ;;  %v3530_v5 = vpop.f32.mrb[128].mxu0 }
 0x1fb   : > { %v2480_v51 = vadd.f32 %v4660_v28, %v2454_v38  ;;  %v3606_v8 = vpop.f32.mrb[128].mxu1  ;;  %v3531_v18 = vpop.f32.mrb[129].mxu0  ;;  %v2455_v9 = vmax.f32 %v4580_v55, %v2386_v6 }
 0x1fc   : > { %2997 = vst [vmem:[%s4670_s15] sm:$0xff] %v2996_v25   ;;  %v3532_v59 = vadd.f32 %v3531_v18, %v3530_v5  ;;  %v3607_v15 = vpop.f32.mrb[129].mxu1  ;;  %v3533_v53 = vpop.f32.mrb[130].mxu0 }
 0x1fd   : > { %v3608_v27 = vadd.f32 %v3607_v15, %v3606_v8  ;;  %v3609_v52 = vpop.f32.mrb[130].mxu1  ;;  %v3534_v10 = vpop.f32.mrb[131].mxu0  ;;  %v2518_v63 = vmul.f32 0.2, %v2480_v51  ;;  %v2481_v61 = vadd.f32 %v4660_v28, %v2455_v9  ;;  %vm2499_vm2 = vcmp.ge.f32.partialorder %v2480_v51, 0.0 }
 0x1fe   : > { %v3535_v48 = vadd.f32 %v3534_v10, %v3533_v53  ;;  %v3610_v0 = vpop.f32.mrb[131].mxu1 }
 0x1ff   : > { %v2391_v17 = vadd.f32 %v3608_v27, %v3532_v59  ;;  %v3611_v31 = vadd.f32 %v3610_v0, %v3609_v52  ;;  %vm2500_vm3 = vcmp.ge.f32.partialorder %v2481_v61, 0.0  ;;  %v2519_v34 = vmul.f32 0.2, %v2481_v61 }
 0x200   : > { %v2537_v26 = vsel %vm2499_vm2, %v2480_v51, %v2518_v63 }
 0x201   : > { %v2456_v33 = vmax.f32 %v4585_v21, %v2391_v17  ;;  %v2394_v55 = vadd.f32 %v3611_v31, %v3535_v48  ;;  %v2538_v50 = vsel %vm2500_vm3, %v2481_v61, %v2519_v34 }
 0x202   : > { %v3536_v46 = vpop.f32.mrb[132].mxu0  ;;  %v3001_v29 = vpack.c.bf16 %v2538_v50, %v2537_v26 }
 0x203   : > { %v2482_v58 = vadd.f32 %v4660_v28, %v2456_v33  ;;  %v2457_v20 = vmax.f32 %v4590_v24, %v2394_v55  ;;  %v3612_v56 = vpop.f32.mrb[132].mxu1  ;;  %v3537_v49 = vpop.f32.mrb[133].mxu0 }
 0x204   : > { %v3538_v32 = vadd.f32 %v3537_v49, %v3536_v46  ;;  %v3613_v12 = vpop.f32.mrb[133].mxu1  ;;  %v3539_v45 = vpop.f32.mrb[134].mxu0  ;;  %3038 = vst [vmem:[%s4670_s15 + $0x8] sm:$0xff] %v3001_v29  }
 0x205   : > { %v2520_v36 = vmul.f32 0.2, %v2482_v58  ;;  %v2483_v14 = vadd.f32 %v4660_v28, %v2457_v20  ;;  %v3614_v47 = vadd.f32 %v3613_v12, %v3612_v56  ;;  %v3615_v21 = vpop.f32.mrb[134].mxu1  ;;  %v3540_v2 = vpop.f32.mrb[135].mxu0  ;;  %vm2501_vm4 = vcmp.ge.f32.partialorder %v2482_v58, 0.0 }
 0x206   : > { %v3541_v42 = vadd.f32 %v3540_v2, %v3539_v45  ;;  %v3616_v57 = vpop.f32.mrb[135].mxu1 }
 0x207   : > { %vm2502_vm5 = vcmp.ge.f32.partialorder %v2483_v14, 0.0  ;;  %v2521_v23 = vmul.f32 0.2, %v2483_v14  ;;  %v2399_v16 = vadd.f32 %v3614_v47, %v3538_v32  ;;  %v3617_v24 = vadd.f32 %v3616_v57, %v3615_v21 }
 0x208   : > { %v2539_v41 = vsel %vm2501_vm4, %v2482_v58, %v2520_v36 }
 0x209   : > { %v2540_v62 = vsel %vm2502_vm5, %v2483_v14, %v2521_v23  ;;  %v2458_v11 = vmax.f32 %v4595_v39, %v2399_v16  ;;  %v2402_v60 = vadd.f32 %v3617_v24, %v3541_v42 }
 0x20a   : > { %v3006_v44 = vpack.c.bf16 %v2540_v62, %v2539_v41  ;;  %v3542_v1 = vpop.f32.mrb[136].mxu0 }
 0x20b   : > { %v2484_v38 = vadd.f32 %v4660_v28, %v2458_v11  ;;  %v3618_v25 = vpop.f32.mrb[136].mxu1  ;;  %v3543_v6 = vpop.f32.mrb[137].mxu0  ;;  %v2459_v5 = vmax.f32 %v4600_v3, %v2402_v60 }
 0x20c   : > { %3039 = vst [vmem:[%s4670_s15 + $0x10] sm:$0xff] %v3006_v44   ;;  %v3544_v51 = vadd.f32 %v3543_v6, %v3542_v1  ;;  %v3619_v8 = vpop.f32.mrb[137].mxu1  ;;  %v3545_v18 = vpop.f32.mrb[138].mxu0 }
 0x20d   : > { %v3620_v9 = vadd.f32 %v3619_v8, %v3618_v25  ;;  %v3621_v59 = vpop.f32.mrb[138].mxu1  ;;  %v3546_v15 = vpop.f32.mrb[139].mxu0  ;;  %v2522_v53 = vmul.f32 0.2, %v2484_v38  ;;  %v2485_v27 = vadd.f32 %v4660_v28, %v2459_v5  ;;  %vm2503_vm6 = vcmp.ge.f32.partialorder %v2484_v38, 0.0 }
 0x20e   : > { %v3547_v39 = vadd.f32 %v3546_v15, %v3545_v18  ;;  %v3622_v52 = vpop.f32.mrb[139].mxu1 }
 0x20f   : > { %v2407_v10 = vadd.f32 %v3620_v9, %v3544_v51  ;;  %v3623_v63 = vadd.f32 %v3622_v52, %v3621_v59  ;;  %vm2504_vm7 = vcmp.ge.f32.partialorder %v2485_v27, 0.0  ;;  %v2523_v61 = vmul.f32 0.2, %v2485_v27 }
 0x210   : > { %v2541_v0 = vsel %vm2503_vm6, %v2484_v38, %v2522_v53 }
 0x211   : > { %v2460_v48 = vmax.f32 %v4605_v19, %v2407_v10  ;;  %v2410_v3 = vadd.f32 %v3623_v63, %v3547_v39  ;;  %v2542_v17 = vsel %vm2504_vm7, %v2485_v27, %v2523_v61 }
 0x212   : > { %v3548_v31 = vpop.f32.mrb[140].mxu0  ;;  %v3011_v34 = vpack.c.bf16 %v2542_v17, %v2541_v0 }
 0x213   : > { %v2486_v33 = vadd.f32 %v4660_v28, %v2460_v48  ;;  %v2461_v55 = vmax.f32 %v4610_v22, %v2410_v3  ;;  %v3624_v26 = vpop.f32.mrb[140].mxu1  ;;  %v3549_v50 = vpop.f32.mrb[141].mxu0 }
 0x214   : > { %v3550_v46 = vadd.f32 %v3549_v50, %v3548_v31  ;;  %v3625_v29 = vpop.f32.mrb[141].mxu1  ;;  %v3551_v58 = vpop.f32.mrb[142].mxu0  ;;  %3040 = vst [vmem:[%s4670_s15 + $0x18] sm:$0xff] %v3011_v34  }
 0x215   : > { %v2524_v20 = vmul.f32 0.2, %v2486_v33  ;;  %v2487_v56 = vadd.f32 %v4660_v28, %v2461_v55  ;;  %v3626_v49 = vadd.f32 %v3625_v29, %v3624_v26  ;;  %v3627_v19 = vpop.f32.mrb[142].mxu1  ;;  %v3552_v32 = vpop.f32.mrb[143].mxu0  ;;  %vm2505_vm8 = vcmp.ge.f32.partialorder %v2486_v33, 0.0 }
 0x216   : > { %v3553_v12 = vadd.f32 %v3552_v32, %v3551_v58  ;;  %v3628_v45 = vpop.f32.mrb[143].mxu1 }
 0x217   : > { %vm2506_vm9 = vcmp.ge.f32.partialorder %v2487_v56, 0.0  ;;  %v2525_v36 = vmul.f32 0.2, %v2487_v56  ;;  %v2415_v14 = vadd.f32 %v3626_v49, %v3550_v46  ;;  %v3629_v22 = vadd.f32 %v3628_v45, %v3627_v19 }
 0x218   : > { %v2543_v47 = vsel %vm2505_vm8, %v2486_v33, %v2524_v20 }
 0x219   : > { %v2544_v21 = vsel %vm2506_vm9, %v2487_v56, %v2525_v36  ;;  %v2462_v2 = vmax.f32 %v4615_v37, %v2415_v14  ;;  %v2418_v57 = vadd.f32 %v3629_v22, %v3553_v12 }
 0x21a   : > { %v3016_v42 = vpack.c.bf16 %v2544_v21, %v2543_v47  ;;  %v3554_v23 = vpop.f32.mrb[144].mxu0 }
 0x21b   : > { %v2488_v16 = vadd.f32 %v4660_v28, %v2462_v2  ;;  %v3630_v24 = vpop.f32.mrb[144].mxu1  ;;  %v3555_v41 = vpop.f32.mrb[145].mxu0  ;;  %v2463_v62 = vmax.f32 %v4620_v40, %v2418_v57 }
 0x21c   : > { %3041 = vst [vmem:[%s4670_s15 + $0x20] sm:$0xff] %v3016_v42   ;;  %v3556_v11 = vadd.f32 %v3555_v41, %v3554_v23  ;;  %v3631_v44 = vpop.f32.mrb[145].mxu1  ;;  %v3557_v60 = vpop.f32.mrb[146].mxu0 }
 0x21d   : > { %v3632_v1 = vadd.f32 %v3631_v44, %v3630_v24  ;;  %v3633_v38 = vpop.f32.mrb[146].mxu1  ;;  %v3558_v25 = vpop.f32.mrb[147].mxu0  ;;  %v2526_v6 = vmul.f32 0.2, %v2488_v16  ;;  %v2489_v5 = vadd.f32 %v4660_v28, %v2463_v62  ;;  %vm2507_vm10 = vcmp.ge.f32.partialorder %v2488_v16, 0.0 }
 0x21e   : > { %v3559_v37 = vadd.f32 %v3558_v25, %v3557_v60  ;;  %v3634_v51 = vpop.f32.mrb[147].mxu1 }
 0x21f   : > { %v2423_v8 = vadd.f32 %v3632_v1, %v3556_v11  ;;  %v3635_v18 = vadd.f32 %v3634_v51, %v3633_v38  ;;  %vm2508_vm11 = vcmp.ge.f32.partialorder %v2489_v5, 0.0  ;;  %v2527_v9 = vmul.f32 0.2, %v2489_v5 }
 0x220   : > { %v2545_v15 = vsel %vm2507_vm10, %v2488_v16, %v2526_v6 }
 0x221   : > { %v2464_v59 = vmax.f32 %v4625_v30, %v2423_v8  ;;  %v2426_v40 = vadd.f32 %v3635_v18, %v3559_v37  ;;  %v2546_v53 = vsel %vm2508_vm11, %v2489_v5, %v2527_v9 }
 0x222   : > { %v3560_v27 = vpop.f32.mrb[148].mxu0  ;;  %v3021_v39 = vpack.c.bf16 %v2546_v53, %v2545_v15 }
 0x223   : > { %v2490_v52 = vadd.f32 %v4660_v28, %v2464_v59  ;;  %v2465_v10 = vmax.f32 %v4630_v13, %v2426_v40  ;;  %v3636_v63 = vpop.f32.mrb[148].mxu1  ;;  %v3561_v61 = vpop.f32.mrb[149].mxu0 }
 0x224   : > { %v3562_v48 = vadd.f32 %v3561_v61, %v3560_v27  ;;  %v3637_v3 = vpop.f32.mrb[149].mxu1  ;;  %v3563_v0 = vpop.f32.mrb[150].mxu0  ;;  %3042 = vst [vmem:[%s4670_s15 + $0x28] sm:$0xff] %v3021_v39  }
 0x225   : > { %v2528_v17 = vmul.f32 0.2, %v2490_v52  ;;  %v2491_v31 = vadd.f32 %v4660_v28, %v2465_v10  ;;  %v3638_v34 = vadd.f32 %v3637_v3, %v3636_v63  ;;  %v3639_v30 = vpop.f32.mrb[150].mxu1  ;;  %v3564_v33 = vpop.f32.mrb[151].mxu0  ;;  %vm2509_vm12 = vcmp.ge.f32.partialorder %v2490_v52, 0.0 }
 0x226   : > { %v3565_v55 = vadd.f32 %v3564_v33, %v3563_v0  ;;  %v3640_v26 = vpop.f32.mrb[151].mxu1 }
 0x227   : > { %vm2510_vm13 = vcmp.ge.f32.partialorder %v2491_v31, 0.0  ;;  %v2529_v50 = vmul.f32 0.2, %v2491_v31  ;;  %v2431_v46 = vadd.f32 %v3638_v34, %v3562_v48  ;;  %v3641_v13 = vadd.f32 %v3640_v26, %v3639_v30 }
 0x228   : > { %v2547_v29 = vsel %vm2509_vm12, %v2490_v52, %v2528_v17 }
 0x229   : > { %v2548_v58 = vsel %vm2510_vm13, %v2491_v31, %v2529_v50  ;;  %v2466_v20 = vmax.f32 %v4635_v35, %v2431_v46  ;;  %v2434_v49 = vadd.f32 %v3641_v13, %v3565_v55 }
 0x22a   : > { %v3026_v56 = vpack.c.bf16 %v2548_v58, %v2547_v29  ;;  %v3566_v19 = vpop.f32.mrb[152].mxu0 }
 0x22b   : > { %v2492_v32 = vadd.f32 %v4660_v28, %v2466_v20  ;;  %v3642_v12 = vpop.f32.mrb[152].mxu1  ;;  %v3567_v45 = vpop.f32.mrb[153].mxu0  ;;  %v2467_v36 = vmax.f32 %v4640_v43, %v2434_v49 }
 0x22c   : > { %3043 = vst [vmem:[%s4670_s15 + $0x30] sm:$0xff] %v3026_v56   ;;  %v3568_v14 = vadd.f32 %v3567_v45, %v3566_v19  ;;  %v3643_v22 = vpop.f32.mrb[153].mxu1  ;;  %v3569_v47 = vpop.f32.mrb[154].mxu0 }
 0x22d   : > { %v3644_v21 = vadd.f32 %v3643_v22, %v3642_v12  ;;  %v3645_v2 = vpop.f32.mrb[154].mxu1  ;;  %v3570_v42 = vpop.f32.mrb[155].mxu0  ;;  %v2530_v57 = vmul.f32 0.2, %v2492_v32  ;;  %v2493_v23 = vadd.f32 %v4660_v28, %v2467_v36  ;;  %vm2511_vm14 = vcmp.ge.f32.partialorder %v2492_v32, 0.0 }
 0x22e   : > { %v3571_v35 = vadd.f32 %v3570_v42, %v3569_v47  ;;  %v3646_v16 = vpop.f32.mrb[155].mxu1 }
 0x22f   : > { %v2439_v24 = vadd.f32 %v3644_v21, %v3568_v14  ;;  %v3647_v41 = vadd.f32 %v3646_v16, %v3645_v2  ;;  %vm2512_vm15 = vcmp.ge.f32.partialorder %v2493_v23, 0.0  ;;  %v2531_v62 = vmul.f32 0.2, %v2493_v23 }
 0x230   : > { %v2549_v44 = vsel %vm2511_vm14, %v2492_v32, %v2530_v57 }
 0x231   : > { %v2468_v11 = vmax.f32 %v4645_v54, %v2439_v24  ;;  %v2442_v43 = vadd.f32 %v3647_v41, %v3571_v35  ;;  %v2550_v60 = vsel %vm2512_vm15, %v2493_v23, %v2531_v62 }
 0x232   : > { %v3572_v1 = vpop.f32.mrb[156].mxu0  ;;  %v3031_v38 = vpack.c.bf16 %v2550_v60, %v2549_v44 }
 0x233   : > { %v2494_v25 = vadd.f32 %v4660_v28, %v2468_v11  ;;  %v2469_v6 = vmax.f32 %v4650_v4, %v2442_v43  ;;  %v3648_v5 = vpop.f32.mrb[156].mxu1  ;;  %v3573_v37 = vpop.f32.mrb[157].mxu0 }
 0x234   : > { %v3574_v51 = vadd.f32 %v3573_v37, %v3572_v1  ;;  %v3649_v8 = vpop.f32.mrb[157].mxu1  ;;  %v3575_v18 = vpop.f32.mrb[158].mxu0  ;;  %3044 = vst [vmem:[%s4670_s15 + $0x38] sm:$0xff] %v3031_v38  }
 0x235   : > { %v2532_v9 = vmul.f32 0.2, %v2494_v25  ;;  %v2495_v59 = vadd.f32 %v4660_v28, %v2469_v6  ;;  %v3650_v54 = vadd.f32 %v3649_v8, %v3648_v5  ;;  %v3651_v40 = vpop.f32.mrb[158].mxu1  ;;  %v3576_v15 = vpop.f32.mrb[159].mxu0  ;;  %vm2513_vm0 = vcmp.ge.f32.partialorder %v2494_v25, 0.0 }
 0x236   : > { %v3652_v53 = vpop.f32.mrb[159].mxu1 }
 0x237   : > { %vm2514_vm1 = vcmp.ge.f32.partialorder %v2495_v59, 0.0  ;;  %v2533_v27 = vmul.f32 0.2, %v2495_v59  ;;  %v2447_v39 = vadd.f32 %v3650_v54, %v3574_v51  ;;  %v2551_v4 = vsel %vm2513_vm0, %v2494_v25, %v2532_v9 }
 0x239   : > { %v2552_v52 = vsel %vm2514_vm1, %v2495_v59, %v2533_v27  ;;  %v2470_v10 = vmax.f32 %v4655_v7, %v2447_v39 }
 0x23a   : > { %v3036_v63 = vpack.c.bf16 %v2552_v52, %v2551_v4 }
 0x23b   : > { %v2496_v61 = vadd.f32 %v4660_v28, %v2470_v10 }
 0x23c   : > { %3045 = vst [vmem:[%s4670_s15 + $0x40] sm:$0xff] %v3036_v63  }
 0x23d   : > { %vm2515_vm2 = vcmp.ge.f32.partialorder %v2496_v61, 0.0  ;;  %v2534_v48 = vmul.f32 0.2, %v2496_v61 }
 0x23f   : > { %v2553_v3 = vsel %vm2515_vm2, %v2496_v61, %v2534_v48 }
 0x240   : > { %v2992_v0 = vpack.c.bf16 %v2553_v3, %v2553_v3 }
 0x242   : > { %2649 = vst [vmem:[%s4670_s15 + $0x48] sm:$0xf] %v2992_v0 }
 0x243 PF: > { %s16_s21 = sadd.s32 1, %s3932_s21  }
 0x244   : > { %p13_p4 = scmp.ge.s32.totalorder %s16_s21, 6  }
 0x246   :  { %15 = sbr.rel (!%p13_p4) target bundleno = 1 (0x1), region = 83 }

// kernel: convnet_forward.6
= control target key start
LH: loop header
LB: loop body
LE: loop exit
PB: predicated region body
PF: predicated region fallthrough
CT: control target
= control target key end

     0   :  { %s3871_s21 = smov 0   ;;  %s3873_s22 = smov 0   ;;  %s4768_s0 = inlined_call_operand.vmem [shape: bf16[152,640], index: 0, kind: input, shape index: {}]   ;;  %s4769_s1 = inlined_call_operand.vmem [shape: bf16[152,640], index: 1, kind: input, shape index: {}]   ;;  %s4770_s2 = inlined_call_operand.vmem [shape: bf16[152,640], index: 2, kind: input, shape index: {}]   ;;  %s4771_s3 = inlined_call_operand.vmem [shape: bf16[152,640], index: 3, kind: input, shape index: {}]   ;;  %s4772_s4 = inlined_call_operand.vmem [shape: bf16[640,128], index: 4, kind: input, shape index: {}]   ;;  %s4773_s5 = inlined_call_operand.vmem [shape: f32[1,128], index: 5, kind: input, shape index: {}]   ;;  %s4774_s6 = inlined_call_operand.vmem [shape: bf16[152,128], index: 6, kind: output, shape index: {}]  }
   0x1   :  { %s3875_s23 = smov 0  }
   0x2 LB: > { %s3884_s24 = sadd.s32 4294967295, %s3800_s23   ;;  %s3886_s25 = sadd.s32 1, %s3800_s23   ;;  %s3800_s23 = sphi %s3875_s23, %s4781_s23   ;;  %s3796_s22 = sphi %s3873_s22, %s4780_s22   ;;  %s3792_s21 = sphi %s3871_s21, %s4779_s21  }
   0x3   : > { %s166_s26 = ssub.s32 %s3800_s23, %s3886_s25  ;;  %s169_s27 = sadd.s32 1, %s3796_s22 }
   0x4   : > { %p167_p0 = scmp.eq.s32.totalorder %s166_s26, 0  ;;  %p179_p1 = scmp.ne.s32.totalorder %s3796_s22, %s3792_s21 }
   0x5   : > { %p180_p2 = scmp.eq.s32.totalorder %s3884_s24, 1  ;;  %p2686_p3 = scmp.ge.s32.totalorder %s3800_s23, 1 }
   0x6   : > { %s3894_s28 = scalar_select %p167_p0, %s3796_s22, %s169_s27  }
   0x7   : > { %p3896_p4 = por %p180_p2, %p179_p1  ;;  %p290_p5 = scmp.lt.s32.totalorder %s3800_s23, 3 }
   0x9   : > { %p291_p6 = pnand %p2686_p3, %p290_p5 }
   0xa   : > { %v3903_v0 = vld [vmem:[%s4772_s4 + $0x40] sm:$0xff] (!%p291_p6)   ;;  %v3926_v4 = vld [vmem:[%s4772_s4 + $0x48] sm:$0xff] (!%p291_p6)   ;;  %v3950_v8 = vld [vmem:[%s4772_s4 + $0x50] sm:$0xff] (!%p291_p6)   ;;  %s3983_s16 = smul.u32 (!%p291_p6), 10, %s3884_s24  ;;  %v3834_v34 = vmov (!%p291_p6), 0.0   ;;  %vm3835_vm0 = vmmov (!%p291_p6), 0  }
   0xb   : > { %294 = sbr.rel (%p291_p6) target bundleno = 575 (0x23f), region = 44  ;;  %v3908_v1 = vld [vmem:[%s4772_s4 + $0xc0] sm:$0xff] (!%p291_p6)   ;;  %2894 = vmatprep.subr.bf16.mxu0 (!%p291_p6), %v3903_v0  ;;  %v3932_v5 = vld [vmem:[%s4772_s4 + $0xc8] sm:$0xff] (!%p291_p6)   ;;  %v3956_v9 = vld [vmem:[%s4772_s4 + $0xd0] sm:$0xff] (!%p291_p6)   ;;  %s355_s30 = sand.u32 (!%p291_p6), 1, %s3792_s21  }
   0xc   : > { %v3914_v2 = vld [vmem:[%s4772_s4] sm:$0xff] (!%p291_p6)   ;;  %2940 = vmatprep.subr.bf16.mxu1 (!%p291_p6), %v3908_v1  ;;  %v3938_v6 = vld [vmem:[%s4772_s4 + $0x8] sm:$0xff] (!%p291_p6)   ;;  %v3962_v10 = vld [vmem:[%s4772_s4 + $0x10] sm:$0xff] (!%p291_p6)   ;;  %p364_p7 = scmp.lt.s32.totalorder (!%p291_p6), %s3983_s16, 18  ;;  %s3458_s8 = smul.u32 (!%p291_p6), 40, %s355_s30 }
   0xd   : > { %v3920_v3 = vld [vmem:[%s4772_s4 + $0x80] sm:$0xff] (!%p291_p6)   ;;  %2895 = vmatpush3.bf16.msra.mxu0 (!%p291_p6), %v3914_v2  ;;  %v3944_v7 = vld [vmem:[%s4772_s4 + $0x88] sm:$0xff] (!%p291_p6)   ;;  %v3968_v11 = vld [vmem:[%s4772_s4 + $0x90] sm:$0xff] (!%p291_p6)  }
   0xe   : > { %2941 = vmatpush3.bf16.msra.mxu1 (!%p291_p6), %v3920_v3  ;;  %2896 = vmatprep.subr.bf16.mxu0 (!%p291_p6), %v3926_v4  ;;  %v3974_v12 = vld [vmem:[%s4772_s4 + $0x58] sm:$0xff] (!%p291_p6)   ;;  %v4001_v16 = vld [vmem:[%s4772_s4 + $0x60] sm:$0xff] (!%p291_p6)   ;;  %v4026_v20 = vld [vmem:[%s4772_s4 + $0x68] sm:$0xff] (!%p291_p6)   ;;  %s4682_s21 = scalar_lea.vmem (!%p291_p6), [#allocation2], %s3458_s8  }
   0xf   : > { %2942 = vmatprep.subr.bf16.mxu1 (!%p291_p6), %v3932_v5  ;;  %v3980_v13 = vld [vmem:[%s4772_s4 + $0xd8] sm:$0xff] (!%p291_p6)   ;;  %v4007_v17 = vld [vmem:[%s4772_s4 + $0xe0] sm:$0xff] (!%p291_p6)   ;;  %v4032_v21 = vld [vmem:[%s4772_s4 + $0xe8] sm:$0xff] (!%p291_p6)  }
  0x10   : > { %v3989_v14 = vld [vmem:[%s4772_s4 + $0x18] sm:$0xff] (!%p291_p6)   ;;  %v4014_v18 = vld [vmem:[%s4772_s4 + $0x20] sm:$0xff] (!%p291_p6)   ;;  %v4039_v22 = vld [vmem:[%s4772_s4 + $0x28] sm:$0xff] (!%p291_p6)  }
  0x11   : > { %2897 = vmatpush3.bf16.msra.mxu0 (!%p291_p6), %v3938_v6  ;;  %v3995_v15 = vld [vmem:[%s4772_s4 + $0x98] sm:$0xff] (!%p291_p6)   ;;  %v4020_v19 = vld [vmem:[%s4772_s4 + $0xa0] sm:$0xff] (!%p291_p6)   ;;  %v4045_v23 = vld [vmem:[%s4772_s4 + $0xa8] sm:$0xff] (!%p291_p6)  }
  0x12   : > { %2943 = vmatpush3.bf16.msra.mxu1 %v3944_v7  ;;  %2898 = vmatprep.subr.bf16.mxu0 %v3950_v8  ;;  %s365_s15 = scalar_select %p364_p7, %s3983_s16, 18  ;;  %v4051_v24 = vld [vmem:[%s4772_s4 + $0x70] sm:$0xff]   ;;  %v4077_v28 = vld [vmem:[%s4772_s4 + $0x78] sm:$0xff]   ;;  %v4114_v37 = vld [vmem:[%s4772_s4 + $0x100] sm:$0xff]  }
  0x13   : > { %2944 = vmatprep.subr.bf16.mxu1 %v3956_v9  ;;  %v4057_v25 = vld [vmem:[%s4772_s4 + $0xf0] sm:$0xff]   ;;  %v4083_v29 = vld [vmem:[%s4772_s4 + $0xf8] sm:$0xff]   ;;  %v4119_v38 = vld [vmem:[%s4772_s4 + $0x108] sm:$0xff]   ;;  %s2403_s9 = ssub.s32 (%p3896_p4), 19, %s3983_s16  ;;  %s2864_s10 = smul.u32 (%p3896_p4), 40, %s3884_s24 }
  0x14   : > { %s4059_s7 = smul.u32 20, %s365_s15  ;;  %v4065_v26 = vld [vmem:[%s4772_s4 + $0x30] sm:$0xff]   ;;  %v4095_v30 = vld [vmem:[%s4772_s4 + $0x38] sm:$0xff]   ;;  %v4154_v49 = vld [vmem:[%s4772_s4 + $0x120] sm:$0xff]   ;;  %p2404_p8 = scmp.lt.s32.totalorder (%p3896_p4), %s2403_s9, 10 }
  0x15   : > { %2899 = vmatpush3.bf16.msra.mxu0 %v3962_v10  ;;  %v4071_v27 = vld [vmem:[%s4772_s4 + $0xb0] sm:$0xff]   ;;  %v4101_v31 = vld [vmem:[%s4772_s4 + $0xb8] sm:$0xff]   ;;  %v4172_v52 = vld [vmem:[%s4772_s4 + $0x128] sm:$0xff]   ;;  %s4716_s14 = scalar_lea.vmem (%p3896_p4), %s4774_s6, %s2864_s10  }
  0x16   : > { %2945 = vmatpush3.bf16.msra.mxu1 %v3968_v11  ;;  %2900 = vmatprep.subr.bf16.mxu0 %v3974_v12  ;;  %s4089_s19 = scalar_lea.vmem %s4768_s0, %s4059_s7  ;;  %v4133_v43 = vld [vmem:[%s4772_s4 + $0x110] sm:$0xff]   ;;  %v4144_v46 = vld [vmem:[%s4772_s4 + $0x118] sm:$0xff]   ;;  %s4166_s23 = scalar_lea.vmem %s4769_s1, %s4059_s7 }
  0x17   : > { %2946 = vmatprep.subr.bf16.mxu1 %v3980_v13  ;;  %v3583_v32 = vld [vmem:[%s4089_s19] ss:$20 sps:$4 sm:$0xff]   ;;  %v3585_v33 = vld [vmem:[%s4089_s19 + $0x4] ss:$20 sps:$4 sm:$0xff]   ;;  %v3586_v35 = vld [vmem:[%s4089_s19 + $0x8] ss:$20 sps:$4 sm:$0xff]   ;;  %s4215_s13 = scalar_lea.vmem %s4770_s2, %s4059_s7  ;;  %s4245_s17 = scalar_lea.vmem %s4771_s3, %s4059_s7 }
  0x18   : > { %v3588_v36 = vld [vmem:[%s4089_s19 + $0xc] ss:$20 sps:$4 sm:$0xff]   ;;  %944 = vmatprep.mubr.bf16.mxu0 %v3585_v33  ;;  %v3593_v40 = vld [vmem:[%s4089_s19 + $0x34] ss:$20 sps:$4 sm:$0xff]   ;;  %v3596_v42 = vld [vmem:[%s4089_s19 + $0x30] ss:$20 sps:$4 sm:$0xff]  }
  0x19   : > { %2901 = vmatpush3.bf16.msra.mxu0 %v3989_v14  ;;  %1017 = vmatprep.mubr.bf16.mxu1 %v3588_v36  ;;  %v3591_v39 = vld [vmem:[%s4089_s19 + $0x2c] ss:$20 sps:$4 sm:$0xff]   ;;  %v3595_v41 = vld [vmem:[%s4089_s19 + $0x28] ss:$20 sps:$4 sm:$0xff]   ;;  %v3602_v47 = vld [vmem:[%s4089_s19 + $0x50] ss:$20 sps:$4 sm:$0xff]  }
  0x1a   : > { %2947 = vmatpush3.bf16.msra.mxu1 %v3995_v15  ;;  %2902 = vmatprep.subr.bf16.mxu0 %v4001_v16  ;;  %v3598_v44 = vld [vmem:[%s4089_s19 + $0x54] ss:$20 sps:$4 sm:$0xff]   ;;  %v3600_v45 = vld [vmem:[%s4089_s19 + $0x5c] ss:$20 sps:$4 sm:$0xff]   ;;  %v3603_v48 = vld [vmem:[%s4089_s19 + $0x58] ss:$20 sps:$4 sm:$0xff]  }
  0x1b   : > { %2948 = vmatprep.subr.bf16.mxu1 %v4007_v17  ;;  %v3606_v50 = vld [vmem:[%s4089_s19 + $0x7c] ss:$20 sps:$4 sm:$0xff]   ;;  %v3608_v51 = vld [vmem:[%s4089_s19 + $0x84] ss:$20 sps:$4 sm:$0xff]   ;;  %v3611_v54 = vld [vmem:[%s4089_s19 + $0x80] ss:$20 sps:$4 sm:$0xff]  }
  0x1c   : > { %v3610_v53 = vld [vmem:[%s4089_s19 + $0x78] ss:$20 sps:$4 sm:$0xff]   ;;  %v4186_v57 = vld [vmem:[%s4772_s4 + $0x130] sm:$0xff]   ;;  %v3619_v60 = vld [vmem:[%s4089_s19 + $0xa8] ss:$20 sps:$4 sm:$0xff]  }
  0x1d   : > { %2903 = vmatpush3.bf16.msra.mxu0 %v4014_v18  ;;  %v3613_v55 = vld [vmem:[%s4089_s19 + $0xa4] ss:$20 sps:$4 sm:$0xff]   ;;  %v3615_v56 = vld [vmem:[%s4089_s19 + $0xac] ss:$20 sps:$4 sm:$0xff]   ;;  %v3629_v36 = vld [vmem:[%s4166_s23 + $0x54] ss:$20 sps:$4 sm:$0xff]  }
  0x1e   : > { %2949 = vmatpush3.bf16.msra.mxu1 %v4020_v19  ;;  %2904 = vmatprep.subr.bf16.mxu0 %v4026_v20  ;;  %v4194_v58 = vld [vmem:[%s4772_s4 + $0x138] sm:$0xff]   ;;  %v3618_v59 = vld [vmem:[%s4089_s19 + $0xa0] ss:$20 sps:$4 sm:$0xff]   ;;  %v3624_v62 = vld [vmem:[%s4089_s19 + $0x10] ss:$20 sps:$4 sm:$0xff]  }
  0x1f   : > { %2950 = vmatprep.subr.bf16.mxu1 %v4032_v21  ;;  %v3623_v61 = vld [vmem:[%s4166_s23 + $0x4] ss:$20 sps:$4 sm:$0xff]   ;;  %v3621_v63 = vld [vmem:[%s4166_s23] ss:$20 sps:$4 sm:$0xff]  }
  0x20   : > { %v3627_v33 = vld [vmem:[%s4089_s19 + $0x38] ss:$20 sps:$4 sm:$0xff]  }
  0x21   : > { %2905 = vmatpush3.bf16.msra.mxu0 %v4039_v22 }
  0x22   : > { %2951 = vmatpush3.bf16.msra.mxu1 %v4045_v23  ;;  %2906 = vmatprep.subr.bf16.mxu0 %v4051_v24 }
  0x23   : > { %2952 = vmatprep.subr.bf16.mxu1 %v4057_v25 }
  0x25   : > { %2907 = vmatpush3.bf16.msra.mxu0 %v4065_v26 }
  0x26   : > { %2953 = vmatpush3.bf16.msra.mxu1 %v4071_v27  ;;  %2908 = vmatprep.subr.bf16.mxu0 %v4077_v28 }
  0x27   : > { %2954 = vmatprep.subr.bf16.mxu1 %v4083_v29 }
  0x29   : > { %2909 = vmatpush3.bf16.msra.mxu0 %v4095_v30 }
  0x2a   : > { %2955 = vmatpush3.bf16.msra.mxu1 %v4101_v31  ;;  %3314 = vmatprep.subr.bf16.mxu0 %v3834_v34 }
  0x2b   : > { %2999 = vmatprep.subr.bf16.mxu1 %v3903_v0 }
  0x2c   : > { %945 = vmatmul.mubr.bf16.vlgmr.msra.gmra.mrb[0].mxu0 %v3583_v32  ;;  %v3625_v32 = vld [vmem:[%s4166_s23 + $0x2c] ss:$20 sps:$4 sm:$0xff]  }
  0x2d   : > { %1018 = vmatmul.mubr.bf16.vlgmr.msra.gmra.mrb[0].mxu1 %v3586_v35  ;;  %3315 = vmatpush3.bf16.msra.mxu0 %v4114_v37  ;;  %v3628_v35 = vld [vmem:[%s4166_s23 + $0x28] ss:$20 sps:$4 sm:$0xff]  }
  0x2e   : > { %3316 = vmatprep.subr.bf16.mxu0 %v3834_v34  ;;  %3000 = vmatpush3.bf16.msra.mxu1 %v3914_v2 }
  0x2f   : > { %952 = vmatprep.mubr.bf16.mxu0 %v3591_v39  ;;  %3001 = vmatprep.subr.bf16.mxu1 %v3926_v4  ;;  %v3631_v39 = vld [vmem:[%s4089_s19 + $0x60] ss:$20 sps:$4 sm:$0xff]  }
  0x30   : > { %1025 = vmatprep.mubr.bf16.mxu1 %v3593_v40  ;;  %v3632_v40 = vld [vmem:[%s4166_s23 + $0x50] ss:$20 sps:$4 sm:$0xff]  }
  0x31   : > { %3317 = vmatpush3.bf16.msra.mxu0 %v4119_v38 }
  0x32   : > { %3318 = vmatprep.subr.bf16.mxu0 %v3834_v34  ;;  %3002 = vmatpush3.bf16.msra.mxu1 %v3938_v6 }
  0x33   : > { %3003 = vmatprep.subr.bf16.mxu1 %v3950_v8 }
  0x34   : > { %953 = vmatmul.mubr.bf16.gmra.mrb[4].mxu0 %v3595_v41  ;;  %v3633_v41 = vld [vmem:[%s4166_s23 + $0x7c] ss:$20 sps:$4 sm:$0xff]  }
  0x35   : > { %1026 = vmatmul.mubr.bf16.gmra.mrb[4].mxu1 %v3596_v42  ;;  %3319 = vmatpush3.bf16.msra.mxu0 %v4133_v43  ;;  %v3635_v42 = vld [vmem:[%s4089_s19 + $0x88] ss:$20 sps:$4 sm:$0xff]  }
  0x36   : > { %960 = vmatprep.mubr.bf16.mxu0 %v3598_v44  ;;  %1033 = vmatprep.mubr.bf16.mxu1 %v3600_v45  ;;  %v3636_v44 = vld [vmem:[%s4166_s23 + $0x78] ss:$20 sps:$4 sm:$0xff]  }
  0x37   : > { %3320 = vmatprep.subr.bf16.mxu0 %v3834_v34  ;;  %3004 = vmatpush3.bf16.msra.mxu1 %v3962_v10  ;;  %v3637_v45 = vld [vmem:[%s4166_s23 + $0xa4] ss:$20 sps:$4 sm:$0xff]  }
  0x38   : > { %3005 = vmatprep.subr.bf16.mxu1 %v3974_v12 }
  0x39   : > { %3321 = vmatpush3.bf16.msra.mxu0 %v4144_v46 }
  0x3a   : > { %3322 = vmatprep.subr.bf16.mxu0 %v3834_v34 }
  0x3b   : > { %3006 = vmatpush3.bf16.msra.mxu1 %v3989_v14 }
  0x3c   : > { %961 = vmatmul.mubr.bf16.gmra.mrb[8].mxu0 %v3602_v47  ;;  %3007 = vmatprep.subr.bf16.mxu1 %v4001_v16  ;;  %v3639_v47 = vld [vmem:[%s4089_s19 + $0xb0] ss:$20 sps:$4 sm:$0xff]  }
  0x3d   : > { %1034 = vmatmul.mubr.bf16.gmra.mrb[8].mxu1 %v3603_v48  ;;  %3323 = vmatpush3.bf16.msra.mxu0 %v4154_v49  ;;  %v3640_v48 = vld [vmem:[%s4166_s23 + $0xa0] ss:$20 sps:$4 sm:$0xff]  }
  0x3e   : > { %968 = vmatprep.mubr.bf16.mxu0 %v3606_v50  ;;  %1041 = vmatprep.mubr.bf16.mxu1 %v3608_v51  ;;  %v3643_v50 = vld [vmem:[%s4166_s23 + $0xc] ss:$20 sps:$4 sm:$0xff]   ;;  %v3641_v51 = vld [vmem:[%s4166_s23 + $0x8] ss:$20 sps:$4 sm:$0xff]  }
  0x3f   : > { %3324 = vmatprep.subr.bf16.mxu0 %v3834_v34  ;;  %3008 = vmatpush3.bf16.msra.mxu1 %v4014_v18 }
  0x40   : > { %3009 = vmatprep.subr.bf16.mxu1 %v4026_v20 }
  0x41   : > { %3325 = vmatpush3.bf16.msra.mxu0 %v4172_v52 }
  0x42   : > { %3326 = vmatprep.subr.bf16.mxu0 %v3834_v34 }
  0x43   : > { %3010 = vmatpush3.bf16.msra.mxu1 %v4039_v22 }
  0x44   : > { %969 = vmatmul.mubr.bf16.gmra.mrb[12].mxu0 %v3610_v53  ;;  %3011 = vmatprep.subr.bf16.mxu1 %v4051_v24  ;;  %v3644_v53 = vld [vmem:[%s4166_s23 + $0x10] ss:$20 sps:$4 sm:$0xff]  }
  0x45   : > { %1042 = vmatmul.mubr.bf16.gmra.mrb[12].mxu1 %v3611_v54  ;;  %976 = vmatprep.mubr.bf16.mxu0 %v3613_v55  ;;  %v3645_v54 = vld [vmem:[%s4166_s23 + $0x34] ss:$20 sps:$4 sm:$0xff]   ;;  %v3648_v55 = vld [vmem:[%s4166_s23 + $0x38] ss:$20 sps:$4 sm:$0xff]  }
  0x46   : > { %1049 = vmatprep.mubr.bf16.mxu1 %v3615_v56  ;;  %3327 = vmatpush3.bf16.msra.mxu0 %v4186_v57  ;;  %v3649_v56 = vld [vmem:[%s4166_s23 + $0x5c] ss:$20 sps:$4 sm:$0xff]  }
  0x47   : > { %3012 = vmatpush3.bf16.msra.mxu1 %v4065_v26  ;;  %3328 = vmatprep.subr.bf16.mxu0 %v3834_v34 }
  0x48   : > { %3013 = vmatprep.subr.bf16.mxu1 %v4077_v28 }
  0x4a   : > { %3329 = vmatpush3.bf16.msra.mxu0 %v4194_v58 }
  0x4b   : > { %3014 = vmatpush3.bf16.msra.mxu1 %v4095_v30  ;;  %3045 = vmatprep.subr.bf16.mxu0 %v3908_v1 }
  0x4c   : > { %977 = vmatmul.mubr.bf16.gmra.mrb[16].mxu0 %v3618_v59  ;;  %3350 = vmatprep.subr.bf16.mxu1 %v3834_v34  ;;  %v3661_v59 = vld [vmem:[%s4215_s13] ss:$20 sps:$4 sm:$0xff]  }
  0x4d   : > { %1050 = vmatmul.mubr.bf16.gmra.mrb[16].mxu1 %v3619_v60  ;;  %3330 = vmatprep.mubr.msk.bf16.mxu0 %vm3835_vm0, %v3834_v34  ;;  %v3664_v60 = vld [vmem:[%s4215_s13 + $0x8] ss:$20 sps:$4 sm:$0xff]  }
  0x4e   : > { %1323 = vmatprep.mubr.bf16.mxu1 %v3623_v61  ;;  %v3667_v61 = vld [vmem:[%s4215_s13 + $0x2c] ss:$20 sps:$4 sm:$0xff]  }
  0x54   : > { %3331 = vmatmul.mubr.bf16.vlgmr.msra.gmra.mrb[20].mxu0 %v3624_v62  ;;  %v3669_v62 = vld [vmem:[%s4215_s13 + $0x34] ss:$20 sps:$4 sm:$0xff]  }
  0x55   : > { %1324 = vmatmul.mubr.bf16.vlgmr.msra.gmra.mrb[20].mxu1 %v3621_v63  ;;  %3046 = vmatpush3.bf16.msra.mxu0 %v3920_v3  ;;  %v3672_v63 = vld [vmem:[%s4215_s13 + $0x30] ss:$20 sps:$4 sm:$0xff]  }
  0x56   : > { %3047 = vmatprep.subr.bf16.mxu0 %v3932_v5  ;;  %3351 = vmatpush3.bf16.msra.mxu1 %v4114_v37 }
  0x57   : > { %3334 = vmatprep.mubr.msk.bf16.mxu0 %vm3835_vm0, %v3834_v34  ;;  %1331 = vmatprep.mubr.bf16.mxu1 %v3625_v32  ;;  %v3673_v32 = vld [vmem:[%s4215_s13 + $0x54] ss:$20 sps:$4 sm:$0xff]  }
  0x58   : > { %3352 = vmatprep.subr.bf16.mxu1 %v3834_v34 }
  0x59   : > { %3048 = vmatpush3.bf16.msra.mxu0 %v3944_v7 }
  0x5a   : > { %3049 = vmatprep.subr.bf16.mxu0 %v3956_v9  ;;  %3353 = vmatpush3.bf16.msra.mxu1 %v4119_v38 }
  0x5b   : > { %3354 = vmatprep.subr.bf16.mxu1 %v3834_v34 }
  0x5c   : > { %3335 = vmatmul.mubr.bf16.gmra.mrb[24].mxu0 %v3627_v33  ;;  %v3675_v33 = vld [vmem:[%s4215_s13 + $0x5c] ss:$20 sps:$4 sm:$0xff]  }
  0x5d   : > { %1332 = vmatmul.mubr.bf16.gmra.mrb[24].mxu1 %v3628_v35  ;;  %3050 = vmatpush3.bf16.msra.mxu0 %v3968_v11  ;;  %v3696_v35 = vld [vmem:[%s4245_s17 + $0x2c] ss:$20 sps:$4 sm:$0xff]  }
  0x5e   : > { %3338 = vmatprep.mubr.msk.bf16.mxu0 %vm3835_vm0, %v3834_v34  ;;  %1339 = vmatprep.mubr.bf16.mxu1 %v3629_v36  ;;  %v3733_v36 = vld [vmem:[%s4772_s4 + $0xc8] sm:$0xff]  }
  0x5f   : > { %3051 = vmatprep.subr.bf16.mxu0 %v3980_v13  ;;  %3355 = vmatpush3.bf16.msra.mxu1 %v4133_v43 }
  0x60   : > { %3356 = vmatprep.subr.bf16.mxu1 %v3834_v34 }
  0x61   : > { %3052 = vmatpush3.bf16.msra.mxu0 %v3995_v15 }
  0x62   : > { %3053 = vmatprep.subr.bf16.mxu0 %v4007_v17 }
  0x63   : > { %3357 = vmatpush3.bf16.msra.mxu1 %v4144_v46 }
  0x64   : > { %3339 = vmatmul.mubr.bf16.gmra.mrb[28].mxu0 %v3631_v39  ;;  %3358 = vmatprep.subr.bf16.mxu1 %v3834_v34  ;;  %v3695_v39 = vld [vmem:[%s4215_s13 + $0x38] ss:$20 sps:$4 sm:$0xff]  }
  0x65   : > { %1340 = vmatmul.mubr.bf16.gmra.mrb[28].mxu1 %v3632_v40  ;;  %3054 = vmatpush3.bf16.msra.mxu0 %v4020_v19  ;;  %v3734_v40 = vld [vmem:[%s4772_s4 + $0x88] sm:$0xff]  }
  0x66   : > { %3342 = vmatprep.mubr.msk.bf16.mxu0 %vm3835_vm0, %v3834_v34  ;;  %1347 = vmatprep.mubr.bf16.mxu1 %v3633_v41  ;;  %v3698_v41 = vld [vmem:[%s4245_s17 + $0x28] ss:$20 sps:$4 sm:$0xff]  }
  0x67   : > { %3055 = vmatprep.subr.bf16.mxu0 %v4032_v21  ;;  %3359 = vmatpush3.bf16.msra.mxu1 %v4154_v49 }
  0x68   : > { %3360 = vmatprep.subr.bf16.mxu1 %v3834_v34 }
  0x69   : > { %3056 = vmatpush3.bf16.msra.mxu0 %v4045_v23 }
  0x6a   : > { %3057 = vmatprep.subr.bf16.mxu0 %v4057_v25 }
  0x6b   : > { %3361 = vmatpush3.bf16.msra.mxu1 %v4172_v52 }
  0x6c   : > { %3343 = vmatmul.mubr.bf16.gmra.mrb[32].mxu0 %v3635_v42  ;;  %3362 = vmatprep.subr.bf16.mxu1 %v3834_v34  ;;  %v3735_v42 = vld [vmem:[%s4772_s4 + $0xd0] sm:$0xff]  }
  0x6d   : > { %1348 = vmatmul.mubr.bf16.gmra.mrb[32].mxu1 %v3636_v44  ;;  %3346 = vmatprep.mubr.msk.bf16.mxu0 %vm3835_vm0, %v3834_v34  ;;  %v3736_v44 = vld [vmem:[%s4772_s4 + $0x90] sm:$0xff]  }
  0x6e   : > { %1355 = vmatprep.mubr.bf16.mxu1 %v3637_v45  ;;  %3058 = vmatpush3.bf16.msra.mxu0 %v4071_v27  ;;  %v3737_v45 = vld [vmem:[%s4772_s4 + $0xd8] sm:$0xff]  }
  0x6f   : > { %3363 = vmatpush3.bf16.msra.mxu1 %v4186_v57  ;;  %3059 = vmatprep.subr.bf16.mxu0 %v4083_v29 }
  0x70   : > { %3364 = vmatprep.subr.bf16.mxu1 %v3834_v34 }
  0x72   : > { %3060 = vmatpush3.bf16.msra.mxu0 %v4101_v31 }
  0x73   : > { %3365 = vmatpush3.bf16.msra.mxu1 %v4194_v58  ;;  %3104 = vmatprep.subr.bf16.mxu0 %v3903_v0 }
  0x74   : > { %3347 = vmatmul.mubr.bf16.gmra.mrb[36].mxu0 %v3639_v47  ;;  %3150 = vmatprep.subr.bf16.mxu1 %v3908_v1  ;;  %v3647_v1 = vld [vmem:[%s4166_s23 + $0x30] ss:$20 sps:$4 sm:$0xff]   ;;  %v3738_v47 = vld [vmem:[%s4772_s4 + $0x98] sm:$0xff]  }
  0x75   : > { %1356 = vmatmul.mubr.bf16.gmra.mrb[36].mxu1 %v3640_v48  ;;  %1396 = vmatprep.mubr.bf16.mxu0 %v3643_v50  ;;  %v3702_v48 = vld [vmem:[%s4245_s17 + $0x50] ss:$20 sps:$4 sm:$0xff]  }
  0x76   : > { %3366 = vmatprep.mubr.msk.bf16.mxu1 %vm3835_vm0, %v3834_v34  ;;  %v3739_v50 = vld [vmem:[%s4772_s4 + $0xe0] sm:$0xff]  }
  0x7c   : > { %1397 = vmatmul.mubr.bf16.vlgmr.msra.gmra.mrb[40].mxu0 %v3641_v51  ;;  %v3740_v51 = vld [vmem:[%s4772_s4 + $0xa0] sm:$0xff]  }
  0x7d   : > { %3367 = vmatmul.mubr.bf16.vlgmr.msra.gmra.mrb[40].mxu1 %v3644_v53  ;;  %3105 = vmatpush3.bf16.msra.mxu0 %v3914_v2  ;;  %v3741_v53 = vld [vmem:[%s4772_s4 + $0xe8] sm:$0xff]  }
  0x7e   : > { %3106 = vmatprep.subr.bf16.mxu0 %v3926_v4  ;;  %3151 = vmatpush3.bf16.msra.mxu1 %v3920_v3  ;;  %v3651_v3 = vld [vmem:[%s4166_s23 + $0x58] ss:$20 sps:$4 sm:$0xff]  }
  0x7f   : > { %1404 = vmatprep.mubr.bf16.mxu0 %v3645_v54  ;;  %3370 = vmatprep.mubr.msk.bf16.mxu1 %vm3835_vm0, %v3834_v34  ;;  %v3706_v54 = vld [vmem:[%s4245_s17 + $0x78] ss:$20 sps:$4 sm:$0xff]  }
  0x80   : > { %3152 = vmatprep.subr.bf16.mxu1 %v3932_v5  ;;  %v3652_v5 = vld [vmem:[%s4166_s23 + $0x60] ss:$20 sps:$4 sm:$0xff]  }
  0x81   : > { %3107 = vmatpush3.bf16.msra.mxu0 %v3938_v6 }
  0x82   : > { %3108 = vmatprep.subr.bf16.mxu0 %v3950_v8  ;;  %3153 = vmatpush3.bf16.msra.mxu1 %v3944_v7  ;;  %v3653_v7 = vld [vmem:[%s4166_s23 + $0x84] ss:$20 sps:$4 sm:$0xff]  }
  0x83   : > { %3154 = vmatprep.subr.bf16.mxu1 %v3956_v9  ;;  %v3655_v9 = vld [vmem:[%s4166_s23 + $0x80] ss:$20 sps:$4 sm:$0xff]  }
  0x84   : > { %1405 = vmatmul.mubr.bf16.gmra.mrb[44].mxu0 %v3647_v1  ;;  %v3708_v1 = vld [vmem:[%s4245_s17 + $0xa4] ss:$20 sps:$4 sm:$0xff]  }
  0x85   : > { %3371 = vmatmul.mubr.bf16.gmra.mrb[44].mxu1 %v3648_v55  ;;  %3109 = vmatpush3.bf16.msra.mxu0 %v3962_v10 }
  0x86   : > { %1412 = vmatprep.mubr.bf16.mxu0 %v3649_v56  ;;  %3374 = vmatprep.mubr.msk.bf16.mxu1 %vm3835_vm0, %v3834_v34 }
  0x87   : > { %3110 = vmatprep.subr.bf16.mxu0 %v3974_v12  ;;  %3155 = vmatpush3.bf16.msra.mxu1 %v3968_v11  ;;  %v3656_v11 = vld [vmem:[%s4166_s23 + $0x88] ss:$20 sps:$4 sm:$0xff]  }
  0x88   : > { %3156 = vmatprep.subr.bf16.mxu1 %v3980_v13  ;;  %v3657_v13 = vld [vmem:[%s4166_s23 + $0xac] ss:$20 sps:$4 sm:$0xff]  }
  0x89   : > { %3111 = vmatpush3.bf16.msra.mxu0 %v3989_v14 }
  0x8a   : > { %3112 = vmatprep.subr.bf16.mxu0 %v4001_v16 }
  0x8b   : > { %3157 = vmatpush3.bf16.msra.mxu1 %v3995_v15  ;;  %v3659_v15 = vld [vmem:[%s4166_s23 + $0xa8] ss:$20 sps:$4 sm:$0xff]  }
  0x8c   : > { %1413 = vmatmul.mubr.bf16.gmra.mrb[48].mxu0 %v3651_v3  ;;  %3158 = vmatprep.subr.bf16.mxu1 %v4007_v17  ;;  %v3660_v17 = vld [vmem:[%s4166_s23 + $0xb0] ss:$20 sps:$4 sm:$0xff]  }
  0x8d   : > { %3375 = vmatmul.mubr.bf16.gmra.mrb[48].mxu1 %v3652_v5  ;;  %3113 = vmatpush3.bf16.msra.mxu0 %v4014_v18  ;;  %v3721_v5 = vld [vmem:[%s4245_s17 + $0x58] ss:$20 sps:$4 sm:$0xff]  }
  0x8e   : > { %1420 = vmatprep.mubr.bf16.mxu0 %v3653_v7  ;;  %3378 = vmatprep.mubr.msk.bf16.mxu1 %vm3835_vm0, %v3834_v34 }
  0x8f   : > { %3114 = vmatprep.subr.bf16.mxu0 %v4026_v20  ;;  %3159 = vmatpush3.bf16.msra.mxu1 %v4020_v19  ;;  %v3663_v19 = vld [vmem:[%s4215_s13 + $0x4] ss:$20 sps:$4 sm:$0xff]  }
  0x90   : > { %3160 = vmatprep.subr.bf16.mxu1 %v4032_v21  ;;  %v3666_v21 = vld [vmem:[%s4215_s13 + $0xc] ss:$20 sps:$4 sm:$0xff]  }
  0x91   : > { %3115 = vmatpush3.bf16.msra.mxu0 %v4039_v22 }
  0x92   : > { %3116 = vmatprep.subr.bf16.mxu0 %v4051_v24 }
  0x93   : > { %3161 = vmatpush3.bf16.msra.mxu1 %v4045_v23 }
  0x94   : > { %1421 = vmatmul.mubr.bf16.gmra.mrb[52].mxu0 %v3655_v9  ;;  %3162 = vmatprep.subr.bf16.mxu1 %v4057_v25 }
  0x95   : > { %3379 = vmatmul.mubr.bf16.gmra.mrb[52].mxu1 %v3656_v11  ;;  %1428 = vmatprep.mubr.bf16.mxu0 %v3657_v13  ;;  %v3722_v13 = vld [vmem:[%s4245_s17 + $0x60] ss:$20 sps:$4 sm:$0xff]  }
  0x96   : > { %3382 = vmatprep.mubr.msk.bf16.mxu1 %vm3835_vm0, %v3834_v34  ;;  %3117 = vmatpush3.bf16.msra.mxu0 %v4065_v26 }
  0x97   : > { %3163 = vmatpush3.bf16.msra.mxu1 %v4071_v27  ;;  %3118 = vmatprep.subr.bf16.mxu0 %v4077_v28 }
  0x98   : > { %3164 = vmatprep.subr.bf16.mxu1 %v4083_v29 }
  0x9a   : > { %3119 = vmatpush3.bf16.msra.mxu0 %v4095_v30 }
  0x9b   : > { %3165 = vmatpush3.bf16.msra.mxu1 %v4101_v31  ;;  %3386 = vmatprep.subr.bf16.mxu0 %v3834_v34 }
  0x9c   : > { %1429 = vmatmul.mubr.bf16.gmra.mrb[56].mxu0 %v3659_v15  ;;  %3209 = vmatprep.subr.bf16.mxu1 %v3903_v0  ;;  %v3671_v0 = vld [vmem:[%s4215_s13 + $0x28] ss:$20 sps:$4 sm:$0xff]   ;;  %v3723_v15 = vld [vmem:[%s4245_s17 + $0x84] ss:$20 sps:$4 sm:$0xff]  }
  0x9d   : > { %3383 = vmatmul.mubr.bf16.gmra.mrb[56].mxu1 %v3660_v17  ;;  %1712 = vmatprep.mubr.bf16.mxu0 %v3663_v19 }
  0x9e   : > { %1785 = vmatprep.mubr.bf16.mxu1 %v3666_v21 }
  0xa4   : > { %1713 = vmatmul.mubr.bf16.vlgmr.msra.gmra.mrb[60].mxu0 %v3661_v59 }
  0xa5   : > { %1786 = vmatmul.mubr.bf16.vlgmr.msra.gmra.mrb[60].mxu1 %v3664_v60  ;;  %3387 = vmatpush3.bf16.msra.mxu0 %v4114_v37 }
  0xa6   : > { %3388 = vmatprep.subr.bf16.mxu0 %v3834_v34  ;;  %3210 = vmatpush3.bf16.msra.mxu1 %v3914_v2  ;;  %v3677_v2 = vld [vmem:[%s4215_s13 + $0x50] ss:$20 sps:$4 sm:$0xff]  }
  0xa7   : > { %1720 = vmatprep.mubr.bf16.mxu0 %v3667_v61  ;;  %1793 = vmatprep.mubr.bf16.mxu1 %v3669_v62 }
  0xa8   : > { %3211 = vmatprep.subr.bf16.mxu1 %v3926_v4  ;;  %v3678_v4 = vld [vmem:[%s4215_s13 + $0x58] ss:$20 sps:$4 sm:$0xff]  }
  0xa9   : > { %3389 = vmatpush3.bf16.msra.mxu0 %v4119_v38 }
  0xaa   : > { %3390 = vmatprep.subr.bf16.mxu0 %v3834_v34  ;;  %3212 = vmatpush3.bf16.msra.mxu1 %v3938_v6  ;;  %v3679_v6 = vld [vmem:[%s4215_s13 + $0x7c] ss:$20 sps:$4 sm:$0xff]  }
  0xab   : > { %3213 = vmatprep.subr.bf16.mxu1 %v3950_v8  ;;  %v3681_v8 = vld [vmem:[%s4215_s13 + $0x84] ss:$20 sps:$4 sm:$0xff]  }
  0xac   : > { %1721 = vmatmul.mubr.bf16.gmra.mrb[64].mxu0 %v3671_v0 }
  0xad   : > { %1794 = vmatmul.mubr.bf16.gmra.mrb[64].mxu1 %v3672_v63  ;;  %3391 = vmatpush3.bf16.msra.mxu0 %v4133_v43 }
  0xae   : > { %1728 = vmatprep.mubr.bf16.mxu0 %v3673_v32  ;;  %1801 = vmatprep.mubr.bf16.mxu1 %v3675_v33 }
  0xaf   : > { %3392 = vmatprep.subr.bf16.mxu0 %v3834_v34  ;;  %3214 = vmatpush3.bf16.msra.mxu1 %v3962_v10  ;;  %v3683_v10 = vld [vmem:[%s4215_s13 + $0x78] ss:$20 sps:$4 sm:$0xff]  }
  0xb0   : > { %3215 = vmatprep.subr.bf16.mxu1 %v3974_v12  ;;  %v3684_v12 = vld [vmem:[%s4215_s13 + $0x80] ss:$20 sps:$4 sm:$0xff]  }
  0xb1   : > { %3393 = vmatpush3.bf16.msra.mxu0 %v4144_v46 }
  0xb2   : > { %3394 = vmatprep.subr.bf16.mxu0 %v3834_v34 }
  0xb3   : > { %3216 = vmatpush3.bf16.msra.mxu1 %v3989_v14  ;;  %v3685_v14 = vld [vmem:[%s4215_s13 + $0xa4] ss:$20 sps:$4 sm:$0xff]  }
  0xb4   : > { %1729 = vmatmul.mubr.bf16.gmra.mrb[68].mxu0 %v3677_v2  ;;  %3217 = vmatprep.subr.bf16.mxu1 %v4001_v16  ;;  %v3687_v16 = vld [vmem:[%s4215_s13 + $0xac] ss:$20 sps:$4 sm:$0xff]  }
  0xb5   : > { %1802 = vmatmul.mubr.bf16.gmra.mrb[68].mxu1 %v3678_v4  ;;  %3395 = vmatpush3.bf16.msra.mxu0 %v4154_v49  ;;  %v3725_v2 = vld [vmem:[%s4245_s17 + $0x80] ss:$20 sps:$4 sm:$0xff]  }
  0xb6   : > { %1736 = vmatprep.mubr.bf16.mxu0 %v3679_v6  ;;  %1809 = vmatprep.mubr.bf16.mxu1 %v3681_v8 }
  0xb7   : > { %3396 = vmatprep.subr.bf16.mxu0 %v3834_v34  ;;  %3218 = vmatpush3.bf16.msra.mxu1 %v4014_v18  ;;  %v3689_v18 = vld [vmem:[%s4215_s13 + $0xa0] ss:$20 sps:$4 sm:$0xff]  }
  0xb8   : > { %3219 = vmatprep.subr.bf16.mxu1 %v4026_v20  ;;  %v3690_v20 = vld [vmem:[%s4215_s13 + $0xa8] ss:$20 sps:$4 sm:$0xff]  }
  0xb9   : > { %3397 = vmatpush3.bf16.msra.mxu0 %v4172_v52 }
  0xba   : > { %3398 = vmatprep.subr.bf16.mxu0 %v3834_v34 }
  0xbb   : > { %3220 = vmatpush3.bf16.msra.mxu1 %v4039_v22  ;;  %v3694_v22 = vld [vmem:[%s4245_s17 + $0x4] ss:$20 sps:$4 sm:$0xff]  }
  0xbc   : > { %1737 = vmatmul.mubr.bf16.gmra.mrb[72].mxu0 %v3683_v10  ;;  %3221 = vmatprep.subr.bf16.mxu1 %v4051_v24  ;;  %v3731_v24 = vld [vmem:[%s4772_s4 + $0xc0] sm:$0xff]   ;;  %v3726_v10 = vld [vmem:[%s4245_s17 + $0x88] ss:$20 sps:$4 sm:$0xff]  }
  0xbd   : > { %1810 = vmatmul.mubr.bf16.gmra.mrb[72].mxu1 %v3684_v12  ;;  %1744 = vmatprep.mubr.bf16.mxu0 %v3685_v14  ;;  %v3727_v12 = vld [vmem:[%s4245_s17 + $0xac] ss:$20 sps:$4 sm:$0xff]  }
  0xbe   : > { %1817 = vmatprep.mubr.bf16.mxu1 %v3687_v16  ;;  %3399 = vmatpush3.bf16.msra.mxu0 %v4186_v57 }
  0xbf   : > { %3400 = vmatprep.subr.bf16.mxu0 %v3834_v34  ;;  %3222 = vmatpush3.bf16.msra.mxu1 %v4065_v26  ;;  %v3691_v26 = vld [vmem:[%s4215_s13 + $0x10] ss:$20 sps:$4 sm:$0xff]  }
  0xc0   : > { %3223 = vmatprep.subr.bf16.mxu1 %v4077_v28  ;;  %v3692_v28 = vld [vmem:[%s4245_s17] ss:$20 sps:$4 sm:$0xff]  }
  0xc2   : > { %3401 = vmatpush3.bf16.msra.mxu0 %v4194_v58 }
  0xc3   : > { %3224 = vmatpush3.bf16.msra.mxu1 %v4095_v30  ;;  %3255 = vmatprep.subr.bf16.mxu0 %v3731_v24  ;;  %v3732_v30 = vld [vmem:[%s4772_s4 + $0x80] sm:$0xff]  }
  0xc4   : > { %1745 = vmatmul.mubr.bf16.gmra.mrb[76].mxu0 %v3689_v18  ;;  %3422 = vmatprep.subr.bf16.mxu1 %v3834_v34 }
  0xc5   : > { %1818 = vmatmul.mubr.bf16.gmra.mrb[76].mxu1 %v3690_v20  ;;  %3402 = vmatprep.mubr.msk.bf16.mxu0 %vm3835_vm0, %v3834_v34 }
  0xc6   : > { %2101 = vmatprep.mubr.bf16.mxu1 %v3694_v22 }
  0xcc   : > { %3403 = vmatmul.mubr.bf16.vlgmr.msra.gmra.mrb[80].mxu0 %v3691_v26 }
  0xcd   : > { %3256 = vmatpush3.bf16.msra.mxu0 %v3732_v30  ;;  %2102 = vmatmul.mubr.bf16.vlgmr.msra.gmra.mrb[80].mxu1 %v3692_v28 }
  0xce   : > { %3257 = vmatprep.subr.bf16.mxu0 %v3733_v36  ;;  %3423 = vmatpush3.bf16.msra.mxu1 %v4114_v37  ;;  %v3700_v37 = vld [vmem:[%s4245_s17 + $0x54] ss:$20 sps:$4 sm:$0xff]  }
  0xcf   : > { %3406 = vmatprep.mubr.msk.bf16.mxu0 %vm3835_vm0, %v3834_v34  ;;  %2109 = vmatprep.mubr.bf16.mxu1 %v3696_v35 }
  0xd0   : > { %3424 = vmatprep.subr.bf16.mxu1 %v3834_v34 }
  0xd1   : > { %3258 = vmatpush3.bf16.msra.mxu0 %v3734_v40 }
  0xd2   : > { %3259 = vmatprep.subr.bf16.mxu0 %v3735_v42  ;;  %3425 = vmatpush3.bf16.msra.mxu1 %v4119_v38  ;;  %v3699_v38 = vld [vmem:[%s4215_s13 + $0x60] ss:$20 sps:$4 sm:$0xff]  }
  0xd3   : > { %3426 = vmatprep.subr.bf16.mxu1 %v3834_v34 }
  0xd4   : > { %3407 = vmatmul.mubr.bf16.gmra.mrb[84].mxu0 %v3695_v39  ;;  %v3729_v39 = vld [vmem:[%s4245_s17 + $0xa8] ss:$20 sps:$4 sm:$0xff]  }
  0xd5   : > { %2110 = vmatmul.mubr.bf16.gmra.mrb[84].mxu1 %v3698_v41  ;;  %3260 = vmatpush3.bf16.msra.mxu0 %v3736_v44 }
  0xd6   : > { %3410 = vmatprep.mubr.msk.bf16.mxu0 %vm3835_vm0, %v3834_v34  ;;  %3261 = vmatprep.subr.bf16.mxu0 %v3737_v45 }
  0xd7   : > { %3427 = vmatpush3.bf16.msra.mxu1 %v4133_v43  ;;  %2117 = vmatprep.mubr.bf16.mxu1 %v3700_v37  ;;  %v3704_v43 = vld [vmem:[%s4245_s17 + $0x7c] ss:$20 sps:$4 sm:$0xff]  }
  0xd8   : > { %3428 = vmatprep.subr.bf16.mxu1 %v3834_v34  ;;  %v3730_v37 = vld [vmem:[%s4245_s17 + $0xb0] ss:$20 sps:$4 sm:$0xff]  }
  0xd9   : > { %3262 = vmatpush3.bf16.msra.mxu0 %v3738_v47 }
  0xda   : > { %3263 = vmatprep.subr.bf16.mxu0 %v3739_v50 }
  0xdb   : > { %3429 = vmatpush3.bf16.msra.mxu1 %v4144_v46  ;;  %v3703_v46 = vld [vmem:[%s4215_s13 + $0x88] ss:$20 sps:$4 sm:$0xff]  }
  0xdc   : > { %3411 = vmatmul.mubr.bf16.gmra.mrb[88].mxu0 %v3699_v38  ;;  %3430 = vmatprep.subr.bf16.mxu1 %v3834_v34 }
  0xdd   : > { %2118 = vmatmul.mubr.bf16.gmra.mrb[88].mxu1 %v3702_v48  ;;  %3264 = vmatpush3.bf16.msra.mxu0 %v3740_v51 }
  0xde   : > { %3414 = vmatprep.mubr.msk.bf16.mxu0 %vm3835_vm0, %v3834_v34  ;;  %3265 = vmatprep.subr.bf16.mxu0 %v3741_v53 }
  0xdf   : > { %2125 = vmatprep.mubr.bf16.mxu1 %v3704_v43  ;;  %3431 = vmatpush3.bf16.msra.mxu1 %v4154_v49  ;;  %v3713_v49 = vld [vmem:[%s4245_s17 + $0xc] ss:$20 sps:$4 sm:$0xff]  }
  0xe0   : > { %3432 = vmatprep.subr.bf16.mxu1 %v3834_v34 }
  0xe1   : > { %3266 = vmatpush3.bf16.msra.mxu0 %v4045_v23  ;;  %v3707_v23 = vld [vmem:[%s4215_s13 + $0xb0] ss:$20 sps:$4 sm:$0xff]  }
  0xe2   : > { %3267 = vmatprep.subr.bf16.mxu0 %v4057_v25  ;;  %v3710_v25 = vld [vmem:[%s4245_s17 + $0xa0] ss:$20 sps:$4 sm:$0xff]  }
  0xe3   : > { %3433 = vmatpush3.bf16.msra.mxu1 %v4172_v52  ;;  %v3715_v52 = vld [vmem:[%s4245_s17 + $0x34] ss:$20 sps:$4 sm:$0xff]  }
  0xe4   : > { %3415 = vmatmul.mubr.bf16.gmra.mrb[92].mxu0 %v3703_v46  ;;  %3434 = vmatprep.subr.bf16.mxu1 %v3834_v34 }
  0xe5   : > { %2126 = vmatmul.mubr.bf16.gmra.mrb[92].mxu1 %v3706_v54  ;;  %3418 = vmatprep.mubr.msk.bf16.mxu0 %vm3835_vm0, %v3834_v34 }
  0xe6   : > { %3268 = vmatpush3.bf16.msra.mxu0 %v4071_v27  ;;  %2133 = vmatprep.mubr.bf16.mxu1 %v3708_v1  ;;  %v3711_v27 = vld [vmem:[%s4245_s17 + $0x8] ss:$20 sps:$4 sm:$0xff]  }
  0xe7   : > { %3269 = vmatprep.subr.bf16.mxu0 %v4083_v29  ;;  %3435 = vmatpush3.bf16.msra.mxu1 %v4186_v57  ;;  %v3714_v29 = vld [vmem:[%s4245_s17 + $0x10] ss:$20 sps:$4 sm:$0xff]   ;;  %v3718_v57 = vld [vmem:[%s4245_s17 + $0x38] ss:$20 sps:$4 sm:$0xff]  }
  0xe8   : > { %3436 = vmatprep.subr.bf16.mxu1 %v3834_v34 }
  0xea   : > { %3270 = vmatpush3.bf16.msra.mxu0 %v4101_v31  ;;  %v3717_v31 = vld [vmem:[%s4245_s17 + $0x30] ss:$20 sps:$4 sm:$0xff]  }
  0xeb   : > { %3437 = vmatpush3.bf16.msra.mxu1 %v4194_v58  ;;  %v3719_v58 = vld [vmem:[%s4245_s17 + $0x5c] ss:$20 sps:$4 sm:$0xff]  }
  0xec   : > { %3419 = vmatmul.mubr.bf16.gmra.mrb[96].mxu0 %v3707_v23 }
  0xed   : > { %2134 = vmatmul.mubr.bf16.gmra.mrb[96].mxu1 %v3710_v25  ;;  %2174 = vmatprep.mubr.bf16.mxu0 %v3713_v49 }
  0xee   : > { %3438 = vmatprep.mubr.msk.bf16.mxu1 %vm3835_vm0, %v3834_v34 }
  0xf4   : > { %2175 = vmatmul.mubr.bf16.vlgmr.msra.gmra.mrb[100].mxu0 %v3711_v27 }
  0xf5   : > { %3439 = vmatmul.mubr.bf16.vlgmr.msra.gmra.mrb[100].mxu1 %v3714_v29  ;;  %2182 = vmatprep.mubr.bf16.mxu0 %v3715_v52 }
  0xf6   : > { %3442 = vmatprep.mubr.msk.bf16.mxu1 %vm3835_vm0, %v3834_v34 }
  0xfc   : > { %2183 = vmatmul.mubr.bf16.gmra.mrb[104].mxu0 %v3717_v31 }
  0xfd   : > { %3443 = vmatmul.mubr.bf16.gmra.mrb[104].mxu1 %v3718_v57  ;;  %2190 = vmatprep.mubr.bf16.mxu0 %v3719_v58 }
  0xfe   : > { %3446 = vmatprep.mubr.msk.bf16.mxu1 %vm3835_vm0, %v3834_v34 }
  0xff   : > { %v2910_v55 = vpop.f32.mrb[0].mxu0 }
 0x100   : > { %v2956_v56 = vpop.f32.mrb[0].mxu1  ;;  %v2911_v3 = vpop.f32.mrb[1].mxu0 }
 0x101   : > { %v2912_v7 = vadd.f32 %v2911_v3, %v2910_v55  ;;  %v2957_v9 = vpop.f32.mrb[1].mxu1  ;;  %v2913_v11 = vpop.f32.mrb[2].mxu0 }
 0x102   : > { %v2958_v17 = vadd.f32 %v2957_v9, %v2956_v56  ;;  %v2959_v19 = vpop.f32.mrb[2].mxu1  ;;  %v2914_v21 = vpop.f32.mrb[3].mxu0 }
 0x103   : > { %v2915_v59 = vadd.f32 %v2914_v21, %v2913_v11  ;;  %v2960_v60 = vpop.f32.mrb[3].mxu1 }
 0x104   : > { %v2961_v61 = vadd.f32 %v2960_v60, %v2959_v19  ;;  %2191 = vmatmul.mubr.bf16.gmra.mrb[108].mxu0 %v3721_v5  ;;  %v4476_v62 = vadd.f32 %v2958_v17, %v2912_v7 }
 0x105   : > { %3447 = vmatmul.mubr.bf16.gmra.mrb[108].mxu1 %v3722_v13  ;;  %2198 = vmatprep.mubr.bf16.mxu0 %v3723_v15 }
 0x106   : > { %3450 = vmatprep.mubr.msk.bf16.mxu1 %vm3835_vm0, %v3834_v34  ;;  %v4480_v0 = vadd.f32 %v2961_v61, %v2915_v59 }
 0x107   : > { %v2916_v63 = vpop.f32.mrb[4].mxu0 }
 0x108   : > { %v2962_v32 = vpop.f32.mrb[4].mxu1  ;;  %v2917_v33 = vpop.f32.mrb[5].mxu0 }
 0x109   : > { %v2918_v4 = vadd.f32 %v2917_v33, %v2916_v63  ;;  %v2963_v6 = vpop.f32.mrb[5].mxu1  ;;  %v2919_v8 = vpop.f32.mrb[6].mxu0 }
 0x10a   : > { %v2964_v14 = vadd.f32 %v2963_v6, %v2962_v32  ;;  %v2965_v16 = vpop.f32.mrb[6].mxu1  ;;  %v2920_v18 = vpop.f32.mrb[7].mxu0 }
 0x10b   : > { %v2921_v20 = vadd.f32 %v2920_v18, %v2919_v8  ;;  %v2966_v22 = vpop.f32.mrb[7].mxu1 }
 0x10c   : > { %v2967_v24 = vadd.f32 %v2966_v22, %v2965_v16  ;;  %2199 = vmatmul.mubr.bf16.gmra.mrb[112].mxu0 %v3725_v2  ;;  %v4485_v26 = vadd.f32 %v2964_v14, %v2918_v4 }
 0x10d   : > { %3451 = vmatmul.mubr.bf16.gmra.mrb[112].mxu1 %v3726_v10  ;;  %2206 = vmatprep.mubr.bf16.mxu0 %v3727_v12 }
 0x10e   : > { %3454 = vmatprep.mubr.msk.bf16.mxu1 %vm3835_vm0, %v3834_v34  ;;  %v4489_v28 = vadd.f32 %v2967_v24, %v2921_v20 }
 0x10f   : > { %v2922_v35 = vpop.f32.mrb[8].mxu0 }
 0x110   : > { %v2968_v30 = vpop.f32.mrb[8].mxu1  ;;  %v2923_v36 = vpop.f32.mrb[9].mxu0 }
 0x111   : > { %v2924_v40 = vadd.f32 %v2923_v36, %v2922_v35  ;;  %v2969_v41 = vpop.f32.mrb[9].mxu1  ;;  %v2925_v42 = vpop.f32.mrb[10].mxu0 }
 0x112   : > { %v2970_v44 = vadd.f32 %v2969_v41, %v2968_v30  ;;  %v2971_v45 = vpop.f32.mrb[10].mxu1  ;;  %v2926_v38 = vpop.f32.mrb[11].mxu0 }
 0x113   : > { %v2927_v47 = vadd.f32 %v2926_v38, %v2925_v42  ;;  %v2972_v48 = vpop.f32.mrb[11].mxu1 }
 0x114   : > { %v2973_v50 = vadd.f32 %v2972_v48, %v2971_v45  ;;  %2207 = vmatmul.mubr.bf16.gmra.mrb[116].mxu0 %v3729_v39  ;;  %v1036_v43 = vadd.f32 %v2970_v44, %v2924_v40 }
 0x115   : > { %3455 = vmatmul.mubr.bf16.gmra.mrb[116].mxu1 %v3730_v37 }
 0x116   : > { %v1039_v34 = vadd.f32 %v2973_v50, %v2927_v47 }
 0x117   : > { %v2928_v51 = vpop.f32.mrb[12].mxu0 }
 0x118   : > { %v2974_v53 = vpop.f32.mrb[12].mxu1  ;;  %v2929_v46 = vpop.f32.mrb[13].mxu0 }
 0x119   : > { %v2930_v54 = vadd.f32 %v2929_v46, %v2928_v51  ;;  %v2975_v1 = vpop.f32.mrb[13].mxu1  ;;  %v2931_v23 = vpop.f32.mrb[14].mxu0 }
 0x11a   : > { %v2976_v25 = vadd.f32 %v2975_v1, %v2974_v53  ;;  %v2977_v49 = vpop.f32.mrb[14].mxu1  ;;  %v2932_v27 = vpop.f32.mrb[15].mxu0 }
 0x11b   : > { %v2933_v29 = vadd.f32 %v2932_v27, %v2931_v23  ;;  %v2978_v52 = vpop.f32.mrb[15].mxu1 }
 0x11c   : > { %v2979_v31 = vadd.f32 %v2978_v52, %v2977_v49  ;;  %v1044_v57 = vadd.f32 %v2976_v25, %v2930_v54 }
 0x11e   : > { %v1047_v58 = vadd.f32 %v2979_v31, %v2933_v29 }
 0x11f   : > { %v2934_v55 = vpop.f32.mrb[16].mxu0 }
 0x120   : > { %v2980_v56 = vpop.f32.mrb[16].mxu1  ;;  %v2935_v3 = vpop.f32.mrb[17].mxu0 }
 0x121   : > { %v2936_v5 = vadd.f32 %v2935_v3, %v2934_v55  ;;  %v2981_v7 = vpop.f32.mrb[17].mxu1  ;;  %v2937_v9 = vpop.f32.mrb[18].mxu0 }
 0x122   : > { %v2982_v11 = vadd.f32 %v2981_v7, %v2980_v56  ;;  %v2983_v13 = vpop.f32.mrb[18].mxu1  ;;  %v2938_v15 = vpop.f32.mrb[19].mxu0 }
 0x123   : > { %v2939_v17 = vadd.f32 %v2938_v15, %v2937_v9  ;;  %v2984_v19 = vpop.f32.mrb[19].mxu1 }
 0x124   : > { %v2985_v21 = vadd.f32 %v2984_v19, %v2983_v13  ;;  %v1052_v59 = vadd.f32 %v2982_v11, %v2936_v5 }
 0x126   : > { %v1055_v60 = vadd.f32 %v2985_v21, %v2939_v17 }
 0x127   : > { %v1092_v61 = vpop.f32.mrb[20].mxu0 }
 0x128   : > { %v4494_v63 = vadd.f32 %v1092_v61, %v4476_v62  ;;  %v3332_v32 = vpop.f32.mrb[21].mxu0  ;;  %v3015_v33 = vpop.f32.mrb[20].mxu1 }
 0x129   : > { %v1095_v2 = vpop.f32.mrb[22].mxu0  ;;  %v3016_v4 = vpop.f32.mrb[21].mxu1 }
 0x12a   : > { %v4497_v6 = vadd.f32 %v1095_v2, %v4480_v0  ;;  %v3333_v8 = vpop.f32.mrb[23].mxu0  ;;  %v3017_v10 = vadd.f32 %v3016_v4, %v3015_v33  ;;  %v3018_v12 = vpop.f32.mrb[22].mxu1 }
 0x12b   : > { %v3019_v14 = vpop.f32.mrb[23].mxu1 }
 0x12c   : > { %v3020_v16 = vadd.f32 %v3019_v14, %v3018_v12 }
 0x12f   : > { %v1100_v18 = vpop.f32.mrb[24].mxu0 }
 0x130   : > { %v4500_v20 = vadd.f32 %v1100_v18, %v4485_v26  ;;  %v3336_v22 = vpop.f32.mrb[25].mxu0  ;;  %v3021_v24 = vpop.f32.mrb[24].mxu1 }
 0x131   : > { %v1103_v62 = vpop.f32.mrb[26].mxu0  ;;  %v3022_v35 = vpop.f32.mrb[25].mxu1 }
 0x132   : > { %v4503_v30 = vadd.f32 %v1103_v62, %v4489_v28  ;;  %v3337_v36 = vpop.f32.mrb[27].mxu0  ;;  %v4505_v39 = vadd.f32 %v3022_v35, %v3021_v24  ;;  %v3024_v0 = vpop.f32.mrb[26].mxu1 }
 0x133   : > { %v3025_v40 = vpop.f32.mrb[27].mxu1 }
 0x134   : > { %v4507_v41 = vadd.f32 %v3025_v40, %v3024_v0 }
 0x137   : > { %v1108_v42 = vpop.f32.mrb[28].mxu0 }
 0x138   : > { %v4509_v37 = vadd.f32 %v1108_v42, %v1036_v43  ;;  %v3340_v44 = vpop.f32.mrb[29].mxu0  ;;  %v3027_v26 = vpop.f32.mrb[28].mxu1 }
 0x139   : > { %v1111_v45 = vpop.f32.mrb[30].mxu0  ;;  %v3028_v38 = vpop.f32.mrb[29].mxu1 }
 0x13a   : > { %v4511_v47 = vadd.f32 %v1111_v45, %v1039_v34  ;;  %v3341_v48 = vpop.f32.mrb[31].mxu0  ;;  %v4513_v50 = vadd.f32 %v3028_v38, %v3027_v26  ;;  %v3030_v28 = vpop.f32.mrb[30].mxu1 }
 0x13b   : > { %v3031_v51 = vpop.f32.mrb[31].mxu1 }
 0x13c   : > { %v4515_v53 = vadd.f32 %v3031_v51, %v3030_v28 }
 0x13f   : > { %v1116_v46 = vpop.f32.mrb[32].mxu0 }
 0x140   : > { %v4517_v54 = vadd.f32 %v1116_v46, %v1044_v57  ;;  %v3344_v1 = vpop.f32.mrb[33].mxu0  ;;  %v3033_v23 = vpop.f32.mrb[32].mxu1 }
 0x141   : > { %v1119_v43 = vpop.f32.mrb[34].mxu0  ;;  %v3034_v25 = vpop.f32.mrb[33].mxu1 }
 0x142   : > { %v4519_v49 = vadd.f32 %v1119_v43, %v1047_v58  ;;  %v3345_v27 = vpop.f32.mrb[35].mxu0  ;;  %v4521_v29 = vadd.f32 %v3034_v25, %v3033_v23  ;;  %v3036_v34 = vpop.f32.mrb[34].mxu1 }
 0x143   : > { %v3037_v52 = vpop.f32.mrb[35].mxu1 }
 0x144   : > { %v4523_v31 = vadd.f32 %v3037_v52, %v3036_v34 }
 0x147   : > { %v1124_v55 = vpop.f32.mrb[36].mxu0 }
 0x148   : > { %v4525_v56 = vadd.f32 %v1124_v55, %v1052_v59  ;;  %v3348_v3 = vpop.f32.mrb[37].mxu0  ;;  %v3039_v5 = vpop.f32.mrb[36].mxu1 }
 0x149   : > { %v1127_v57 = vpop.f32.mrb[38].mxu0  ;;  %v3040_v7 = vpop.f32.mrb[37].mxu1 }
 0x14a   : > { %v4527_v9 = vadd.f32 %v1127_v57, %v1055_v60  ;;  %v3349_v11 = vpop.f32.mrb[39].mxu0  ;;  %v4529_v13 = vadd.f32 %v3040_v7, %v3039_v5  ;;  %v3042_v58 = vpop.f32.mrb[38].mxu1 }
 0x14b   : > { %v3043_v15 = vpop.f32.mrb[39].mxu1 }
 0x14c   : > { %v4531_v17 = vadd.f32 %v3043_v15, %v3042_v58 }
 0x14f   : > { %v3061_v19 = vpop.f32.mrb[40].mxu0 }
 0x150   : > { %v3062_v21 = vpop.f32.mrb[41].mxu0  ;;  %v1471_v61 = vpop.f32.mrb[40].mxu1 }
 0x151   : > { %v3063_v32 = vadd.f32 %v3062_v21, %v3061_v19  ;;  %v3064_v33 = vpop.f32.mrb[42].mxu0  ;;  %v3368_v59 = vpop.f32.mrb[41].mxu1 }
 0x152   : > { %v3065_v2 = vpop.f32.mrb[43].mxu0  ;;  %v1474_v4 = vpop.f32.mrb[42].mxu1 }
 0x153   : > { %v3066_v8 = vadd.f32 %v3065_v2, %v3064_v33  ;;  %v1399_v12 = vadd.f32 %v3063_v32, %v3017_v10  ;;  %v3369_v14 = vpop.f32.mrb[43].mxu1 }
 0x155   : > { %v4533_v60 = vadd.f32 %v1471_v61, %v1399_v12  ;;  %v1402_v18 = vadd.f32 %v3066_v8, %v3020_v16 }
 0x157   : > { %v1510_v22 = vmax.f32 %v4494_v63, %v4533_v60  ;;  %v4537_v24 = vadd.f32 %v1474_v4, %v1402_v18  ;;  %v3067_v62 = vpop.f32.mrb[44].mxu0 }
 0x158   : > { %v3068_v35 = vpop.f32.mrb[45].mxu0  ;;  %v1479_v36 = vpop.f32.mrb[44].mxu1 }
 0x159   : > { %v1511_v0 = vmax.f32 %v4497_v6, %v4537_v24  ;;  %v3069_v40 = vadd.f32 %v3068_v35, %v3067_v62  ;;  %v3070_v42 = vpop.f32.mrb[46].mxu0  ;;  %v3372_v44 = vpop.f32.mrb[45].mxu1 }
 0x15a   : > { %v3071_v26 = vpop.f32.mrb[47].mxu0  ;;  %v1482_v10 = vpop.f32.mrb[46].mxu1 }
 0x15b   : > { %v3072_v45 = vadd.f32 %v3071_v26, %v3070_v42  ;;  %v1407_v38 = vadd.f32 %v3069_v40, %v4505_v39  ;;  %v3373_v16 = vpop.f32.mrb[47].mxu1 }
 0x15d   : > { %v4542_v48 = vadd.f32 %v1479_v36, %v1407_v38  ;;  %v1410_v28 = vadd.f32 %v3072_v45, %v4507_v41 }
 0x15f   : > { %v1512_v51 = vmax.f32 %v4500_v20, %v4542_v48  ;;  %v4547_v46 = vadd.f32 %v1482_v10, %v1410_v28  ;;  %v3073_v1 = vpop.f32.mrb[48].mxu0 }
 0x160   : > { %v3074_v23 = vpop.f32.mrb[49].mxu0  ;;  %v1487_v43 = vpop.f32.mrb[48].mxu1 }
 0x161   : > { %v1513_v25 = vmax.f32 %v4503_v30, %v4547_v46  ;;  %v3075_v27 = vadd.f32 %v3074_v23, %v3073_v1  ;;  %v3076_v34 = vpop.f32.mrb[50].mxu0  ;;  %v3376_v52 = vpop.f32.mrb[49].mxu1 }
 0x162   : > { %v3077_v39 = vpop.f32.mrb[51].mxu0  ;;  %v1490_v55 = vpop.f32.mrb[50].mxu1 }
 0x163   : > { %v3078_v3 = vadd.f32 %v3077_v39, %v3076_v34  ;;  %v1415_v5 = vadd.f32 %v3075_v27, %v4513_v50  ;;  %v3377_v41 = vpop.f32.mrb[51].mxu1 }
 0x165   : > { %v4552_v57 = vadd.f32 %v1487_v43, %v1415_v5  ;;  %v1418_v7 = vadd.f32 %v3078_v3, %v4515_v53 }
 0x167   : > { %v1514_v11 = vmax.f32 %v4509_v37, %v4552_v57  ;;  %v4557_v58 = vadd.f32 %v1490_v55, %v1418_v7  ;;  %v3079_v15 = vpop.f32.mrb[52].mxu0 }
 0x168   : > { %v3080_v19 = vpop.f32.mrb[53].mxu0  ;;  %v1495_v21 = vpop.f32.mrb[52].mxu1 }
 0x169   : > { %v1515_v61 = vmax.f32 %v4511_v47, %v4557_v58  ;;  %v3081_v32 = vadd.f32 %v3080_v19, %v3079_v15  ;;  %v3082_v33 = vpop.f32.mrb[54].mxu0  ;;  %v3380_v59 = vpop.f32.mrb[53].mxu1 }
 0x16a   : > { %v3083_v50 = vpop.f32.mrb[55].mxu0  ;;  %v1498_v2 = vpop.f32.mrb[54].mxu1 }
 0x16b   : > { %v3084_v4 = vadd.f32 %v3083_v50, %v3082_v33  ;;  %v1423_v8 = vadd.f32 %v3081_v32, %v4521_v29  ;;  %v3381_v53 = vpop.f32.mrb[55].mxu1 }
 0x16d   : > { %v4562_v12 = vadd.f32 %v1495_v21, %v1423_v8  ;;  %v1426_v14 = vadd.f32 %v3084_v4, %v4523_v31 }
 0x16f   : > { %v1516_v18 = vmax.f32 %v4517_v54, %v4562_v12  ;;  %v4567_v62 = vadd.f32 %v1498_v2, %v1426_v14  ;;  %v3085_v35 = vpop.f32.mrb[56].mxu0 }
 0x170   : > { %v3086_v36 = vpop.f32.mrb[57].mxu0  ;;  %v1503_v40 = vpop.f32.mrb[56].mxu1 }
 0x171   : > { %v1517_v42 = vmax.f32 %v4519_v49, %v4567_v62  ;;  %v3087_v44 = vadd.f32 %v3086_v36, %v3085_v35  ;;  %v3088_v26 = vpop.f32.mrb[58].mxu0  ;;  %v3384_v10 = vpop.f32.mrb[57].mxu1 }
 0x172   : > { %v3089_v29 = vpop.f32.mrb[59].mxu0  ;;  %v1506_v45 = vpop.f32.mrb[58].mxu1 }
 0x173   : > { %v3090_v38 = vadd.f32 %v3089_v29, %v3088_v26  ;;  %v1431_v16 = vadd.f32 %v3087_v44, %v4529_v13  ;;  %v3385_v31 = vpop.f32.mrb[59].mxu1 }
 0x175   : > { %v4572_v28 = vadd.f32 %v1503_v40, %v1431_v16  ;;  %v1434_v1 = vadd.f32 %v3090_v38, %v4531_v17 }
 0x177   : > { %v1518_v23 = vmax.f32 %v4525_v56, %v4572_v28  ;;  %v4577_v43 = vadd.f32 %v1506_v45, %v1434_v1  ;;  %v3120_v27 = vpop.f32.mrb[60].mxu0 }
 0x178   : > { %v3166_v34 = vpop.f32.mrb[60].mxu1  ;;  %v3121_v52 = vpop.f32.mrb[61].mxu0 }
 0x179   : > { %v1519_v39 = vmax.f32 %v4527_v9, %v4577_v43  ;;  %v3122_v55 = vadd.f32 %v3121_v52, %v3120_v27  ;;  %v3167_v3 = vpop.f32.mrb[61].mxu1  ;;  %v3123_v5 = vpop.f32.mrb[62].mxu0  ;;  %v4671_v43 = vld [vmem:[%s4773_s5] ss:$0 sm:$0xff] }
 0x17a   : > { %v3168_v13 = vadd.f32 %v3167_v3, %v3166_v34  ;;  %v3169_v41 = vpop.f32.mrb[62].mxu1  ;;  %v3124_v7 = vpop.f32.mrb[63].mxu0 }
 0x17b   : > { %v3125_v15 = vadd.f32 %v3124_v7, %v3123_v5  ;;  %v3170_v19 = vpop.f32.mrb[63].mxu1 }
 0x17c   : > { %v3171_v17 = vadd.f32 %v3170_v19, %v3169_v41  ;;  %v1788_v21 = vadd.f32 %v3168_v13, %v3122_v55 }
 0x17e   : > { %v4581_v32 = vadd.f32 %v3171_v17, %v3125_v15 }
 0x17f   : > { %v3126_v33 = vpop.f32.mrb[64].mxu0 }
 0x180   : > { %v3172_v59 = vpop.f32.mrb[64].mxu1  ;;  %v3127_v50 = vpop.f32.mrb[65].mxu0 }
 0x181   : > { %v3128_v2 = vadd.f32 %v3127_v50, %v3126_v33  ;;  %v3173_v4 = vpop.f32.mrb[65].mxu1  ;;  %v3129_v8 = vpop.f32.mrb[66].mxu0 }
 0x182   : > { %v3174_v53 = vadd.f32 %v3173_v4, %v3172_v59  ;;  %v3175_v14 = vpop.f32.mrb[66].mxu1  ;;  %v3130_v35 = vpop.f32.mrb[67].mxu0 }
 0x183   : > { %v3131_v36 = vadd.f32 %v3130_v35, %v3129_v8  ;;  %v3176_v40 = vpop.f32.mrb[67].mxu1 }
 0x184   : > { %v3177_v44 = vadd.f32 %v3176_v40, %v3175_v14  ;;  %v1796_v26 = vadd.f32 %v3174_v53, %v3128_v2 }
 0x186   : > { %v4583_v10 = vadd.f32 %v3177_v44, %v3131_v36 }
 0x187   : > { %v3132_v29 = vpop.f32.mrb[68].mxu0 }
 0x188   : > { %v3178_v45 = vpop.f32.mrb[68].mxu1  ;;  %v3133_v38 = vpop.f32.mrb[69].mxu0 }
 0x189   : > { %v3134_v16 = vadd.f32 %v3133_v38, %v3132_v29  ;;  %v3179_v31 = vpop.f32.mrb[69].mxu1  ;;  %v3135_v1 = vpop.f32.mrb[70].mxu0 }
 0x18a   : > { %v3180_v27 = vadd.f32 %v3179_v31, %v3178_v45  ;;  %v3181_v34 = vpop.f32.mrb[70].mxu1  ;;  %v3136_v52 = vpop.f32.mrb[71].mxu0 }
 0x18b   : > { %v3137_v55 = vadd.f32 %v3136_v52, %v3135_v1  ;;  %v3182_v3 = vpop.f32.mrb[71].mxu1 }
 0x18c   : > { %v3183_v5 = vadd.f32 %v3182_v3, %v3181_v34  ;;  %v1804_v13 = vadd.f32 %v3180_v27, %v3134_v16 }
 0x18e   : > { %v4585_v41 = vadd.f32 %v3183_v5, %v3137_v55 }
 0x18f   : > { %v3138_v7 = vpop.f32.mrb[72].mxu0 }
 0x190   : > { %v3184_v15 = vpop.f32.mrb[72].mxu1  ;;  %v3139_v19 = vpop.f32.mrb[73].mxu0 }
 0x191   : > { %v3140_v17 = vadd.f32 %v3139_v19, %v3138_v7  ;;  %v3185_v33 = vpop.f32.mrb[73].mxu1  ;;  %v3141_v59 = vpop.f32.mrb[74].mxu0 }
 0x192   : > { %v3186_v50 = vadd.f32 %v3185_v33, %v3184_v15  ;;  %v3187_v2 = vpop.f32.mrb[74].mxu1  ;;  %v3142_v4 = vpop.f32.mrb[75].mxu0 }
 0x193   : > { %v3143_v8 = vadd.f32 %v3142_v4, %v3141_v59  ;;  %v3188_v53 = vpop.f32.mrb[75].mxu1 }
 0x194   : > { %v3189_v14 = vadd.f32 %v3188_v53, %v3187_v2  ;;  %v1812_v35 = vadd.f32 %v3186_v50, %v3140_v17 }
 0x196   : > { %v4587_v36 = vadd.f32 %v3189_v14, %v3143_v8 }
 0x197   : > { %v3144_v40 = vpop.f32.mrb[76].mxu0 }
 0x198   : > { %v3190_v44 = vpop.f32.mrb[76].mxu1  ;;  %v3145_v29 = vpop.f32.mrb[77].mxu0 }
 0x199   : > { %v3146_v45 = vadd.f32 %v3145_v29, %v3144_v40  ;;  %v3191_v38 = vpop.f32.mrb[77].mxu1  ;;  %v3147_v16 = vpop.f32.mrb[78].mxu0 }
 0x19a   : > { %v3192_v31 = vadd.f32 %v3191_v38, %v3190_v44  ;;  %v3193_v1 = vpop.f32.mrb[78].mxu1  ;;  %v3148_v27 = vpop.f32.mrb[79].mxu0 }
 0x19b   : > { %v3149_v34 = vadd.f32 %v3148_v27, %v3147_v16  ;;  %v3194_v52 = vpop.f32.mrb[79].mxu1 }
 0x19c   : > { %v3195_v55 = vadd.f32 %v3194_v52, %v3193_v1  ;;  %v1820_v3 = vadd.f32 %v3192_v31, %v3146_v45 }
 0x19e   : > { %v4589_v5 = vadd.f32 %v3195_v55, %v3149_v34 }
 0x19f   : > { %v1860_v7 = vpop.f32.mrb[80].mxu0 }
 0x1a0   : > { %v1861_v15 = vadd.f32 %v1860_v7, %v1788_v21  ;;  %v3404_v19 = vpop.f32.mrb[81].mxu0  ;;  %v3225_v17 = vpop.f32.mrb[80].mxu1 }
 0x1a1   : > { %v1863_v33 = vpop.f32.mrb[82].mxu0  ;;  %v3226_v59 = vpop.f32.mrb[81].mxu1 }
 0x1a2   : > { %v4594_v50 = vmax.f32 %v1510_v22, %v1861_v15  ;;  %v1864_v2 = vadd.f32 %v1863_v33, %v4581_v32  ;;  %v3405_v4 = vpop.f32.mrb[83].mxu0  ;;  %v4597_v8 = vadd.f32 %v3226_v59, %v3225_v17  ;;  %v3228_v53 = vpop.f32.mrb[82].mxu1 }
 0x1a3   : > { %v3229_v14 = vpop.f32.mrb[83].mxu1 }
 0x1a4   : > { %v4602_v21 = vmax.f32 %v1511_v0, %v1864_v2  ;;  %v4604_v40 = vadd.f32 %v3229_v14, %v3228_v53 }
 0x1a7   : > { %v1868_v44 = vpop.f32.mrb[84].mxu0 }
 0x1a8   : > { %v1869_v29 = vadd.f32 %v1868_v44, %v1796_v26  ;;  %v3408_v45 = vpop.f32.mrb[85].mxu0  ;;  %v3231_v63 = vpop.f32.mrb[84].mxu1 }
 0x1a9   : > { %v1871_v60 = vpop.f32.mrb[86].mxu0  ;;  %v3232_v22 = vpop.f32.mrb[85].mxu1 }
 0x1aa   : > { %v4609_v32 = vmax.f32 %v1512_v51, %v1869_v29  ;;  %v1872_v38 = vadd.f32 %v1871_v60, %v4583_v10  ;;  %v3409_v16 = vpop.f32.mrb[87].mxu0  ;;  %v4612_v31 = vadd.f32 %v3232_v22, %v3231_v63  ;;  %v3234_v6 = vpop.f32.mrb[86].mxu1 }
 0x1ab   : > { %v3235_v24 = vpop.f32.mrb[87].mxu1 }
 0x1ac   : > { %v4617_v0 = vmax.f32 %v1513_v25, %v1872_v38  ;;  %v4619_v26 = vadd.f32 %v3235_v24, %v3234_v6 }
 0x1af   : > { %v1876_v1 = vpop.f32.mrb[88].mxu0 }
 0x1b0   : > { %v1877_v27 = vadd.f32 %v1876_v1, %v1804_v13  ;;  %v3412_v34 = vpop.f32.mrb[89].mxu0  ;;  %v3237_v20 = vpop.f32.mrb[88].mxu1 }
 0x1b1   : > { %v1879_v48 = vpop.f32.mrb[90].mxu0  ;;  %v3238_v51 = vpop.f32.mrb[89].mxu1 }
 0x1b2   : > { %v4624_v10 = vmax.f32 %v1514_v11, %v1877_v27  ;;  %v1880_v52 = vadd.f32 %v1879_v48, %v4585_v41  ;;  %v3413_v55 = vpop.f32.mrb[91].mxu0  ;;  %v4627_v7 = vadd.f32 %v3238_v51, %v3237_v20  ;;  %v3240_v30 = vpop.f32.mrb[90].mxu1 }
 0x1b3   : > { %v3241_v46 = vpop.f32.mrb[91].mxu1 }
 0x1b4   : > { %v4632_v25 = vmax.f32 %v1515_v61, %v1880_v52  ;;  %v4634_v13 = vadd.f32 %v3241_v46, %v3240_v30 }
 0x1b7   : > { %v1884_v15 = vpop.f32.mrb[92].mxu0 }
 0x1b8   : > { %v1885_v19 = vadd.f32 %v1884_v15, %v1812_v35  ;;  %v3416_v17 = vpop.f32.mrb[93].mxu0  ;;  %v3243_v37 = vpop.f32.mrb[92].mxu1 }
 0x1b9   : > { %v1887_v57 = vpop.f32.mrb[94].mxu0  ;;  %v3244_v11 = vpop.f32.mrb[93].mxu1 }
 0x1ba   : > { %v4639_v41 = vmax.f32 %v1516_v18, %v1885_v19  ;;  %v1888_v33 = vadd.f32 %v1887_v57, %v4587_v36  ;;  %v3417_v59 = vpop.f32.mrb[95].mxu0  ;;  %v4642_v2 = vadd.f32 %v3244_v11, %v3243_v37  ;;  %v3246_v47 = vpop.f32.mrb[94].mxu1 }
 0x1bb   : > { %v3247_v58 = vpop.f32.mrb[95].mxu1 }
 0x1bc   : > { %v4647_v61 = vmax.f32 %v1517_v42, %v1888_v33  ;;  %v4649_v35 = vadd.f32 %v3247_v58, %v3246_v47 }
 0x1bf   : > { %v1892_v4 = vpop.f32.mrb[96].mxu0 }
 0x1c0   : > { %v1893_v53 = vadd.f32 %v1892_v4, %v1820_v3  ;;  %v3420_v14 = vpop.f32.mrb[97].mxu0  ;;  %v3249_v54 = vpop.f32.mrb[96].mxu1 }
 0x1c1   : > { %v1895_v12 = vpop.f32.mrb[98].mxu0  ;;  %v3250_v18 = vpop.f32.mrb[97].mxu1 }
 0x1c2   : > { %v4654_v36 = vmax.f32 %v1518_v23, %v1893_v53  ;;  %v1896_v44 = vadd.f32 %v1895_v12, %v4589_v5  ;;  %v3421_v29 = vpop.f32.mrb[99].mxu0  ;;  %v4657_v45 = vadd.f32 %v3250_v18, %v3249_v54  ;;  %v3252_v49 = vpop.f32.mrb[98].mxu1 }
 0x1c3   : > { %v3253_v62 = vpop.f32.mrb[99].mxu1 }
 0x1c4   : > { %v4662_v42 = vmax.f32 %v1519_v39, %v1896_v44  ;;  %v4664_v3 = vadd.f32 %v3253_v62, %v3252_v49 }
 0x1c7   : > { %v3271_v63 = vpop.f32.mrb[100].mxu0 }
 0x1c8   : > { %v3272_v60 = vpop.f32.mrb[101].mxu0  ;;  %v2249_v56 = vpop.f32.mrb[100].mxu1 }
 0x1c9   : > { %v3273_v28 = vadd.f32 %v3272_v60, %v3271_v63  ;;  %v3274_v23 = vpop.f32.mrb[102].mxu0  ;;  %v3440_v22 = vpop.f32.mrb[101].mxu1 }
 0x1ca   : > { %v3275_v5 = vpop.f32.mrb[103].mxu0  ;;  %v2252_v38 = vpop.f32.mrb[102].mxu1 }
 0x1cb   : > { %v3276_v16 = vadd.f32 %v3275_v5, %v3274_v23  ;;  %v2177_v6 = vadd.f32 %v3273_v28, %v4597_v8  ;;  %v3441_v24 = vpop.f32.mrb[103].mxu1 }
 0x1cd   : > { %v2250_v1 = vadd.f32 %v2249_v56, %v2177_v6  ;;  %v2180_v9 = vadd.f32 %v3276_v16, %v4604_v40 }
 0x1cf   : > { %v2288_v39 = vmax.f32 %v4594_v50, %v2250_v1  ;;  %v2253_v27 = vadd.f32 %v2252_v38, %v2180_v9  ;;  %v3277_v34 = vpop.f32.mrb[104].mxu0 }
 0x1d0   : > { %v3278_v20 = vpop.f32.mrb[105].mxu0  ;;  %v2257_v48 = vpop.f32.mrb[104].mxu1 }
 0x1d1   : > { %v2305_v51 = vadd.f32 %v4671_v43, %v2288_v39  ;;  %v2289_v8 = vmax.f32 %v4602_v21, %v2253_v27  ;;  %v3279_v52 = vadd.f32 %v3278_v20, %v3277_v34  ;;  %v3280_v55 = vpop.f32.mrb[106].mxu0  ;;  %v3444_v30 = vpop.f32.mrb[105].mxu1 }
 0x1d2   : > { %v3281_v40 = vpop.f32.mrb[107].mxu0  ;;  %v2260_v46 = vpop.f32.mrb[106].mxu1 }
 0x1d3   : > { %v2325_v15 = vmul.f32 0.2, %v2305_v51  ;;  %v2306_v19 = vadd.f32 %v4671_v43, %v2289_v8  ;;  %v3282_v17 = vadd.f32 %v3281_v40, %v3280_v55  ;;  %v3445_v50 = vpop.f32.mrb[107].mxu1  ;;  %vm2315_vm1 = vcmp.ge.f32.partialorder %v2305_v51, 0.0 }
 0x1d4   : > { %v2185_v37 = vadd.f32 %v3279_v52, %v4612_v31 }
 0x1d5   : > { %vm2316_vm2 = vcmp.ge.f32.partialorder %v2306_v19, 0.0  ;;  %v2326_v57 = vmul.f32 0.2, %v2306_v19  ;;  %v2188_v11 = vadd.f32 %v3282_v17, %v4619_v26  ;;  %v2335_v21 = vsel %vm2315_vm1, %v2305_v51, %v2325_v15 }
 0x1d6   : > { %v2258_v33 = vadd.f32 %v2257_v48, %v2185_v37 }
 0x1d7   : > { %v2336_v59 = vsel %vm2316_vm2, %v2306_v19, %v2326_v57  ;;  %v2261_v47 = vadd.f32 %v2260_v46, %v2188_v11  ;;  %v3283_v58 = vpop.f32.mrb[108].mxu0 }
 0x1d8   : > { %v2868_v4 = vpack.c.bf16 %v2336_v59, %v2335_v21  ;;  %v2290_v53 = vmax.f32 %v4609_v32, %v2258_v33  ;;  %v3284_v14 = vpop.f32.mrb[109].mxu0  ;;  %v2265_v54 = vpop.f32.mrb[108].mxu1 }
 0x1d9   : > { %v2291_v12 = vmax.f32 %v4617_v0, %v2261_v47  ;;  %v3285_v18 = vadd.f32 %v3284_v14, %v3283_v58  ;;  %v3286_v44 = vpop.f32.mrb[110].mxu0  ;;  %v3448_v29 = vpop.f32.mrb[109].mxu1 }
 0x1da   : > { %2869 = vst [vmem:[%s4682_s21] sm:$0xff] %v2868_v4   ;;  %v2307_v31 = vadd.f32 %v4671_v43, %v2290_v53  ;;  %v3287_v26 = vpop.f32.mrb[111].mxu0  ;;  %v2268_v49 = vpop.f32.mrb[110].mxu1 }
 0x1db   : > { %v2308_v62 = vadd.f32 %v4671_v43, %v2291_v12  ;;  %v3288_v63 = vadd.f32 %v3287_v26, %v3286_v44  ;;  %v2193_v32 = vadd.f32 %v3285_v18, %v4627_v7  ;;  %v3449_v60 = vpop.f32.mrb[111].mxu1 }
 0x1dc   : > { %vm2317_vm3 = vcmp.ge.f32.partialorder %v2307_v31, 0.0  ;;  %v2327_v56 = vmul.f32 0.2, %v2307_v31 }
 0x1dd   : > { %vm2318_vm4 = vcmp.ge.f32.partialorder %v2308_v62, 0.0  ;;  %v2328_v0 = vmul.f32 0.2, %v2308_v62  ;;  %v2266_v28 = vadd.f32 %v2265_v54, %v2193_v32  ;;  %v2196_v23 = vadd.f32 %v3288_v63, %v4634_v13 }
 0x1de   : > { %v2337_v22 = vsel %vm2317_vm3, %v2307_v31, %v2327_v56 }
 0x1df   : > { %v2338_v5 = vsel %vm2318_vm4, %v2308_v62, %v2328_v0  ;;  %v2292_v38 = vmax.f32 %v4624_v10, %v2266_v28  ;;  %v2269_v16 = vadd.f32 %v2268_v49, %v2196_v23  ;;  %v3289_v6 = vpop.f32.mrb[112].mxu0 }
 0x1e0   : > { %v2873_v24 = vpack.c.bf16 %v2338_v5, %v2337_v22  ;;  %v3290_v1 = vpop.f32.mrb[113].mxu0  ;;  %v2273_v9 = vpop.f32.mrb[112].mxu1 }
 0x1e1   : > { %v2309_v7 = vadd.f32 %v4671_v43, %v2292_v38  ;;  %v2293_v39 = vmax.f32 %v4632_v25, %v2269_v16  ;;  %v3291_v27 = vadd.f32 %v3290_v1, %v3289_v6  ;;  %v3292_v34 = vpop.f32.mrb[114].mxu0  ;;  %v3452_v20 = vpop.f32.mrb[113].mxu1 }
 0x1e2   : > { %2890 = vst [vmem:[%s4682_s21 + $0x8] sm:$0xff] %v2873_v24   ;;  %v3293_v48 = vpop.f32.mrb[115].mxu0  ;;  %v2276_v51 = vpop.f32.mrb[114].mxu1 }
 0x1e3   : > { %v2329_v13 = vmul.f32 0.2, %v2309_v7  ;;  %v2310_v8 = vadd.f32 %v4671_v43, %v2293_v39  ;;  %v3294_v52 = vadd.f32 %v3293_v48, %v3292_v34  ;;  %v3453_v10 = vpop.f32.mrb[115].mxu1  ;;  %vm2319_vm5 = vcmp.ge.f32.partialorder %v2309_v7, 0.0 }
 0x1e4   : > { %v2201_v55 = vadd.f32 %v3291_v27, %v4642_v2 }
 0x1e5   : > { %vm2320_vm6 = vcmp.ge.f32.partialorder %v2310_v8, 0.0  ;;  %v2330_v30 = vmul.f32 0.2, %v2310_v8  ;;  %v2204_v40 = vadd.f32 %v3294_v52, %v4649_v35  ;;  %v2339_v46 = vsel %vm2319_vm5, %v2309_v7, %v2329_v13 }
 0x1e6   : > { %v2274_v25 = vadd.f32 %v2273_v9, %v2201_v55 }
 0x1e7   : > { %v2340_v15 = vsel %vm2320_vm6, %v2310_v8, %v2330_v30  ;;  %v2277_v19 = vadd.f32 %v2276_v51, %v2204_v40  ;;  %v3295_v17 = vpop.f32.mrb[116].mxu0 }
 0x1e8   : > { %v2878_v50 = vpack.c.bf16 %v2340_v15, %v2339_v46  ;;  %v2294_v37 = vmax.f32 %v4639_v41, %v2274_v25  ;;  %v3296_v57 = vpop.f32.mrb[117].mxu0  ;;  %v2281_v11 = vpop.f32.mrb[116].mxu1 }
 0x1e9   : > { %v2295_v33 = vmax.f32 %v4647_v61, %v2277_v19  ;;  %v3297_v21 = vadd.f32 %v3296_v57, %v3295_v17  ;;  %v3298_v59 = vpop.f32.mrb[118].mxu0  ;;  %v3456_v2 = vpop.f32.mrb[117].mxu1 }
 0x1ea   : > { %2891 = vst [vmem:[%s4682_s21 + $0x10] sm:$0xff] %v2878_v50   ;;  %v2311_v47 = vadd.f32 %v4671_v43, %v2294_v37  ;;  %v3299_v58 = vpop.f32.mrb[119].mxu0  ;;  %v2284_v35 = vpop.f32.mrb[118].mxu1 }
 0x1eb   : > { %v2312_v4 = vadd.f32 %v4671_v43, %v2295_v33  ;;  %v3300_v53 = vadd.f32 %v3299_v58, %v3298_v59  ;;  %v2209_v14 = vadd.f32 %v3297_v21, %v4657_v45  ;;  %v3457_v54 = vpop.f32.mrb[119].mxu1 }
 0x1ec   : > { %vm2321_vm7 = vcmp.ge.f32.partialorder %v2311_v47, 0.0  ;;  %v2331_v41 = vmul.f32 0.2, %v2311_v47 }
 0x1ed   : > { %vm2322_vm8 = vcmp.ge.f32.partialorder %v2312_v4, 0.0  ;;  %v2332_v12 = vmul.f32 0.2, %v2312_v4  ;;  %v2282_v61 = vadd.f32 %v2281_v11, %v2209_v14  ;;  %v2212_v18 = vadd.f32 %v3300_v53, %v4664_v3 }
 0x1ee   : > { %v2341_v44 = vsel %vm2321_vm7, %v2311_v47, %v2331_v41 }
 0x1ef   : > { %v2342_v29 = vsel %vm2322_vm8, %v2312_v4, %v2332_v12  ;;  %v2296_v31 = vmax.f32 %v4654_v36, %v2282_v61  ;;  %v2285_v26 = vadd.f32 %v2284_v35, %v2212_v18 }
 0x1f0   : > { %v2883_v49 = vpack.c.bf16 %v2342_v29, %v2341_v44 }
 0x1f1   : > { %v2313_v62 = vadd.f32 %v4671_v43, %v2296_v31  ;;  %v2297_v63 = vmax.f32 %v4662_v42, %v2285_v26 }
 0x1f2   : > { %2892 = vst [vmem:[%s4682_s21 + $0x18] sm:$0xff] %v2883_v49  }
 0x1f3   : > { %v2333_v45 = vmul.f32 0.2, %v2313_v62  ;;  %v2314_v32 = vadd.f32 %v4671_v43, %v2297_v63  ;;  %vm2323_vm9 = vcmp.ge.f32.partialorder %v2313_v62, 0.0 }
 0x1f4   : > { %2401 = sbr.rel (!%p3896_p4) target bundleno = 575 (0x23f), region = 48 }
 0x1f5   : > { %vm2324_vm10 = vcmp.ge.f32.partialorder %v2314_v32, 0.0  ;;  %v2334_v60 = vmul.f32 0.2, %v2314_v32  ;;  %v2343_v56 = vsel %vm2323_vm9, %v2313_v62, %v2333_v45 }
 0x1f7   : > { %v2344_v3 = vsel %vm2324_vm10, %v2314_v32, %v2334_v60 }
 0x1f8   : > { %v2888_v0 = vpack.c.bf16 %v2344_v3, %v2343_v56 }
 0x1fa   : > { %2893 = vst [vmem:[%s4682_s21 + $0x20] sm:$0xff] %v2888_v0  }
 0x1fb   : > { %s4783_s9 = smov (!%p2404_p8, %s2403_s9), 10 }
 0x1fc   : > { %s2842_s15 = sshll.u32 %s4783_s9, 6 }
 0x1fd   : > { %p2845_p9 = scmp.eq.s32.totalorder %s2842_s15, 0 }
 0x1fe   : > { %3742 = sdivrem.u32 (!%p2845_p9), %s4783_s9, 10 }
 0x1ff   : > { %2412 = sbr.rel (%p2845_p9) target bundleno = 575 (0x23f), region = 52 }
 0x207   : > { %s4722_s29 = spop.drf %3742 }
 0x208   : > { %p2846_p10 = scmp.le.s32.totalorder %s4722_s29, 0 }
 0x209   : > { %s4776_s24 = smov (!%p2846_p10), %s4716_s14  ;;  %s4777_s16 = smov (!%p2846_p10), %s4682_s21 }
 0x20a   : > { %2621 = sbr.rel (%p2846_p10) target bundleno = 546 (0x222), region = 133  ;;  %s4731_s7 = smov (!%p2846_p10), 0  }
 0x20b   : > { %s4733_s19 = smov (!%p2846_p10), 0  }
 0x211 LB: >> { %v2429_v36 = vld [vmem:[%s3808_s16] sm:$0xf]  ;;  %v2431_v42 = vld [vmem:[%s3808_s16 + $0x4] sm:$0xf]  ;;  %v2433_v43 = vld [vmem:[%s3808_s16 + $0x8] sm:$0xf]  ;;  %s3816_s19 = sphi %s4733_s19, %s2423_s19   ;;  %s3812_s7 = sphi %s4731_s7, %s4778_s7   ;;  %s3808_s16 = sphi %s4777_s16, %s2454_s16   ;;  %s3804_s24 = sphi %s4776_s24, %s2455_s24  }
 0x212   : >> { %2430 = vst [vmem:[%s3804_s24] sm:$0xf] %v2429_v36  ;;  %2432 = vst [vmem:[%s3804_s24 + $0x4] sm:$0xf] %v2431_v42  ;;  %v2435_v28 = vld [vmem:[%s3808_s16 + $0xc] sm:$0xf]  ;;  %s2449_s18 = sadd.s32 1, %s3812_s7 }
 0x213   : >> { %2434 = vst [vmem:[%s3804_s24 + $0x8] sm:$0xf] %v2433_v43  ;;  %v2437_v23 = vld [vmem:[%s3808_s16 + $0x10] sm:$0xf]  ;;  %v2439_v22 = vld [vmem:[%s3808_s16 + $0x14] sm:$0xf]  ;;  %p2450_p11 = scmp.ge.s32.totalorder %s2449_s18, %s4722_s29 }
 0x214   : >> { %2436 = vst [vmem:[%s3804_s24 + $0xc] sm:$0xf] %v2435_v28  ;;  %2438 = vst [vmem:[%s3804_s24 + $0x10] sm:$0xf] %v2437_v23  ;;  %v2441_v5 = vld [vmem:[%s3808_s16 + $0x18] sm:$0xf] }
 0x215   : >> { %2440 = vst [vmem:[%s3804_s24 + $0x14] sm:$0xf] %v2439_v22  ;;  %v2443_v38 = vld [vmem:[%s3808_s16 + $0x1c] sm:$0xf]  ;;  %v2445_v16 = vld [vmem:[%s3808_s16 + $0x20] sm:$0xf] }
 0x216   : >> { %2442 = vst [vmem:[%s3804_s24 + $0x18] sm:$0xf] %v2441_v5  ;;  %2444 = vst [vmem:[%s3804_s24 + $0x1c] sm:$0xf] %v2443_v38  ;;  %v2447_v6 = vld [vmem:[%s3808_s16 + $0x24] sm:$0xf] }
 0x217   : >> { %2446 = vst [vmem:[%s3804_s24 + $0x20] sm:$0xf] %v2445_v16  ;;  %2448 = vst [vmem:[%s3804_s24 + $0x24] sm:$0xf] %v2447_v6  ;;  %s4785_s18 = smov (%p2450_p11, %s2449_s18), 0  ;;  %s2423_s19 = sadd.s32 1, %s3816_s19  }
 0x218   : >> { %s2452_s20 = smul.u32 40, %s4785_s18  ;;  %p2422_p12 = scmp.ge.s32.totalorder %s2423_s19, %s4722_s29 }
 0x219   : >> { %s4778_s7 = smov %s4785_s18 }
 0x21a   : >> { %s2454_s16 = scalar_lea.vmem %s4682_s21, %s2452_s20 [#allocation2]   ;;  %s2455_s24 = scalar_lea.vmem %s4716_s14, %s2452_s20  }
 0x21b   : > { %2425 = sbr.rel (!%p2422_p12) target bundleno = 529 (0x211), region = 139 }
 0x222 PF: > { %3744 = sdivrem.u32 %s4783_s9, 10 }
 0x223   : > { %s2847_s23 = smul.u32 40, %s4722_s29 }
 0x225   : > { %s2460_s26 = scalar_lea.vmem %s4682_s21, %s2847_s23 [#allocation2]   ;;  %s2462_s27 = scalar_lea.vmem %s4716_s14, %s2847_s23  }
 0x22b   : > { %s3745_s13 = spop.drf %3744 }
 0x22c   : > { %p2849_p13 = scmp.le.s32.totalorder %s3745_s13, 0 }
 0x22d   : > { %s3818_s17 = smov (!%p2849_p13), %s2462_s27   ;;  %s3822_s30 = smov (!%p2849_p13), %s2460_s26  }
 0x22e   : > { %2635 = sbr.rel (%p2849_p13) target bundleno = 575 (0x23f), region = 144  ;;  %s3826_s8 = smov (!%p2849_p13), 0  }
 0x22f   : > { %s3830_s10 = smov (!%p2849_p13), 0  }
 0x235 LB: >> { %v2472_v24 = vld [vmem:[%s3824_s30] sm:$0xf]  ;;  %s2474_s11 = sadd.s32 1, %s3828_s8  ;;  %s2466_s10 = sadd.s32 1, %s3832_s10   ;;  %s3832_s10 = sphi %s3830_s10, %s2466_s10   ;;  %s3828_s8 = sphi %s3826_s8, %s3827_s8   ;;  %s3824_s30 = sphi %s3822_s30, %s2479_s30   ;;  %s3820_s17 = sphi %s3818_s17, %s2480_s17  }
 0x236   : >> { %2473 = vst [vmem:[%s3820_s17] sm:$0xf] %v2472_v24  ;;  %p2475_p0 = scmp.ge.s32.totalorder %s2474_s11, %s3745_s13  ;;  %p2465_p1 = scmp.ge.s32.totalorder %s2466_s10, %s3745_s13 }
 0x238   : >> { %s4787_s11 = smov (%p2475_p0, %s2474_s11), 0  ;;  %2468 = sbr.rel (!%p2465_p1) target bundleno = 565 (0x235), region = 150 }
 0x239   : >> { %s2850_s21 = sshll.u32 %s4787_s11, 2  ;;  %s3827_s8 = smov %s4787_s11  }
 0x23a   : >> { %s2479_s30 = scalar_lea.vmem %s2460_s26, %s2850_s21 [#allocation2]   ;;  %s2480_s17 = scalar_lea.vmem %s2462_s27, %s2850_s21  }
 0x23f PF: > { %p13_p2 = scmp.ge.s32.totalorder %s3886_s25, 4   ;;  %s4779_s21 = smov %s3796_s22 }
 0x240   : > { %s4780_s22 = smov %s3894_s28  ;;  %s4781_s23 = smov %s3886_s25 }
 0x241   :  { %15 = sbr.rel (!%p13_p2) target bundleno = 2 (0x2), region = 161 }

// kernel: convnet_forward.7
= control target key start
LH: loop header
LB: loop body
LE: loop exit
PB: predicated region body
PF: predicated region fallthrough
CT: control target
= control target key end

     0   :  { %s17590_s1 = inlined_call_operand.vmem [shape: bf16[4864,512], index: 1, kind: input, shape index: {}]   ;;  %s17591_s0 = inlined_call_operand.vmem [shape: bf16[8,4864], index: 0, kind: input, shape index: {}]   ;;  %s17592_s3 = inlined_call_operand.vmem [shape: bf16[512,384], index: 3, kind: input, shape index: {}]   ;;  %s17593_s2 = inlined_call_operand.vmem [shape: f32[1,512], index: 2, kind: input, shape index: {}]   ;;  %s17594_s4 = inlined_call_operand.vmem [shape: f32[1,384], index: 4, kind: input, shape index: {}]   ;;  %s17595_s5 = inlined_call_operand.vmem [shape: f32[8,384], index: 5, kind: output, shape index: {}]  }
   0x1   :  { %v11427_v0 = vld [vmem:[%s17590_s1 + $0x4] ss:$16 sps:$4 sm:$0xff]   ;;  %v11429_v1 = vld [vmem:[%s17590_s1 + $0xc] ss:$16 sps:$4 sm:$0xff]   ;;  %v11431_v2 = vld [vmem:[%s17590_s1] ss:$16 sps:$4 sm:$0xff]  }
   0x2   :  { %7491 = vmatprep.subr.bf16.mxu0 %v11427_v0  ;;  %v11432_v3 = vld [vmem:[%s17590_s1 + $0x8] ss:$16 sps:$4 sm:$0xff]   ;;  %8270 = vmatprep.subr.bf16.mxu1 %v11429_v1  ;;  %v11433_v4 = vld [vmem:[%s17590_s1 + $0x24] ss:$16 sps:$4 sm:$0xff]   ;;  %v11435_v5 = vld [vmem:[%s17590_s1 + $0x2c] ss:$16 sps:$4 sm:$0xff]  }
   0x3   :  { %7492 = vmatpush1.bf16.msra.mxu0 %v11431_v2  ;;  %8271 = vmatpush1.bf16.msra.mxu1 %v11432_v3  ;;  %v11437_v6 = vld [vmem:[%s17590_s1 + $0x20] ss:$16 sps:$4 sm:$0xff]   ;;  %v11438_v7 = vld [vmem:[%s17590_s1 + $0x28] ss:$16 sps:$4 sm:$0xff]   ;;  %v11439_v8 = vld [vmem:[%s17590_s1 + $0x44] ss:$16 sps:$4 sm:$0xff]  }
   0x4   :  { %7493 = vmatprep.subr.bf16.mxu0 %v11433_v4  ;;  %8272 = vmatprep.subr.bf16.mxu1 %v11435_v5  ;;  %v11441_v9 = vld [vmem:[%s17590_s1 + $0x4c] ss:$16 sps:$4 sm:$0xff]   ;;  %v11443_v10 = vld [vmem:[%s17590_s1 + $0x40] ss:$16 sps:$4 sm:$0xff]   ;;  %v11444_v11 = vld [vmem:[%s17590_s1 + $0x48] ss:$16 sps:$4 sm:$0xff]  }
   0x5   :  { %v11445_v12 = vld [vmem:[%s17590_s1 + $0x64] ss:$16 sps:$4 sm:$0xff]   ;;  %v11447_v13 = vld [vmem:[%s17590_s1 + $0x6c] ss:$16 sps:$4 sm:$0xff]   ;;  %v11449_v14 = vld [vmem:[%s17590_s1 + $0x60] ss:$16 sps:$4 sm:$0xff]  }
   0x6   :  { %v11450_v15 = vld [vmem:[%s17590_s1 + $0x68] ss:$16 sps:$4 sm:$0xff]   ;;  %v11451_v16 = vld [vmem:[%s17590_s1 + $0x84] ss:$16 sps:$4 sm:$0xff]   ;;  %v11453_v17 = vld [vmem:[%s17590_s1 + $0x8c] ss:$16 sps:$4 sm:$0xff]  }
   0x7   :  { %7494 = vmatpush1.bf16.msra.mxu0 %v11437_v6  ;;  %8273 = vmatpush1.bf16.msra.mxu1 %v11438_v7  ;;  %v11455_v18 = vld [vmem:[%s17590_s1 + $0x80] ss:$16 sps:$4 sm:$0xff]   ;;  %v11456_v19 = vld [vmem:[%s17590_s1 + $0x88] ss:$16 sps:$4 sm:$0xff]   ;;  %v11457_v20 = vld [vmem:[%s17590_s1 + $0xa4] ss:$16 sps:$4 sm:$0xff]  }
   0x8   :  { %7495 = vmatprep.subr.bf16.mxu0 %v11439_v8  ;;  %8274 = vmatprep.subr.bf16.mxu1 %v11441_v9  ;;  %v11459_v21 = vld [vmem:[%s17590_s1 + $0xac] ss:$16 sps:$4 sm:$0xff]   ;;  %v11461_v22 = vld [vmem:[%s17590_s1 + $0xa0] ss:$16 sps:$4 sm:$0xff]   ;;  %v11462_v23 = vld [vmem:[%s17590_s1 + $0xa8] ss:$16 sps:$4 sm:$0xff]  }
   0x9   :  { %v11463_v24 = vld [vmem:[%s17590_s1 + $0xc4] ss:$16 sps:$4 sm:$0xff]   ;;  %v11465_v25 = vld [vmem:[%s17590_s1 + $0xcc] ss:$16 sps:$4 sm:$0xff]   ;;  %v11467_v26 = vld [vmem:[%s17590_s1 + $0xc0] ss:$16 sps:$4 sm:$0xff]  }
   0xa   :  { %v11468_v27 = vld [vmem:[%s17590_s1 + $0xc8] ss:$16 sps:$4 sm:$0xff]   ;;  %v11469_v28 = vld [vmem:[%s17590_s1 + $0xe4] ss:$16 sps:$4 sm:$0xff]   ;;  %v11471_v29 = vld [vmem:[%s17590_s1 + $0xec] ss:$16 sps:$4 sm:$0xff]  }
   0xb   :  { %7496 = vmatpush1.bf16.msra.mxu0 %v11443_v10  ;;  %8275 = vmatpush1.bf16.msra.mxu1 %v11444_v11  ;;  %v11473_v30 = vld [vmem:[%s17590_s1 + $0xe0] ss:$16 sps:$4 sm:$0xff]   ;;  %v11474_v31 = vld [vmem:[%s17590_s1 + $0xe8] ss:$16 sps:$4 sm:$0xff]   ;;  %v11475_v32 = vld [vmem:[%s17590_s1 + $0x104] ss:$16 sps:$4 sm:$0xff]  }
   0xc   :  { %7497 = vmatprep.subr.bf16.mxu0 %v11445_v12  ;;  %8276 = vmatprep.subr.bf16.mxu1 %v11447_v13  ;;  %v11477_v33 = vld [vmem:[%s17590_s1 + $0x10c] ss:$16 sps:$4 sm:$0xff]   ;;  %v11479_v34 = vld [vmem:[%s17590_s1 + $0x100] ss:$16 sps:$4 sm:$0xff]   ;;  %v11480_v35 = vld [vmem:[%s17590_s1 + $0x108] ss:$16 sps:$4 sm:$0xff]  }
   0xd   :  { %v11481_v36 = vld [vmem:[%s17590_s1 + $0x124] ss:$16 sps:$4 sm:$0xff]   ;;  %v11483_v37 = vld [vmem:[%s17590_s1 + $0x12c] ss:$16 sps:$4 sm:$0xff]   ;;  %v11485_v38 = vld [vmem:[%s17590_s1 + $0x120] ss:$16 sps:$4 sm:$0xff]  }
   0xe   :  { %v11486_v39 = vld [vmem:[%s17590_s1 + $0x128] ss:$16 sps:$4 sm:$0xff]   ;;  %v11487_v40 = vld [vmem:[%s17590_s1 + $0x144] ss:$16 sps:$4 sm:$0xff]   ;;  %v11489_v41 = vld [vmem:[%s17590_s1 + $0x14c] ss:$16 sps:$4 sm:$0xff]  }
   0xf   :  { %7498 = vmatpush1.bf16.msra.mxu0 %v11449_v14  ;;  %8277 = vmatpush1.bf16.msra.mxu1 %v11450_v15  ;;  %v11491_v42 = vld [vmem:[%s17590_s1 + $0x140] ss:$16 sps:$4 sm:$0xff]   ;;  %v11492_v43 = vld [vmem:[%s17590_s1 + $0x148] ss:$16 sps:$4 sm:$0xff]   ;;  %v11493_v44 = vld [vmem:[%s17590_s1 + $0x164] ss:$16 sps:$4 sm:$0xff]  }
  0x10   :  { %7499 = vmatprep.subr.bf16.mxu0 %v11451_v16  ;;  %8278 = vmatprep.subr.bf16.mxu1 %v11453_v17  ;;  %v11495_v45 = vld [vmem:[%s17590_s1 + $0x16c] ss:$16 sps:$4 sm:$0xff]   ;;  %v21_v46 = vld [vmem:[%s17591_s0] sm:$0xff]  ;;  %v11498_v49 = vld [vmem:[%s17590_s1 + $0x168] ss:$16 sps:$4 sm:$0xff]  }
  0x11   :  { %v11497_v47 = vld [vmem:[%s17590_s1 + $0x160] ss:$16 sps:$4 sm:$0xff]   ;;  %v9880_v48 = vcombine.high %v21_v46, %v21_v46  ;;  %v11499_v50 = vld [vmem:[%s17590_s1 + $0x184] ss:$16 sps:$4 sm:$0xff]   ;;  %v11501_v51 = vld [vmem:[%s17590_s1 + $0x18c] ss:$16 sps:$4 sm:$0xff]   ;;  %v9879_v4 = vcombine.low %v21_v46, %v21_v46 }
  0x12   :  { %v11503_v52 = vld [vmem:[%s17590_s1 + $0x180] ss:$16 sps:$4 sm:$0xff]   ;;  %v11504_v53 = vld [vmem:[%s17590_s1 + $0x188] ss:$16 sps:$4 sm:$0xff]   ;;  %v11505_v54 = vld [vmem:[%s17590_s1 + $0x1a4] ss:$16 sps:$4 sm:$0xff]  }
  0x13   :  { %7500 = vmatpush1.bf16.msra.mxu0 %v11455_v18  ;;  %8279 = vmatpush1.bf16.msra.mxu1 %v11456_v19  ;;  %v11507_v55 = vld [vmem:[%s17590_s1 + $0x1ac] ss:$16 sps:$4 sm:$0xff]   ;;  %v11509_v56 = vld [vmem:[%s17590_s1 + $0x1a0] ss:$16 sps:$4 sm:$0xff]   ;;  %v11510_v57 = vld [vmem:[%s17590_s1 + $0x1a8] ss:$16 sps:$4 sm:$0xff]  }
  0x14   :  { %7501 = vmatprep.subr.bf16.mxu0 %v11457_v20  ;;  %8280 = vmatprep.subr.bf16.mxu1 %v11459_v21  ;;  %v11511_v58 = vld [vmem:[%s17590_s1 + $0x1c4] ss:$16 sps:$4 sm:$0xff]   ;;  %v11513_v59 = vld [vmem:[%s17590_s1 + $0x1cc] ss:$16 sps:$4 sm:$0xff]   ;;  %v11515_v60 = vld [vmem:[%s17590_s1 + $0x1c0] ss:$16 sps:$4 sm:$0xff]  }
  0x15   :  { %7523 = vmatprep.mubr.bf16.mxu0 %v9880_v48  ;;  %8302 = vmatprep.mubr.bf16.mxu1 %v9880_v48  ;;  %v11516_v61 = vld [vmem:[%s17590_s1 + $0x1c8] ss:$16 sps:$4 sm:$0xff]   ;;  %v11517_v62 = vld [vmem:[%s17590_s1 + $0x1e4] ss:$16 sps:$4 sm:$0xff]   ;;  %v11519_v63 = vld [vmem:[%s17590_s1 + $0x1ec] ss:$16 sps:$4 sm:$0xff]  }
  0x16   :  { %v11521_v0 = vld [vmem:[%s17590_s1 + $0x1e0] ss:$16 sps:$4 sm:$0xff]   ;;  %v11522_v1 = vld [vmem:[%s17590_s1 + $0x1e8] ss:$16 sps:$4 sm:$0xff]   ;;  %v11527_v2 = vld [vmem:[%s17590_s1 + $0x204] ss:$16 sps:$4 sm:$0xff]  }
  0x17   :  { %7502 = vmatpush1.bf16.msra.mxu0 %v11461_v22  ;;  %8281 = vmatpush1.bf16.msra.mxu1 %v11462_v23  ;;  %v11530_v3 = vld [vmem:[%s17590_s1 + $0x20c] ss:$16 sps:$4 sm:$0xff]   ;;  %v11525_v5 = vld [vmem:[%s17590_s1 + $0x200] ss:$16 sps:$4 sm:$0xff]   ;;  %v11528_v6 = vld [vmem:[%s17590_s1 + $0x208] ss:$16 sps:$4 sm:$0xff]  }
  0x18   :  { %7503 = vmatprep.subr.bf16.mxu0 %v11463_v24  ;;  %8282 = vmatprep.subr.bf16.mxu1 %v11465_v25  ;;  %v11533_v7 = vld [vmem:[%s17590_s1 + $0x224] ss:$16 sps:$4 sm:$0xff]   ;;  %v11536_v8 = vld [vmem:[%s17590_s1 + $0x22c] ss:$16 sps:$4 sm:$0xff]   ;;  %v11531_v9 = vld [vmem:[%s17590_s1 + $0x220] ss:$16 sps:$4 sm:$0xff]  }
  0x19   :  { %v11534_v10 = vld [vmem:[%s17590_s1 + $0x228] ss:$16 sps:$4 sm:$0xff]   ;;  %v11539_v11 = vld [vmem:[%s17590_s1 + $0x244] ss:$16 sps:$4 sm:$0xff]   ;;  %v11542_v12 = vld [vmem:[%s17590_s1 + $0x24c] ss:$16 sps:$4 sm:$0xff]  }
  0x1a   :  { %v11537_v13 = vld [vmem:[%s17590_s1 + $0x240] ss:$16 sps:$4 sm:$0xff]   ;;  %v11540_v14 = vld [vmem:[%s17590_s1 + $0x248] ss:$16 sps:$4 sm:$0xff]   ;;  %v11545_v15 = vld [vmem:[%s17590_s1 + $0x264] ss:$16 sps:$4 sm:$0xff]  }
  0x1b   :  { %7504 = vmatpush1.bf16.msra.mxu0 %v11467_v26  ;;  %8283 = vmatpush1.bf16.msra.mxu1 %v11468_v27  ;;  %v11548_v16 = vld [vmem:[%s17590_s1 + $0x26c] ss:$16 sps:$4 sm:$0xff]   ;;  %v11543_v17 = vld [vmem:[%s17590_s1 + $0x260] ss:$16 sps:$4 sm:$0xff]   ;;  %v11546_v18 = vld [vmem:[%s17590_s1 + $0x268] ss:$16 sps:$4 sm:$0xff]  }
  0x1c   :  { %7505 = vmatprep.subr.bf16.mxu0 %v11469_v28  ;;  %8284 = vmatprep.subr.bf16.mxu1 %v11471_v29  ;;  %v11551_v19 = vld [vmem:[%s17590_s1 + $0x284] ss:$16 sps:$4 sm:$0xff]   ;;  %v11554_v20 = vld [vmem:[%s17590_s1 + $0x28c] ss:$16 sps:$4 sm:$0xff]   ;;  %v11549_v21 = vld [vmem:[%s17590_s1 + $0x280] ss:$16 sps:$4 sm:$0xff]  }
  0x1d   :  { %v11552_v22 = vld [vmem:[%s17590_s1 + $0x288] ss:$16 sps:$4 sm:$0xff]   ;;  %v11557_v23 = vld [vmem:[%s17590_s1 + $0x2a4] ss:$16 sps:$4 sm:$0xff]   ;;  %v11560_v24 = vld [vmem:[%s17590_s1 + $0x2ac] ss:$16 sps:$4 sm:$0xff]  }
  0x1e   :  { %v11555_v25 = vld [vmem:[%s17590_s1 + $0x2a0] ss:$16 sps:$4 sm:$0xff]   ;;  %v11558_v26 = vld [vmem:[%s17590_s1 + $0x2a8] ss:$16 sps:$4 sm:$0xff]   ;;  %v11563_v27 = vld [vmem:[%s17590_s1 + $0x2c4] ss:$16 sps:$4 sm:$0xff]  }
  0x1f   :  { %7506 = vmatpush1.bf16.msra.mxu0 %v11473_v30  ;;  %8285 = vmatpush1.bf16.msra.mxu1 %v11474_v31  ;;  %v11566_v28 = vld [vmem:[%s17590_s1 + $0x2cc] ss:$16 sps:$4 sm:$0xff]   ;;  %v11561_v31 = vld [vmem:[%s17590_s1 + $0x2c0] ss:$16 sps:$4 sm:$0xff]   ;;  %v11588_v48 = vld [vmem:[%s17590_s1 + $0x348] ss:$16 sps:$4 sm:$0xff]  }
  0x20   :  { %7507 = vmatprep.subr.bf16.mxu0 %v11475_v32  ;;  %8286 = vmatprep.subr.bf16.mxu1 %v11477_v33  ;;  %v13723_v29 = vld [vmem:[%s17591_s0 + $0x8] sm:$0xff]  ;;  %v11569_v33 = vld [vmem:[%s17590_s1 + $0x2e4] ss:$16 sps:$4 sm:$0xff]  }
  0x21   :  { %v9882_v30 = vcombine.high %v13723_v29, %v13723_v29  ;;  %v11564_v32 = vld [vmem:[%s17590_s1 + $0x2c8] ss:$16 sps:$4 sm:$0xff]   ;;  %v11590_v46 = vld [vmem:[%s17590_s1 + $0x34c] ss:$16 sps:$4 sm:$0xff]  }
  0x23   :  { %7508 = vmatpush1.bf16.msra.mxu0 %v11479_v34  ;;  %8287 = vmatpush1.bf16.msra.mxu1 %v11480_v35  ;;  %v11572_v34 = vld [vmem:[%s17590_s1 + $0x2ec] ss:$16 sps:$4 sm:$0xff]   ;;  %v11567_v35 = vld [vmem:[%s17590_s1 + $0x2e0] ss:$16 sps:$4 sm:$0xff]  }
  0x24   :  { %7509 = vmatprep.subr.bf16.mxu0 %v11481_v36  ;;  %8288 = vmatprep.subr.bf16.mxu1 %v11483_v37  ;;  %v11570_v36 = vld [vmem:[%s17590_s1 + $0x2e8] ss:$16 sps:$4 sm:$0xff]   ;;  %v11575_v37 = vld [vmem:[%s17590_s1 + $0x304] ss:$16 sps:$4 sm:$0xff]  }
  0x27   :  { %7510 = vmatpush1.bf16.msra.mxu0 %v11485_v38  ;;  %8289 = vmatpush1.bf16.msra.mxu1 %v11486_v39  ;;  %v11578_v38 = vld [vmem:[%s17590_s1 + $0x30c] ss:$16 sps:$4 sm:$0xff]   ;;  %v11573_v39 = vld [vmem:[%s17590_s1 + $0x300] ss:$16 sps:$4 sm:$0xff]  }
  0x28   :  { %7511 = vmatprep.subr.bf16.mxu0 %v11487_v40  ;;  %8290 = vmatprep.subr.bf16.mxu1 %v11489_v41  ;;  %v11576_v40 = vld [vmem:[%s17590_s1 + $0x308] ss:$16 sps:$4 sm:$0xff]   ;;  %v11581_v41 = vld [vmem:[%s17590_s1 + $0x324] ss:$16 sps:$4 sm:$0xff]  }
  0x2b   :  { %7512 = vmatpush1.bf16.msra.mxu0 %v11491_v42  ;;  %8291 = vmatpush1.bf16.msra.mxu1 %v11492_v43  ;;  %v11584_v42 = vld [vmem:[%s17590_s1 + $0x32c] ss:$16 sps:$4 sm:$0xff]   ;;  %v11579_v43 = vld [vmem:[%s17590_s1 + $0x320] ss:$16 sps:$4 sm:$0xff]  }
  0x2c   :  { %7513 = vmatprep.subr.bf16.mxu0 %v11493_v44  ;;  %8292 = vmatprep.subr.bf16.mxu1 %v11495_v45  ;;  %v11582_v44 = vld [vmem:[%s17590_s1 + $0x328] ss:$16 sps:$4 sm:$0xff]   ;;  %v11587_v45 = vld [vmem:[%s17590_s1 + $0x344] ss:$16 sps:$4 sm:$0xff]  }
  0x2f   :  { %7514 = vmatpush1.bf16.msra.mxu0 %v11497_v47  ;;  %8293 = vmatpush1.bf16.msra.mxu1 %v11498_v49  ;;  %v11585_v47 = vld [vmem:[%s17590_s1 + $0x340] ss:$16 sps:$4 sm:$0xff]   ;;  %v11593_v49 = vld [vmem:[%s17590_s1 + $0x364] ss:$16 sps:$4 sm:$0xff]  }
  0x30   :  { %7515 = vmatprep.subr.bf16.mxu0 %v11499_v50  ;;  %8294 = vmatprep.subr.bf16.mxu1 %v11501_v51  ;;  %v11596_v50 = vld [vmem:[%s17590_s1 + $0x36c] ss:$16 sps:$4 sm:$0xff]   ;;  %v11591_v51 = vld [vmem:[%s17590_s1 + $0x360] ss:$16 sps:$4 sm:$0xff]  }
  0x33   :  { %7516 = vmatpush1.bf16.msra.mxu0 %v11503_v52  ;;  %8295 = vmatpush1.bf16.msra.mxu1 %v11504_v53  ;;  %v11594_v52 = vld [vmem:[%s17590_s1 + $0x368] ss:$16 sps:$4 sm:$0xff]   ;;  %v11599_v53 = vld [vmem:[%s17590_s1 + $0x384] ss:$16 sps:$4 sm:$0xff]  }
  0x34   :  { %7517 = vmatprep.subr.bf16.mxu0 %v11505_v54  ;;  %8296 = vmatprep.subr.bf16.mxu1 %v11507_v55  ;;  %v11602_v54 = vld [vmem:[%s17590_s1 + $0x38c] ss:$16 sps:$4 sm:$0xff]   ;;  %v11597_v55 = vld [vmem:[%s17590_s1 + $0x380] ss:$16 sps:$4 sm:$0xff]  }
  0x37   :  { %7518 = vmatpush1.bf16.msra.mxu0 %v11509_v56  ;;  %8297 = vmatpush1.bf16.msra.mxu1 %v11510_v57  ;;  %v11600_v56 = vld [vmem:[%s17590_s1 + $0x388] ss:$16 sps:$4 sm:$0xff]   ;;  %v11605_v57 = vld [vmem:[%s17590_s1 + $0x3a4] ss:$16 sps:$4 sm:$0xff]  }
  0x38   :  { %7519 = vmatprep.subr.bf16.mxu0 %v11511_v58  ;;  %8298 = vmatprep.subr.bf16.mxu1 %v11513_v59  ;;  %v11608_v58 = vld [vmem:[%s17590_s1 + $0x3ac] ss:$16 sps:$4 sm:$0xff]   ;;  %v11603_v59 = vld [vmem:[%s17590_s1 + $0x3a0] ss:$16 sps:$4 sm:$0xff]  }
  0x3b   :  { %7520 = vmatpush1.bf16.msra.mxu0 %v11515_v60  ;;  %8299 = vmatpush1.bf16.msra.mxu1 %v11516_v61  ;;  %v11606_v60 = vld [vmem:[%s17590_s1 + $0x3a8] ss:$16 sps:$4 sm:$0xff]   ;;  %v11611_v61 = vld [vmem:[%s17590_s1 + $0x3c4] ss:$16 sps:$4 sm:$0xff]  }
  0x3c   :  { %7521 = vmatprep.subr.bf16.mxu0 %v11517_v62  ;;  %8300 = vmatprep.subr.bf16.mxu1 %v11519_v63  ;;  %v11614_v62 = vld [vmem:[%s17590_s1 + $0x3cc] ss:$16 sps:$4 sm:$0xff]   ;;  %v11609_v63 = vld [vmem:[%s17590_s1 + $0x3c0] ss:$16 sps:$4 sm:$0xff]  }
  0x3f   :  { %7522 = vmatpush1.bf16.msra.mxu0 %v11521_v0  ;;  %8301 = vmatpush1.bf16.msra.mxu1 %v11522_v1  ;;  %v11612_v0 = vld [vmem:[%s17590_s1 + $0x3c8] ss:$16 sps:$4 sm:$0xff]   ;;  %v11617_v1 = vld [vmem:[%s17590_s1 + $0x3e4] ss:$16 sps:$4 sm:$0xff]  }
  0x40   :  { %7532 = vmatprep.subr.bf16.mxu0 %v11527_v2  ;;  %8311 = vmatprep.subr.bf16.mxu1 %v11530_v3  ;;  %v11620_v2 = vld [vmem:[%s17590_s1 + $0x3ec] ss:$16 sps:$4 sm:$0xff]   ;;  %v11615_v3 = vld [vmem:[%s17590_s1 + $0x3e0] ss:$16 sps:$4 sm:$0xff]  }
  0x42   :  { %7524 = vmatmul.mubr.bf16.vlgmr.msra.gmra.mrb[0].mxu0 %v9879_v4  ;;  %8303 = vmatmul.mubr.bf16.vlgmr.msra.gmra.mrb[0].mxu1 %v9879_v4  ;;  %v11618_v4 = vld [vmem:[%s17590_s1 + $0x3e8] ss:$16 sps:$4 sm:$0xff]  }
  0x43   :  { %7533 = vmatpush1.bf16.msra.mxu0 %v11525_v5  ;;  %8312 = vmatpush1.bf16.msra.mxu1 %v11528_v6  ;;  %v11625_v5 = vld [vmem:[%s17590_s1 + $0x404] ss:$16 sps:$4 sm:$0xff]   ;;  %v11628_v6 = vld [vmem:[%s17590_s1 + $0x40c] ss:$16 sps:$4 sm:$0xff]  }
  0x44   :  { %7534 = vmatprep.subr.bf16.mxu0 %v11533_v7  ;;  %8313 = vmatprep.subr.bf16.mxu1 %v11536_v8  ;;  %v9881_v7 = vcombine.low %v13723_v29, %v13723_v29  ;;  %v11623_v8 = vld [vmem:[%s17590_s1 + $0x400] ss:$16 sps:$4 sm:$0xff]   ;;  %v11658_v29 = vld [vmem:[%s17590_s1 + $0x4ac] ss:$16 sps:$4 sm:$0xff]  }
  0x45   :  { %7564 = vmatprep.mubr.bf16.mxu0 %v9882_v30  ;;  %8343 = vmatprep.mubr.bf16.mxu1 %v9882_v30  ;;  %v11653_v30 = vld [vmem:[%s17590_s1 + $0x4a0] ss:$16 sps:$4 sm:$0xff]  }
  0x47   :  { %7535 = vmatpush1.bf16.msra.mxu0 %v11531_v9  ;;  %8314 = vmatpush1.bf16.msra.mxu1 %v11534_v10  ;;  %v11626_v9 = vld [vmem:[%s17590_s1 + $0x408] ss:$16 sps:$4 sm:$0xff]   ;;  %v11631_v10 = vld [vmem:[%s17590_s1 + $0x424] ss:$16 sps:$4 sm:$0xff]  }
  0x48   :  { %7536 = vmatprep.subr.bf16.mxu0 %v11539_v11  ;;  %8315 = vmatprep.subr.bf16.mxu1 %v11542_v12  ;;  %v13861_v11 = vld [vmem:[%s17591_s0 + $0x10] sm:$0xff]  ;;  %v11634_v12 = vld [vmem:[%s17590_s1 + $0x42c] ss:$16 sps:$4 sm:$0xff]  }
  0x4b   :  { %7537 = vmatpush1.bf16.msra.mxu0 %v11537_v13  ;;  %8316 = vmatpush1.bf16.msra.mxu1 %v11540_v14  ;;  %v9884_v13 = vcombine.high %v13861_v11, %v13861_v11  ;;  %v11629_v14 = vld [vmem:[%s17590_s1 + $0x420] ss:$16 sps:$4 sm:$0xff]  }
  0x4c   :  { %7538 = vmatprep.subr.bf16.mxu0 %v11545_v15  ;;  %8317 = vmatprep.subr.bf16.mxu1 %v11548_v16  ;;  %v11632_v15 = vld [vmem:[%s17590_s1 + $0x428] ss:$16 sps:$4 sm:$0xff]   ;;  %v11637_v16 = vld [vmem:[%s17590_s1 + $0x444] ss:$16 sps:$4 sm:$0xff]  }
  0x4f   :  { %7539 = vmatpush1.bf16.msra.mxu0 %v11543_v17  ;;  %8318 = vmatpush1.bf16.msra.mxu1 %v11546_v18  ;;  %v11640_v17 = vld [vmem:[%s17590_s1 + $0x44c] ss:$16 sps:$4 sm:$0xff]   ;;  %v11635_v18 = vld [vmem:[%s17590_s1 + $0x440] ss:$16 sps:$4 sm:$0xff]  }
  0x50   :  { %7540 = vmatprep.subr.bf16.mxu0 %v11551_v19  ;;  %8319 = vmatprep.subr.bf16.mxu1 %v11554_v20  ;;  %v11638_v19 = vld [vmem:[%s17590_s1 + $0x448] ss:$16 sps:$4 sm:$0xff]   ;;  %v11643_v20 = vld [vmem:[%s17590_s1 + $0x464] ss:$16 sps:$4 sm:$0xff]  }
  0x53   :  { %7541 = vmatpush1.bf16.msra.mxu0 %v11549_v21  ;;  %8320 = vmatpush1.bf16.msra.mxu1 %v11552_v22  ;;  %v11646_v21 = vld [vmem:[%s17590_s1 + $0x46c] ss:$16 sps:$4 sm:$0xff]   ;;  %v11641_v22 = vld [vmem:[%s17590_s1 + $0x460] ss:$16 sps:$4 sm:$0xff]  }
  0x54   :  { %7542 = vmatprep.subr.bf16.mxu0 %v11557_v23  ;;  %8321 = vmatprep.subr.bf16.mxu1 %v11560_v24  ;;  %v11644_v23 = vld [vmem:[%s17590_s1 + $0x468] ss:$16 sps:$4 sm:$0xff]   ;;  %v11649_v24 = vld [vmem:[%s17590_s1 + $0x484] ss:$16 sps:$4 sm:$0xff]  }
  0x57   :  { %7543 = vmatpush1.bf16.msra.mxu0 %v11555_v25  ;;  %8322 = vmatpush1.bf16.msra.mxu1 %v11558_v26  ;;  %v11652_v25 = vld [vmem:[%s17590_s1 + $0x48c] ss:$16 sps:$4 sm:$0xff]   ;;  %v11647_v26 = vld [vmem:[%s17590_s1 + $0x480] ss:$16 sps:$4 sm:$0xff]  }
  0x58   :  { %7544 = vmatprep.subr.bf16.mxu0 %v11563_v27  ;;  %8323 = vmatprep.subr.bf16.mxu1 %v11566_v28  ;;  %v11650_v27 = vld [vmem:[%s17590_s1 + $0x488] ss:$16 sps:$4 sm:$0xff]   ;;  %v11655_v28 = vld [vmem:[%s17590_s1 + $0x4a4] ss:$16 sps:$4 sm:$0xff]  }
  0x5b   :  { %7545 = vmatpush1.bf16.msra.mxu0 %v11561_v31  ;;  %8324 = vmatpush1.bf16.msra.mxu1 %v11564_v32  ;;  %v11656_v31 = vld [vmem:[%s17590_s1 + $0x4a8] ss:$16 sps:$4 sm:$0xff]   ;;  %v11661_v32 = vld [vmem:[%s17590_s1 + $0x4c4] ss:$16 sps:$4 sm:$0xff]  }
  0x5c   :  { %7546 = vmatprep.subr.bf16.mxu0 %v11569_v33  ;;  %8325 = vmatprep.subr.bf16.mxu1 %v11572_v34  ;;  %v11664_v33 = vld [vmem:[%s17590_s1 + $0x4cc] ss:$16 sps:$4 sm:$0xff]   ;;  %v11659_v34 = vld [vmem:[%s17590_s1 + $0x4c0] ss:$16 sps:$4 sm:$0xff]  }
  0x5f   :  { %7547 = vmatpush1.bf16.msra.mxu0 %v11567_v35  ;;  %8326 = vmatpush1.bf16.msra.mxu1 %v11570_v36  ;;  %v11662_v35 = vld [vmem:[%s17590_s1 + $0x4c8] ss:$16 sps:$4 sm:$0xff]   ;;  %v11667_v36 = vld [vmem:[%s17590_s1 + $0x4e4] ss:$16 sps:$4 sm:$0xff]  }
  0x60   :  { %7548 = vmatprep.subr.bf16.mxu0 %v11575_v37  ;;  %8327 = vmatprep.subr.bf16.mxu1 %v11578_v38  ;;  %v11670_v37 = vld [vmem:[%s17590_s1 + $0x4ec] ss:$16 sps:$4 sm:$0xff]   ;;  %v11665_v38 = vld [vmem:[%s17590_s1 + $0x4e0] ss:$16 sps:$4 sm:$0xff]  }
  0x63   :  { %7549 = vmatpush1.bf16.msra.mxu0 %v11573_v39  ;;  %8328 = vmatpush1.bf16.msra.mxu1 %v11576_v40  ;;  %v11668_v39 = vld [vmem:[%s17590_s1 + $0x4e8] ss:$16 sps:$4 sm:$0xff]   ;;  %v11673_v40 = vld [vmem:[%s17590_s1 + $0x504] ss:$16 sps:$4 sm:$0xff]  }
  0x64   :  { %7550 = vmatprep.subr.bf16.mxu0 %v11581_v41  ;;  %8329 = vmatprep.subr.bf16.mxu1 %v11584_v42  ;;  %v11676_v41 = vld [vmem:[%s17590_s1 + $0x50c] ss:$16 sps:$4 sm:$0xff]   ;;  %v11671_v42 = vld [vmem:[%s17590_s1 + $0x500] ss:$16 sps:$4 sm:$0xff]  }
  0x67   :  { %7551 = vmatpush1.bf16.msra.mxu0 %v11579_v43  ;;  %8330 = vmatpush1.bf16.msra.mxu1 %v11582_v44  ;;  %v11674_v43 = vld [vmem:[%s17590_s1 + $0x508] ss:$16 sps:$4 sm:$0xff]   ;;  %v11679_v44 = vld [vmem:[%s17590_s1 + $0x524] ss:$16 sps:$4 sm:$0xff]  }
  0x68   :  { %7552 = vmatprep.subr.bf16.mxu0 %v11587_v45  ;;  %8331 = vmatprep.subr.bf16.mxu1 %v11590_v46  ;;  %v11682_v45 = vld [vmem:[%s17590_s1 + $0x52c] ss:$16 sps:$4 sm:$0xff]   ;;  %v11677_v46 = vld [vmem:[%s17590_s1 + $0x520] ss:$16 sps:$4 sm:$0xff]  }
  0x6b   :  { %7553 = vmatpush1.bf16.msra.mxu0 %v11585_v47  ;;  %8332 = vmatpush1.bf16.msra.mxu1 %v11588_v48  ;;  %v11680_v47 = vld [vmem:[%s17590_s1 + $0x528] ss:$16 sps:$4 sm:$0xff]   ;;  %v11685_v48 = vld [vmem:[%s17590_s1 + $0x544] ss:$16 sps:$4 sm:$0xff]  }
  0x6c   :  { %7554 = vmatprep.subr.bf16.mxu0 %v11593_v49  ;;  %8333 = vmatprep.subr.bf16.mxu1 %v11596_v50  ;;  %v11688_v49 = vld [vmem:[%s17590_s1 + $0x54c] ss:$16 sps:$4 sm:$0xff]   ;;  %v11683_v50 = vld [vmem:[%s17590_s1 + $0x540] ss:$16 sps:$4 sm:$0xff]  }
  0x6f   :  { %7555 = vmatpush1.bf16.msra.mxu0 %v11591_v51  ;;  %8334 = vmatpush1.bf16.msra.mxu1 %v11594_v52  ;;  %v11686_v51 = vld [vmem:[%s17590_s1 + $0x548] ss:$16 sps:$4 sm:$0xff]   ;;  %v11691_v52 = vld [vmem:[%s17590_s1 + $0x564] ss:$16 sps:$4 sm:$0xff]  }
  0x70   :  { %7556 = vmatprep.subr.bf16.mxu0 %v11599_v53  ;;  %8335 = vmatprep.subr.bf16.mxu1 %v11602_v54  ;;  %v11694_v53 = vld [vmem:[%s17590_s1 + $0x56c] ss:$16 sps:$4 sm:$0xff]   ;;  %v11689_v54 = vld [vmem:[%s17590_s1 + $0x560] ss:$16 sps:$4 sm:$0xff]  }
  0x73   :  { %7557 = vmatpush1.bf16.msra.mxu0 %v11597_v55  ;;  %8336 = vmatpush1.bf16.msra.mxu1 %v11600_v56  ;;  %v11692_v55 = vld [vmem:[%s17590_s1 + $0x568] ss:$16 sps:$4 sm:$0xff]   ;;  %v11697_v56 = vld [vmem:[%s17590_s1 + $0x584] ss:$16 sps:$4 sm:$0xff]  }
  0x74   :  { %7558 = vmatprep.subr.bf16.mxu0 %v11605_v57  ;;  %8337 = vmatprep.subr.bf16.mxu1 %v11608_v58  ;;  %v11700_v57 = vld [vmem:[%s17590_s1 + $0x58c] ss:$16 sps:$4 sm:$0xff]   ;;  %v11695_v58 = vld [vmem:[%s17590_s1 + $0x580] ss:$16 sps:$4 sm:$0xff]  }
  0x77   :  { %7559 = vmatpush1.bf16.msra.mxu0 %v11603_v59  ;;  %8338 = vmatpush1.bf16.msra.mxu1 %v11606_v60  ;;  %v11698_v59 = vld [vmem:[%s17590_s1 + $0x588] ss:$16 sps:$4 sm:$0xff]   ;;  %v11703_v60 = vld [vmem:[%s17590_s1 + $0x5a4] ss:$16 sps:$4 sm:$0xff]  }
  0x78   :  { %7560 = vmatprep.subr.bf16.mxu0 %v11611_v61  ;;  %8339 = vmatprep.subr.bf16.mxu1 %v11614_v62  ;;  %v11706_v61 = vld [vmem:[%s17590_s1 + $0x5ac] ss:$16 sps:$4 sm:$0xff]   ;;  %v11701_v62 = vld [vmem:[%s17590_s1 + $0x5a0] ss:$16 sps:$4 sm:$0xff]  }
  0x7b   :  { %7561 = vmatpush1.bf16.msra.mxu0 %v11609_v63  ;;  %8340 = vmatpush1.bf16.msra.mxu1 %v11612_v0  ;;  %v11704_v63 = vld [vmem:[%s17590_s1 + $0x5a8] ss:$16 sps:$4 sm:$0xff]   ;;  %v11709_v0 = vld [vmem:[%s17590_s1 + $0x5c4] ss:$16 sps:$4 sm:$0xff]  }
  0x7c   :  { %7562 = vmatprep.subr.bf16.mxu0 %v11617_v1  ;;  %8341 = vmatprep.subr.bf16.mxu1 %v11620_v2  ;;  %v11712_v1 = vld [vmem:[%s17590_s1 + $0x5cc] ss:$16 sps:$4 sm:$0xff]   ;;  %v11707_v2 = vld [vmem:[%s17590_s1 + $0x5c0] ss:$16 sps:$4 sm:$0xff]  }
  0x7f   :  { %7563 = vmatpush1.bf16.msra.mxu0 %v11615_v3  ;;  %8342 = vmatpush1.bf16.msra.mxu1 %v11618_v4  ;;  %v11710_v3 = vld [vmem:[%s17590_s1 + $0x5c8] ss:$16 sps:$4 sm:$0xff]   ;;  %v11715_v4 = vld [vmem:[%s17590_s1 + $0x5e4] ss:$16 sps:$4 sm:$0xff]  }
  0x80   :  { %7573 = vmatprep.subr.bf16.mxu0 %v11625_v5  ;;  %8352 = vmatprep.subr.bf16.mxu1 %v11628_v6  ;;  %v11718_v5 = vld [vmem:[%s17590_s1 + $0x5ec] ss:$16 sps:$4 sm:$0xff]   ;;  %v11713_v6 = vld [vmem:[%s17590_s1 + $0x5e0] ss:$16 sps:$4 sm:$0xff]  }
  0x82   :  { %7565 = vmatmul.mubr.bf16.vlgmr.msra.gmra.mrb[0].mxu0 %v9881_v7  ;;  %8344 = vmatmul.mubr.bf16.vlgmr.msra.gmra.mrb[0].mxu1 %v9881_v7  ;;  %v11716_v7 = vld [vmem:[%s17590_s1 + $0x5e8] ss:$16 sps:$4 sm:$0xff]  }
  0x83   :  { %7574 = vmatpush1.bf16.msra.mxu0 %v11623_v8  ;;  %8353 = vmatpush1.bf16.msra.mxu1 %v11626_v9  ;;  %v11723_v8 = vld [vmem:[%s17590_s1 + $0x604] ss:$16 sps:$4 sm:$0xff]   ;;  %v11726_v9 = vld [vmem:[%s17590_s1 + $0x60c] ss:$16 sps:$4 sm:$0xff]  }
  0x84   :  { %7575 = vmatprep.subr.bf16.mxu0 %v11631_v10  ;;  %8354 = vmatprep.subr.bf16.mxu1 %v11634_v12  ;;  %v11721_v10 = vld [vmem:[%s17590_s1 + $0x600] ss:$16 sps:$4 sm:$0xff]   ;;  %v9883_v12 = vcombine.low %v13861_v11, %v13861_v11  ;;  %v11732_v11 = vld [vmem:[%s17590_s1 + $0x62c] ss:$16 sps:$4 sm:$0xff]  }
  0x85   :  { %7605 = vmatprep.mubr.bf16.mxu0 %v9884_v13  ;;  %8384 = vmatprep.mubr.bf16.mxu1 %v9884_v13  ;;  %v11724_v13 = vld [vmem:[%s17590_s1 + $0x608] ss:$16 sps:$4 sm:$0xff]  }
  0x87   :  { %7576 = vmatpush1.bf16.msra.mxu0 %v11629_v14  ;;  %8355 = vmatpush1.bf16.msra.mxu1 %v11632_v15  ;;  %v14059_v14 = vld [vmem:[%s17591_s0 + $0x18] sm:$0xff]  ;;  %v11729_v15 = vld [vmem:[%s17590_s1 + $0x624] ss:$16 sps:$4 sm:$0xff]  }
  0x88   :  { %7577 = vmatprep.subr.bf16.mxu0 %v11637_v16  ;;  %8356 = vmatprep.subr.bf16.mxu1 %v11640_v17  ;;  %v9886_v16 = vcombine.high %v14059_v14, %v14059_v14  ;;  %v11727_v17 = vld [vmem:[%s17590_s1 + $0x620] ss:$16 sps:$4 sm:$0xff]  }
  0x8b   :  { %7578 = vmatpush1.bf16.msra.mxu0 %v11635_v18  ;;  %8357 = vmatpush1.bf16.msra.mxu1 %v11638_v19  ;;  %v11730_v18 = vld [vmem:[%s17590_s1 + $0x628] ss:$16 sps:$4 sm:$0xff]   ;;  %v11735_v19 = vld [vmem:[%s17590_s1 + $0x644] ss:$16 sps:$4 sm:$0xff]  }
  0x8c   :  { %7579 = vmatprep.subr.bf16.mxu0 %v11643_v20  ;;  %8358 = vmatprep.subr.bf16.mxu1 %v11646_v21  ;;  %v11738_v20 = vld [vmem:[%s17590_s1 + $0x64c] ss:$16 sps:$4 sm:$0xff]   ;;  %v11733_v21 = vld [vmem:[%s17590_s1 + $0x640] ss:$16 sps:$4 sm:$0xff]  }
  0x8f   :  { %7580 = vmatpush1.bf16.msra.mxu0 %v11641_v22  ;;  %8359 = vmatpush1.bf16.msra.mxu1 %v11644_v23  ;;  %v11736_v22 = vld [vmem:[%s17590_s1 + $0x648] ss:$16 sps:$4 sm:$0xff]   ;;  %v11741_v23 = vld [vmem:[%s17590_s1 + $0x664] ss:$16 sps:$4 sm:$0xff]  }
  0x90   :  { %7581 = vmatprep.subr.bf16.mxu0 %v11649_v24  ;;  %8360 = vmatprep.subr.bf16.mxu1 %v11652_v25  ;;  %v11744_v24 = vld [vmem:[%s17590_s1 + $0x66c] ss:$16 sps:$4 sm:$0xff]   ;;  %v11739_v25 = vld [vmem:[%s17590_s1 + $0x660] ss:$16 sps:$4 sm:$0xff]  }
  0x93   :  { %7582 = vmatpush1.bf16.msra.mxu0 %v11647_v26  ;;  %8361 = vmatpush1.bf16.msra.mxu1 %v11650_v27  ;;  %v11742_v26 = vld [vmem:[%s17590_s1 + $0x668] ss:$16 sps:$4 sm:$0xff]   ;;  %v11747_v27 = vld [vmem:[%s17590_s1 + $0x684] ss:$16 sps:$4 sm:$0xff]  }
  0x94   :  { %7583 = vmatprep.subr.bf16.mxu0 %v11655_v28  ;;  %8362 = vmatprep.subr.bf16.mxu1 %v11658_v29  ;;  %v11750_v28 = vld [vmem:[%s17590_s1 + $0x68c] ss:$16 sps:$4 sm:$0xff]   ;;  %v11745_v29 = vld [vmem:[%s17590_s1 + $0x680] ss:$16 sps:$4 sm:$0xff]  }
  0x97   :  { %7584 = vmatpush1.bf16.msra.mxu0 %v11653_v30  ;;  %8363 = vmatpush1.bf16.msra.mxu1 %v11656_v31  ;;  %v11748_v30 = vld [vmem:[%s17590_s1 + $0x688] ss:$16 sps:$4 sm:$0xff]   ;;  %v11753_v31 = vld [vmem:[%s17590_s1 + $0x6a4] ss:$16 sps:$4 sm:$0xff]  }
  0x98   :  { %7585 = vmatprep.subr.bf16.mxu0 %v11661_v32  ;;  %8364 = vmatprep.subr.bf16.mxu1 %v11664_v33  ;;  %v11756_v32 = vld [vmem:[%s17590_s1 + $0x6ac] ss:$16 sps:$4 sm:$0xff]   ;;  %v11751_v33 = vld [vmem:[%s17590_s1 + $0x6a0] ss:$16 sps:$4 sm:$0xff]  }
  0x9b   :  { %7586 = vmatpush1.bf16.msra.mxu0 %v11659_v34  ;;  %8365 = vmatpush1.bf16.msra.mxu1 %v11662_v35  ;;  %v11754_v34 = vld [vmem:[%s17590_s1 + $0x6a8] ss:$16 sps:$4 sm:$0xff]   ;;  %v11759_v35 = vld [vmem:[%s17590_s1 + $0x6c4] ss:$16 sps:$4 sm:$0xff]  }
  0x9c   :  { %7587 = vmatprep.subr.bf16.mxu0 %v11667_v36  ;;  %8366 = vmatprep.subr.bf16.mxu1 %v11670_v37  ;;  %v11762_v36 = vld [vmem:[%s17590_s1 + $0x6cc] ss:$16 sps:$4 sm:$0xff]   ;;  %v11757_v37 = vld [vmem:[%s17590_s1 + $0x6c0] ss:$16 sps:$4 sm:$0xff]  }
  0x9f   :  { %7588 = vmatpush1.bf16.msra.mxu0 %v11665_v38  ;;  %8367 = vmatpush1.bf16.msra.mxu1 %v11668_v39  ;;  %v11760_v38 = vld [vmem:[%s17590_s1 + $0x6c8] ss:$16 sps:$4 sm:$0xff]   ;;  %v11765_v39 = vld [vmem:[%s17590_s1 + $0x6e4] ss:$16 sps:$4 sm:$0xff]  }
  0xa0   :  { %7589 = vmatprep.subr.bf16.mxu0 %v11673_v40  ;;  %8368 = vmatprep.subr.bf16.mxu1 %v11676_v41  ;;  %v11768_v40 = vld [vmem:[%s17590_s1 + $0x6ec] ss:$16 sps:$4 sm:$0xff]   ;;  %v11763_v41 = vld [vmem:[%s17590_s1 + $0x6e0] ss:$16 sps:$4 sm:$0xff]  }
  0xa3   :  { %7590 = vmatpush1.bf16.msra.mxu0 %v11671_v42  ;;  %8369 = vmatpush1.bf16.msra.mxu1 %v11674_v43  ;;  %v11766_v42 = vld [vmem:[%s17590_s1 + $0x6e8] ss:$16 sps:$4 sm:$0xff]   ;;  %v11771_v43 = vld [vmem:[%s17590_s1 + $0x704] ss:$16 sps:$4 sm:$0xff]  }
  0xa4   :  { %7591 = vmatprep.subr.bf16.mxu0 %v11679_v44  ;;  %8370 = vmatprep.subr.bf16.mxu1 %v11682_v45  ;;  %v11774_v44 = vld [vmem:[%s17590_s1 + $0x70c] ss:$16 sps:$4 sm:$0xff]   ;;  %v11769_v45 = vld [vmem:[%s17590_s1 + $0x700] ss:$16 sps:$4 sm:$0xff]  }
  0xa7   :  { %7592 = vmatpush1.bf16.msra.mxu0 %v11677_v46  ;;  %8371 = vmatpush1.bf16.msra.mxu1 %v11680_v47  ;;  %v11772_v46 = vld [vmem:[%s17590_s1 + $0x708] ss:$16 sps:$4 sm:$0xff]   ;;  %v11777_v47 = vld [vmem:[%s17590_s1 + $0x724] ss:$16 sps:$4 sm:$0xff]  }
  0xa8   :  { %7593 = vmatprep.subr.bf16.mxu0 %v11685_v48  ;;  %8372 = vmatprep.subr.bf16.mxu1 %v11688_v49  ;;  %v11780_v48 = vld [vmem:[%s17590_s1 + $0x72c] ss:$16 sps:$4 sm:$0xff]   ;;  %v11775_v49 = vld [vmem:[%s17590_s1 + $0x720] ss:$16 sps:$4 sm:$0xff]  }
  0xab   :  { %7594 = vmatpush1.bf16.msra.mxu0 %v11683_v50  ;;  %8373 = vmatpush1.bf16.msra.mxu1 %v11686_v51  ;;  %v11778_v50 = vld [vmem:[%s17590_s1 + $0x728] ss:$16 sps:$4 sm:$0xff]   ;;  %v11783_v51 = vld [vmem:[%s17590_s1 + $0x744] ss:$16 sps:$4 sm:$0xff]  }
  0xac   :  { %7595 = vmatprep.subr.bf16.mxu0 %v11691_v52  ;;  %8374 = vmatprep.subr.bf16.mxu1 %v11694_v53  ;;  %v11786_v52 = vld [vmem:[%s17590_s1 + $0x74c] ss:$16 sps:$4 sm:$0xff]   ;;  %v11781_v53 = vld [vmem:[%s17590_s1 + $0x740] ss:$16 sps:$4 sm:$0xff]  }
  0xaf   :  { %7596 = vmatpush1.bf16.msra.mxu0 %v11689_v54  ;;  %8375 = vmatpush1.bf16.msra.mxu1 %v11692_v55  ;;  %v11784_v54 = vld [vmem:[%s17590_s1 + $0x748] ss:$16 sps:$4 sm:$0xff]   ;;  %v11789_v55 = vld [vmem:[%s17590_s1 + $0x764] ss:$16 sps:$4 sm:$0xff]  }
  0xb0   :  { %7597 = vmatprep.subr.bf16.mxu0 %v11697_v56  ;;  %8376 = vmatprep.subr.bf16.mxu1 %v11700_v57  ;;  %v11792_v56 = vld [vmem:[%s17590_s1 + $0x76c] ss:$16 sps:$4 sm:$0xff]   ;;  %v11787_v57 = vld [vmem:[%s17590_s1 + $0x760] ss:$16 sps:$4 sm:$0xff]  }
  0xb3   :  { %7598 = vmatpush1.bf16.msra.mxu0 %v11695_v58  ;;  %8377 = vmatpush1.bf16.msra.mxu1 %v11698_v59  ;;  %v11790_v58 = vld [vmem:[%s17590_s1 + $0x768] ss:$16 sps:$4 sm:$0xff]   ;;  %v11795_v59 = vld [vmem:[%s17590_s1 + $0x784] ss:$16 sps:$4 sm:$0xff]  }
  0xb4   :  { %7599 = vmatprep.subr.bf16.mxu0 %v11703_v60  ;;  %8378 = vmatprep.subr.bf16.mxu1 %v11706_v61  ;;  %v11798_v60 = vld [vmem:[%s17590_s1 + $0x78c] ss:$16 sps:$4 sm:$0xff]   ;;  %v11793_v61 = vld [vmem:[%s17590_s1 + $0x780] ss:$16 sps:$4 sm:$0xff]  }
  0xb7   :  { %7600 = vmatpush1.bf16.msra.mxu0 %v11701_v62  ;;  %8379 = vmatpush1.bf16.msra.mxu1 %v11704_v63  ;;  %v11796_v62 = vld [vmem:[%s17590_s1 + $0x788] ss:$16 sps:$4 sm:$0xff]   ;;  %v11801_v63 = vld [vmem:[%s17590_s1 + $0x7a4] ss:$16 sps:$4 sm:$0xff]  }
  0xb8   :  { %7601 = vmatprep.subr.bf16.mxu0 %v11709_v0  ;;  %8380 = vmatprep.subr.bf16.mxu1 %v11712_v1  ;;  %v11804_v0 = vld [vmem:[%s17590_s1 + $0x7ac] ss:$16 sps:$4 sm:$0xff]   ;;  %v11799_v1 = vld [vmem:[%s17590_s1 + $0x7a0] ss:$16 sps:$4 sm:$0xff]  }
  0xbb   :  { %7602 = vmatpush1.bf16.msra.mxu0 %v11707_v2  ;;  %8381 = vmatpush1.bf16.msra.mxu1 %v11710_v3  ;;  %v11802_v2 = vld [vmem:[%s17590_s1 + $0x7a8] ss:$16 sps:$4 sm:$0xff]   ;;  %v11807_v3 = vld [vmem:[%s17590_s1 + $0x7c4] ss:$16 sps:$4 sm:$0xff]  }
  0xbc   :  { %7603 = vmatprep.subr.bf16.mxu0 %v11715_v4  ;;  %8382 = vmatprep.subr.bf16.mxu1 %v11718_v5  ;;  %v11810_v4 = vld [vmem:[%s17590_s1 + $0x7cc] ss:$16 sps:$4 sm:$0xff]   ;;  %v11805_v5 = vld [vmem:[%s17590_s1 + $0x7c0] ss:$16 sps:$4 sm:$0xff]  }
  0xbf   :  { %7604 = vmatpush1.bf16.msra.mxu0 %v11713_v6  ;;  %8383 = vmatpush1.bf16.msra.mxu1 %v11716_v7  ;;  %v11808_v6 = vld [vmem:[%s17590_s1 + $0x7c8] ss:$16 sps:$4 sm:$0xff]   ;;  %v11813_v7 = vld [vmem:[%s17590_s1 + $0x7e4] ss:$16 sps:$4 sm:$0xff]  }
  0xc0   :  { %7614 = vmatprep.subr.bf16.mxu0 %v11723_v8  ;;  %8393 = vmatprep.subr.bf16.mxu1 %v11726_v9  ;;  %v11816_v8 = vld [vmem:[%s17590_s1 + $0x7ec] ss:$16 sps:$4 sm:$0xff]   ;;  %v11811_v9 = vld [vmem:[%s17590_s1 + $0x7e0] ss:$16 sps:$4 sm:$0xff]  }
  0xc2   :  { %7606 = vmatmul.mubr.bf16.vlgmr.msra.gmra.mrb[0].mxu0 %v9883_v12  ;;  %8385 = vmatmul.mubr.bf16.vlgmr.msra.gmra.mrb[0].mxu1 %v9883_v12  ;;  %v11821_v12 = vld [vmem:[%s17590_s1 + $0x804] ss:$16 sps:$4 sm:$0xff]  }
  0xc3   :  { %7615 = vmatpush1.bf16.msra.mxu0 %v11721_v10  ;;  %8394 = vmatpush1.bf16.msra.mxu1 %v11724_v13  ;;  %v11814_v10 = vld [vmem:[%s17590_s1 + $0x7e8] ss:$16 sps:$4 sm:$0xff]   ;;  %v11824_v13 = vld [vmem:[%s17590_s1 + $0x80c] ss:$16 sps:$4 sm:$0xff]  }
  0xc4   :  { %7616 = vmatprep.subr.bf16.mxu0 %v11729_v15  ;;  %8395 = vmatprep.subr.bf16.mxu1 %v11732_v11  ;;  %v11819_v15 = vld [vmem:[%s17590_s1 + $0x800] ss:$16 sps:$4 sm:$0xff]   ;;  %v9885_v11 = vcombine.low %v14059_v14, %v14059_v14  ;;  %v11830_v14 = vld [vmem:[%s17590_s1 + $0x82c] ss:$16 sps:$4 sm:$0xff]  }
  0xc5   :  { %7646 = vmatprep.mubr.bf16.mxu0 %v9886_v16  ;;  %8425 = vmatprep.mubr.bf16.mxu1 %v9886_v16  ;;  %v14257_v16 = vld [vmem:[%s17591_s0 + $0x20] sm:$0xff] }
  0xc7   :  { %7617 = vmatpush1.bf16.msra.mxu0 %v11727_v17  ;;  %8396 = vmatpush1.bf16.msra.mxu1 %v11730_v18  ;;  %v11822_v17 = vld [vmem:[%s17590_s1 + $0x808] ss:$16 sps:$4 sm:$0xff]   ;;  %v11827_v18 = vld [vmem:[%s17590_s1 + $0x824] ss:$16 sps:$4 sm:$0xff]  }
  0xc8   :  { %7618 = vmatprep.subr.bf16.mxu0 %v11735_v19  ;;  %8397 = vmatprep.subr.bf16.mxu1 %v11738_v20  ;;  %v9888_v19 = vcombine.high %v14257_v16, %v14257_v16  ;;  %v11825_v20 = vld [vmem:[%s17590_s1 + $0x820] ss:$16 sps:$4 sm:$0xff]  }
  0xcb   :  { %7619 = vmatpush1.bf16.msra.mxu0 %v11733_v21  ;;  %8398 = vmatpush1.bf16.msra.mxu1 %v11736_v22  ;;  %v11828_v21 = vld [vmem:[%s17590_s1 + $0x828] ss:$16 sps:$4 sm:$0xff]   ;;  %v11833_v22 = vld [vmem:[%s17590_s1 + $0x844] ss:$16 sps:$4 sm:$0xff]  }
  0xcc   :  { %7620 = vmatprep.subr.bf16.mxu0 %v11741_v23  ;;  %8399 = vmatprep.subr.bf16.mxu1 %v11744_v24  ;;  %v11836_v23 = vld [vmem:[%s17590_s1 + $0x84c] ss:$16 sps:$4 sm:$0xff]   ;;  %v11831_v24 = vld [vmem:[%s17590_s1 + $0x840] ss:$16 sps:$4 sm:$0xff]  }
  0xcf   :  { %7621 = vmatpush1.bf16.msra.mxu0 %v11739_v25  ;;  %8400 = vmatpush1.bf16.msra.mxu1 %v11742_v26  ;;  %v11834_v25 = vld [vmem:[%s17590_s1 + $0x848] ss:$16 sps:$4 sm:$0xff]   ;;  %v11839_v26 = vld [vmem:[%s17590_s1 + $0x864] ss:$16 sps:$4 sm:$0xff]  }
  0xd0   :  { %7622 = vmatprep.subr.bf16.mxu0 %v11747_v27  ;;  %8401 = vmatprep.subr.bf16.mxu1 %v11750_v28  ;;  %v11842_v27 = vld [vmem:[%s17590_s1 + $0x86c] ss:$16 sps:$4 sm:$0xff]   ;;  %v11837_v28 = vld [vmem:[%s17590_s1 + $0x860] ss:$16 sps:$4 sm:$0xff]  }
  0xd3   :  { %7623 = vmatpush1.bf16.msra.mxu0 %v11745_v29  ;;  %8402 = vmatpush1.bf16.msra.mxu1 %v11748_v30  ;;  %v11840_v29 = vld [vmem:[%s17590_s1 + $0x868] ss:$16 sps:$4 sm:$0xff]   ;;  %v11845_v30 = vld [vmem:[%s17590_s1 + $0x884] ss:$16 sps:$4 sm:$0xff]  }
  0xd4   :  { %7624 = vmatprep.subr.bf16.mxu0 %v11753_v31  ;;  %8403 = vmatprep.subr.bf16.mxu1 %v11756_v32  ;;  %v11848_v31 = vld [vmem:[%s17590_s1 + $0x88c] ss:$16 sps:$4 sm:$0xff]   ;;  %v11843_v32 = vld [vmem:[%s17590_s1 + $0x880] ss:$16 sps:$4 sm:$0xff]  }
  0xd7   :  { %7625 = vmatpush1.bf16.msra.mxu0 %v11751_v33  ;;  %8404 = vmatpush1.bf16.msra.mxu1 %v11754_v34  ;;  %v11846_v33 = vld [vmem:[%s17590_s1 + $0x888] ss:$16 sps:$4 sm:$0xff]   ;;  %v11851_v34 = vld [vmem:[%s17590_s1 + $0x8a4] ss:$16 sps:$4 sm:$0xff]  }
  0xd8   :  { %7626 = vmatprep.subr.bf16.mxu0 %v11759_v35  ;;  %8405 = vmatprep.subr.bf16.mxu1 %v11762_v36  ;;  %v11854_v35 = vld [vmem:[%s17590_s1 + $0x8ac] ss:$16 sps:$4 sm:$0xff]   ;;  %v11849_v36 = vld [vmem:[%s17590_s1 + $0x8a0] ss:$16 sps:$4 sm:$0xff]  }
  0xdb   :  { %7627 = vmatpush1.bf16.msra.mxu0 %v11757_v37  ;;  %8406 = vmatpush1.bf16.msra.mxu1 %v11760_v38  ;;  %v11852_v37 = vld [vmem:[%s17590_s1 + $0x8a8] ss:$16 sps:$4 sm:$0xff]   ;;  %v11857_v38 = vld [vmem:[%s17590_s1 + $0x8c4] ss:$16 sps:$4 sm:$0xff]  }
  0xdc   :  { %7628 = vmatprep.subr.bf16.mxu0 %v11765_v39  ;;  %8407 = vmatprep.subr.bf16.mxu1 %v11768_v40  ;;  %v11860_v39 = vld [vmem:[%s17590_s1 + $0x8cc] ss:$16 sps:$4 sm:$0xff]   ;;  %v11855_v40 = vld [vmem:[%s17590_s1 + $0x8c0] ss:$16 sps:$4 sm:$0xff]  }
  0xdf   :  { %7629 = vmatpush1.bf16.msra.mxu0 %v11763_v41  ;;  %8408 = vmatpush1.bf16.msra.mxu1 %v11766_v42  ;;  %v11858_v41 = vld [vmem:[%s17590_s1 + $0x8c8] ss:$16 sps:$4 sm:$0xff]   ;;  %v11863_v42 = vld [vmem:[%s17590_s1 + $0x8e4] ss:$16 sps:$4 sm:$0xff]  }
  0xe0   :  { %7630 = vmatprep.subr.bf16.mxu0 %v11771_v43  ;;  %8409 = vmatprep.subr.bf16.mxu1 %v11774_v44  ;;  %v11866_v43 = vld [vmem:[%s17590_s1 + $0x8ec] ss:$16 sps:$4 sm:$0xff]   ;;  %v11861_v44 = vld [vmem:[%s17590_s1 + $0x8e0] ss:$16 sps:$4 sm:$0xff]  }
  0xe3   :  { %7631 = vmatpush1.bf16.msra.mxu0 %v11769_v45  ;;  %8410 = vmatpush1.bf16.msra.mxu1 %v11772_v46  ;;  %v11864_v45 = vld [vmem:[%s17590_s1 + $0x8e8] ss:$16 sps:$4 sm:$0xff]   ;;  %v11869_v46 = vld [vmem:[%s17590_s1 + $0x904] ss:$16 sps:$4 sm:$0xff]  }
  0xe4   :  { %7632 = vmatprep.subr.bf16.mxu0 %v11777_v47  ;;  %8411 = vmatprep.subr.bf16.mxu1 %v11780_v48  ;;  %v11872_v47 = vld [vmem:[%s17590_s1 + $0x90c] ss:$16 sps:$4 sm:$0xff]   ;;  %v11867_v48 = vld [vmem:[%s17590_s1 + $0x900] ss:$16 sps:$4 sm:$0xff]  }
  0xe7   :  { %7633 = vmatpush1.bf16.msra.mxu0 %v11775_v49  ;;  %8412 = vmatpush1.bf16.msra.mxu1 %v11778_v50  ;;  %v11870_v49 = vld [vmem:[%s17590_s1 + $0x908] ss:$16 sps:$4 sm:$0xff]   ;;  %v11875_v50 = vld [vmem:[%s17590_s1 + $0x924] ss:$16 sps:$4 sm:$0xff]  }
  0xe8   :  { %7634 = vmatprep.subr.bf16.mxu0 %v11783_v51  ;;  %8413 = vmatprep.subr.bf16.mxu1 %v11786_v52  ;;  %v11878_v51 = vld [vmem:[%s17590_s1 + $0x92c] ss:$16 sps:$4 sm:$0xff]   ;;  %v11873_v52 = vld [vmem:[%s17590_s1 + $0x920] ss:$16 sps:$4 sm:$0xff]  }
  0xeb   :  { %7635 = vmatpush1.bf16.msra.mxu0 %v11781_v53  ;;  %8414 = vmatpush1.bf16.msra.mxu1 %v11784_v54  ;;  %v11876_v53 = vld [vmem:[%s17590_s1 + $0x928] ss:$16 sps:$4 sm:$0xff]   ;;  %v11881_v54 = vld [vmem:[%s17590_s1 + $0x944] ss:$16 sps:$4 sm:$0xff]  }
  0xec   :  { %7636 = vmatprep.subr.bf16.mxu0 %v11789_v55  ;;  %8415 = vmatprep.subr.bf16.mxu1 %v11792_v56  ;;  %v11884_v55 = vld [vmem:[%s17590_s1 + $0x94c] ss:$16 sps:$4 sm:$0xff]   ;;  %v11879_v56 = vld [vmem:[%s17590_s1 + $0x940] ss:$16 sps:$4 sm:$0xff]  }
  0xef   :  { %7637 = vmatpush1.bf16.msra.mxu0 %v11787_v57  ;;  %8416 = vmatpush1.bf16.msra.mxu1 %v11790_v58  ;;  %v11882_v57 = vld [vmem:[%s17590_s1 + $0x948] ss:$16 sps:$4 sm:$0xff]   ;;  %v11887_v58 = vld [vmem:[%s17590_s1 + $0x964] ss:$16 sps:$4 sm:$0xff]  }
  0xf0   :  { %7638 = vmatprep.subr.bf16.mxu0 %v11795_v59  ;;  %8417 = vmatprep.subr.bf16.mxu1 %v11798_v60  ;;  %v11890_v59 = vld [vmem:[%s17590_s1 + $0x96c] ss:$16 sps:$4 sm:$0xff]   ;;  %v11885_v60 = vld [vmem:[%s17590_s1 + $0x960] ss:$16 sps:$4 sm:$0xff]  }
  0xf3   :  { %7639 = vmatpush1.bf16.msra.mxu0 %v11793_v61  ;;  %8418 = vmatpush1.bf16.msra.mxu1 %v11796_v62  ;;  %v11888_v61 = vld [vmem:[%s17590_s1 + $0x968] ss:$16 sps:$4 sm:$0xff]   ;;  %v11893_v62 = vld [vmem:[%s17590_s1 + $0x984] ss:$16 sps:$4 sm:$0xff]  }
  0xf4   :  { %7640 = vmatprep.subr.bf16.mxu0 %v11801_v63  ;;  %8419 = vmatprep.subr.bf16.mxu1 %v11804_v0  ;;  %v11896_v63 = vld [vmem:[%s17590_s1 + $0x98c] ss:$16 sps:$4 sm:$0xff]   ;;  %v11891_v0 = vld [vmem:[%s17590_s1 + $0x980] ss:$16 sps:$4 sm:$0xff]  }
  0xf7   :  { %7641 = vmatpush1.bf16.msra.mxu0 %v11799_v1  ;;  %8420 = vmatpush1.bf16.msra.mxu1 %v11802_v2  ;;  %v11894_v1 = vld [vmem:[%s17590_s1 + $0x988] ss:$16 sps:$4 sm:$0xff]   ;;  %v11899_v2 = vld [vmem:[%s17590_s1 + $0x9a4] ss:$16 sps:$4 sm:$0xff]  }
  0xf8   :  { %7642 = vmatprep.subr.bf16.mxu0 %v11807_v3  ;;  %8421 = vmatprep.subr.bf16.mxu1 %v11810_v4  ;;  %v11902_v3 = vld [vmem:[%s17590_s1 + $0x9ac] ss:$16 sps:$4 sm:$0xff]   ;;  %v11897_v4 = vld [vmem:[%s17590_s1 + $0x9a0] ss:$16 sps:$4 sm:$0xff]  }
  0xfb   :  { %7643 = vmatpush1.bf16.msra.mxu0 %v11805_v5  ;;  %8422 = vmatpush1.bf16.msra.mxu1 %v11808_v6  ;;  %v11900_v5 = vld [vmem:[%s17590_s1 + $0x9a8] ss:$16 sps:$4 sm:$0xff]   ;;  %v11905_v6 = vld [vmem:[%s17590_s1 + $0x9c4] ss:$16 sps:$4 sm:$0xff]  }
  0xfc   :  { %7644 = vmatprep.subr.bf16.mxu0 %v11813_v7  ;;  %8423 = vmatprep.subr.bf16.mxu1 %v11816_v8  ;;  %v11908_v7 = vld [vmem:[%s17590_s1 + $0x9cc] ss:$16 sps:$4 sm:$0xff]   ;;  %v11903_v8 = vld [vmem:[%s17590_s1 + $0x9c0] ss:$16 sps:$4 sm:$0xff]  }
  0xff   :  { %7645 = vmatpush1.bf16.msra.mxu0 %v11811_v9  ;;  %8424 = vmatpush1.bf16.msra.mxu1 %v11814_v10  ;;  %v11906_v9 = vld [vmem:[%s17590_s1 + $0x9c8] ss:$16 sps:$4 sm:$0xff]   ;;  %v11911_v10 = vld [vmem:[%s17590_s1 + $0x9e4] ss:$16 sps:$4 sm:$0xff]  }
 0x100   :  { %7655 = vmatprep.subr.bf16.mxu0 %v11821_v12  ;;  %8434 = vmatprep.subr.bf16.mxu1 %v11824_v13  ;;  %v11914_v12 = vld [vmem:[%s17590_s1 + $0x9ec] ss:$16 sps:$4 sm:$0xff]   ;;  %v11909_v13 = vld [vmem:[%s17590_s1 + $0x9e0] ss:$16 sps:$4 sm:$0xff]  }
 0x102   :  { %7647 = vmatmul.mubr.bf16.vlgmr.msra.gmra.mrb[0].mxu0 %v9885_v11  ;;  %8426 = vmatmul.mubr.bf16.vlgmr.msra.gmra.mrb[0].mxu1 %v9885_v11  ;;  %v11919_v11 = vld [vmem:[%s17590_s1 + $0xa04] ss:$16 sps:$4 sm:$0xff]  }
 0x103   :  { %7656 = vmatpush1.bf16.msra.mxu0 %v11819_v15  ;;  %8435 = vmatpush1.bf16.msra.mxu1 %v11822_v17  ;;  %v11912_v15 = vld [vmem:[%s17590_s1 + $0x9e8] ss:$16 sps:$4 sm:$0xff]   ;;  %v11922_v17 = vld [vmem:[%s17590_s1 + $0xa0c] ss:$16 sps:$4 sm:$0xff]  }
 0x104   :  { %7657 = vmatprep.subr.bf16.mxu0 %v11827_v18  ;;  %8436 = vmatprep.subr.bf16.mxu1 %v11830_v14  ;;  %v14453_v18 = vld [vmem:[%s17591_s0 + $0x28] sm:$0xff]  ;;  %v9887_v14 = vcombine.low %v14257_v16, %v14257_v16 }
 0x105   :  { %7687 = vmatprep.mubr.bf16.mxu0 %v9888_v19  ;;  %8466 = vmatprep.mubr.bf16.mxu1 %v9888_v19  ;;  %v11917_v19 = vld [vmem:[%s17590_s1 + $0xa00] ss:$16 sps:$4 sm:$0xff]   ;;  %v11928_v16 = vld [vmem:[%s17590_s1 + $0xa2c] ss:$16 sps:$4 sm:$0xff]  }
 0x107   :  { %7658 = vmatpush1.bf16.msra.mxu0 %v11825_v20  ;;  %8437 = vmatpush1.bf16.msra.mxu1 %v11828_v21  ;;  %v11920_v20 = vld [vmem:[%s17590_s1 + $0xa08] ss:$16 sps:$4 sm:$0xff]   ;;  %v11925_v21 = vld [vmem:[%s17590_s1 + $0xa24] ss:$16 sps:$4 sm:$0xff]  }
 0x108   :  { %7659 = vmatprep.subr.bf16.mxu0 %v11833_v22  ;;  %8438 = vmatprep.subr.bf16.mxu1 %v11836_v23  ;;  %v9890_v22 = vcombine.high %v14453_v18, %v14453_v18  ;;  %v11923_v23 = vld [vmem:[%s17590_s1 + $0xa20] ss:$16 sps:$4 sm:$0xff]  }
 0x10b   :  { %7660 = vmatpush1.bf16.msra.mxu0 %v11831_v24  ;;  %8439 = vmatpush1.bf16.msra.mxu1 %v11834_v25  ;;  %v11926_v24 = vld [vmem:[%s17590_s1 + $0xa28] ss:$16 sps:$4 sm:$0xff]   ;;  %v11931_v25 = vld [vmem:[%s17590_s1 + $0xa44] ss:$16 sps:$4 sm:$0xff]  }
 0x10c   :  { %7661 = vmatprep.subr.bf16.mxu0 %v11839_v26  ;;  %8440 = vmatprep.subr.bf16.mxu1 %v11842_v27  ;;  %v11934_v26 = vld [vmem:[%s17590_s1 + $0xa4c] ss:$16 sps:$4 sm:$0xff]   ;;  %v11929_v27 = vld [vmem:[%s17590_s1 + $0xa40] ss:$16 sps:$4 sm:$0xff]  }
 0x10f   :  { %7662 = vmatpush1.bf16.msra.mxu0 %v11837_v28  ;;  %8441 = vmatpush1.bf16.msra.mxu1 %v11840_v29  ;;  %v11932_v28 = vld [vmem:[%s17590_s1 + $0xa48] ss:$16 sps:$4 sm:$0xff]   ;;  %v11937_v29 = vld [vmem:[%s17590_s1 + $0xa64] ss:$16 sps:$4 sm:$0xff]  }
 0x110   :  { %7663 = vmatprep.subr.bf16.mxu0 %v11845_v30  ;;  %8442 = vmatprep.subr.bf16.mxu1 %v11848_v31  ;;  %v11940_v30 = vld [vmem:[%s17590_s1 + $0xa6c] ss:$16 sps:$4 sm:$0xff]   ;;  %v11935_v31 = vld [vmem:[%s17590_s1 + $0xa60] ss:$16 sps:$4 sm:$0xff]  }
 0x113   :  { %7664 = vmatpush1.bf16.msra.mxu0 %v11843_v32  ;;  %8443 = vmatpush1.bf16.msra.mxu1 %v11846_v33  ;;  %v11938_v32 = vld [vmem:[%s17590_s1 + $0xa68] ss:$16 sps:$4 sm:$0xff]   ;;  %v11943_v33 = vld [vmem:[%s17590_s1 + $0xa84] ss:$16 sps:$4 sm:$0xff]  }
 0x114   :  { %7665 = vmatprep.subr.bf16.mxu0 %v11851_v34  ;;  %8444 = vmatprep.subr.bf16.mxu1 %v11854_v35  ;;  %v11946_v34 = vld [vmem:[%s17590_s1 + $0xa8c] ss:$16 sps:$4 sm:$0xff]   ;;  %v11941_v35 = vld [vmem:[%s17590_s1 + $0xa80] ss:$16 sps:$4 sm:$0xff]  }
 0x117   :  { %7666 = vmatpush1.bf16.msra.mxu0 %v11849_v36  ;;  %8445 = vmatpush1.bf16.msra.mxu1 %v11852_v37  ;;  %v11944_v36 = vld [vmem:[%s17590_s1 + $0xa88] ss:$16 sps:$4 sm:$0xff]   ;;  %v11949_v37 = vld [vmem:[%s17590_s1 + $0xaa4] ss:$16 sps:$4 sm:$0xff]  }
 0x118   :  { %7667 = vmatprep.subr.bf16.mxu0 %v11857_v38  ;;  %8446 = vmatprep.subr.bf16.mxu1 %v11860_v39  ;;  %v11952_v38 = vld [vmem:[%s17590_s1 + $0xaac] ss:$16 sps:$4 sm:$0xff]   ;;  %v11947_v39 = vld [vmem:[%s17590_s1 + $0xaa0] ss:$16 sps:$4 sm:$0xff]  }
 0x11b   :  { %7668 = vmatpush1.bf16.msra.mxu0 %v11855_v40  ;;  %8447 = vmatpush1.bf16.msra.mxu1 %v11858_v41  ;;  %v11950_v40 = vld [vmem:[%s17590_s1 + $0xaa8] ss:$16 sps:$4 sm:$0xff]   ;;  %v11955_v41 = vld [vmem:[%s17590_s1 + $0xac4] ss:$16 sps:$4 sm:$0xff]  }
 0x11c   :  { %7669 = vmatprep.subr.bf16.mxu0 %v11863_v42  ;;  %8448 = vmatprep.subr.bf16.mxu1 %v11866_v43  ;;  %v11958_v42 = vld [vmem:[%s17590_s1 + $0xacc] ss:$16 sps:$4 sm:$0xff]   ;;  %v11953_v43 = vld [vmem:[%s17590_s1 + $0xac0] ss:$16 sps:$4 sm:$0xff]  }
 0x11f   :  { %7670 = vmatpush1.bf16.msra.mxu0 %v11861_v44  ;;  %8449 = vmatpush1.bf16.msra.mxu1 %v11864_v45  ;;  %v11956_v44 = vld [vmem:[%s17590_s1 + $0xac8] ss:$16 sps:$4 sm:$0xff]   ;;  %v11961_v45 = vld [vmem:[%s17590_s1 + $0xae4] ss:$16 sps:$4 sm:$0xff]  }
 0x120   :  { %7671 = vmatprep.subr.bf16.mxu0 %v11869_v46  ;;  %8450 = vmatprep.subr.bf16.mxu1 %v11872_v47  ;;  %v11964_v46 = vld [vmem:[%s17590_s1 + $0xaec] ss:$16 sps:$4 sm:$0xff]   ;;  %v11959_v47 = vld [vmem:[%s17590_s1 + $0xae0] ss:$16 sps:$4 sm:$0xff]  }
 0x123   :  { %7672 = vmatpush1.bf16.msra.mxu0 %v11867_v48  ;;  %8451 = vmatpush1.bf16.msra.mxu1 %v11870_v49  ;;  %v11962_v48 = vld [vmem:[%s17590_s1 + $0xae8] ss:$16 sps:$4 sm:$0xff]   ;;  %v11967_v49 = vld [vmem:[%s17590_s1 + $0xb04] ss:$16 sps:$4 sm:$0xff]  }
 0x124   :  { %7673 = vmatprep.subr.bf16.mxu0 %v11875_v50  ;;  %8452 = vmatprep.subr.bf16.mxu1 %v11878_v51  ;;  %v11970_v50 = vld [vmem:[%s17590_s1 + $0xb0c] ss:$16 sps:$4 sm:$0xff]   ;;  %v11965_v51 = vld [vmem:[%s17590_s1 + $0xb00] ss:$16 sps:$4 sm:$0xff]  }
 0x127   :  { %7674 = vmatpush1.bf16.msra.mxu0 %v11873_v52  ;;  %8453 = vmatpush1.bf16.msra.mxu1 %v11876_v53  ;;  %v11968_v52 = vld [vmem:[%s17590_s1 + $0xb08] ss:$16 sps:$4 sm:$0xff]   ;;  %v11973_v53 = vld [vmem:[%s17590_s1 + $0xb24] ss:$16 sps:$4 sm:$0xff]  }
 0x128   :  { %7675 = vmatprep.subr.bf16.mxu0 %v11881_v54  ;;  %8454 = vmatprep.subr.bf16.mxu1 %v11884_v55  ;;  %v11976_v54 = vld [vmem:[%s17590_s1 + $0xb2c] ss:$16 sps:$4 sm:$0xff]   ;;  %v11971_v55 = vld [vmem:[%s17590_s1 + $0xb20] ss:$16 sps:$4 sm:$0xff]  }
 0x12b   :  { %7676 = vmatpush1.bf16.msra.mxu0 %v11879_v56  ;;  %8455 = vmatpush1.bf16.msra.mxu1 %v11882_v57  ;;  %v11974_v56 = vld [vmem:[%s17590_s1 + $0xb28] ss:$16 sps:$4 sm:$0xff]   ;;  %v11979_v57 = vld [vmem:[%s17590_s1 + $0xb44] ss:$16 sps:$4 sm:$0xff]  }
 0x12c   :  { %7677 = vmatprep.subr.bf16.mxu0 %v11887_v58  ;;  %8456 = vmatprep.subr.bf16.mxu1 %v11890_v59  ;;  %v11982_v58 = vld [vmem:[%s17590_s1 + $0xb4c] ss:$16 sps:$4 sm:$0xff]   ;;  %v11977_v59 = vld [vmem:[%s17590_s1 + $0xb40] ss:$16 sps:$4 sm:$0xff]  }
 0x12f   :  { %7678 = vmatpush1.bf16.msra.mxu0 %v11885_v60  ;;  %8457 = vmatpush1.bf16.msra.mxu1 %v11888_v61  ;;  %v11980_v60 = vld [vmem:[%s17590_s1 + $0xb48] ss:$16 sps:$4 sm:$0xff]   ;;  %v11985_v61 = vld [vmem:[%s17590_s1 + $0xb64] ss:$16 sps:$4 sm:$0xff]  }
 0x130   :  { %7679 = vmatprep.subr.bf16.mxu0 %v11893_v62  ;;  %8458 = vmatprep.subr.bf16.mxu1 %v11896_v63  ;;  %v11988_v62 = vld [vmem:[%s17590_s1 + $0xb6c] ss:$16 sps:$4 sm:$0xff]   ;;  %v11983_v63 = vld [vmem:[%s17590_s1 + $0xb60] ss:$16 sps:$4 sm:$0xff]  }
 0x133   :  { %7680 = vmatpush1.bf16.msra.mxu0 %v11891_v0  ;;  %8459 = vmatpush1.bf16.msra.mxu1 %v11894_v1  ;;  %v11986_v0 = vld [vmem:[%s17590_s1 + $0xb68] ss:$16 sps:$4 sm:$0xff]   ;;  %v11991_v1 = vld [vmem:[%s17590_s1 + $0xb84] ss:$16 sps:$4 sm:$0xff]  }
 0x134   :  { %7681 = vmatprep.subr.bf16.mxu0 %v11899_v2  ;;  %8460 = vmatprep.subr.bf16.mxu1 %v11902_v3  ;;  %v11994_v2 = vld [vmem:[%s17590_s1 + $0xb8c] ss:$16 sps:$4 sm:$0xff]   ;;  %v11989_v3 = vld [vmem:[%s17590_s1 + $0xb80] ss:$16 sps:$4 sm:$0xff]  }
 0x137   :  { %7682 = vmatpush1.bf16.msra.mxu0 %v11897_v4  ;;  %8461 = vmatpush1.bf16.msra.mxu1 %v11900_v5  ;;  %v11992_v4 = vld [vmem:[%s17590_s1 + $0xb88] ss:$16 sps:$4 sm:$0xff]   ;;  %v11997_v5 = vld [vmem:[%s17590_s1 + $0xba4] ss:$16 sps:$4 sm:$0xff]  }
 0x138   :  { %7683 = vmatprep.subr.bf16.mxu0 %v11905_v6  ;;  %8462 = vmatprep.subr.bf16.mxu1 %v11908_v7  ;;  %v12000_v6 = vld [vmem:[%s17590_s1 + $0xbac] ss:$16 sps:$4 sm:$0xff]   ;;  %v11995_v7 = vld [vmem:[%s17590_s1 + $0xba0] ss:$16 sps:$4 sm:$0xff]  }
 0x13b   :  { %7684 = vmatpush1.bf16.msra.mxu0 %v11903_v8  ;;  %8463 = vmatpush1.bf16.msra.mxu1 %v11906_v9  ;;  %v11998_v8 = vld [vmem:[%s17590_s1 + $0xba8] ss:$16 sps:$4 sm:$0xff]   ;;  %v12003_v9 = vld [vmem:[%s17590_s1 + $0xbc4] ss:$16 sps:$4 sm:$0xff]  }
 0x13c   :  { %7685 = vmatprep.subr.bf16.mxu0 %v11911_v10  ;;  %8464 = vmatprep.subr.bf16.mxu1 %v11914_v12  ;;  %v12006_v10 = vld [vmem:[%s17590_s1 + $0xbcc] ss:$16 sps:$4 sm:$0xff]   ;;  %v12001_v12 = vld [vmem:[%s17590_s1 + $0xbc0] ss:$16 sps:$4 sm:$0xff]  }
 0x13f   :  { %7686 = vmatpush1.bf16.msra.mxu0 %v11909_v13  ;;  %8465 = vmatpush1.bf16.msra.mxu1 %v11912_v15  ;;  %v12004_v13 = vld [vmem:[%s17590_s1 + $0xbc8] ss:$16 sps:$4 sm:$0xff]   ;;  %v12009_v15 = vld [vmem:[%s17590_s1 + $0xbe4] ss:$16 sps:$4 sm:$0xff]  }
 0x140   :  { %7696 = vmatprep.subr.bf16.mxu0 %v11919_v11  ;;  %8475 = vmatprep.subr.bf16.mxu1 %v11922_v17  ;;  %v12012_v11 = vld [vmem:[%s17590_s1 + $0xbec] ss:$16 sps:$4 sm:$0xff]   ;;  %v12007_v17 = vld [vmem:[%s17590_s1 + $0xbe0] ss:$16 sps:$4 sm:$0xff]  }
 0x142   :  { %7688 = vmatmul.mubr.bf16.vlgmr.msra.gmra.mrb[0].mxu0 %v9887_v14  ;;  %8467 = vmatmul.mubr.bf16.vlgmr.msra.gmra.mrb[0].mxu1 %v9887_v14  ;;  %v12010_v14 = vld [vmem:[%s17590_s1 + $0xbe8] ss:$16 sps:$4 sm:$0xff]  }
 0x143   :  { %7697 = vmatpush1.bf16.msra.mxu0 %v11917_v19  ;;  %8476 = vmatpush1.bf16.msra.mxu1 %v11920_v20  ;;  %v12017_v19 = vld [vmem:[%s17590_s1 + $0xc04] ss:$16 sps:$4 sm:$0xff]   ;;  %v12020_v20 = vld [vmem:[%s17590_s1 + $0xc0c] ss:$16 sps:$4 sm:$0xff]  }
 0x144   :  { %7698 = vmatprep.subr.bf16.mxu0 %v11925_v21  ;;  %8477 = vmatprep.subr.bf16.mxu1 %v11928_v16  ;;  %v14654_v21 = vld [vmem:[%s17591_s0 + $0x30] sm:$0xff]  ;;  %v9889_v16 = vcombine.low %v14453_v18, %v14453_v18  ;;  %v12026_v18 = vld [vmem:[%s17590_s1 + $0xc2c] ss:$16 sps:$4 sm:$0xff]  }
 0x145   :  { %7728 = vmatprep.mubr.bf16.mxu0 %v9890_v22  ;;  %8507 = vmatprep.mubr.bf16.mxu1 %v9890_v22  ;;  %v12015_v22 = vld [vmem:[%s17590_s1 + $0xc00] ss:$16 sps:$4 sm:$0xff]  }
 0x147   :  { %7699 = vmatpush1.bf16.msra.mxu0 %v11923_v23  ;;  %8478 = vmatpush1.bf16.msra.mxu1 %v11926_v24  ;;  %v12018_v23 = vld [vmem:[%s17590_s1 + $0xc08] ss:$16 sps:$4 sm:$0xff]   ;;  %v12023_v24 = vld [vmem:[%s17590_s1 + $0xc24] ss:$16 sps:$4 sm:$0xff]  }
 0x148   :  { %7700 = vmatprep.subr.bf16.mxu0 %v11931_v25  ;;  %8479 = vmatprep.subr.bf16.mxu1 %v11934_v26  ;;  %v9892_v25 = vcombine.high %v14654_v21, %v14654_v21  ;;  %v12021_v26 = vld [vmem:[%s17590_s1 + $0xc20] ss:$16 sps:$4 sm:$0xff]  }
 0x14b   :  { %7701 = vmatpush1.bf16.msra.mxu0 %v11929_v27  ;;  %8480 = vmatpush1.bf16.msra.mxu1 %v11932_v28  ;;  %v12024_v27 = vld [vmem:[%s17590_s1 + $0xc28] ss:$16 sps:$4 sm:$0xff]   ;;  %v12029_v28 = vld [vmem:[%s17590_s1 + $0xc44] ss:$16 sps:$4 sm:$0xff]  }
 0x14c   :  { %7702 = vmatprep.subr.bf16.mxu0 %v11937_v29  ;;  %8481 = vmatprep.subr.bf16.mxu1 %v11940_v30  ;;  %v12032_v29 = vld [vmem:[%s17590_s1 + $0xc4c] ss:$16 sps:$4 sm:$0xff]   ;;  %v12027_v30 = vld [vmem:[%s17590_s1 + $0xc40] ss:$16 sps:$4 sm:$0xff]  }
 0x14f   :  { %7703 = vmatpush1.bf16.msra.mxu0 %v11935_v31  ;;  %8482 = vmatpush1.bf16.msra.mxu1 %v11938_v32  ;;  %v12030_v31 = vld [vmem:[%s17590_s1 + $0xc48] ss:$16 sps:$4 sm:$0xff]   ;;  %v12035_v32 = vld [vmem:[%s17590_s1 + $0xc64] ss:$16 sps:$4 sm:$0xff]  }
 0x150   :  { %7704 = vmatprep.subr.bf16.mxu0 %v11943_v33  ;;  %8483 = vmatprep.subr.bf16.mxu1 %v11946_v34  ;;  %v12038_v33 = vld [vmem:[%s17590_s1 + $0xc6c] ss:$16 sps:$4 sm:$0xff]   ;;  %v12033_v34 = vld [vmem:[%s17590_s1 + $0xc60] ss:$16 sps:$4 sm:$0xff]  }
 0x153   :  { %7705 = vmatpush1.bf16.msra.mxu0 %v11941_v35  ;;  %8484 = vmatpush1.bf16.msra.mxu1 %v11944_v36  ;;  %v12036_v35 = vld [vmem:[%s17590_s1 + $0xc68] ss:$16 sps:$4 sm:$0xff]   ;;  %v12041_v36 = vld [vmem:[%s17590_s1 + $0xc84] ss:$16 sps:$4 sm:$0xff]  }
 0x154   :  { %7706 = vmatprep.subr.bf16.mxu0 %v11949_v37  ;;  %8485 = vmatprep.subr.bf16.mxu1 %v11952_v38  ;;  %v12044_v37 = vld [vmem:[%s17590_s1 + $0xc8c] ss:$16 sps:$4 sm:$0xff]   ;;  %v12039_v38 = vld [vmem:[%s17590_s1 + $0xc80] ss:$16 sps:$4 sm:$0xff]  }
 0x157   :  { %7707 = vmatpush1.bf16.msra.mxu0 %v11947_v39  ;;  %8486 = vmatpush1.bf16.msra.mxu1 %v11950_v40  ;;  %v12042_v39 = vld [vmem:[%s17590_s1 + $0xc88] ss:$16 sps:$4 sm:$0xff]   ;;  %v12047_v40 = vld [vmem:[%s17590_s1 + $0xca4] ss:$16 sps:$4 sm:$0xff]  }
 0x158   :  { %7708 = vmatprep.subr.bf16.mxu0 %v11955_v41  ;;  %8487 = vmatprep.subr.bf16.mxu1 %v11958_v42  ;;  %v12050_v41 = vld [vmem:[%s17590_s1 + $0xcac] ss:$16 sps:$4 sm:$0xff]   ;;  %v12045_v42 = vld [vmem:[%s17590_s1 + $0xca0] ss:$16 sps:$4 sm:$0xff]  }
 0x15b   :  { %7709 = vmatpush1.bf16.msra.mxu0 %v11953_v43  ;;  %8488 = vmatpush1.bf16.msra.mxu1 %v11956_v44  ;;  %v12048_v43 = vld [vmem:[%s17590_s1 + $0xca8] ss:$16 sps:$4 sm:$0xff]   ;;  %v12053_v44 = vld [vmem:[%s17590_s1 + $0xcc4] ss:$16 sps:$4 sm:$0xff]  }
 0x15c   :  { %7710 = vmatprep.subr.bf16.mxu0 %v11961_v45  ;;  %8489 = vmatprep.subr.bf16.mxu1 %v11964_v46  ;;  %v12056_v45 = vld [vmem:[%s17590_s1 + $0xccc] ss:$16 sps:$4 sm:$0xff]   ;;  %v12051_v46 = vld [vmem:[%s17590_s1 + $0xcc0] ss:$16 sps:$4 sm:$0xff]  }
 0x15f   :  { %7711 = vmatpush1.bf16.msra.mxu0 %v11959_v47  ;;  %8490 = vmatpush1.bf16.msra.mxu1 %v11962_v48  ;;  %v12054_v47 = vld [vmem:[%s17590_s1 + $0xcc8] ss:$16 sps:$4 sm:$0xff]   ;;  %v12059_v48 = vld [vmem:[%s17590_s1 + $0xce4] ss:$16 sps:$4 sm:$0xff]  }
 0x160   :  { %7712 = vmatprep.subr.bf16.mxu0 %v11967_v49  ;;  %8491 = vmatprep.subr.bf16.mxu1 %v11970_v50  ;;  %v12062_v49 = vld [vmem:[%s17590_s1 + $0xcec] ss:$16 sps:$4 sm:$0xff]   ;;  %v12057_v50 = vld [vmem:[%s17590_s1 + $0xce0] ss:$16 sps:$4 sm:$0xff]  }
 0x163   :  { %7713 = vmatpush1.bf16.msra.mxu0 %v11965_v51  ;;  %8492 = vmatpush1.bf16.msra.mxu1 %v11968_v52  ;;  %v12060_v51 = vld [vmem:[%s17590_s1 + $0xce8] ss:$16 sps:$4 sm:$0xff]   ;;  %v12065_v52 = vld [vmem:[%s17590_s1 + $0xd04] ss:$16 sps:$4 sm:$0xff]  }
 0x164   :  { %7714 = vmatprep.subr.bf16.mxu0 %v11973_v53  ;;  %8493 = vmatprep.subr.bf16.mxu1 %v11976_v54  ;;  %v12068_v53 = vld [vmem:[%s17590_s1 + $0xd0c] ss:$16 sps:$4 sm:$0xff]   ;;  %v12063_v54 = vld [vmem:[%s17590_s1 + $0xd00] ss:$16 sps:$4 sm:$0xff]  }
 0x167   :  { %7715 = vmatpush1.bf16.msra.mxu0 %v11971_v55  ;;  %8494 = vmatpush1.bf16.msra.mxu1 %v11974_v56  ;;  %v12066_v55 = vld [vmem:[%s17590_s1 + $0xd08] ss:$16 sps:$4 sm:$0xff]   ;;  %v12071_v56 = vld [vmem:[%s17590_s1 + $0xd24] ss:$16 sps:$4 sm:$0xff]  }
 0x168   :  { %7716 = vmatprep.subr.bf16.mxu0 %v11979_v57  ;;  %8495 = vmatprep.subr.bf16.mxu1 %v11982_v58  ;;  %v12074_v57 = vld [vmem:[%s17590_s1 + $0xd2c] ss:$16 sps:$4 sm:$0xff]   ;;  %v12069_v58 = vld [vmem:[%s17590_s1 + $0xd20] ss:$16 sps:$4 sm:$0xff]  }
 0x16b   :  { %7717 = vmatpush1.bf16.msra.mxu0 %v11977_v59  ;;  %8496 = vmatpush1.bf16.msra.mxu1 %v11980_v60  ;;  %v12072_v59 = vld [vmem:[%s17590_s1 + $0xd28] ss:$16 sps:$4 sm:$0xff]   ;;  %v12077_v60 = vld [vmem:[%s17590_s1 + $0xd44] ss:$16 sps:$4 sm:$0xff]  }
 0x16c   :  { %7718 = vmatprep.subr.bf16.mxu0 %v11985_v61  ;;  %8497 = vmatprep.subr.bf16.mxu1 %v11988_v62  ;;  %v12080_v61 = vld [vmem:[%s17590_s1 + $0xd4c] ss:$16 sps:$4 sm:$0xff]   ;;  %v12075_v62 = vld [vmem:[%s17590_s1 + $0xd40] ss:$16 sps:$4 sm:$0xff]  }
 0x16f   :  { %7719 = vmatpush1.bf16.msra.mxu0 %v11983_v63  ;;  %8498 = vmatpush1.bf16.msra.mxu1 %v11986_v0  ;;  %v12078_v63 = vld [vmem:[%s17590_s1 + $0xd48] ss:$16 sps:$4 sm:$0xff]   ;;  %v12083_v0 = vld [vmem:[%s17590_s1 + $0xd64] ss:$16 sps:$4 sm:$0xff]  }
 0x170   :  { %7720 = vmatprep.subr.bf16.mxu0 %v11991_v1  ;;  %8499 = vmatprep.subr.bf16.mxu1 %v11994_v2  ;;  %v12086_v1 = vld [vmem:[%s17590_s1 + $0xd6c] ss:$16 sps:$4 sm:$0xff]   ;;  %v12081_v2 = vld [vmem:[%s17590_s1 + $0xd60] ss:$16 sps:$4 sm:$0xff]  }
 0x173   :  { %7721 = vmatpush1.bf16.msra.mxu0 %v11989_v3  ;;  %8500 = vmatpush1.bf16.msra.mxu1 %v11992_v4  ;;  %v12084_v3 = vld [vmem:[%s17590_s1 + $0xd68] ss:$16 sps:$4 sm:$0xff]   ;;  %v12089_v4 = vld [vmem:[%s17590_s1 + $0xd84] ss:$16 sps:$4 sm:$0xff]  }
 0x174   :  { %7722 = vmatprep.subr.bf16.mxu0 %v11997_v5  ;;  %8501 = vmatprep.subr.bf16.mxu1 %v12000_v6  ;;  %v12092_v5 = vld [vmem:[%s17590_s1 + $0xd8c] ss:$16 sps:$4 sm:$0xff]   ;;  %v12087_v6 = vld [vmem:[%s17590_s1 + $0xd80] ss:$16 sps:$4 sm:$0xff]  }
 0x177   :  { %7723 = vmatpush1.bf16.msra.mxu0 %v11995_v7  ;;  %8502 = vmatpush1.bf16.msra.mxu1 %v11998_v8  ;;  %v12090_v7 = vld [vmem:[%s17590_s1 + $0xd88] ss:$16 sps:$4 sm:$0xff]   ;;  %v12095_v8 = vld [vmem:[%s17590_s1 + $0xda4] ss:$16 sps:$4 sm:$0xff]  }
 0x178   :  { %7724 = vmatprep.subr.bf16.mxu0 %v12003_v9  ;;  %8503 = vmatprep.subr.bf16.mxu1 %v12006_v10  ;;  %v12098_v9 = vld [vmem:[%s17590_s1 + $0xdac] ss:$16 sps:$4 sm:$0xff]   ;;  %v12093_v10 = vld [vmem:[%s17590_s1 + $0xda0] ss:$16 sps:$4 sm:$0xff]  }
 0x17b   :  { %7725 = vmatpush1.bf16.msra.mxu0 %v12001_v12  ;;  %8504 = vmatpush1.bf16.msra.mxu1 %v12004_v13  ;;  %v12096_v12 = vld [vmem:[%s17590_s1 + $0xda8] ss:$16 sps:$4 sm:$0xff]   ;;  %v12101_v13 = vld [vmem:[%s17590_s1 + $0xdc4] ss:$16 sps:$4 sm:$0xff]  }
 0x17c   :  { %7726 = vmatprep.subr.bf16.mxu0 %v12009_v15  ;;  %8505 = vmatprep.subr.bf16.mxu1 %v12012_v11  ;;  %v12104_v15 = vld [vmem:[%s17590_s1 + $0xdcc] ss:$16 sps:$4 sm:$0xff]   ;;  %v12099_v11 = vld [vmem:[%s17590_s1 + $0xdc0] ss:$16 sps:$4 sm:$0xff]  }
 0x17f   :  { %7727 = vmatpush1.bf16.msra.mxu0 %v12007_v17  ;;  %8506 = vmatpush1.bf16.msra.mxu1 %v12010_v14  ;;  %v12102_v17 = vld [vmem:[%s17590_s1 + $0xdc8] ss:$16 sps:$4 sm:$0xff]   ;;  %v12107_v14 = vld [vmem:[%s17590_s1 + $0xde4] ss:$16 sps:$4 sm:$0xff]  }
 0x180   :  { %7737 = vmatprep.subr.bf16.mxu0 %v12017_v19  ;;  %8516 = vmatprep.subr.bf16.mxu1 %v12020_v20  ;;  %v12110_v19 = vld [vmem:[%s17590_s1 + $0xdec] ss:$16 sps:$4 sm:$0xff]   ;;  %v12105_v20 = vld [vmem:[%s17590_s1 + $0xde0] ss:$16 sps:$4 sm:$0xff]  }
 0x182   :  { %7729 = vmatmul.mubr.bf16.vlgmr.msra.gmra.mrb[0].mxu0 %v9889_v16  ;;  %8508 = vmatmul.mubr.bf16.vlgmr.msra.gmra.mrb[0].mxu1 %v9889_v16  ;;  %v12108_v16 = vld [vmem:[%s17590_s1 + $0xde8] ss:$16 sps:$4 sm:$0xff]  }
 0x183   :  { %7738 = vmatpush1.bf16.msra.mxu0 %v12015_v22  ;;  %8517 = vmatpush1.bf16.msra.mxu1 %v12018_v23  ;;  %v12115_v22 = vld [vmem:[%s17590_s1 + $0xe04] ss:$16 sps:$4 sm:$0xff]   ;;  %v12118_v23 = vld [vmem:[%s17590_s1 + $0xe0c] ss:$16 sps:$4 sm:$0xff]  }
 0x184   :  { %7739 = vmatprep.subr.bf16.mxu0 %v12023_v24  ;;  %8518 = vmatprep.subr.bf16.mxu1 %v12026_v18  ;;  %v14855_v24 = vld [vmem:[%s17591_s0 + $0x38] sm:$0xff]  ;;  %v9891_v18 = vcombine.low %v14654_v21, %v14654_v21 }
 0x185   :  { %7769 = vmatprep.mubr.bf16.mxu0 %v9892_v25  ;;  %8548 = vmatprep.mubr.bf16.mxu1 %v9892_v25  ;;  %v12113_v25 = vld [vmem:[%s17590_s1 + $0xe00] ss:$16 sps:$4 sm:$0xff]   ;;  %v12124_v21 = vld [vmem:[%s17590_s1 + $0xe2c] ss:$16 sps:$4 sm:$0xff]  }
 0x187   :  { %7740 = vmatpush1.bf16.msra.mxu0 %v12021_v26  ;;  %8519 = vmatpush1.bf16.msra.mxu1 %v12024_v27  ;;  %v12116_v26 = vld [vmem:[%s17590_s1 + $0xe08] ss:$16 sps:$4 sm:$0xff]   ;;  %v12121_v27 = vld [vmem:[%s17590_s1 + $0xe24] ss:$16 sps:$4 sm:$0xff]  }
 0x188   :  { %7741 = vmatprep.subr.bf16.mxu0 %v12029_v28  ;;  %8520 = vmatprep.subr.bf16.mxu1 %v12032_v29  ;;  %v9894_v28 = vcombine.high %v14855_v24, %v14855_v24  ;;  %v12119_v29 = vld [vmem:[%s17590_s1 + $0xe20] ss:$16 sps:$4 sm:$0xff]  }
 0x18b   :  { %7742 = vmatpush1.bf16.msra.mxu0 %v12027_v30  ;;  %8521 = vmatpush1.bf16.msra.mxu1 %v12030_v31  ;;  %v12122_v30 = vld [vmem:[%s17590_s1 + $0xe28] ss:$16 sps:$4 sm:$0xff]   ;;  %v12127_v31 = vld [vmem:[%s17590_s1 + $0xe44] ss:$16 sps:$4 sm:$0xff]  }
 0x18c   :  { %7743 = vmatprep.subr.bf16.mxu0 %v12035_v32  ;;  %8522 = vmatprep.subr.bf16.mxu1 %v12038_v33  ;;  %v12130_v32 = vld [vmem:[%s17590_s1 + $0xe4c] ss:$16 sps:$4 sm:$0xff]   ;;  %v12125_v33 = vld [vmem:[%s17590_s1 + $0xe40] ss:$16 sps:$4 sm:$0xff]  }
 0x18f   :  { %7744 = vmatpush1.bf16.msra.mxu0 %v12033_v34  ;;  %8523 = vmatpush1.bf16.msra.mxu1 %v12036_v35  ;;  %v12128_v34 = vld [vmem:[%s17590_s1 + $0xe48] ss:$16 sps:$4 sm:$0xff]   ;;  %v12133_v35 = vld [vmem:[%s17590_s1 + $0xe64] ss:$16 sps:$4 sm:$0xff]  }
 0x190   :  { %7745 = vmatprep.subr.bf16.mxu0 %v12041_v36  ;;  %8524 = vmatprep.subr.bf16.mxu1 %v12044_v37  ;;  %v12136_v36 = vld [vmem:[%s17590_s1 + $0xe6c] ss:$16 sps:$4 sm:$0xff]   ;;  %v12131_v37 = vld [vmem:[%s17590_s1 + $0xe60] ss:$16 sps:$4 sm:$0xff]  }
 0x193   :  { %7746 = vmatpush1.bf16.msra.mxu0 %v12039_v38  ;;  %8525 = vmatpush1.bf16.msra.mxu1 %v12042_v39  ;;  %v12134_v38 = vld [vmem:[%s17590_s1 + $0xe68] ss:$16 sps:$4 sm:$0xff]   ;;  %v12139_v39 = vld [vmem:[%s17590_s1 + $0xe84] ss:$16 sps:$4 sm:$0xff]  }
 0x194   :  { %7747 = vmatprep.subr.bf16.mxu0 %v12047_v40  ;;  %8526 = vmatprep.subr.bf16.mxu1 %v12050_v41  ;;  %v12142_v40 = vld [vmem:[%s17590_s1 + $0xe8c] ss:$16 sps:$4 sm:$0xff]   ;;  %v12137_v41 = vld [vmem:[%s17590_s1 + $0xe80] ss:$16 sps:$4 sm:$0xff]  }
 0x197   :  { %7748 = vmatpush1.bf16.msra.mxu0 %v12045_v42  ;;  %8527 = vmatpush1.bf16.msra.mxu1 %v12048_v43  ;;  %v12140_v42 = vld [vmem:[%s17590_s1 + $0xe88] ss:$16 sps:$4 sm:$0xff]   ;;  %v12145_v43 = vld [vmem:[%s17590_s1 + $0xea4] ss:$16 sps:$4 sm:$0xff]  }
 0x198   :  { %7749 = vmatprep.subr.bf16.mxu0 %v12053_v44  ;;  %8528 = vmatprep.subr.bf16.mxu1 %v12056_v45  ;;  %v12148_v44 = vld [vmem:[%s17590_s1 + $0xeac] ss:$16 sps:$4 sm:$0xff]   ;;  %v12143_v45 = vld [vmem:[%s17590_s1 + $0xea0] ss:$16 sps:$4 sm:$0xff]  }
 0x19b   :  { %7750 = vmatpush1.bf16.msra.mxu0 %v12051_v46  ;;  %8529 = vmatpush1.bf16.msra.mxu1 %v12054_v47  ;;  %v12146_v46 = vld [vmem:[%s17590_s1 + $0xea8] ss:$16 sps:$4 sm:$0xff]   ;;  %v12151_v47 = vld [vmem:[%s17590_s1 + $0xec4] ss:$16 sps:$4 sm:$0xff]  }
 0x19c   :  { %7751 = vmatprep.subr.bf16.mxu0 %v12059_v48  ;;  %8530 = vmatprep.subr.bf16.mxu1 %v12062_v49  ;;  %v12154_v48 = vld [vmem:[%s17590_s1 + $0xecc] ss:$16 sps:$4 sm:$0xff]   ;;  %v12149_v49 = vld [vmem:[%s17590_s1 + $0xec0] ss:$16 sps:$4 sm:$0xff]  }
 0x19f   :  { %7752 = vmatpush1.bf16.msra.mxu0 %v12057_v50  ;;  %8531 = vmatpush1.bf16.msra.mxu1 %v12060_v51  ;;  %v12152_v50 = vld [vmem:[%s17590_s1 + $0xec8] ss:$16 sps:$4 sm:$0xff]   ;;  %v12157_v51 = vld [vmem:[%s17590_s1 + $0xee4] ss:$16 sps:$4 sm:$0xff]  }
 0x1a0   :  { %7753 = vmatprep.subr.bf16.mxu0 %v12065_v52  ;;  %8532 = vmatprep.subr.bf16.mxu1 %v12068_v53  ;;  %v12160_v52 = vld [vmem:[%s17590_s1 + $0xeec] ss:$16 sps:$4 sm:$0xff]   ;;  %v12155_v53 = vld [vmem:[%s17590_s1 + $0xee0] ss:$16 sps:$4 sm:$0xff]  }
 0x1a3   :  { %7754 = vmatpush1.bf16.msra.mxu0 %v12063_v54  ;;  %8533 = vmatpush1.bf16.msra.mxu1 %v12066_v55  ;;  %v12158_v54 = vld [vmem:[%s17590_s1 + $0xee8] ss:$16 sps:$4 sm:$0xff]   ;;  %v12163_v55 = vld [vmem:[%s17590_s1 + $0xf04] ss:$16 sps:$4 sm:$0xff]  }
 0x1a4   :  { %7755 = vmatprep.subr.bf16.mxu0 %v12071_v56  ;;  %8534 = vmatprep.subr.bf16.mxu1 %v12074_v57  ;;  %v12166_v56 = vld [vmem:[%s17590_s1 + $0xf0c] ss:$16 sps:$4 sm:$0xff]   ;;  %v12161_v57 = vld [vmem:[%s17590_s1 + $0xf00] ss:$16 sps:$4 sm:$0xff]  }
 0x1a7   :  { %7756 = vmatpush1.bf16.msra.mxu0 %v12069_v58  ;;  %8535 = vmatpush1.bf16.msra.mxu1 %v12072_v59  ;;  %v12164_v58 = vld [vmem:[%s17590_s1 + $0xf08] ss:$16 sps:$4 sm:$0xff]   ;;  %v12169_v59 = vld [vmem:[%s17590_s1 + $0xf24] ss:$16 sps:$4 sm:$0xff]  }
 0x1a8   :  { %7757 = vmatprep.subr.bf16.mxu0 %v12077_v60  ;;  %8536 = vmatprep.subr.bf16.mxu1 %v12080_v61  ;;  %v12172_v60 = vld [vmem:[%s17590_s1 + $0xf2c] ss:$16 sps:$4 sm:$0xff]   ;;  %v12167_v61 = vld [vmem:[%s17590_s1 + $0xf20] ss:$16 sps:$4 sm:$0xff]  }
 0x1ab   :  { %7758 = vmatpush1.bf16.msra.mxu0 %v12075_v62  ;;  %8537 = vmatpush1.bf16.msra.mxu1 %v12078_v63  ;;  %v12170_v62 = vld [vmem:[%s17590_s1 + $0xf28] ss:$16 sps:$4 sm:$0xff]   ;;  %v12175_v63 = vld [vmem:[%s17590_s1 + $0xf44] ss:$16 sps:$4 sm:$0xff]  }
 0x1ac   :  { %7759 = vmatprep.subr.bf16.mxu0 %v12083_v0  ;;  %8538 = vmatprep.subr.bf16.mxu1 %v12086_v1  ;;  %v12178_v0 = vld [vmem:[%s17590_s1 + $0xf4c] ss:$16 sps:$4 sm:$0xff]   ;;  %v12173_v1 = vld [vmem:[%s17590_s1 + $0xf40] ss:$16 sps:$4 sm:$0xff]  }
 0x1af   :  { %7760 = vmatpush1.bf16.msra.mxu0 %v12081_v2  ;;  %8539 = vmatpush1.bf16.msra.mxu1 %v12084_v3  ;;  %v12176_v2 = vld [vmem:[%s17590_s1 + $0xf48] ss:$16 sps:$4 sm:$0xff]   ;;  %v12181_v3 = vld [vmem:[%s17590_s1 + $0xf64] ss:$16 sps:$4 sm:$0xff]  }
 0x1b0   :  { %7761 = vmatprep.subr.bf16.mxu0 %v12089_v4  ;;  %8540 = vmatprep.subr.bf16.mxu1 %v12092_v5  ;;  %v12184_v4 = vld [vmem:[%s17590_s1 + $0xf6c] ss:$16 sps:$4 sm:$0xff]   ;;  %v12179_v5 = vld [vmem:[%s17590_s1 + $0xf60] ss:$16 sps:$4 sm:$0xff]  }
 0x1b3   :  { %7762 = vmatpush1.bf16.msra.mxu0 %v12087_v6  ;;  %8541 = vmatpush1.bf16.msra.mxu1 %v12090_v7  ;;  %v12182_v6 = vld [vmem:[%s17590_s1 + $0xf68] ss:$16 sps:$4 sm:$0xff]   ;;  %v12187_v7 = vld [vmem:[%s17590_s1 + $0xf84] ss:$16 sps:$4 sm:$0xff]  }
 0x1b4   :  { %7763 = vmatprep.subr.bf16.mxu0 %v12095_v8  ;;  %8542 = vmatprep.subr.bf16.mxu1 %v12098_v9  ;;  %v12190_v8 = vld [vmem:[%s17590_s1 + $0xf8c] ss:$16 sps:$4 sm:$0xff]   ;;  %v12185_v9 = vld [vmem:[%s17590_s1 + $0xf80] ss:$16 sps:$4 sm:$0xff]  }
 0x1b7   :  { %7764 = vmatpush1.bf16.msra.mxu0 %v12093_v10  ;;  %8543 = vmatpush1.bf16.msra.mxu1 %v12096_v12  ;;  %v12188_v10 = vld [vmem:[%s17590_s1 + $0xf88] ss:$16 sps:$4 sm:$0xff]   ;;  %v12193_v12 = vld [vmem:[%s17590_s1 + $0xfa4] ss:$16 sps:$4 sm:$0xff]  }
 0x1b8   :  { %7765 = vmatprep.subr.bf16.mxu0 %v12101_v13  ;;  %8544 = vmatprep.subr.bf16.mxu1 %v12104_v15  ;;  %v12196_v13 = vld [vmem:[%s17590_s1 + $0xfac] ss:$16 sps:$4 sm:$0xff]   ;;  %v12191_v15 = vld [vmem:[%s17590_s1 + $0xfa0] ss:$16 sps:$4 sm:$0xff]  }
 0x1bb   :  { %7766 = vmatpush1.bf16.msra.mxu0 %v12099_v11  ;;  %8545 = vmatpush1.bf16.msra.mxu1 %v12102_v17  ;;  %v12194_v11 = vld [vmem:[%s17590_s1 + $0xfa8] ss:$16 sps:$4 sm:$0xff]   ;;  %v12199_v17 = vld [vmem:[%s17590_s1 + $0xfc4] ss:$16 sps:$4 sm:$0xff]  }
 0x1bc   :  { %7767 = vmatprep.subr.bf16.mxu0 %v12107_v14  ;;  %8546 = vmatprep.subr.bf16.mxu1 %v12110_v19  ;;  %v12202_v14 = vld [vmem:[%s17590_s1 + $0xfcc] ss:$16 sps:$4 sm:$0xff]   ;;  %v12197_v19 = vld [vmem:[%s17590_s1 + $0xfc0] ss:$16 sps:$4 sm:$0xff]  }
 0x1bf   :  { %7768 = vmatpush1.bf16.msra.mxu0 %v12105_v20  ;;  %8547 = vmatpush1.bf16.msra.mxu1 %v12108_v16  ;;  %v12200_v20 = vld [vmem:[%s17590_s1 + $0xfc8] ss:$16 sps:$4 sm:$0xff]   ;;  %v12205_v16 = vld [vmem:[%s17590_s1 + $0xfe4] ss:$16 sps:$4 sm:$0xff]  }
 0x1c0   :  { %7778 = vmatprep.subr.bf16.mxu0 %v12115_v22  ;;  %8557 = vmatprep.subr.bf16.mxu1 %v12118_v23  ;;  %v12208_v22 = vld [vmem:[%s17590_s1 + $0xfec] ss:$16 sps:$4 sm:$0xff]   ;;  %v12203_v23 = vld [vmem:[%s17590_s1 + $0xfe0] ss:$16 sps:$4 sm:$0xff]  }
 0x1c2   :  { %7770 = vmatmul.mubr.bf16.vlgmr.msra.gmra.mrb[0].mxu0 %v9891_v18  ;;  %8549 = vmatmul.mubr.bf16.vlgmr.msra.gmra.mrb[0].mxu1 %v9891_v18  ;;  %v12206_v18 = vld [vmem:[%s17590_s1 + $0xfe8] ss:$16 sps:$4 sm:$0xff]  }
 0x1c3   :  { %7779 = vmatpush1.bf16.msra.mxu0 %v12113_v25  ;;  %8558 = vmatpush1.bf16.msra.mxu1 %v12116_v26  ;;  %v12213_v25 = vld [vmem:[%s17590_s1 + $0x1004] ss:$16 sps:$4 sm:$0xff]   ;;  %v12216_v26 = vld [vmem:[%s17590_s1 + $0x100c] ss:$16 sps:$4 sm:$0xff]  }
 0x1c4   :  { %7780 = vmatprep.subr.bf16.mxu0 %v12121_v27  ;;  %8559 = vmatprep.subr.bf16.mxu1 %v12124_v21  ;;  %v15056_v27 = vld [vmem:[%s17591_s0 + $0x40] sm:$0xff]  ;;  %v9893_v21 = vcombine.low %v14855_v24, %v14855_v24  ;;  %v12222_v24 = vld [vmem:[%s17590_s1 + $0x102c] ss:$16 sps:$4 sm:$0xff]  }
 0x1c5   :  { %7810 = vmatprep.mubr.bf16.mxu0 %v9894_v28  ;;  %8589 = vmatprep.mubr.bf16.mxu1 %v9894_v28  ;;  %v12211_v28 = vld [vmem:[%s17590_s1 + $0x1000] ss:$16 sps:$4 sm:$0xff]  }
 0x1c7   :  { %7781 = vmatpush1.bf16.msra.mxu0 %v12119_v29  ;;  %8560 = vmatpush1.bf16.msra.mxu1 %v12122_v30  ;;  %v12214_v29 = vld [vmem:[%s17590_s1 + $0x1008] ss:$16 sps:$4 sm:$0xff]   ;;  %v12219_v30 = vld [vmem:[%s17590_s1 + $0x1024] ss:$16 sps:$4 sm:$0xff]  }
 0x1c8   :  { %7782 = vmatprep.subr.bf16.mxu0 %v12127_v31  ;;  %8561 = vmatprep.subr.bf16.mxu1 %v12130_v32  ;;  %v9896_v31 = vcombine.high %v15056_v27, %v15056_v27  ;;  %v12217_v32 = vld [vmem:[%s17590_s1 + $0x1020] ss:$16 sps:$4 sm:$0xff]  }
 0x1cb   :  { %7783 = vmatpush1.bf16.msra.mxu0 %v12125_v33  ;;  %8562 = vmatpush1.bf16.msra.mxu1 %v12128_v34  ;;  %v12220_v33 = vld [vmem:[%s17590_s1 + $0x1028] ss:$16 sps:$4 sm:$0xff]   ;;  %v12225_v34 = vld [vmem:[%s17590_s1 + $0x1044] ss:$16 sps:$4 sm:$0xff]  }
 0x1cc   :  { %7784 = vmatprep.subr.bf16.mxu0 %v12133_v35  ;;  %8563 = vmatprep.subr.bf16.mxu1 %v12136_v36  ;;  %v12228_v35 = vld [vmem:[%s17590_s1 + $0x104c] ss:$16 sps:$4 sm:$0xff]   ;;  %v12223_v36 = vld [vmem:[%s17590_s1 + $0x1040] ss:$16 sps:$4 sm:$0xff]  }
 0x1cf   :  { %7785 = vmatpush1.bf16.msra.mxu0 %v12131_v37  ;;  %8564 = vmatpush1.bf16.msra.mxu1 %v12134_v38  ;;  %v12226_v37 = vld [vmem:[%s17590_s1 + $0x1048] ss:$16 sps:$4 sm:$0xff]   ;;  %v12231_v38 = vld [vmem:[%s17590_s1 + $0x1064] ss:$16 sps:$4 sm:$0xff]  }
 0x1d0   :  { %7786 = vmatprep.subr.bf16.mxu0 %v12139_v39  ;;  %8565 = vmatprep.subr.bf16.mxu1 %v12142_v40  ;;  %v12234_v39 = vld [vmem:[%s17590_s1 + $0x106c] ss:$16 sps:$4 sm:$0xff]   ;;  %v12229_v40 = vld [vmem:[%s17590_s1 + $0x1060] ss:$16 sps:$4 sm:$0xff]  }
 0x1d3   :  { %7787 = vmatpush1.bf16.msra.mxu0 %v12137_v41  ;;  %8566 = vmatpush1.bf16.msra.mxu1 %v12140_v42  ;;  %v12232_v41 = vld [vmem:[%s17590_s1 + $0x1068] ss:$16 sps:$4 sm:$0xff]   ;;  %v12237_v42 = vld [vmem:[%s17590_s1 + $0x1084] ss:$16 sps:$4 sm:$0xff]  }
 0x1d4   :  { %7788 = vmatprep.subr.bf16.mxu0 %v12145_v43  ;;  %8567 = vmatprep.subr.bf16.mxu1 %v12148_v44  ;;  %v12240_v43 = vld [vmem:[%s17590_s1 + $0x108c] ss:$16 sps:$4 sm:$0xff]   ;;  %v12235_v44 = vld [vmem:[%s17590_s1 + $0x1080] ss:$16 sps:$4 sm:$0xff]  }
 0x1d7   :  { %7789 = vmatpush1.bf16.msra.mxu0 %v12143_v45  ;;  %8568 = vmatpush1.bf16.msra.mxu1 %v12146_v46  ;;  %v12238_v45 = vld [vmem:[%s17590_s1 + $0x1088] ss:$16 sps:$4 sm:$0xff]   ;;  %v12243_v46 = vld [vmem:[%s17590_s1 + $0x10a4] ss:$16 sps:$4 sm:$0xff]  }
 0x1d8   :  { %7790 = vmatprep.subr.bf16.mxu0 %v12151_v47  ;;  %8569 = vmatprep.subr.bf16.mxu1 %v12154_v48  ;;  %v12246_v47 = vld [vmem:[%s17590_s1 + $0x10ac] ss:$16 sps:$4 sm:$0xff]   ;;  %v12241_v48 = vld [vmem:[%s17590_s1 + $0x10a0] ss:$16 sps:$4 sm:$0xff]  }
 0x1db   :  { %7791 = vmatpush1.bf16.msra.mxu0 %v12149_v49  ;;  %8570 = vmatpush1.bf16.msra.mxu1 %v12152_v50  ;;  %v12244_v49 = vld [vmem:[%s17590_s1 + $0x10a8] ss:$16 sps:$4 sm:$0xff]   ;;  %v12249_v50 = vld [vmem:[%s17590_s1 + $0x10c4] ss:$16 sps:$4 sm:$0xff]  }
 0x1dc   :  { %7792 = vmatprep.subr.bf16.mxu0 %v12157_v51  ;;  %8571 = vmatprep.subr.bf16.mxu1 %v12160_v52  ;;  %v12252_v51 = vld [vmem:[%s17590_s1 + $0x10cc] ss:$16 sps:$4 sm:$0xff]   ;;  %v12247_v52 = vld [vmem:[%s17590_s1 + $0x10c0] ss:$16 sps:$4 sm:$0xff]  }
 0x1df   :  { %7793 = vmatpush1.bf16.msra.mxu0 %v12155_v53  ;;  %8572 = vmatpush1.bf16.msra.mxu1 %v12158_v54  ;;  %v12250_v53 = vld [vmem:[%s17590_s1 + $0x10c8] ss:$16 sps:$4 sm:$0xff]   ;;  %v12255_v54 = vld [vmem:[%s17590_s1 + $0x10e4] ss:$16 sps:$4 sm:$0xff]  }
 0x1e0   :  { %7794 = vmatprep.subr.bf16.mxu0 %v12163_v55  ;;  %8573 = vmatprep.subr.bf16.mxu1 %v12166_v56  ;;  %v12258_v55 = vld [vmem:[%s17590_s1 + $0x10ec] ss:$16 sps:$4 sm:$0xff]   ;;  %v12253_v56 = vld [vmem:[%s17590_s1 + $0x10e0] ss:$16 sps:$4 sm:$0xff]  }
 0x1e3   :  { %7795 = vmatpush1.bf16.msra.mxu0 %v12161_v57  ;;  %8574 = vmatpush1.bf16.msra.mxu1 %v12164_v58  ;;  %v12256_v57 = vld [vmem:[%s17590_s1 + $0x10e8] ss:$16 sps:$4 sm:$0xff]   ;;  %v12261_v58 = vld [vmem:[%s17590_s1 + $0x1104] ss:$16 sps:$4 sm:$0xff]  }
 0x1e4   :  { %7796 = vmatprep.subr.bf16.mxu0 %v12169_v59  ;;  %8575 = vmatprep.subr.bf16.mxu1 %v12172_v60  ;;  %v12264_v59 = vld [vmem:[%s17590_s1 + $0x110c] ss:$16 sps:$4 sm:$0xff]   ;;  %v12259_v60 = vld [vmem:[%s17590_s1 + $0x1100] ss:$16 sps:$4 sm:$0xff]  }
 0x1e7   :  { %7797 = vmatpush1.bf16.msra.mxu0 %v12167_v61  ;;  %8576 = vmatpush1.bf16.msra.mxu1 %v12170_v62  ;;  %v12262_v61 = vld [vmem:[%s17590_s1 + $0x1108] ss:$16 sps:$4 sm:$0xff]   ;;  %v12267_v62 = vld [vmem:[%s17590_s1 + $0x1124] ss:$16 sps:$4 sm:$0xff]  }
 0x1e8   :  { %7798 = vmatprep.subr.bf16.mxu0 %v12175_v63  ;;  %8577 = vmatprep.subr.bf16.mxu1 %v12178_v0  ;;  %v12270_v63 = vld [vmem:[%s17590_s1 + $0x112c] ss:$16 sps:$4 sm:$0xff]   ;;  %v12265_v0 = vld [vmem:[%s17590_s1 + $0x1120] ss:$16 sps:$4 sm:$0xff]  }
 0x1eb   :  { %7799 = vmatpush1.bf16.msra.mxu0 %v12173_v1  ;;  %8578 = vmatpush1.bf16.msra.mxu1 %v12176_v2  ;;  %v12268_v1 = vld [vmem:[%s17590_s1 + $0x1128] ss:$16 sps:$4 sm:$0xff]   ;;  %v12273_v2 = vld [vmem:[%s17590_s1 + $0x1144] ss:$16 sps:$4 sm:$0xff]  }
 0x1ec   :  { %7800 = vmatprep.subr.bf16.mxu0 %v12181_v3  ;;  %8579 = vmatprep.subr.bf16.mxu1 %v12184_v4  ;;  %v12276_v3 = vld [vmem:[%s17590_s1 + $0x114c] ss:$16 sps:$4 sm:$0xff]   ;;  %v12271_v4 = vld [vmem:[%s17590_s1 + $0x1140] ss:$16 sps:$4 sm:$0xff]  }
 0x1ef   :  { %7801 = vmatpush1.bf16.msra.mxu0 %v12179_v5  ;;  %8580 = vmatpush1.bf16.msra.mxu1 %v12182_v6  ;;  %v12274_v5 = vld [vmem:[%s17590_s1 + $0x1148] ss:$16 sps:$4 sm:$0xff]   ;;  %v12279_v6 = vld [vmem:[%s17590_s1 + $0x1164] ss:$16 sps:$4 sm:$0xff]  }
 0x1f0   :  { %7802 = vmatprep.subr.bf16.mxu0 %v12187_v7  ;;  %8581 = vmatprep.subr.bf16.mxu1 %v12190_v8  ;;  %v12282_v7 = vld [vmem:[%s17590_s1 + $0x116c] ss:$16 sps:$4 sm:$0xff]   ;;  %v12277_v8 = vld [vmem:[%s17590_s1 + $0x1160] ss:$16 sps:$4 sm:$0xff]  }
 0x1f3   :  { %7803 = vmatpush1.bf16.msra.mxu0 %v12185_v9  ;;  %8582 = vmatpush1.bf16.msra.mxu1 %v12188_v10  ;;  %v12280_v9 = vld [vmem:[%s17590_s1 + $0x1168] ss:$16 sps:$4 sm:$0xff]   ;;  %v12285_v10 = vld [vmem:[%s17590_s1 + $0x1184] ss:$16 sps:$4 sm:$0xff]  }
 0x1f4   :  { %7804 = vmatprep.subr.bf16.mxu0 %v12193_v12  ;;  %8583 = vmatprep.subr.bf16.mxu1 %v12196_v13  ;;  %v12288_v12 = vld [vmem:[%s17590_s1 + $0x118c] ss:$16 sps:$4 sm:$0xff]   ;;  %v12283_v13 = vld [vmem:[%s17590_s1 + $0x1180] ss:$16 sps:$4 sm:$0xff]  }
 0x1f7   :  { %7805 = vmatpush1.bf16.msra.mxu0 %v12191_v15  ;;  %8584 = vmatpush1.bf16.msra.mxu1 %v12194_v11  ;;  %v12286_v15 = vld [vmem:[%s17590_s1 + $0x1188] ss:$16 sps:$4 sm:$0xff]   ;;  %v12291_v11 = vld [vmem:[%s17590_s1 + $0x11a4] ss:$16 sps:$4 sm:$0xff]  }
 0x1f8   :  { %7806 = vmatprep.subr.bf16.mxu0 %v12199_v17  ;;  %8585 = vmatprep.subr.bf16.mxu1 %v12202_v14  ;;  %v12294_v17 = vld [vmem:[%s17590_s1 + $0x11ac] ss:$16 sps:$4 sm:$0xff]   ;;  %v12289_v14 = vld [vmem:[%s17590_s1 + $0x11a0] ss:$16 sps:$4 sm:$0xff]  }
 0x1fb   :  { %7807 = vmatpush1.bf16.msra.mxu0 %v12197_v19  ;;  %8586 = vmatpush1.bf16.msra.mxu1 %v12200_v20  ;;  %v12292_v19 = vld [vmem:[%s17590_s1 + $0x11a8] ss:$16 sps:$4 sm:$0xff]   ;;  %v12297_v20 = vld [vmem:[%s17590_s1 + $0x11c4] ss:$16 sps:$4 sm:$0xff]  }
 0x1fc   :  { %7808 = vmatprep.subr.bf16.mxu0 %v12205_v16  ;;  %8587 = vmatprep.subr.bf16.mxu1 %v12208_v22  ;;  %v12300_v16 = vld [vmem:[%s17590_s1 + $0x11cc] ss:$16 sps:$4 sm:$0xff]   ;;  %v12295_v22 = vld [vmem:[%s17590_s1 + $0x11c0] ss:$16 sps:$4 sm:$0xff]  }
 0x1ff   :  { %7809 = vmatpush1.bf16.msra.mxu0 %v12203_v23  ;;  %8588 = vmatpush1.bf16.msra.mxu1 %v12206_v18  ;;  %v12298_v23 = vld [vmem:[%s17590_s1 + $0x11c8] ss:$16 sps:$4 sm:$0xff]   ;;  %v12303_v18 = vld [vmem:[%s17590_s1 + $0x11e4] ss:$16 sps:$4 sm:$0xff]  }
 0x200   :  { %7819 = vmatprep.subr.bf16.mxu0 %v12213_v25  ;;  %8598 = vmatprep.subr.bf16.mxu1 %v12216_v26  ;;  %v12306_v25 = vld [vmem:[%s17590_s1 + $0x11ec] ss:$16 sps:$4 sm:$0xff]   ;;  %v12301_v26 = vld [vmem:[%s17590_s1 + $0x11e0] ss:$16 sps:$4 sm:$0xff]  }
 0x202   :  { %7811 = vmatmul.mubr.bf16.vlgmr.msra.gmra.mrb[0].mxu0 %v9893_v21  ;;  %8590 = vmatmul.mubr.bf16.vlgmr.msra.gmra.mrb[0].mxu1 %v9893_v21  ;;  %v12304_v21 = vld [vmem:[%s17590_s1 + $0x11e8] ss:$16 sps:$4 sm:$0xff]  }
 0x203   :  { %7820 = vmatpush1.bf16.msra.mxu0 %v12211_v28  ;;  %8599 = vmatpush1.bf16.msra.mxu1 %v12214_v29  ;;  %v12311_v28 = vld [vmem:[%s17590_s1 + $0x1204] ss:$16 sps:$4 sm:$0xff]   ;;  %v12314_v29 = vld [vmem:[%s17590_s1 + $0x120c] ss:$16 sps:$4 sm:$0xff]  }
 0x204   :  { %7821 = vmatprep.subr.bf16.mxu0 %v12219_v30  ;;  %8600 = vmatprep.subr.bf16.mxu1 %v12222_v24  ;;  %v15257_v30 = vld [vmem:[%s17591_s0 + $0x48] sm:$0xff]  ;;  %v9895_v24 = vcombine.low %v15056_v27, %v15056_v27 }
 0x205   :  { %7851 = vmatprep.mubr.bf16.mxu0 %v9896_v31  ;;  %8630 = vmatprep.mubr.bf16.mxu1 %v9896_v31  ;;  %v12309_v31 = vld [vmem:[%s17590_s1 + $0x1200] ss:$16 sps:$4 sm:$0xff]   ;;  %v12320_v27 = vld [vmem:[%s17590_s1 + $0x122c] ss:$16 sps:$4 sm:$0xff]  }
 0x207   :  { %7822 = vmatpush1.bf16.msra.mxu0 %v12217_v32  ;;  %8601 = vmatpush1.bf16.msra.mxu1 %v12220_v33  ;;  %v12312_v32 = vld [vmem:[%s17590_s1 + $0x1208] ss:$16 sps:$4 sm:$0xff]   ;;  %v12317_v33 = vld [vmem:[%s17590_s1 + $0x1224] ss:$16 sps:$4 sm:$0xff]  }
 0x208   :  { %7823 = vmatprep.subr.bf16.mxu0 %v12225_v34  ;;  %8602 = vmatprep.subr.bf16.mxu1 %v12228_v35  ;;  %v9898_v34 = vcombine.high %v15257_v30, %v15257_v30  ;;  %v12315_v35 = vld [vmem:[%s17590_s1 + $0x1220] ss:$16 sps:$4 sm:$0xff]  }
 0x20b   :  { %7824 = vmatpush1.bf16.msra.mxu0 %v12223_v36  ;;  %8603 = vmatpush1.bf16.msra.mxu1 %v12226_v37  ;;  %v12318_v36 = vld [vmem:[%s17590_s1 + $0x1228] ss:$16 sps:$4 sm:$0xff]   ;;  %v12323_v37 = vld [vmem:[%s17590_s1 + $0x1244] ss:$16 sps:$4 sm:$0xff]  }
 0x20c   :  { %7825 = vmatprep.subr.bf16.mxu0 %v12231_v38  ;;  %8604 = vmatprep.subr.bf16.mxu1 %v12234_v39  ;;  %v12326_v38 = vld [vmem:[%s17590_s1 + $0x124c] ss:$16 sps:$4 sm:$0xff]   ;;  %v12321_v39 = vld [vmem:[%s17590_s1 + $0x1240] ss:$16 sps:$4 sm:$0xff]  }
 0x20f   :  { %7826 = vmatpush1.bf16.msra.mxu0 %v12229_v40  ;;  %8605 = vmatpush1.bf16.msra.mxu1 %v12232_v41  ;;  %v12324_v40 = vld [vmem:[%s17590_s1 + $0x1248] ss:$16 sps:$4 sm:$0xff]   ;;  %v12329_v41 = vld [vmem:[%s17590_s1 + $0x1264] ss:$16 sps:$4 sm:$0xff]  }
 0x210   :  { %7827 = vmatprep.subr.bf16.mxu0 %v12237_v42  ;;  %8606 = vmatprep.subr.bf16.mxu1 %v12240_v43  ;;  %v12332_v42 = vld [vmem:[%s17590_s1 + $0x126c] ss:$16 sps:$4 sm:$0xff]   ;;  %v12327_v43 = vld [vmem:[%s17590_s1 + $0x1260] ss:$16 sps:$4 sm:$0xff]  }
 0x213   :  { %7828 = vmatpush1.bf16.msra.mxu0 %v12235_v44  ;;  %8607 = vmatpush1.bf16.msra.mxu1 %v12238_v45  ;;  %v12330_v44 = vld [vmem:[%s17590_s1 + $0x1268] ss:$16 sps:$4 sm:$0xff]   ;;  %v12335_v45 = vld [vmem:[%s17590_s1 + $0x1284] ss:$16 sps:$4 sm:$0xff]  }
 0x214   :  { %7829 = vmatprep.subr.bf16.mxu0 %v12243_v46  ;;  %8608 = vmatprep.subr.bf16.mxu1 %v12246_v47  ;;  %v12338_v46 = vld [vmem:[%s17590_s1 + $0x128c] ss:$16 sps:$4 sm:$0xff]   ;;  %v12333_v47 = vld [vmem:[%s17590_s1 + $0x1280] ss:$16 sps:$4 sm:$0xff]  }
 0x217   :  { %7830 = vmatpush1.bf16.msra.mxu0 %v12241_v48  ;;  %8609 = vmatpush1.bf16.msra.mxu1 %v12244_v49  ;;  %v12336_v48 = vld [vmem:[%s17590_s1 + $0x1288] ss:$16 sps:$4 sm:$0xff]   ;;  %v12341_v49 = vld [vmem:[%s17590_s1 + $0x12a4] ss:$16 sps:$4 sm:$0xff]  }
 0x218   :  { %7831 = vmatprep.subr.bf16.mxu0 %v12249_v50  ;;  %8610 = vmatprep.subr.bf16.mxu1 %v12252_v51  ;;  %v12344_v50 = vld [vmem:[%s17590_s1 + $0x12ac] ss:$16 sps:$4 sm:$0xff]   ;;  %v12339_v51 = vld [vmem:[%s17590_s1 + $0x12a0] ss:$16 sps:$4 sm:$0xff]  }
 0x21b   :  { %7832 = vmatpush1.bf16.msra.mxu0 %v12247_v52  ;;  %8611 = vmatpush1.bf16.msra.mxu1 %v12250_v53  ;;  %v12342_v52 = vld [vmem:[%s17590_s1 + $0x12a8] ss:$16 sps:$4 sm:$0xff]   ;;  %v12347_v53 = vld [vmem:[%s17590_s1 + $0x12c4] ss:$16 sps:$4 sm:$0xff]  }
 0x21c   :  { %7833 = vmatprep.subr.bf16.mxu0 %v12255_v54  ;;  %8612 = vmatprep.subr.bf16.mxu1 %v12258_v55  ;;  %v12350_v54 = vld [vmem:[%s17590_s1 + $0x12cc] ss:$16 sps:$4 sm:$0xff]   ;;  %v12345_v55 = vld [vmem:[%s17590_s1 + $0x12c0] ss:$16 sps:$4 sm:$0xff]  }
 0x21f   :  { %7834 = vmatpush1.bf16.msra.mxu0 %v12253_v56  ;;  %8613 = vmatpush1.bf16.msra.mxu1 %v12256_v57  ;;  %v12348_v56 = vld [vmem:[%s17590_s1 + $0x12c8] ss:$16 sps:$4 sm:$0xff]   ;;  %v12353_v57 = vld [vmem:[%s17590_s1 + $0x12e4] ss:$16 sps:$4 sm:$0xff]  }
 0x220   :  { %7835 = vmatprep.subr.bf16.mxu0 %v12261_v58  ;;  %8614 = vmatprep.subr.bf16.mxu1 %v12264_v59  ;;  %v12356_v58 = vld [vmem:[%s17590_s1 + $0x12ec] ss:$16 sps:$4 sm:$0xff]   ;;  %v12351_v59 = vld [vmem:[%s17590_s1 + $0x12e0] ss:$16 sps:$4 sm:$0xff]  }
 0x223   :  { %7836 = vmatpush1.bf16.msra.mxu0 %v12259_v60  ;;  %8615 = vmatpush1.bf16.msra.mxu1 %v12262_v61  ;;  %v12354_v60 = vld [vmem:[%s17590_s1 + $0x12e8] ss:$16 sps:$4 sm:$0xff]   ;;  %v12359_v61 = vld [vmem:[%s17590_s1 + $0x1304] ss:$16 sps:$4 sm:$0xff]  }
 0x224   :  { %7837 = vmatprep.subr.bf16.mxu0 %v12267_v62  ;;  %8616 = vmatprep.subr.bf16.mxu1 %v12270_v63  ;;  %v12362_v62 = vld [vmem:[%s17590_s1 + $0x130c] ss:$16 sps:$4 sm:$0xff]   ;;  %v12357_v63 = vld [vmem:[%s17590_s1 + $0x1300] ss:$16 sps:$4 sm:$0xff]  }
 0x227   :  { %7838 = vmatpush1.bf16.msra.mxu0 %v12265_v0  ;;  %8617 = vmatpush1.bf16.msra.mxu1 %v12268_v1  ;;  %v12360_v0 = vld [vmem:[%s17590_s1 + $0x1308] ss:$16 sps:$4 sm:$0xff]   ;;  %v12365_v1 = vld [vmem:[%s17590_s1 + $0x1324] ss:$16 sps:$4 sm:$0xff]  }
 0x228   :  { %7839 = vmatprep.subr.bf16.mxu0 %v12273_v2  ;;  %8618 = vmatprep.subr.bf16.mxu1 %v12276_v3  ;;  %v12368_v2 = vld [vmem:[%s17590_s1 + $0x132c] ss:$16 sps:$4 sm:$0xff]   ;;  %v12363_v3 = vld [vmem:[%s17590_s1 + $0x1320] ss:$16 sps:$4 sm:$0xff]  }
 0x22b   :  { %7840 = vmatpush1.bf16.msra.mxu0 %v12271_v4  ;;  %8619 = vmatpush1.bf16.msra.mxu1 %v12274_v5  ;;  %v12366_v4 = vld [vmem:[%s17590_s1 + $0x1328] ss:$16 sps:$4 sm:$0xff]   ;;  %v12371_v5 = vld [vmem:[%s17590_s1 + $0x1344] ss:$16 sps:$4 sm:$0xff]  }
 0x22c   :  { %7841 = vmatprep.subr.bf16.mxu0 %v12279_v6  ;;  %8620 = vmatprep.subr.bf16.mxu1 %v12282_v7  ;;  %v12374_v6 = vld [vmem:[%s17590_s1 + $0x134c] ss:$16 sps:$4 sm:$0xff]   ;;  %v12369_v7 = vld [vmem:[%s17590_s1 + $0x1340] ss:$16 sps:$4 sm:$0xff]  }
 0x22f   :  { %7842 = vmatpush1.bf16.msra.mxu0 %v12277_v8  ;;  %8621 = vmatpush1.bf16.msra.mxu1 %v12280_v9  ;;  %v12372_v8 = vld [vmem:[%s17590_s1 + $0x1348] ss:$16 sps:$4 sm:$0xff]   ;;  %v12377_v9 = vld [vmem:[%s17590_s1 + $0x1364] ss:$16 sps:$4 sm:$0xff]  }
 0x230   :  { %7843 = vmatprep.subr.bf16.mxu0 %v12285_v10  ;;  %8622 = vmatprep.subr.bf16.mxu1 %v12288_v12  ;;  %v12380_v10 = vld [vmem:[%s17590_s1 + $0x136c] ss:$16 sps:$4 sm:$0xff]   ;;  %v12375_v12 = vld [vmem:[%s17590_s1 + $0x1360] ss:$16 sps:$4 sm:$0xff]  }
 0x233   :  { %7844 = vmatpush1.bf16.msra.mxu0 %v12283_v13  ;;  %8623 = vmatpush1.bf16.msra.mxu1 %v12286_v15  ;;  %v12378_v13 = vld [vmem:[%s17590_s1 + $0x1368] ss:$16 sps:$4 sm:$0xff]   ;;  %v12383_v15 = vld [vmem:[%s17590_s1 + $0x1384] ss:$16 sps:$4 sm:$0xff]  }
 0x234   :  { %7845 = vmatprep.subr.bf16.mxu0 %v12291_v11  ;;  %8624 = vmatprep.subr.bf16.mxu1 %v12294_v17  ;;  %v12386_v11 = vld [vmem:[%s17590_s1 + $0x138c] ss:$16 sps:$4 sm:$0xff]   ;;  %v12381_v17 = vld [vmem:[%s17590_s1 + $0x1380] ss:$16 sps:$4 sm:$0xff]  }
 0x237   :  { %7846 = vmatpush1.bf16.msra.mxu0 %v12289_v14  ;;  %8625 = vmatpush1.bf16.msra.mxu1 %v12292_v19  ;;  %v12384_v14 = vld [vmem:[%s17590_s1 + $0x1388] ss:$16 sps:$4 sm:$0xff]   ;;  %v12389_v19 = vld [vmem:[%s17590_s1 + $0x13a4] ss:$16 sps:$4 sm:$0xff]  }
 0x238   :  { %7847 = vmatprep.subr.bf16.mxu0 %v12297_v20  ;;  %8626 = vmatprep.subr.bf16.mxu1 %v12300_v16  ;;  %v12392_v20 = vld [vmem:[%s17590_s1 + $0x13ac] ss:$16 sps:$4 sm:$0xff]   ;;  %v12387_v16 = vld [vmem:[%s17590_s1 + $0x13a0] ss:$16 sps:$4 sm:$0xff]  }
 0x23b   :  { %7848 = vmatpush1.bf16.msra.mxu0 %v12295_v22  ;;  %8627 = vmatpush1.bf16.msra.mxu1 %v12298_v23  ;;  %v12390_v22 = vld [vmem:[%s17590_s1 + $0x13a8] ss:$16 sps:$4 sm:$0xff]   ;;  %v12395_v23 = vld [vmem:[%s17590_s1 + $0x13c4] ss:$16 sps:$4 sm:$0xff]  }
 0x23c   :  { %7849 = vmatprep.subr.bf16.mxu0 %v12303_v18  ;;  %8628 = vmatprep.subr.bf16.mxu1 %v12306_v25  ;;  %v12398_v18 = vld [vmem:[%s17590_s1 + $0x13cc] ss:$16 sps:$4 sm:$0xff]   ;;  %v12393_v25 = vld [vmem:[%s17590_s1 + $0x13c0] ss:$16 sps:$4 sm:$0xff]  }
 0x23f   :  { %7850 = vmatpush1.bf16.msra.mxu0 %v12301_v26  ;;  %8629 = vmatpush1.bf16.msra.mxu1 %v12304_v21  ;;  %v12396_v26 = vld [vmem:[%s17590_s1 + $0x13c8] ss:$16 sps:$4 sm:$0xff]   ;;  %v12401_v21 = vld [vmem:[%s17590_s1 + $0x13e4] ss:$16 sps:$4 sm:$0xff]  }
 0x240   :  { %7860 = vmatprep.subr.bf16.mxu0 %v12311_v28  ;;  %8639 = vmatprep.subr.bf16.mxu1 %v12314_v29  ;;  %v12404_v28 = vld [vmem:[%s17590_s1 + $0x13ec] ss:$16 sps:$4 sm:$0xff]   ;;  %v12399_v29 = vld [vmem:[%s17590_s1 + $0x13e0] ss:$16 sps:$4 sm:$0xff]  }
 0x242   :  { %7852 = vmatmul.mubr.bf16.vlgmr.msra.gmra.mrb[0].mxu0 %v9895_v24  ;;  %8631 = vmatmul.mubr.bf16.vlgmr.msra.gmra.mrb[0].mxu1 %v9895_v24  ;;  %v12402_v24 = vld [vmem:[%s17590_s1 + $0x13e8] ss:$16 sps:$4 sm:$0xff]  }
 0x243   :  { %7861 = vmatpush1.bf16.msra.mxu0 %v12309_v31  ;;  %8640 = vmatpush1.bf16.msra.mxu1 %v12312_v32  ;;  %v12409_v31 = vld [vmem:[%s17590_s1 + $0x1404] ss:$16 sps:$4 sm:$0xff]   ;;  %v12412_v32 = vld [vmem:[%s17590_s1 + $0x140c] ss:$16 sps:$4 sm:$0xff]  }
 0x244   :  { %7862 = vmatprep.subr.bf16.mxu0 %v12317_v33  ;;  %8641 = vmatprep.subr.bf16.mxu1 %v12320_v27  ;;  %v15458_v33 = vld [vmem:[%s17591_s0 + $0x50] sm:$0xff]  ;;  %v9897_v27 = vcombine.low %v15257_v30, %v15257_v30  ;;  %v12418_v30 = vld [vmem:[%s17590_s1 + $0x142c] ss:$16 sps:$4 sm:$0xff]  }
 0x245   :  { %7892 = vmatprep.mubr.bf16.mxu0 %v9898_v34  ;;  %8671 = vmatprep.mubr.bf16.mxu1 %v9898_v34  ;;  %v12407_v34 = vld [vmem:[%s17590_s1 + $0x1400] ss:$16 sps:$4 sm:$0xff]  }
 0x247   :  { %7863 = vmatpush1.bf16.msra.mxu0 %v12315_v35  ;;  %8642 = vmatpush1.bf16.msra.mxu1 %v12318_v36  ;;  %v12410_v35 = vld [vmem:[%s17590_s1 + $0x1408] ss:$16 sps:$4 sm:$0xff]   ;;  %v12415_v36 = vld [vmem:[%s17590_s1 + $0x1424] ss:$16 sps:$4 sm:$0xff]  }
 0x248   :  { %7864 = vmatprep.subr.bf16.mxu0 %v12323_v37  ;;  %8643 = vmatprep.subr.bf16.mxu1 %v12326_v38  ;;  %v9900_v37 = vcombine.high %v15458_v33, %v15458_v33  ;;  %v12413_v38 = vld [vmem:[%s17590_s1 + $0x1420] ss:$16 sps:$4 sm:$0xff]  }
 0x24b   :  { %7865 = vmatpush1.bf16.msra.mxu0 %v12321_v39  ;;  %8644 = vmatpush1.bf16.msra.mxu1 %v12324_v40  ;;  %v12416_v39 = vld [vmem:[%s17590_s1 + $0x1428] ss:$16 sps:$4 sm:$0xff]   ;;  %v12421_v40 = vld [vmem:[%s17590_s1 + $0x1444] ss:$16 sps:$4 sm:$0xff]  }
 0x24c   :  { %7866 = vmatprep.subr.bf16.mxu0 %v12329_v41  ;;  %8645 = vmatprep.subr.bf16.mxu1 %v12332_v42  ;;  %v12424_v41 = vld [vmem:[%s17590_s1 + $0x144c] ss:$16 sps:$4 sm:$0xff]   ;;  %v12419_v42 = vld [vmem:[%s17590_s1 + $0x1440] ss:$16 sps:$4 sm:$0xff]  }
 0x24f   :  { %7867 = vmatpush1.bf16.msra.mxu0 %v12327_v43  ;;  %8646 = vmatpush1.bf16.msra.mxu1 %v12330_v44  ;;  %v12422_v43 = vld [vmem:[%s17590_s1 + $0x1448] ss:$16 sps:$4 sm:$0xff]   ;;  %v12427_v44 = vld [vmem:[%s17590_s1 + $0x1464] ss:$16 sps:$4 sm:$0xff]  }
 0x250   :  { %7868 = vmatprep.subr.bf16.mxu0 %v12335_v45  ;;  %8647 = vmatprep.subr.bf16.mxu1 %v12338_v46  ;;  %v12430_v45 = vld [vmem:[%s17590_s1 + $0x146c] ss:$16 sps:$4 sm:$0xff]   ;;  %v12425_v46 = vld [vmem:[%s17590_s1 + $0x1460] ss:$16 sps:$4 sm:$0xff]  }
 0x253   :  { %7869 = vmatpush1.bf16.msra.mxu0 %v12333_v47  ;;  %8648 = vmatpush1.bf16.msra.mxu1 %v12336_v48  ;;  %v12428_v47 = vld [vmem:[%s17590_s1 + $0x1468] ss:$16 sps:$4 sm:$0xff]   ;;  %v12433_v48 = vld [vmem:[%s17590_s1 + $0x1484] ss:$16 sps:$4 sm:$0xff]  }
 0x254   :  { %7870 = vmatprep.subr.bf16.mxu0 %v12341_v49  ;;  %8649 = vmatprep.subr.bf16.mxu1 %v12344_v50  ;;  %v12436_v49 = vld [vmem:[%s17590_s1 + $0x148c] ss:$16 sps:$4 sm:$0xff]   ;;  %v12431_v50 = vld [vmem:[%s17590_s1 + $0x1480] ss:$16 sps:$4 sm:$0xff]  }
 0x257   :  { %7871 = vmatpush1.bf16.msra.mxu0 %v12339_v51  ;;  %8650 = vmatpush1.bf16.msra.mxu1 %v12342_v52  ;;  %v12434_v51 = vld [vmem:[%s17590_s1 + $0x1488] ss:$16 sps:$4 sm:$0xff]   ;;  %v12439_v52 = vld [vmem:[%s17590_s1 + $0x14a4] ss:$16 sps:$4 sm:$0xff]  }
 0x258   :  { %7872 = vmatprep.subr.bf16.mxu0 %v12347_v53  ;;  %8651 = vmatprep.subr.bf16.mxu1 %v12350_v54  ;;  %v12442_v53 = vld [vmem:[%s17590_s1 + $0x14ac] ss:$16 sps:$4 sm:$0xff]   ;;  %v12437_v54 = vld [vmem:[%s17590_s1 + $0x14a0] ss:$16 sps:$4 sm:$0xff]  }
 0x25b   :  { %7873 = vmatpush1.bf16.msra.mxu0 %v12345_v55  ;;  %8652 = vmatpush1.bf16.msra.mxu1 %v12348_v56  ;;  %v12440_v55 = vld [vmem:[%s17590_s1 + $0x14a8] ss:$16 sps:$4 sm:$0xff]   ;;  %v12445_v56 = vld [vmem:[%s17590_s1 + $0x14c4] ss:$16 sps:$4 sm:$0xff]  }
 0x25c   :  { %7874 = vmatprep.subr.bf16.mxu0 %v12353_v57  ;;  %8653 = vmatprep.subr.bf16.mxu1 %v12356_v58  ;;  %v12448_v57 = vld [vmem:[%s17590_s1 + $0x14cc] ss:$16 sps:$4 sm:$0xff]   ;;  %v12443_v58 = vld [vmem:[%s17590_s1 + $0x14c0] ss:$16 sps:$4 sm:$0xff]  }
 0x25f   :  { %7875 = vmatpush1.bf16.msra.mxu0 %v12351_v59  ;;  %8654 = vmatpush1.bf16.msra.mxu1 %v12354_v60  ;;  %v12446_v59 = vld [vmem:[%s17590_s1 + $0x14c8] ss:$16 sps:$4 sm:$0xff]   ;;  %v12451_v60 = vld [vmem:[%s17590_s1 + $0x14e4] ss:$16 sps:$4 sm:$0xff]  }
 0x260   :  { %7876 = vmatprep.subr.bf16.mxu0 %v12359_v61  ;;  %8655 = vmatprep.subr.bf16.mxu1 %v12362_v62  ;;  %v12454_v61 = vld [vmem:[%s17590_s1 + $0x14ec] ss:$16 sps:$4 sm:$0xff]   ;;  %v12449_v62 = vld [vmem:[%s17590_s1 + $0x14e0] ss:$16 sps:$4 sm:$0xff]  }
 0x263   :  { %7877 = vmatpush1.bf16.msra.mxu0 %v12357_v63  ;;  %8656 = vmatpush1.bf16.msra.mxu1 %v12360_v0  ;;  %v12452_v63 = vld [vmem:[%s17590_s1 + $0x14e8] ss:$16 sps:$4 sm:$0xff]   ;;  %v12457_v0 = vld [vmem:[%s17590_s1 + $0x1504] ss:$16 sps:$4 sm:$0xff]  }
 0x264   :  { %7878 = vmatprep.subr.bf16.mxu0 %v12365_v1  ;;  %8657 = vmatprep.subr.bf16.mxu1 %v12368_v2  ;;  %v12460_v1 = vld [vmem:[%s17590_s1 + $0x150c] ss:$16 sps:$4 sm:$0xff]   ;;  %v12455_v2 = vld [vmem:[%s17590_s1 + $0x1500] ss:$16 sps:$4 sm:$0xff]  }
 0x267   :  { %7879 = vmatpush1.bf16.msra.mxu0 %v12363_v3  ;;  %8658 = vmatpush1.bf16.msra.mxu1 %v12366_v4  ;;  %v12458_v3 = vld [vmem:[%s17590_s1 + $0x1508] ss:$16 sps:$4 sm:$0xff]   ;;  %v12463_v4 = vld [vmem:[%s17590_s1 + $0x1524] ss:$16 sps:$4 sm:$0xff]  }
 0x268   :  { %7880 = vmatprep.subr.bf16.mxu0 %v12371_v5  ;;  %8659 = vmatprep.subr.bf16.mxu1 %v12374_v6  ;;  %v12466_v5 = vld [vmem:[%s17590_s1 + $0x152c] ss:$16 sps:$4 sm:$0xff]   ;;  %v12461_v6 = vld [vmem:[%s17590_s1 + $0x1520] ss:$16 sps:$4 sm:$0xff]  }
 0x26b   :  { %7881 = vmatpush1.bf16.msra.mxu0 %v12369_v7  ;;  %8660 = vmatpush1.bf16.msra.mxu1 %v12372_v8  ;;  %v12464_v7 = vld [vmem:[%s17590_s1 + $0x1528] ss:$16 sps:$4 sm:$0xff]   ;;  %v12469_v8 = vld [vmem:[%s17590_s1 + $0x1544] ss:$16 sps:$4 sm:$0xff]  }
 0x26c   :  { %7882 = vmatprep.subr.bf16.mxu0 %v12377_v9  ;;  %8661 = vmatprep.subr.bf16.mxu1 %v12380_v10  ;;  %v12472_v9 = vld [vmem:[%s17590_s1 + $0x154c] ss:$16 sps:$4 sm:$0xff]   ;;  %v12467_v10 = vld [vmem:[%s17590_s1 + $0x1540] ss:$16 sps:$4 sm:$0xff]  }
 0x26f   :  { %7883 = vmatpush1.bf16.msra.mxu0 %v12375_v12  ;;  %8662 = vmatpush1.bf16.msra.mxu1 %v12378_v13  ;;  %v12470_v12 = vld [vmem:[%s17590_s1 + $0x1548] ss:$16 sps:$4 sm:$0xff]   ;;  %v12475_v13 = vld [vmem:[%s17590_s1 + $0x1564] ss:$16 sps:$4 sm:$0xff]  }
 0x270   :  { %7884 = vmatprep.subr.bf16.mxu0 %v12383_v15  ;;  %8663 = vmatprep.subr.bf16.mxu1 %v12386_v11  ;;  %v12478_v15 = vld [vmem:[%s17590_s1 + $0x156c] ss:$16 sps:$4 sm:$0xff]   ;;  %v12473_v11 = vld [vmem:[%s17590_s1 + $0x1560] ss:$16 sps:$4 sm:$0xff]  }
 0x273   :  { %7885 = vmatpush1.bf16.msra.mxu0 %v12381_v17  ;;  %8664 = vmatpush1.bf16.msra.mxu1 %v12384_v14  ;;  %v12476_v17 = vld [vmem:[%s17590_s1 + $0x1568] ss:$16 sps:$4 sm:$0xff]   ;;  %v12481_v14 = vld [vmem:[%s17590_s1 + $0x1584] ss:$16 sps:$4 sm:$0xff]  }
 0x274   :  { %7886 = vmatprep.subr.bf16.mxu0 %v12389_v19  ;;  %8665 = vmatprep.subr.bf16.mxu1 %v12392_v20  ;;  %v12484_v19 = vld [vmem:[%s17590_s1 + $0x158c] ss:$16 sps:$4 sm:$0xff]   ;;  %v12479_v20 = vld [vmem:[%s17590_s1 + $0x1580] ss:$16 sps:$4 sm:$0xff]  }
 0x277   :  { %7887 = vmatpush1.bf16.msra.mxu0 %v12387_v16  ;;  %8666 = vmatpush1.bf16.msra.mxu1 %v12390_v22  ;;  %v12482_v16 = vld [vmem:[%s17590_s1 + $0x1588] ss:$16 sps:$4 sm:$0xff]   ;;  %v12487_v22 = vld [vmem:[%s17590_s1 + $0x15a4] ss:$16 sps:$4 sm:$0xff]  }
 0x278   :  { %7888 = vmatprep.subr.bf16.mxu0 %v12395_v23  ;;  %8667 = vmatprep.subr.bf16.mxu1 %v12398_v18  ;;  %v12490_v23 = vld [vmem:[%s17590_s1 + $0x15ac] ss:$16 sps:$4 sm:$0xff]   ;;  %v12485_v18 = vld [vmem:[%s17590_s1 + $0x15a0] ss:$16 sps:$4 sm:$0xff]  }
 0x27b   :  { %7889 = vmatpush1.bf16.msra.mxu0 %v12393_v25  ;;  %8668 = vmatpush1.bf16.msra.mxu1 %v12396_v26  ;;  %v12488_v25 = vld [vmem:[%s17590_s1 + $0x15a8] ss:$16 sps:$4 sm:$0xff]   ;;  %v12493_v26 = vld [vmem:[%s17590_s1 + $0x15c4] ss:$16 sps:$4 sm:$0xff]  }
 0x27c   :  { %7890 = vmatprep.subr.bf16.mxu0 %v12401_v21  ;;  %8669 = vmatprep.subr.bf16.mxu1 %v12404_v28  ;;  %v12496_v21 = vld [vmem:[%s17590_s1 + $0x15cc] ss:$16 sps:$4 sm:$0xff]   ;;  %v12491_v28 = vld [vmem:[%s17590_s1 + $0x15c0] ss:$16 sps:$4 sm:$0xff]  }
 0x27f   :  { %7891 = vmatpush1.bf16.msra.mxu0 %v12399_v29  ;;  %8670 = vmatpush1.bf16.msra.mxu1 %v12402_v24  ;;  %v12494_v29 = vld [vmem:[%s17590_s1 + $0x15c8] ss:$16 sps:$4 sm:$0xff]   ;;  %v12499_v24 = vld [vmem:[%s17590_s1 + $0x15e4] ss:$16 sps:$4 sm:$0xff]  }
 0x280   :  { %7901 = vmatprep.subr.bf16.mxu0 %v12409_v31  ;;  %8680 = vmatprep.subr.bf16.mxu1 %v12412_v32  ;;  %v12502_v31 = vld [vmem:[%s17590_s1 + $0x15ec] ss:$16 sps:$4 sm:$0xff]   ;;  %v12497_v32 = vld [vmem:[%s17590_s1 + $0x15e0] ss:$16 sps:$4 sm:$0xff]  }
 0x282   :  { %7893 = vmatmul.mubr.bf16.vlgmr.msra.gmra.mrb[0].mxu0 %v9897_v27  ;;  %8672 = vmatmul.mubr.bf16.vlgmr.msra.gmra.mrb[0].mxu1 %v9897_v27  ;;  %v12500_v27 = vld [vmem:[%s17590_s1 + $0x15e8] ss:$16 sps:$4 sm:$0xff]  }
 0x283   :  { %7902 = vmatpush1.bf16.msra.mxu0 %v12407_v34  ;;  %8681 = vmatpush1.bf16.msra.mxu1 %v12410_v35  ;;  %v12507_v34 = vld [vmem:[%s17590_s1 + $0x1604] ss:$16 sps:$4 sm:$0xff]   ;;  %v12510_v35 = vld [vmem:[%s17590_s1 + $0x160c] ss:$16 sps:$4 sm:$0xff]  }
 0x284   :  { %7903 = vmatprep.subr.bf16.mxu0 %v12415_v36  ;;  %8682 = vmatprep.subr.bf16.mxu1 %v12418_v30  ;;  %v9899_v36 = vcombine.low %v15458_v33, %v15458_v33  ;;  %v15661_v30 = vld [vmem:[%s17591_s0 + $0x58] sm:$0xff]  ;;  %v12513_v33 = vld [vmem:[%s17590_s1 + $0x1624] ss:$16 sps:$4 sm:$0xff]  }
 0x285   :  { %7933 = vmatprep.mubr.bf16.mxu0 %v9900_v37  ;;  %8712 = vmatprep.mubr.bf16.mxu1 %v9900_v37  ;;  %v12505_v37 = vld [vmem:[%s17590_s1 + $0x1600] ss:$16 sps:$4 sm:$0xff]  }
 0x287   :  { %7904 = vmatpush1.bf16.msra.mxu0 %v12413_v38  ;;  %8683 = vmatpush1.bf16.msra.mxu1 %v12416_v39  ;;  %v12508_v38 = vld [vmem:[%s17590_s1 + $0x1608] ss:$16 sps:$4 sm:$0xff]   ;;  %v12516_v39 = vld [vmem:[%s17590_s1 + $0x162c] ss:$16 sps:$4 sm:$0xff]  }
 0x288   :  { %7905 = vmatprep.subr.bf16.mxu0 %v12421_v40  ;;  %8684 = vmatprep.subr.bf16.mxu1 %v12424_v41  ;;  %v9902_v40 = vcombine.high %v15661_v30, %v15661_v30  ;;  %v12511_v41 = vld [vmem:[%s17590_s1 + $0x1620] ss:$16 sps:$4 sm:$0xff]  }
 0x28b   :  { %7906 = vmatpush1.bf16.msra.mxu0 %v12419_v42  ;;  %8685 = vmatpush1.bf16.msra.mxu1 %v12422_v43  ;;  %v12514_v42 = vld [vmem:[%s17590_s1 + $0x1628] ss:$16 sps:$4 sm:$0xff]   ;;  %v12519_v43 = vld [vmem:[%s17590_s1 + $0x1644] ss:$16 sps:$4 sm:$0xff]  }
 0x28c   :  { %7907 = vmatprep.subr.bf16.mxu0 %v12427_v44  ;;  %8686 = vmatprep.subr.bf16.mxu1 %v12430_v45  ;;  %v12522_v44 = vld [vmem:[%s17590_s1 + $0x164c] ss:$16 sps:$4 sm:$0xff]   ;;  %v12517_v45 = vld [vmem:[%s17590_s1 + $0x1640] ss:$16 sps:$4 sm:$0xff]  }
 0x28f   :  { %7908 = vmatpush1.bf16.msra.mxu0 %v12425_v46  ;;  %8687 = vmatpush1.bf16.msra.mxu1 %v12428_v47  ;;  %v12520_v46 = vld [vmem:[%s17590_s1 + $0x1648] ss:$16 sps:$4 sm:$0xff]   ;;  %v12525_v47 = vld [vmem:[%s17590_s1 + $0x1664] ss:$16 sps:$4 sm:$0xff]  }
 0x290   :  { %7909 = vmatprep.subr.bf16.mxu0 %v12433_v48  ;;  %8688 = vmatprep.subr.bf16.mxu1 %v12436_v49  ;;  %v12528_v48 = vld [vmem:[%s17590_s1 + $0x166c] ss:$16 sps:$4 sm:$0xff]   ;;  %v12523_v49 = vld [vmem:[%s17590_s1 + $0x1660] ss:$16 sps:$4 sm:$0xff]  }
 0x293   :  { %7910 = vmatpush1.bf16.msra.mxu0 %v12431_v50  ;;  %8689 = vmatpush1.bf16.msra.mxu1 %v12434_v51  ;;  %v12526_v50 = vld [vmem:[%s17590_s1 + $0x1668] ss:$16 sps:$4 sm:$0xff]   ;;  %v12531_v51 = vld [vmem:[%s17590_s1 + $0x1684] ss:$16 sps:$4 sm:$0xff]  }
 0x294   :  { %7911 = vmatprep.subr.bf16.mxu0 %v12439_v52  ;;  %8690 = vmatprep.subr.bf16.mxu1 %v12442_v53  ;;  %v12534_v52 = vld [vmem:[%s17590_s1 + $0x168c] ss:$16 sps:$4 sm:$0xff]   ;;  %v12529_v53 = vld [vmem:[%s17590_s1 + $0x1680] ss:$16 sps:$4 sm:$0xff]  }
 0x297   :  { %7912 = vmatpush1.bf16.msra.mxu0 %v12437_v54  ;;  %8691 = vmatpush1.bf16.msra.mxu1 %v12440_v55  ;;  %v12532_v54 = vld [vmem:[%s17590_s1 + $0x1688] ss:$16 sps:$4 sm:$0xff]   ;;  %v12537_v55 = vld [vmem:[%s17590_s1 + $0x16a4] ss:$16 sps:$4 sm:$0xff]  }
 0x298   :  { %7913 = vmatprep.subr.bf16.mxu0 %v12445_v56  ;;  %8692 = vmatprep.subr.bf16.mxu1 %v12448_v57  ;;  %v12540_v56 = vld [vmem:[%s17590_s1 + $0x16ac] ss:$16 sps:$4 sm:$0xff]   ;;  %v12535_v57 = vld [vmem:[%s17590_s1 + $0x16a0] ss:$16 sps:$4 sm:$0xff]  }
 0x29b   :  { %7914 = vmatpush1.bf16.msra.mxu0 %v12443_v58  ;;  %8693 = vmatpush1.bf16.msra.mxu1 %v12446_v59  ;;  %v12538_v58 = vld [vmem:[%s17590_s1 + $0x16a8] ss:$16 sps:$4 sm:$0xff]   ;;  %v12543_v59 = vld [vmem:[%s17590_s1 + $0x16c4] ss:$16 sps:$4 sm:$0xff]  }
 0x29c   :  { %7915 = vmatprep.subr.bf16.mxu0 %v12451_v60  ;;  %8694 = vmatprep.subr.bf16.mxu1 %v12454_v61  ;;  %v12546_v60 = vld [vmem:[%s17590_s1 + $0x16cc] ss:$16 sps:$4 sm:$0xff]   ;;  %v12541_v61 = vld [vmem:[%s17590_s1 + $0x16c0] ss:$16 sps:$4 sm:$0xff]  }
 0x29f   :  { %7916 = vmatpush1.bf16.msra.mxu0 %v12449_v62  ;;  %8695 = vmatpush1.bf16.msra.mxu1 %v12452_v63  ;;  %v12544_v62 = vld [vmem:[%s17590_s1 + $0x16c8] ss:$16 sps:$4 sm:$0xff]   ;;  %v12549_v63 = vld [vmem:[%s17590_s1 + $0x16e4] ss:$16 sps:$4 sm:$0xff]  }
 0x2a0   :  { %7917 = vmatprep.subr.bf16.mxu0 %v12457_v0  ;;  %8696 = vmatprep.subr.bf16.mxu1 %v12460_v1  ;;  %v12552_v0 = vld [vmem:[%s17590_s1 + $0x16ec] ss:$16 sps:$4 sm:$0xff]   ;;  %v12547_v1 = vld [vmem:[%s17590_s1 + $0x16e0] ss:$16 sps:$4 sm:$0xff]  }
 0x2a3   :  { %7918 = vmatpush1.bf16.msra.mxu0 %v12455_v2  ;;  %8697 = vmatpush1.bf16.msra.mxu1 %v12458_v3  ;;  %v12550_v2 = vld [vmem:[%s17590_s1 + $0x16e8] ss:$16 sps:$4 sm:$0xff]   ;;  %v12555_v3 = vld [vmem:[%s17590_s1 + $0x1704] ss:$16 sps:$4 sm:$0xff]  }
 0x2a4   :  { %7919 = vmatprep.subr.bf16.mxu0 %v12463_v4  ;;  %8698 = vmatprep.subr.bf16.mxu1 %v12466_v5  ;;  %v12558_v4 = vld [vmem:[%s17590_s1 + $0x170c] ss:$16 sps:$4 sm:$0xff]   ;;  %v12553_v5 = vld [vmem:[%s17590_s1 + $0x1700] ss:$16 sps:$4 sm:$0xff]  }
 0x2a7   :  { %7920 = vmatpush1.bf16.msra.mxu0 %v12461_v6  ;;  %8699 = vmatpush1.bf16.msra.mxu1 %v12464_v7  ;;  %v12556_v6 = vld [vmem:[%s17590_s1 + $0x1708] ss:$16 sps:$4 sm:$0xff]   ;;  %v12561_v7 = vld [vmem:[%s17590_s1 + $0x1724] ss:$16 sps:$4 sm:$0xff]  }
 0x2a8   :  { %7921 = vmatprep.subr.bf16.mxu0 %v12469_v8  ;;  %8700 = vmatprep.subr.bf16.mxu1 %v12472_v9  ;;  %v12564_v8 = vld [vmem:[%s17590_s1 + $0x172c] ss:$16 sps:$4 sm:$0xff]   ;;  %v12559_v9 = vld [vmem:[%s17590_s1 + $0x1720] ss:$16 sps:$4 sm:$0xff]  }
 0x2ab   :  { %7922 = vmatpush1.bf16.msra.mxu0 %v12467_v10  ;;  %8701 = vmatpush1.bf16.msra.mxu1 %v12470_v12  ;;  %v12562_v10 = vld [vmem:[%s17590_s1 + $0x1728] ss:$16 sps:$4 sm:$0xff]   ;;  %v12567_v12 = vld [vmem:[%s17590_s1 + $0x1744] ss:$16 sps:$4 sm:$0xff]  }
 0x2ac   :  { %7923 = vmatprep.subr.bf16.mxu0 %v12475_v13  ;;  %8702 = vmatprep.subr.bf16.mxu1 %v12478_v15  ;;  %v12570_v13 = vld [vmem:[%s17590_s1 + $0x174c] ss:$16 sps:$4 sm:$0xff]   ;;  %v12565_v15 = vld [vmem:[%s17590_s1 + $0x1740] ss:$16 sps:$4 sm:$0xff]  }
 0x2af   :  { %7924 = vmatpush1.bf16.msra.mxu0 %v12473_v11  ;;  %8703 = vmatpush1.bf16.msra.mxu1 %v12476_v17  ;;  %v12568_v11 = vld [vmem:[%s17590_s1 + $0x1748] ss:$16 sps:$4 sm:$0xff]   ;;  %v12573_v17 = vld [vmem:[%s17590_s1 + $0x1764] ss:$16 sps:$4 sm:$0xff]  }
 0x2b0   :  { %7925 = vmatprep.subr.bf16.mxu0 %v12481_v14  ;;  %8704 = vmatprep.subr.bf16.mxu1 %v12484_v19  ;;  %v12576_v14 = vld [vmem:[%s17590_s1 + $0x176c] ss:$16 sps:$4 sm:$0xff]   ;;  %v12571_v19 = vld [vmem:[%s17590_s1 + $0x1760] ss:$16 sps:$4 sm:$0xff]  }
 0x2b3   :  { %7926 = vmatpush1.bf16.msra.mxu0 %v12479_v20  ;;  %8705 = vmatpush1.bf16.msra.mxu1 %v12482_v16  ;;  %v12574_v20 = vld [vmem:[%s17590_s1 + $0x1768] ss:$16 sps:$4 sm:$0xff]   ;;  %v12579_v16 = vld [vmem:[%s17590_s1 + $0x1784] ss:$16 sps:$4 sm:$0xff]  }
 0x2b4   :  { %7927 = vmatprep.subr.bf16.mxu0 %v12487_v22  ;;  %8706 = vmatprep.subr.bf16.mxu1 %v12490_v23  ;;  %v12582_v22 = vld [vmem:[%s17590_s1 + $0x178c] ss:$16 sps:$4 sm:$0xff]   ;;  %v12577_v23 = vld [vmem:[%s17590_s1 + $0x1780] ss:$16 sps:$4 sm:$0xff]  }
 0x2b7   :  { %7928 = vmatpush1.bf16.msra.mxu0 %v12485_v18  ;;  %8707 = vmatpush1.bf16.msra.mxu1 %v12488_v25  ;;  %v12580_v18 = vld [vmem:[%s17590_s1 + $0x1788] ss:$16 sps:$4 sm:$0xff]   ;;  %v12585_v25 = vld [vmem:[%s17590_s1 + $0x17a4] ss:$16 sps:$4 sm:$0xff]  }
 0x2b8   :  { %7929 = vmatprep.subr.bf16.mxu0 %v12493_v26  ;;  %8708 = vmatprep.subr.bf16.mxu1 %v12496_v21  ;;  %v12588_v26 = vld [vmem:[%s17590_s1 + $0x17ac] ss:$16 sps:$4 sm:$0xff]   ;;  %v12583_v21 = vld [vmem:[%s17590_s1 + $0x17a0] ss:$16 sps:$4 sm:$0xff]  }
 0x2bb   :  { %7930 = vmatpush1.bf16.msra.mxu0 %v12491_v28  ;;  %8709 = vmatpush1.bf16.msra.mxu1 %v12494_v29  ;;  %v12586_v28 = vld [vmem:[%s17590_s1 + $0x17a8] ss:$16 sps:$4 sm:$0xff]   ;;  %v12591_v29 = vld [vmem:[%s17590_s1 + $0x17c4] ss:$16 sps:$4 sm:$0xff]  }
 0x2bc   :  { %7931 = vmatprep.subr.bf16.mxu0 %v12499_v24  ;;  %8710 = vmatprep.subr.bf16.mxu1 %v12502_v31  ;;  %v12594_v24 = vld [vmem:[%s17590_s1 + $0x17cc] ss:$16 sps:$4 sm:$0xff]   ;;  %v12589_v31 = vld [vmem:[%s17590_s1 + $0x17c0] ss:$16 sps:$4 sm:$0xff]  }
 0x2bf   :  { %7932 = vmatpush1.bf16.msra.mxu0 %v12497_v32  ;;  %8711 = vmatpush1.bf16.msra.mxu1 %v12500_v27  ;;  %v12592_v32 = vld [vmem:[%s17590_s1 + $0x17c8] ss:$16 sps:$4 sm:$0xff]   ;;  %v12597_v27 = vld [vmem:[%s17590_s1 + $0x17e4] ss:$16 sps:$4 sm:$0xff]  }
 0x2c0   :  { %7942 = vmatprep.subr.bf16.mxu0 %v12507_v34  ;;  %8721 = vmatprep.subr.bf16.mxu1 %v12510_v35  ;;  %v12600_v34 = vld [vmem:[%s17590_s1 + $0x17ec] ss:$16 sps:$4 sm:$0xff]   ;;  %v12595_v35 = vld [vmem:[%s17590_s1 + $0x17e0] ss:$16 sps:$4 sm:$0xff]  }
 0x2c2   :  { %7934 = vmatmul.mubr.bf16.vlgmr.msra.gmra.mrb[0].mxu0 %v9899_v36  ;;  %8713 = vmatmul.mubr.bf16.vlgmr.msra.gmra.mrb[0].mxu1 %v9899_v36  ;;  %v12598_v36 = vld [vmem:[%s17590_s1 + $0x17e8] ss:$16 sps:$4 sm:$0xff]  }
 0x2c3   :  { %7943 = vmatpush1.bf16.msra.mxu0 %v12505_v37  ;;  %8722 = vmatpush1.bf16.msra.mxu1 %v12508_v38  ;;  %v12605_v37 = vld [vmem:[%s17590_s1 + $0x1804] ss:$16 sps:$4 sm:$0xff]   ;;  %v12608_v38 = vld [vmem:[%s17590_s1 + $0x180c] ss:$16 sps:$4 sm:$0xff]  }
 0x2c4   :  { %7944 = vmatprep.subr.bf16.mxu0 %v12513_v33  ;;  %8723 = vmatprep.subr.bf16.mxu1 %v12516_v39  ;;  %v9901_v33 = vcombine.low %v15661_v30, %v15661_v30  ;;  %v15862_v39 = vld [vmem:[%s17591_s0 + $0x60] sm:$0xff] }
 0x2c5   :  { %7974 = vmatprep.mubr.bf16.mxu0 %v9902_v40  ;;  %8753 = vmatprep.mubr.bf16.mxu1 %v9902_v40  ;;  %v12603_v40 = vld [vmem:[%s17590_s1 + $0x1800] ss:$16 sps:$4 sm:$0xff]   ;;  %v12611_v30 = vld [vmem:[%s17590_s1 + $0x1824] ss:$16 sps:$4 sm:$0xff]  }
 0x2c7   :  { %7945 = vmatpush1.bf16.msra.mxu0 %v12511_v41  ;;  %8724 = vmatpush1.bf16.msra.mxu1 %v12514_v42  ;;  %v12606_v41 = vld [vmem:[%s17590_s1 + $0x1808] ss:$16 sps:$4 sm:$0xff]   ;;  %v12614_v42 = vld [vmem:[%s17590_s1 + $0x182c] ss:$16 sps:$4 sm:$0xff]  }
 0x2c8   :  { %7946 = vmatprep.subr.bf16.mxu0 %v12519_v43  ;;  %8725 = vmatprep.subr.bf16.mxu1 %v12522_v44  ;;  %v9904_v43 = vcombine.high %v15862_v39, %v15862_v39  ;;  %v12609_v44 = vld [vmem:[%s17590_s1 + $0x1820] ss:$16 sps:$4 sm:$0xff]  }
 0x2cb   :  { %7947 = vmatpush1.bf16.msra.mxu0 %v12517_v45  ;;  %8726 = vmatpush1.bf16.msra.mxu1 %v12520_v46  ;;  %v12612_v45 = vld [vmem:[%s17590_s1 + $0x1828] ss:$16 sps:$4 sm:$0xff]   ;;  %v12617_v46 = vld [vmem:[%s17590_s1 + $0x1844] ss:$16 sps:$4 sm:$0xff]  }
 0x2cc   :  { %7948 = vmatprep.subr.bf16.mxu0 %v12525_v47  ;;  %8727 = vmatprep.subr.bf16.mxu1 %v12528_v48  ;;  %v12620_v47 = vld [vmem:[%s17590_s1 + $0x184c] ss:$16 sps:$4 sm:$0xff]   ;;  %v12615_v48 = vld [vmem:[%s17590_s1 + $0x1840] ss:$16 sps:$4 sm:$0xff]  }
 0x2cf   :  { %7949 = vmatpush1.bf16.msra.mxu0 %v12523_v49  ;;  %8728 = vmatpush1.bf16.msra.mxu1 %v12526_v50  ;;  %v12618_v49 = vld [vmem:[%s17590_s1 + $0x1848] ss:$16 sps:$4 sm:$0xff]   ;;  %v12623_v50 = vld [vmem:[%s17590_s1 + $0x1864] ss:$16 sps:$4 sm:$0xff]  }
 0x2d0   :  { %7950 = vmatprep.subr.bf16.mxu0 %v12531_v51  ;;  %8729 = vmatprep.subr.bf16.mxu1 %v12534_v52  ;;  %v12626_v51 = vld [vmem:[%s17590_s1 + $0x186c] ss:$16 sps:$4 sm:$0xff]   ;;  %v12621_v52 = vld [vmem:[%s17590_s1 + $0x1860] ss:$16 sps:$4 sm:$0xff]  }
 0x2d3   :  { %7951 = vmatpush1.bf16.msra.mxu0 %v12529_v53  ;;  %8730 = vmatpush1.bf16.msra.mxu1 %v12532_v54  ;;  %v12624_v53 = vld [vmem:[%s17590_s1 + $0x1868] ss:$16 sps:$4 sm:$0xff]   ;;  %v12629_v54 = vld [vmem:[%s17590_s1 + $0x1884] ss:$16 sps:$4 sm:$0xff]  }
 0x2d4   :  { %7952 = vmatprep.subr.bf16.mxu0 %v12537_v55  ;;  %8731 = vmatprep.subr.bf16.mxu1 %v12540_v56  ;;  %v12632_v55 = vld [vmem:[%s17590_s1 + $0x188c] ss:$16 sps:$4 sm:$0xff]   ;;  %v12627_v56 = vld [vmem:[%s17590_s1 + $0x1880] ss:$16 sps:$4 sm:$0xff]  }
 0x2d7   :  { %7953 = vmatpush1.bf16.msra.mxu0 %v12535_v57  ;;  %8732 = vmatpush1.bf16.msra.mxu1 %v12538_v58  ;;  %v12630_v57 = vld [vmem:[%s17590_s1 + $0x1888] ss:$16 sps:$4 sm:$0xff]   ;;  %v12635_v58 = vld [vmem:[%s17590_s1 + $0x18a4] ss:$16 sps:$4 sm:$0xff]  }
 0x2d8   :  { %7954 = vmatprep.subr.bf16.mxu0 %v12543_v59  ;;  %8733 = vmatprep.subr.bf16.mxu1 %v12546_v60  ;;  %v12638_v59 = vld [vmem:[%s17590_s1 + $0x18ac] ss:$16 sps:$4 sm:$0xff]   ;;  %v12633_v60 = vld [vmem:[%s17590_s1 + $0x18a0] ss:$16 sps:$4 sm:$0xff]  }
 0x2db   :  { %7955 = vmatpush1.bf16.msra.mxu0 %v12541_v61  ;;  %8734 = vmatpush1.bf16.msra.mxu1 %v12544_v62  ;;  %v12636_v61 = vld [vmem:[%s17590_s1 + $0x18a8] ss:$16 sps:$4 sm:$0xff]   ;;  %v12641_v62 = vld [vmem:[%s17590_s1 + $0x18c4] ss:$16 sps:$4 sm:$0xff]  }
 0x2dc   :  { %7956 = vmatprep.subr.bf16.mxu0 %v12549_v63  ;;  %8735 = vmatprep.subr.bf16.mxu1 %v12552_v0  ;;  %v12644_v63 = vld [vmem:[%s17590_s1 + $0x18cc] ss:$16 sps:$4 sm:$0xff]   ;;  %v12639_v0 = vld [vmem:[%s17590_s1 + $0x18c0] ss:$16 sps:$4 sm:$0xff]  }
 0x2df   :  { %7957 = vmatpush1.bf16.msra.mxu0 %v12547_v1  ;;  %8736 = vmatpush1.bf16.msra.mxu1 %v12550_v2  ;;  %v12642_v1 = vld [vmem:[%s17590_s1 + $0x18c8] ss:$16 sps:$4 sm:$0xff]   ;;  %v12647_v2 = vld [vmem:[%s17590_s1 + $0x18e4] ss:$16 sps:$4 sm:$0xff]  }
 0x2e0   :  { %7958 = vmatprep.subr.bf16.mxu0 %v12555_v3  ;;  %8737 = vmatprep.subr.bf16.mxu1 %v12558_v4  ;;  %v12650_v3 = vld [vmem:[%s17590_s1 + $0x18ec] ss:$16 sps:$4 sm:$0xff]   ;;  %v12645_v4 = vld [vmem:[%s17590_s1 + $0x18e0] ss:$16 sps:$4 sm:$0xff]  }
 0x2e3   :  { %7959 = vmatpush1.bf16.msra.mxu0 %v12553_v5  ;;  %8738 = vmatpush1.bf16.msra.mxu1 %v12556_v6  ;;  %v12648_v5 = vld [vmem:[%s17590_s1 + $0x18e8] ss:$16 sps:$4 sm:$0xff]   ;;  %v12653_v6 = vld [vmem:[%s17590_s1 + $0x1904] ss:$16 sps:$4 sm:$0xff]  }
 0x2e4   :  { %7960 = vmatprep.subr.bf16.mxu0 %v12561_v7  ;;  %8739 = vmatprep.subr.bf16.mxu1 %v12564_v8  ;;  %v12656_v7 = vld [vmem:[%s17590_s1 + $0x190c] ss:$16 sps:$4 sm:$0xff]   ;;  %v12651_v8 = vld [vmem:[%s17590_s1 + $0x1900] ss:$16 sps:$4 sm:$0xff]  }
 0x2e7   :  { %7961 = vmatpush1.bf16.msra.mxu0 %v12559_v9  ;;  %8740 = vmatpush1.bf16.msra.mxu1 %v12562_v10  ;;  %v12654_v9 = vld [vmem:[%s17590_s1 + $0x1908] ss:$16 sps:$4 sm:$0xff]   ;;  %v12659_v10 = vld [vmem:[%s17590_s1 + $0x1924] ss:$16 sps:$4 sm:$0xff]  }
 0x2e8   :  { %7962 = vmatprep.subr.bf16.mxu0 %v12567_v12  ;;  %8741 = vmatprep.subr.bf16.mxu1 %v12570_v13  ;;  %v12662_v12 = vld [vmem:[%s17590_s1 + $0x192c] ss:$16 sps:$4 sm:$0xff]   ;;  %v12657_v13 = vld [vmem:[%s17590_s1 + $0x1920] ss:$16 sps:$4 sm:$0xff]  }
 0x2eb   :  { %7963 = vmatpush1.bf16.msra.mxu0 %v12565_v15  ;;  %8742 = vmatpush1.bf16.msra.mxu1 %v12568_v11  ;;  %v12660_v15 = vld [vmem:[%s17590_s1 + $0x1928] ss:$16 sps:$4 sm:$0xff]   ;;  %v12665_v11 = vld [vmem:[%s17590_s1 + $0x1944] ss:$16 sps:$4 sm:$0xff]  }
 0x2ec   :  { %7964 = vmatprep.subr.bf16.mxu0 %v12573_v17  ;;  %8743 = vmatprep.subr.bf16.mxu1 %v12576_v14  ;;  %v12668_v17 = vld [vmem:[%s17590_s1 + $0x194c] ss:$16 sps:$4 sm:$0xff]   ;;  %v12663_v14 = vld [vmem:[%s17590_s1 + $0x1940] ss:$16 sps:$4 sm:$0xff]  }
 0x2ef   :  { %7965 = vmatpush1.bf16.msra.mxu0 %v12571_v19  ;;  %8744 = vmatpush1.bf16.msra.mxu1 %v12574_v20  ;;  %v12666_v19 = vld [vmem:[%s17590_s1 + $0x1948] ss:$16 sps:$4 sm:$0xff]   ;;  %v12671_v20 = vld [vmem:[%s17590_s1 + $0x1964] ss:$16 sps:$4 sm:$0xff]  }
 0x2f0   :  { %7966 = vmatprep.subr.bf16.mxu0 %v12579_v16  ;;  %8745 = vmatprep.subr.bf16.mxu1 %v12582_v22  ;;  %v12674_v16 = vld [vmem:[%s17590_s1 + $0x196c] ss:$16 sps:$4 sm:$0xff]   ;;  %v12669_v22 = vld [vmem:[%s17590_s1 + $0x1960] ss:$16 sps:$4 sm:$0xff]  }
 0x2f3   :  { %7967 = vmatpush1.bf16.msra.mxu0 %v12577_v23  ;;  %8746 = vmatpush1.bf16.msra.mxu1 %v12580_v18  ;;  %v12672_v23 = vld [vmem:[%s17590_s1 + $0x1968] ss:$16 sps:$4 sm:$0xff]   ;;  %v12677_v18 = vld [vmem:[%s17590_s1 + $0x1984] ss:$16 sps:$4 sm:$0xff]  }
 0x2f4   :  { %7968 = vmatprep.subr.bf16.mxu0 %v12585_v25  ;;  %8747 = vmatprep.subr.bf16.mxu1 %v12588_v26  ;;  %v12680_v25 = vld [vmem:[%s17590_s1 + $0x198c] ss:$16 sps:$4 sm:$0xff]   ;;  %v12675_v26 = vld [vmem:[%s17590_s1 + $0x1980] ss:$16 sps:$4 sm:$0xff]  }
 0x2f7   :  { %7969 = vmatpush1.bf16.msra.mxu0 %v12583_v21  ;;  %8748 = vmatpush1.bf16.msra.mxu1 %v12586_v28  ;;  %v12678_v21 = vld [vmem:[%s17590_s1 + $0x1988] ss:$16 sps:$4 sm:$0xff]   ;;  %v12683_v28 = vld [vmem:[%s17590_s1 + $0x19a4] ss:$16 sps:$4 sm:$0xff]  }
 0x2f8   :  { %7970 = vmatprep.subr.bf16.mxu0 %v12591_v29  ;;  %8749 = vmatprep.subr.bf16.mxu1 %v12594_v24  ;;  %v12686_v29 = vld [vmem:[%s17590_s1 + $0x19ac] ss:$16 sps:$4 sm:$0xff]   ;;  %v12681_v24 = vld [vmem:[%s17590_s1 + $0x19a0] ss:$16 sps:$4 sm:$0xff]  }
 0x2fb   :  { %7971 = vmatpush1.bf16.msra.mxu0 %v12589_v31  ;;  %8750 = vmatpush1.bf16.msra.mxu1 %v12592_v32  ;;  %v12684_v31 = vld [vmem:[%s17590_s1 + $0x19a8] ss:$16 sps:$4 sm:$0xff]   ;;  %v12689_v32 = vld [vmem:[%s17590_s1 + $0x19c4] ss:$16 sps:$4 sm:$0xff]  }
 0x2fc   :  { %7972 = vmatprep.subr.bf16.mxu0 %v12597_v27  ;;  %8751 = vmatprep.subr.bf16.mxu1 %v12600_v34  ;;  %v12692_v27 = vld [vmem:[%s17590_s1 + $0x19cc] ss:$16 sps:$4 sm:$0xff]   ;;  %v12687_v34 = vld [vmem:[%s17590_s1 + $0x19c0] ss:$16 sps:$4 sm:$0xff]  }
 0x2ff   :  { %7973 = vmatpush1.bf16.msra.mxu0 %v12595_v35  ;;  %8752 = vmatpush1.bf16.msra.mxu1 %v12598_v36  ;;  %v12690_v35 = vld [vmem:[%s17590_s1 + $0x19c8] ss:$16 sps:$4 sm:$0xff]   ;;  %v12695_v36 = vld [vmem:[%s17590_s1 + $0x19e4] ss:$16 sps:$4 sm:$0xff]  }
 0x300   :  { %7983 = vmatprep.subr.bf16.mxu0 %v12605_v37  ;;  %8762 = vmatprep.subr.bf16.mxu1 %v12608_v38  ;;  %v12698_v37 = vld [vmem:[%s17590_s1 + $0x19ec] ss:$16 sps:$4 sm:$0xff]   ;;  %v12693_v38 = vld [vmem:[%s17590_s1 + $0x19e0] ss:$16 sps:$4 sm:$0xff]  }
 0x302   :  { %7975 = vmatmul.mubr.bf16.vlgmr.msra.gmra.mrb[0].mxu0 %v9901_v33  ;;  %8754 = vmatmul.mubr.bf16.vlgmr.msra.gmra.mrb[0].mxu1 %v9901_v33  ;;  %v12696_v33 = vld [vmem:[%s17590_s1 + $0x19e8] ss:$16 sps:$4 sm:$0xff]  }
 0x303   :  { %7984 = vmatpush1.bf16.msra.mxu0 %v12603_v40  ;;  %8763 = vmatpush1.bf16.msra.mxu1 %v12606_v41  ;;  %v12703_v40 = vld [vmem:[%s17590_s1 + $0x1a04] ss:$16 sps:$4 sm:$0xff]   ;;  %v12706_v41 = vld [vmem:[%s17590_s1 + $0x1a0c] ss:$16 sps:$4 sm:$0xff]  }
 0x304   :  { %7985 = vmatprep.subr.bf16.mxu0 %v12611_v30  ;;  %8764 = vmatprep.subr.bf16.mxu1 %v12614_v42  ;;  %v9903_v30 = vcombine.low %v15862_v39, %v15862_v39  ;;  %v16063_v42 = vld [vmem:[%s17591_s0 + $0x68] sm:$0xff]  ;;  %v12709_v39 = vld [vmem:[%s17590_s1 + $0x1a24] ss:$16 sps:$4 sm:$0xff]  }
 0x305   :  { %8015 = vmatprep.mubr.bf16.mxu0 %v9904_v43  ;;  %8794 = vmatprep.mubr.bf16.mxu1 %v9904_v43  ;;  %v12701_v43 = vld [vmem:[%s17590_s1 + $0x1a00] ss:$16 sps:$4 sm:$0xff]  }
 0x307   :  { %7986 = vmatpush1.bf16.msra.mxu0 %v12609_v44  ;;  %8765 = vmatpush1.bf16.msra.mxu1 %v12612_v45  ;;  %v12704_v44 = vld [vmem:[%s17590_s1 + $0x1a08] ss:$16 sps:$4 sm:$0xff]   ;;  %v12712_v45 = vld [vmem:[%s17590_s1 + $0x1a2c] ss:$16 sps:$4 sm:$0xff]  }
 0x308   :  { %7987 = vmatprep.subr.bf16.mxu0 %v12617_v46  ;;  %8766 = vmatprep.subr.bf16.mxu1 %v12620_v47  ;;  %v9906_v46 = vcombine.high %v16063_v42, %v16063_v42  ;;  %v12707_v47 = vld [vmem:[%s17590_s1 + $0x1a20] ss:$16 sps:$4 sm:$0xff]  }
 0x30b   :  { %7988 = vmatpush1.bf16.msra.mxu0 %v12615_v48  ;;  %8767 = vmatpush1.bf16.msra.mxu1 %v12618_v49  ;;  %v12710_v48 = vld [vmem:[%s17590_s1 + $0x1a28] ss:$16 sps:$4 sm:$0xff]   ;;  %v12715_v49 = vld [vmem:[%s17590_s1 + $0x1a44] ss:$16 sps:$4 sm:$0xff]  }
 0x30c   :  { %7989 = vmatprep.subr.bf16.mxu0 %v12623_v50  ;;  %8768 = vmatprep.subr.bf16.mxu1 %v12626_v51  ;;  %v12718_v50 = vld [vmem:[%s17590_s1 + $0x1a4c] ss:$16 sps:$4 sm:$0xff]   ;;  %v12713_v51 = vld [vmem:[%s17590_s1 + $0x1a40] ss:$16 sps:$4 sm:$0xff]  }
 0x30f   :  { %7990 = vmatpush1.bf16.msra.mxu0 %v12621_v52  ;;  %8769 = vmatpush1.bf16.msra.mxu1 %v12624_v53  ;;  %v12716_v52 = vld [vmem:[%s17590_s1 + $0x1a48] ss:$16 sps:$4 sm:$0xff]   ;;  %v12721_v53 = vld [vmem:[%s17590_s1 + $0x1a64] ss:$16 sps:$4 sm:$0xff]  }
 0x310   :  { %7991 = vmatprep.subr.bf16.mxu0 %v12629_v54  ;;  %8770 = vmatprep.subr.bf16.mxu1 %v12632_v55  ;;  %v12724_v54 = vld [vmem:[%s17590_s1 + $0x1a6c] ss:$16 sps:$4 sm:$0xff]   ;;  %v12719_v55 = vld [vmem:[%s17590_s1 + $0x1a60] ss:$16 sps:$4 sm:$0xff]  }
 0x313   :  { %7992 = vmatpush1.bf16.msra.mxu0 %v12627_v56  ;;  %8771 = vmatpush1.bf16.msra.mxu1 %v12630_v57  ;;  %v12722_v56 = vld [vmem:[%s17590_s1 + $0x1a68] ss:$16 sps:$4 sm:$0xff]   ;;  %v12727_v57 = vld [vmem:[%s17590_s1 + $0x1a84] ss:$16 sps:$4 sm:$0xff]  }
 0x314   :  { %7993 = vmatprep.subr.bf16.mxu0 %v12635_v58  ;;  %8772 = vmatprep.subr.bf16.mxu1 %v12638_v59  ;;  %v12730_v58 = vld [vmem:[%s17590_s1 + $0x1a8c] ss:$16 sps:$4 sm:$0xff]   ;;  %v12725_v59 = vld [vmem:[%s17590_s1 + $0x1a80] ss:$16 sps:$4 sm:$0xff]  }
 0x317   :  { %7994 = vmatpush1.bf16.msra.mxu0 %v12633_v60  ;;  %8773 = vmatpush1.bf16.msra.mxu1 %v12636_v61  ;;  %v12728_v60 = vld [vmem:[%s17590_s1 + $0x1a88] ss:$16 sps:$4 sm:$0xff]   ;;  %v12733_v61 = vld [vmem:[%s17590_s1 + $0x1aa4] ss:$16 sps:$4 sm:$0xff]  }
 0x318   :  { %7995 = vmatprep.subr.bf16.mxu0 %v12641_v62  ;;  %8774 = vmatprep.subr.bf16.mxu1 %v12644_v63  ;;  %v12736_v62 = vld [vmem:[%s17590_s1 + $0x1aac] ss:$16 sps:$4 sm:$0xff]   ;;  %v12731_v63 = vld [vmem:[%s17590_s1 + $0x1aa0] ss:$16 sps:$4 sm:$0xff]  }
 0x31b   :  { %7996 = vmatpush1.bf16.msra.mxu0 %v12639_v0  ;;  %8775 = vmatpush1.bf16.msra.mxu1 %v12642_v1  ;;  %v12734_v0 = vld [vmem:[%s17590_s1 + $0x1aa8] ss:$16 sps:$4 sm:$0xff]   ;;  %v12739_v1 = vld [vmem:[%s17590_s1 + $0x1ac4] ss:$16 sps:$4 sm:$0xff]  }
 0x31c   :  { %7997 = vmatprep.subr.bf16.mxu0 %v12647_v2  ;;  %8776 = vmatprep.subr.bf16.mxu1 %v12650_v3  ;;  %v12742_v2 = vld [vmem:[%s17590_s1 + $0x1acc] ss:$16 sps:$4 sm:$0xff]   ;;  %v12737_v3 = vld [vmem:[%s17590_s1 + $0x1ac0] ss:$16 sps:$4 sm:$0xff]  }
 0x31f   :  { %7998 = vmatpush1.bf16.msra.mxu0 %v12645_v4  ;;  %8777 = vmatpush1.bf16.msra.mxu1 %v12648_v5  ;;  %v12740_v4 = vld [vmem:[%s17590_s1 + $0x1ac8] ss:$16 sps:$4 sm:$0xff]   ;;  %v12745_v5 = vld [vmem:[%s17590_s1 + $0x1ae4] ss:$16 sps:$4 sm:$0xff]  }
 0x320   :  { %7999 = vmatprep.subr.bf16.mxu0 %v12653_v6  ;;  %8778 = vmatprep.subr.bf16.mxu1 %v12656_v7  ;;  %v12748_v6 = vld [vmem:[%s17590_s1 + $0x1aec] ss:$16 sps:$4 sm:$0xff]   ;;  %v12743_v7 = vld [vmem:[%s17590_s1 + $0x1ae0] ss:$16 sps:$4 sm:$0xff]  }
 0x323   :  { %8000 = vmatpush1.bf16.msra.mxu0 %v12651_v8  ;;  %8779 = vmatpush1.bf16.msra.mxu1 %v12654_v9  ;;  %v12746_v8 = vld [vmem:[%s17590_s1 + $0x1ae8] ss:$16 sps:$4 sm:$0xff]   ;;  %v12751_v9 = vld [vmem:[%s17590_s1 + $0x1b04] ss:$16 sps:$4 sm:$0xff]  }
 0x324   :  { %8001 = vmatprep.subr.bf16.mxu0 %v12659_v10  ;;  %8780 = vmatprep.subr.bf16.mxu1 %v12662_v12  ;;  %v12754_v10 = vld [vmem:[%s17590_s1 + $0x1b0c] ss:$16 sps:$4 sm:$0xff]   ;;  %v12749_v12 = vld [vmem:[%s17590_s1 + $0x1b00] ss:$16 sps:$4 sm:$0xff]  }
 0x327   :  { %8002 = vmatpush1.bf16.msra.mxu0 %v12657_v13  ;;  %8781 = vmatpush1.bf16.msra.mxu1 %v12660_v15  ;;  %v12752_v13 = vld [vmem:[%s17590_s1 + $0x1b08] ss:$16 sps:$4 sm:$0xff]   ;;  %v12757_v15 = vld [vmem:[%s17590_s1 + $0x1b24] ss:$16 sps:$4 sm:$0xff]  }
 0x328   :  { %8003 = vmatprep.subr.bf16.mxu0 %v12665_v11  ;;  %8782 = vmatprep.subr.bf16.mxu1 %v12668_v17  ;;  %v12760_v11 = vld [vmem:[%s17590_s1 + $0x1b2c] ss:$16 sps:$4 sm:$0xff]   ;;  %v12755_v17 = vld [vmem:[%s17590_s1 + $0x1b20] ss:$16 sps:$4 sm:$0xff]  }
 0x32b   :  { %8004 = vmatpush1.bf16.msra.mxu0 %v12663_v14  ;;  %8783 = vmatpush1.bf16.msra.mxu1 %v12666_v19  ;;  %v12758_v14 = vld [vmem:[%s17590_s1 + $0x1b28] ss:$16 sps:$4 sm:$0xff]   ;;  %v12763_v19 = vld [vmem:[%s17590_s1 + $0x1b44] ss:$16 sps:$4 sm:$0xff]  }
 0x32c   :  { %8005 = vmatprep.subr.bf16.mxu0 %v12671_v20  ;;  %8784 = vmatprep.subr.bf16.mxu1 %v12674_v16  ;;  %v12766_v20 = vld [vmem:[%s17590_s1 + $0x1b4c] ss:$16 sps:$4 sm:$0xff]   ;;  %v12761_v16 = vld [vmem:[%s17590_s1 + $0x1b40] ss:$16 sps:$4 sm:$0xff]  }
 0x32f   :  { %8006 = vmatpush1.bf16.msra.mxu0 %v12669_v22  ;;  %8785 = vmatpush1.bf16.msra.mxu1 %v12672_v23  ;;  %v12764_v22 = vld [vmem:[%s17590_s1 + $0x1b48] ss:$16 sps:$4 sm:$0xff]   ;;  %v12769_v23 = vld [vmem:[%s17590_s1 + $0x1b64] ss:$16 sps:$4 sm:$0xff]  }
 0x330   :  { %8007 = vmatprep.subr.bf16.mxu0 %v12677_v18  ;;  %8786 = vmatprep.subr.bf16.mxu1 %v12680_v25  ;;  %v12772_v18 = vld [vmem:[%s17590_s1 + $0x1b6c] ss:$16 sps:$4 sm:$0xff]   ;;  %v12767_v25 = vld [vmem:[%s17590_s1 + $0x1b60] ss:$16 sps:$4 sm:$0xff]  }
 0x333   :  { %8008 = vmatpush1.bf16.msra.mxu0 %v12675_v26  ;;  %8787 = vmatpush1.bf16.msra.mxu1 %v12678_v21  ;;  %v12770_v26 = vld [vmem:[%s17590_s1 + $0x1b68] ss:$16 sps:$4 sm:$0xff]   ;;  %v12775_v21 = vld [vmem:[%s17590_s1 + $0x1b84] ss:$16 sps:$4 sm:$0xff]  }
 0x334   :  { %8009 = vmatprep.subr.bf16.mxu0 %v12683_v28  ;;  %8788 = vmatprep.subr.bf16.mxu1 %v12686_v29  ;;  %v12778_v28 = vld [vmem:[%s17590_s1 + $0x1b8c] ss:$16 sps:$4 sm:$0xff]   ;;  %v12773_v29 = vld [vmem:[%s17590_s1 + $0x1b80] ss:$16 sps:$4 sm:$0xff]  }
 0x337   :  { %8010 = vmatpush1.bf16.msra.mxu0 %v12681_v24  ;;  %8789 = vmatpush1.bf16.msra.mxu1 %v12684_v31  ;;  %v12776_v24 = vld [vmem:[%s17590_s1 + $0x1b88] ss:$16 sps:$4 sm:$0xff]   ;;  %v12781_v31 = vld [vmem:[%s17590_s1 + $0x1ba4] ss:$16 sps:$4 sm:$0xff]  }
 0x338   :  { %8011 = vmatprep.subr.bf16.mxu0 %v12689_v32  ;;  %8790 = vmatprep.subr.bf16.mxu1 %v12692_v27  ;;  %v12784_v32 = vld [vmem:[%s17590_s1 + $0x1bac] ss:$16 sps:$4 sm:$0xff]   ;;  %v12779_v27 = vld [vmem:[%s17590_s1 + $0x1ba0] ss:$16 sps:$4 sm:$0xff]  }
 0x33b   :  { %8012 = vmatpush1.bf16.msra.mxu0 %v12687_v34  ;;  %8791 = vmatpush1.bf16.msra.mxu1 %v12690_v35  ;;  %v12782_v34 = vld [vmem:[%s17590_s1 + $0x1ba8] ss:$16 sps:$4 sm:$0xff]   ;;  %v12787_v35 = vld [vmem:[%s17590_s1 + $0x1bc4] ss:$16 sps:$4 sm:$0xff]  }
 0x33c   :  { %8013 = vmatprep.subr.bf16.mxu0 %v12695_v36  ;;  %8792 = vmatprep.subr.bf16.mxu1 %v12698_v37  ;;  %v12790_v36 = vld [vmem:[%s17590_s1 + $0x1bcc] ss:$16 sps:$4 sm:$0xff]   ;;  %v12785_v37 = vld [vmem:[%s17590_s1 + $0x1bc0] ss:$16 sps:$4 sm:$0xff]  }
 0x33f   :  { %8014 = vmatpush1.bf16.msra.mxu0 %v12693_v38  ;;  %8793 = vmatpush1.bf16.msra.mxu1 %v12696_v33  ;;  %v12788_v38 = vld [vmem:[%s17590_s1 + $0x1bc8] ss:$16 sps:$4 sm:$0xff]   ;;  %v12793_v33 = vld [vmem:[%s17590_s1 + $0x1be4] ss:$16 sps:$4 sm:$0xff]  }
 0x340   :  { %8024 = vmatprep.subr.bf16.mxu0 %v12703_v40  ;;  %8803 = vmatprep.subr.bf16.mxu1 %v12706_v41  ;;  %v12796_v40 = vld [vmem:[%s17590_s1 + $0x1bec] ss:$16 sps:$4 sm:$0xff]   ;;  %v12791_v41 = vld [vmem:[%s17590_s1 + $0x1be0] ss:$16 sps:$4 sm:$0xff]  }
 0x342   :  { %8016 = vmatmul.mubr.bf16.vlgmr.msra.gmra.mrb[0].mxu0 %v9903_v30  ;;  %8795 = vmatmul.mubr.bf16.vlgmr.msra.gmra.mrb[0].mxu1 %v9903_v30  ;;  %v12794_v30 = vld [vmem:[%s17590_s1 + $0x1be8] ss:$16 sps:$4 sm:$0xff]  }
 0x343   :  { %8025 = vmatpush1.bf16.msra.mxu0 %v12701_v43  ;;  %8804 = vmatpush1.bf16.msra.mxu1 %v12704_v44  ;;  %v12801_v43 = vld [vmem:[%s17590_s1 + $0x1c04] ss:$16 sps:$4 sm:$0xff]   ;;  %v12804_v44 = vld [vmem:[%s17590_s1 + $0x1c0c] ss:$16 sps:$4 sm:$0xff]  }
 0x344   :  { %8026 = vmatprep.subr.bf16.mxu0 %v12709_v39  ;;  %8805 = vmatprep.subr.bf16.mxu1 %v12712_v45  ;;  %v9905_v39 = vcombine.low %v16063_v42, %v16063_v42  ;;  %v16264_v45 = vld [vmem:[%s17591_s0 + $0x70] sm:$0xff] }
 0x345   :  { %8056 = vmatprep.mubr.bf16.mxu0 %v9906_v46  ;;  %8835 = vmatprep.mubr.bf16.mxu1 %v9906_v46  ;;  %v12799_v46 = vld [vmem:[%s17590_s1 + $0x1c00] ss:$16 sps:$4 sm:$0xff]   ;;  %v12807_v42 = vld [vmem:[%s17590_s1 + $0x1c24] ss:$16 sps:$4 sm:$0xff]  }
 0x347   :  { %8027 = vmatpush1.bf16.msra.mxu0 %v12707_v47  ;;  %8806 = vmatpush1.bf16.msra.mxu1 %v12710_v48  ;;  %v12802_v47 = vld [vmem:[%s17590_s1 + $0x1c08] ss:$16 sps:$4 sm:$0xff]   ;;  %v12810_v48 = vld [vmem:[%s17590_s1 + $0x1c2c] ss:$16 sps:$4 sm:$0xff]  }
 0x348   :  { %8028 = vmatprep.subr.bf16.mxu0 %v12715_v49  ;;  %8807 = vmatprep.subr.bf16.mxu1 %v12718_v50  ;;  %v9908_v49 = vcombine.high %v16264_v45, %v16264_v45  ;;  %v12805_v50 = vld [vmem:[%s17590_s1 + $0x1c20] ss:$16 sps:$4 sm:$0xff]  }
 0x34b   :  { %8029 = vmatpush1.bf16.msra.mxu0 %v12713_v51  ;;  %8808 = vmatpush1.bf16.msra.mxu1 %v12716_v52  ;;  %v12808_v51 = vld [vmem:[%s17590_s1 + $0x1c28] ss:$16 sps:$4 sm:$0xff]   ;;  %v12813_v52 = vld [vmem:[%s17590_s1 + $0x1c44] ss:$16 sps:$4 sm:$0xff]  }
 0x34c   :  { %8030 = vmatprep.subr.bf16.mxu0 %v12721_v53  ;;  %8809 = vmatprep.subr.bf16.mxu1 %v12724_v54  ;;  %v12816_v53 = vld [vmem:[%s17590_s1 + $0x1c4c] ss:$16 sps:$4 sm:$0xff]   ;;  %v12811_v54 = vld [vmem:[%s17590_s1 + $0x1c40] ss:$16 sps:$4 sm:$0xff]  }
 0x34f   :  { %8031 = vmatpush1.bf16.msra.mxu0 %v12719_v55  ;;  %8810 = vmatpush1.bf16.msra.mxu1 %v12722_v56  ;;  %v12814_v55 = vld [vmem:[%s17590_s1 + $0x1c48] ss:$16 sps:$4 sm:$0xff]   ;;  %v12819_v56 = vld [vmem:[%s17590_s1 + $0x1c64] ss:$16 sps:$4 sm:$0xff]  }
 0x350   :  { %8032 = vmatprep.subr.bf16.mxu0 %v12727_v57  ;;  %8811 = vmatprep.subr.bf16.mxu1 %v12730_v58  ;;  %v12822_v57 = vld [vmem:[%s17590_s1 + $0x1c6c] ss:$16 sps:$4 sm:$0xff]   ;;  %v12817_v58 = vld [vmem:[%s17590_s1 + $0x1c60] ss:$16 sps:$4 sm:$0xff]  }
 0x353   :  { %8033 = vmatpush1.bf16.msra.mxu0 %v12725_v59  ;;  %8812 = vmatpush1.bf16.msra.mxu1 %v12728_v60  ;;  %v12820_v59 = vld [vmem:[%s17590_s1 + $0x1c68] ss:$16 sps:$4 sm:$0xff]   ;;  %v12825_v60 = vld [vmem:[%s17590_s1 + $0x1c84] ss:$16 sps:$4 sm:$0xff]  }
 0x354   :  { %8034 = vmatprep.subr.bf16.mxu0 %v12733_v61  ;;  %8813 = vmatprep.subr.bf16.mxu1 %v12736_v62  ;;  %v12828_v61 = vld [vmem:[%s17590_s1 + $0x1c8c] ss:$16 sps:$4 sm:$0xff]   ;;  %v12823_v62 = vld [vmem:[%s17590_s1 + $0x1c80] ss:$16 sps:$4 sm:$0xff]  }
 0x357   :  { %8035 = vmatpush1.bf16.msra.mxu0 %v12731_v63  ;;  %8814 = vmatpush1.bf16.msra.mxu1 %v12734_v0  ;;  %v12826_v63 = vld [vmem:[%s17590_s1 + $0x1c88] ss:$16 sps:$4 sm:$0xff]   ;;  %v12831_v0 = vld [vmem:[%s17590_s1 + $0x1ca4] ss:$16 sps:$4 sm:$0xff]  }
 0x358   :  { %8036 = vmatprep.subr.bf16.mxu0 %v12739_v1  ;;  %8815 = vmatprep.subr.bf16.mxu1 %v12742_v2  ;;  %v12834_v1 = vld [vmem:[%s17590_s1 + $0x1cac] ss:$16 sps:$4 sm:$0xff]   ;;  %v12829_v2 = vld [vmem:[%s17590_s1 + $0x1ca0] ss:$16 sps:$4 sm:$0xff]  }
 0x35b   :  { %8037 = vmatpush1.bf16.msra.mxu0 %v12737_v3  ;;  %8816 = vmatpush1.bf16.msra.mxu1 %v12740_v4  ;;  %v12832_v3 = vld [vmem:[%s17590_s1 + $0x1ca8] ss:$16 sps:$4 sm:$0xff]   ;;  %v12837_v4 = vld [vmem:[%s17590_s1 + $0x1cc4] ss:$16 sps:$4 sm:$0xff]  }
 0x35c   :  { %8038 = vmatprep.subr.bf16.mxu0 %v12745_v5  ;;  %8817 = vmatprep.subr.bf16.mxu1 %v12748_v6  ;;  %v12840_v5 = vld [vmem:[%s17590_s1 + $0x1ccc] ss:$16 sps:$4 sm:$0xff]   ;;  %v12835_v6 = vld [vmem:[%s17590_s1 + $0x1cc0] ss:$16 sps:$4 sm:$0xff]  }
 0x35f   :  { %8039 = vmatpush1.bf16.msra.mxu0 %v12743_v7  ;;  %8818 = vmatpush1.bf16.msra.mxu1 %v12746_v8  ;;  %v12838_v7 = vld [vmem:[%s17590_s1 + $0x1cc8] ss:$16 sps:$4 sm:$0xff]   ;;  %v12843_v8 = vld [vmem:[%s17590_s1 + $0x1ce4] ss:$16 sps:$4 sm:$0xff]  }
 0x360   :  { %8040 = vmatprep.subr.bf16.mxu0 %v12751_v9  ;;  %8819 = vmatprep.subr.bf16.mxu1 %v12754_v10  ;;  %v12846_v9 = vld [vmem:[%s17590_s1 + $0x1cec] ss:$16 sps:$4 sm:$0xff]   ;;  %v12841_v10 = vld [vmem:[%s17590_s1 + $0x1ce0] ss:$16 sps:$4 sm:$0xff]  }
 0x363   :  { %8041 = vmatpush1.bf16.msra.mxu0 %v12749_v12  ;;  %8820 = vmatpush1.bf16.msra.mxu1 %v12752_v13  ;;  %v12844_v12 = vld [vmem:[%s17590_s1 + $0x1ce8] ss:$16 sps:$4 sm:$0xff]   ;;  %v12849_v13 = vld [vmem:[%s17590_s1 + $0x1d04] ss:$16 sps:$4 sm:$0xff]  }
 0x364   :  { %8042 = vmatprep.subr.bf16.mxu0 %v12757_v15  ;;  %8821 = vmatprep.subr.bf16.mxu1 %v12760_v11  ;;  %v12852_v15 = vld [vmem:[%s17590_s1 + $0x1d0c] ss:$16 sps:$4 sm:$0xff]   ;;  %v12847_v11 = vld [vmem:[%s17590_s1 + $0x1d00] ss:$16 sps:$4 sm:$0xff]  }
 0x367   :  { %8043 = vmatpush1.bf16.msra.mxu0 %v12755_v17  ;;  %8822 = vmatpush1.bf16.msra.mxu1 %v12758_v14  ;;  %v12850_v17 = vld [vmem:[%s17590_s1 + $0x1d08] ss:$16 sps:$4 sm:$0xff]   ;;  %v12855_v14 = vld [vmem:[%s17590_s1 + $0x1d24] ss:$16 sps:$4 sm:$0xff]  }
 0x368   :  { %8044 = vmatprep.subr.bf16.mxu0 %v12763_v19  ;;  %8823 = vmatprep.subr.bf16.mxu1 %v12766_v20  ;;  %v12858_v19 = vld [vmem:[%s17590_s1 + $0x1d2c] ss:$16 sps:$4 sm:$0xff]   ;;  %v12853_v20 = vld [vmem:[%s17590_s1 + $0x1d20] ss:$16 sps:$4 sm:$0xff]  }
 0x36b   :  { %8045 = vmatpush1.bf16.msra.mxu0 %v12761_v16  ;;  %8824 = vmatpush1.bf16.msra.mxu1 %v12764_v22  ;;  %v12856_v16 = vld [vmem:[%s17590_s1 + $0x1d28] ss:$16 sps:$4 sm:$0xff]   ;;  %v12861_v22 = vld [vmem:[%s17590_s1 + $0x1d44] ss:$16 sps:$4 sm:$0xff]  }
 0x36c   :  { %8046 = vmatprep.subr.bf16.mxu0 %v12769_v23  ;;  %8825 = vmatprep.subr.bf16.mxu1 %v12772_v18  ;;  %v12864_v23 = vld [vmem:[%s17590_s1 + $0x1d4c] ss:$16 sps:$4 sm:$0xff]   ;;  %v12859_v18 = vld [vmem:[%s17590_s1 + $0x1d40] ss:$16 sps:$4 sm:$0xff]  }
 0x36f   :  { %8047 = vmatpush1.bf16.msra.mxu0 %v12767_v25  ;;  %8826 = vmatpush1.bf16.msra.mxu1 %v12770_v26  ;;  %v12862_v25 = vld [vmem:[%s17590_s1 + $0x1d48] ss:$16 sps:$4 sm:$0xff]   ;;  %v12867_v26 = vld [vmem:[%s17590_s1 + $0x1d64] ss:$16 sps:$4 sm:$0xff]  }
 0x370   :  { %8048 = vmatprep.subr.bf16.mxu0 %v12775_v21  ;;  %8827 = vmatprep.subr.bf16.mxu1 %v12778_v28  ;;  %v12870_v21 = vld [vmem:[%s17590_s1 + $0x1d6c] ss:$16 sps:$4 sm:$0xff]   ;;  %v12865_v28 = vld [vmem:[%s17590_s1 + $0x1d60] ss:$16 sps:$4 sm:$0xff]  }
 0x373   :  { %8049 = vmatpush1.bf16.msra.mxu0 %v12773_v29  ;;  %8828 = vmatpush1.bf16.msra.mxu1 %v12776_v24  ;;  %v12868_v29 = vld [vmem:[%s17590_s1 + $0x1d68] ss:$16 sps:$4 sm:$0xff]   ;;  %v12873_v24 = vld [vmem:[%s17590_s1 + $0x1d84] ss:$16 sps:$4 sm:$0xff]  }
 0x374   :  { %8050 = vmatprep.subr.bf16.mxu0 %v12781_v31  ;;  %8829 = vmatprep.subr.bf16.mxu1 %v12784_v32  ;;  %v12876_v31 = vld [vmem:[%s17590_s1 + $0x1d8c] ss:$16 sps:$4 sm:$0xff]   ;;  %v12871_v32 = vld [vmem:[%s17590_s1 + $0x1d80] ss:$16 sps:$4 sm:$0xff]  }
 0x377   :  { %8051 = vmatpush1.bf16.msra.mxu0 %v12779_v27  ;;  %8830 = vmatpush1.bf16.msra.mxu1 %v12782_v34  ;;  %v12874_v27 = vld [vmem:[%s17590_s1 + $0x1d88] ss:$16 sps:$4 sm:$0xff]   ;;  %v12879_v34 = vld [vmem:[%s17590_s1 + $0x1da4] ss:$16 sps:$4 sm:$0xff]  }
 0x378   :  { %8052 = vmatprep.subr.bf16.mxu0 %v12787_v35  ;;  %8831 = vmatprep.subr.bf16.mxu1 %v12790_v36  ;;  %v12882_v35 = vld [vmem:[%s17590_s1 + $0x1dac] ss:$16 sps:$4 sm:$0xff]   ;;  %v12877_v36 = vld [vmem:[%s17590_s1 + $0x1da0] ss:$16 sps:$4 sm:$0xff]  }
 0x37b   :  { %8053 = vmatpush1.bf16.msra.mxu0 %v12785_v37  ;;  %8832 = vmatpush1.bf16.msra.mxu1 %v12788_v38  ;;  %v12880_v37 = vld [vmem:[%s17590_s1 + $0x1da8] ss:$16 sps:$4 sm:$0xff]   ;;  %v12885_v38 = vld [vmem:[%s17590_s1 + $0x1dc4] ss:$16 sps:$4 sm:$0xff]  }
 0x37c   :  { %8054 = vmatprep.subr.bf16.mxu0 %v12793_v33  ;;  %8833 = vmatprep.subr.bf16.mxu1 %v12796_v40  ;;  %v12888_v33 = vld [vmem:[%s17590_s1 + $0x1dcc] ss:$16 sps:$4 sm:$0xff]   ;;  %v12883_v40 = vld [vmem:[%s17590_s1 + $0x1dc0] ss:$16 sps:$4 sm:$0xff]  }
 0x37f   :  { %8055 = vmatpush1.bf16.msra.mxu0 %v12791_v41  ;;  %8834 = vmatpush1.bf16.msra.mxu1 %v12794_v30  ;;  %v12886_v41 = vld [vmem:[%s17590_s1 + $0x1dc8] ss:$16 sps:$4 sm:$0xff]   ;;  %v12891_v30 = vld [vmem:[%s17590_s1 + $0x1de4] ss:$16 sps:$4 sm:$0xff]  }
 0x380   :  { %8065 = vmatprep.subr.bf16.mxu0 %v12801_v43  ;;  %8844 = vmatprep.subr.bf16.mxu1 %v12804_v44  ;;  %v12894_v43 = vld [vmem:[%s17590_s1 + $0x1dec] ss:$16 sps:$4 sm:$0xff]   ;;  %v12889_v44 = vld [vmem:[%s17590_s1 + $0x1de0] ss:$16 sps:$4 sm:$0xff]  }
 0x382   :  { %8057 = vmatmul.mubr.bf16.vlgmr.msra.gmra.mrb[0].mxu0 %v9905_v39  ;;  %8836 = vmatmul.mubr.bf16.vlgmr.msra.gmra.mrb[0].mxu1 %v9905_v39  ;;  %v12892_v39 = vld [vmem:[%s17590_s1 + $0x1de8] ss:$16 sps:$4 sm:$0xff]  }
 0x383   :  { %8066 = vmatpush1.bf16.msra.mxu0 %v12799_v46  ;;  %8845 = vmatpush1.bf16.msra.mxu1 %v12802_v47  ;;  %v12899_v46 = vld [vmem:[%s17590_s1 + $0x1e04] ss:$16 sps:$4 sm:$0xff]   ;;  %v12902_v47 = vld [vmem:[%s17590_s1 + $0x1e0c] ss:$16 sps:$4 sm:$0xff]  }
 0x384   :  { %8067 = vmatprep.subr.bf16.mxu0 %v12807_v42  ;;  %8846 = vmatprep.subr.bf16.mxu1 %v12810_v48  ;;  %v9907_v42 = vcombine.low %v16264_v45, %v16264_v45  ;;  %v16465_v48 = vld [vmem:[%s17591_s0 + $0x78] sm:$0xff]  ;;  %v12905_v45 = vld [vmem:[%s17590_s1 + $0x1e24] ss:$16 sps:$4 sm:$0xff]  }
 0x385   :  { %8097 = vmatprep.mubr.bf16.mxu0 %v9908_v49  ;;  %8876 = vmatprep.mubr.bf16.mxu1 %v9908_v49  ;;  %v12897_v49 = vld [vmem:[%s17590_s1 + $0x1e00] ss:$16 sps:$4 sm:$0xff]  }
 0x387   :  { %8068 = vmatpush1.bf16.msra.mxu0 %v12805_v50  ;;  %8847 = vmatpush1.bf16.msra.mxu1 %v12808_v51  ;;  %v12900_v50 = vld [vmem:[%s17590_s1 + $0x1e08] ss:$16 sps:$4 sm:$0xff]   ;;  %v12908_v51 = vld [vmem:[%s17590_s1 + $0x1e2c] ss:$16 sps:$4 sm:$0xff]  }
 0x388   :  { %8069 = vmatprep.subr.bf16.mxu0 %v12813_v52  ;;  %8848 = vmatprep.subr.bf16.mxu1 %v12816_v53  ;;  %v9910_v52 = vcombine.high %v16465_v48, %v16465_v48  ;;  %v12903_v53 = vld [vmem:[%s17590_s1 + $0x1e20] ss:$16 sps:$4 sm:$0xff]  }
 0x38b   :  { %8070 = vmatpush1.bf16.msra.mxu0 %v12811_v54  ;;  %8849 = vmatpush1.bf16.msra.mxu1 %v12814_v55  ;;  %v12906_v54 = vld [vmem:[%s17590_s1 + $0x1e28] ss:$16 sps:$4 sm:$0xff]   ;;  %v12911_v55 = vld [vmem:[%s17590_s1 + $0x1e44] ss:$16 sps:$4 sm:$0xff]  }
 0x38c   :  { %8071 = vmatprep.subr.bf16.mxu0 %v12819_v56  ;;  %8850 = vmatprep.subr.bf16.mxu1 %v12822_v57  ;;  %v12914_v56 = vld [vmem:[%s17590_s1 + $0x1e4c] ss:$16 sps:$4 sm:$0xff]   ;;  %v12909_v57 = vld [vmem:[%s17590_s1 + $0x1e40] ss:$16 sps:$4 sm:$0xff]  }
 0x38f   :  { %8072 = vmatpush1.bf16.msra.mxu0 %v12817_v58  ;;  %8851 = vmatpush1.bf16.msra.mxu1 %v12820_v59  ;;  %v12912_v58 = vld [vmem:[%s17590_s1 + $0x1e48] ss:$16 sps:$4 sm:$0xff]   ;;  %v12917_v59 = vld [vmem:[%s17590_s1 + $0x1e64] ss:$16 sps:$4 sm:$0xff]  }
 0x390   :  { %8073 = vmatprep.subr.bf16.mxu0 %v12825_v60  ;;  %8852 = vmatprep.subr.bf16.mxu1 %v12828_v61  ;;  %v12920_v60 = vld [vmem:[%s17590_s1 + $0x1e6c] ss:$16 sps:$4 sm:$0xff]   ;;  %v12915_v61 = vld [vmem:[%s17590_s1 + $0x1e60] ss:$16 sps:$4 sm:$0xff]  }
 0x393   :  { %8074 = vmatpush1.bf16.msra.mxu0 %v12823_v62  ;;  %8853 = vmatpush1.bf16.msra.mxu1 %v12826_v63  ;;  %v12918_v62 = vld [vmem:[%s17590_s1 + $0x1e68] ss:$16 sps:$4 sm:$0xff]   ;;  %v12923_v63 = vld [vmem:[%s17590_s1 + $0x1e84] ss:$16 sps:$4 sm:$0xff]  }
 0x394   :  { %8075 = vmatprep.subr.bf16.mxu0 %v12831_v0  ;;  %8854 = vmatprep.subr.bf16.mxu1 %v12834_v1  ;;  %v12926_v0 = vld [vmem:[%s17590_s1 + $0x1e8c] ss:$16 sps:$4 sm:$0xff]   ;;  %v12921_v1 = vld [vmem:[%s17590_s1 + $0x1e80] ss:$16 sps:$4 sm:$0xff]  }
 0x397   :  { %8076 = vmatpush1.bf16.msra.mxu0 %v12829_v2  ;;  %8855 = vmatpush1.bf16.msra.mxu1 %v12832_v3  ;;  %v12924_v2 = vld [vmem:[%s17590_s1 + $0x1e88] ss:$16 sps:$4 sm:$0xff]   ;;  %v12929_v3 = vld [vmem:[%s17590_s1 + $0x1ea4] ss:$16 sps:$4 sm:$0xff]  }
 0x398   :  { %8077 = vmatprep.subr.bf16.mxu0 %v12837_v4  ;;  %8856 = vmatprep.subr.bf16.mxu1 %v12840_v5  ;;  %v12932_v4 = vld [vmem:[%s17590_s1 + $0x1eac] ss:$16 sps:$4 sm:$0xff]   ;;  %v12927_v5 = vld [vmem:[%s17590_s1 + $0x1ea0] ss:$16 sps:$4 sm:$0xff]  }
 0x39b   :  { %8078 = vmatpush1.bf16.msra.mxu0 %v12835_v6  ;;  %8857 = vmatpush1.bf16.msra.mxu1 %v12838_v7  ;;  %v12930_v6 = vld [vmem:[%s17590_s1 + $0x1ea8] ss:$16 sps:$4 sm:$0xff]   ;;  %v12935_v7 = vld [vmem:[%s17590_s1 + $0x1ec4] ss:$16 sps:$4 sm:$0xff]  }
 0x39c   :  { %8079 = vmatprep.subr.bf16.mxu0 %v12843_v8  ;;  %8858 = vmatprep.subr.bf16.mxu1 %v12846_v9  ;;  %v12938_v8 = vld [vmem:[%s17590_s1 + $0x1ecc] ss:$16 sps:$4 sm:$0xff]   ;;  %v12933_v9 = vld [vmem:[%s17590_s1 + $0x1ec0] ss:$16 sps:$4 sm:$0xff]  }
 0x39f   :  { %8080 = vmatpush1.bf16.msra.mxu0 %v12841_v10  ;;  %8859 = vmatpush1.bf16.msra.mxu1 %v12844_v12  ;;  %v12936_v10 = vld [vmem:[%s17590_s1 + $0x1ec8] ss:$16 sps:$4 sm:$0xff]   ;;  %v12941_v12 = vld [vmem:[%s17590_s1 + $0x1ee4] ss:$16 sps:$4 sm:$0xff]  }
 0x3a0   :  { %8081 = vmatprep.subr.bf16.mxu0 %v12849_v13  ;;  %8860 = vmatprep.subr.bf16.mxu1 %v12852_v15  ;;  %v12944_v13 = vld [vmem:[%s17590_s1 + $0x1eec] ss:$16 sps:$4 sm:$0xff]   ;;  %v12939_v15 = vld [vmem:[%s17590_s1 + $0x1ee0] ss:$16 sps:$4 sm:$0xff]  }
 0x3a3   :  { %8082 = vmatpush1.bf16.msra.mxu0 %v12847_v11  ;;  %8861 = vmatpush1.bf16.msra.mxu1 %v12850_v17  ;;  %v12942_v11 = vld [vmem:[%s17590_s1 + $0x1ee8] ss:$16 sps:$4 sm:$0xff]   ;;  %v12947_v17 = vld [vmem:[%s17590_s1 + $0x1f04] ss:$16 sps:$4 sm:$0xff]  }
 0x3a4   :  { %8083 = vmatprep.subr.bf16.mxu0 %v12855_v14  ;;  %8862 = vmatprep.subr.bf16.mxu1 %v12858_v19  ;;  %v12950_v14 = vld [vmem:[%s17590_s1 + $0x1f0c] ss:$16 sps:$4 sm:$0xff]   ;;  %v12945_v19 = vld [vmem:[%s17590_s1 + $0x1f00] ss:$16 sps:$4 sm:$0xff]  }
 0x3a7   :  { %8084 = vmatpush1.bf16.msra.mxu0 %v12853_v20  ;;  %8863 = vmatpush1.bf16.msra.mxu1 %v12856_v16  ;;  %v12948_v20 = vld [vmem:[%s17590_s1 + $0x1f08] ss:$16 sps:$4 sm:$0xff]   ;;  %v12953_v16 = vld [vmem:[%s17590_s1 + $0x1f24] ss:$16 sps:$4 sm:$0xff]  }
 0x3a8   :  { %8085 = vmatprep.subr.bf16.mxu0 %v12861_v22  ;;  %8864 = vmatprep.subr.bf16.mxu1 %v12864_v23  ;;  %v12956_v22 = vld [vmem:[%s17590_s1 + $0x1f2c] ss:$16 sps:$4 sm:$0xff]   ;;  %v12951_v23 = vld [vmem:[%s17590_s1 + $0x1f20] ss:$16 sps:$4 sm:$0xff]  }
 0x3ab   :  { %8086 = vmatpush1.bf16.msra.mxu0 %v12859_v18  ;;  %8865 = vmatpush1.bf16.msra.mxu1 %v12862_v25  ;;  %v12954_v18 = vld [vmem:[%s17590_s1 + $0x1f28] ss:$16 sps:$4 sm:$0xff]   ;;  %v12959_v25 = vld [vmem:[%s17590_s1 + $0x1f44] ss:$16 sps:$4 sm:$0xff]  }
 0x3ac   :  { %8087 = vmatprep.subr.bf16.mxu0 %v12867_v26  ;;  %8866 = vmatprep.subr.bf16.mxu1 %v12870_v21  ;;  %v12962_v26 = vld [vmem:[%s17590_s1 + $0x1f4c] ss:$16 sps:$4 sm:$0xff]   ;;  %v12957_v21 = vld [vmem:[%s17590_s1 + $0x1f40] ss:$16 sps:$4 sm:$0xff]  }
 0x3af   :  { %8088 = vmatpush1.bf16.msra.mxu0 %v12865_v28  ;;  %8867 = vmatpush1.bf16.msra.mxu1 %v12868_v29  ;;  %v12960_v28 = vld [vmem:[%s17590_s1 + $0x1f48] ss:$16 sps:$4 sm:$0xff]   ;;  %v12965_v29 = vld [vmem:[%s17590_s1 + $0x1f64] ss:$16 sps:$4 sm:$0xff]  }
 0x3b0   :  { %8089 = vmatprep.subr.bf16.mxu0 %v12873_v24  ;;  %8868 = vmatprep.subr.bf16.mxu1 %v12876_v31  ;;  %v12968_v24 = vld [vmem:[%s17590_s1 + $0x1f6c] ss:$16 sps:$4 sm:$0xff]   ;;  %v12963_v31 = vld [vmem:[%s17590_s1 + $0x1f60] ss:$16 sps:$4 sm:$0xff]  }
 0x3b3   :  { %8090 = vmatpush1.bf16.msra.mxu0 %v12871_v32  ;;  %8869 = vmatpush1.bf16.msra.mxu1 %v12874_v27  ;;  %v12966_v32 = vld [vmem:[%s17590_s1 + $0x1f68] ss:$16 sps:$4 sm:$0xff]   ;;  %v12971_v27 = vld [vmem:[%s17590_s1 + $0x1f84] ss:$16 sps:$4 sm:$0xff]  }
 0x3b4   :  { %8091 = vmatprep.subr.bf16.mxu0 %v12879_v34  ;;  %8870 = vmatprep.subr.bf16.mxu1 %v12882_v35  ;;  %v12974_v34 = vld [vmem:[%s17590_s1 + $0x1f8c] ss:$16 sps:$4 sm:$0xff]   ;;  %v12969_v35 = vld [vmem:[%s17590_s1 + $0x1f80] ss:$16 sps:$4 sm:$0xff]  }
 0x3b7   :  { %8092 = vmatpush1.bf16.msra.mxu0 %v12877_v36  ;;  %8871 = vmatpush1.bf16.msra.mxu1 %v12880_v37  ;;  %v12972_v36 = vld [vmem:[%s17590_s1 + $0x1f88] ss:$16 sps:$4 sm:$0xff]   ;;  %v12977_v37 = vld [vmem:[%s17590_s1 + $0x1fa4] ss:$16 sps:$4 sm:$0xff]  }
 0x3b8   :  { %8093 = vmatprep.subr.bf16.mxu0 %v12885_v38  ;;  %8872 = vmatprep.subr.bf16.mxu1 %v12888_v33  ;;  %v12980_v38 = vld [vmem:[%s17590_s1 + $0x1fac] ss:$16 sps:$4 sm:$0xff]   ;;  %v12975_v33 = vld [vmem:[%s17590_s1 + $0x1fa0] ss:$16 sps:$4 sm:$0xff]  }
 0x3bb   :  { %8094 = vmatpush1.bf16.msra.mxu0 %v12883_v40  ;;  %8873 = vmatpush1.bf16.msra.mxu1 %v12886_v41  ;;  %v12978_v40 = vld [vmem:[%s17590_s1 + $0x1fa8] ss:$16 sps:$4 sm:$0xff]   ;;  %v12983_v41 = vld [vmem:[%s17590_s1 + $0x1fc4] ss:$16 sps:$4 sm:$0xff]  }
 0x3bc   :  { %8095 = vmatprep.subr.bf16.mxu0 %v12891_v30  ;;  %8874 = vmatprep.subr.bf16.mxu1 %v12894_v43  ;;  %v12986_v30 = vld [vmem:[%s17590_s1 + $0x1fcc] ss:$16 sps:$4 sm:$0xff]   ;;  %v12981_v43 = vld [vmem:[%s17590_s1 + $0x1fc0] ss:$16 sps:$4 sm:$0xff]  }
 0x3bf   :  { %8096 = vmatpush1.bf16.msra.mxu0 %v12889_v44  ;;  %8875 = vmatpush1.bf16.msra.mxu1 %v12892_v39  ;;  %v12984_v44 = vld [vmem:[%s17590_s1 + $0x1fc8] ss:$16 sps:$4 sm:$0xff]   ;;  %v12989_v39 = vld [vmem:[%s17590_s1 + $0x1fe4] ss:$16 sps:$4 sm:$0xff]  }
 0x3c0   :  { %8106 = vmatprep.subr.bf16.mxu0 %v12899_v46  ;;  %8885 = vmatprep.subr.bf16.mxu1 %v12902_v47  ;;  %v12992_v46 = vld [vmem:[%s17590_s1 + $0x1fec] ss:$16 sps:$4 sm:$0xff]   ;;  %v12987_v47 = vld [vmem:[%s17590_s1 + $0x1fe0] ss:$16 sps:$4 sm:$0xff]  }
 0x3c2   :  { %8098 = vmatmul.mubr.bf16.vlgmr.msra.gmra.mrb[0].mxu0 %v9907_v42  ;;  %8877 = vmatmul.mubr.bf16.vlgmr.msra.gmra.mrb[0].mxu1 %v9907_v42  ;;  %v12990_v42 = vld [vmem:[%s17590_s1 + $0x1fe8] ss:$16 sps:$4 sm:$0xff]  }
 0x3c3   :  { %8107 = vmatpush1.bf16.msra.mxu0 %v12897_v49  ;;  %8886 = vmatpush1.bf16.msra.mxu1 %v12900_v50  ;;  %v12997_v49 = vld [vmem:[%s17590_s1 + $0x2004] ss:$16 sps:$4 sm:$0xff]   ;;  %v13000_v50 = vld [vmem:[%s17590_s1 + $0x200c] ss:$16 sps:$4 sm:$0xff]  }
 0x3c4   :  { %8108 = vmatprep.subr.bf16.mxu0 %v12905_v45  ;;  %8887 = vmatprep.subr.bf16.mxu1 %v12908_v51  ;;  %v9909_v45 = vcombine.low %v16465_v48, %v16465_v48  ;;  %v16666_v51 = vld [vmem:[%s17591_s0 + $0x80] sm:$0xff] }
 0x3c5   :  { %8138 = vmatprep.mubr.bf16.mxu0 %v9910_v52  ;;  %8917 = vmatprep.mubr.bf16.mxu1 %v9910_v52  ;;  %v12995_v52 = vld [vmem:[%s17590_s1 + $0x2000] ss:$16 sps:$4 sm:$0xff]   ;;  %v13003_v48 = vld [vmem:[%s17590_s1 + $0x2024] ss:$16 sps:$4 sm:$0xff]  }
 0x3c7   :  { %8109 = vmatpush1.bf16.msra.mxu0 %v12903_v53  ;;  %8888 = vmatpush1.bf16.msra.mxu1 %v12906_v54  ;;  %v12998_v53 = vld [vmem:[%s17590_s1 + $0x2008] ss:$16 sps:$4 sm:$0xff]   ;;  %v13006_v54 = vld [vmem:[%s17590_s1 + $0x202c] ss:$16 sps:$4 sm:$0xff]  }
 0x3c8   :  { %8110 = vmatprep.subr.bf16.mxu0 %v12911_v55  ;;  %8889 = vmatprep.subr.bf16.mxu1 %v12914_v56  ;;  %v9912_v55 = vcombine.high %v16666_v51, %v16666_v51  ;;  %v13001_v56 = vld [vmem:[%s17590_s1 + $0x2020] ss:$16 sps:$4 sm:$0xff]  }
 0x3cb   :  { %8111 = vmatpush1.bf16.msra.mxu0 %v12909_v57  ;;  %8890 = vmatpush1.bf16.msra.mxu1 %v12912_v58  ;;  %v13004_v57 = vld [vmem:[%s17590_s1 + $0x2028] ss:$16 sps:$4 sm:$0xff]   ;;  %v13009_v58 = vld [vmem:[%s17590_s1 + $0x2044] ss:$16 sps:$4 sm:$0xff]  }
 0x3cc   :  { %8112 = vmatprep.subr.bf16.mxu0 %v12917_v59  ;;  %8891 = vmatprep.subr.bf16.mxu1 %v12920_v60  ;;  %v13012_v59 = vld [vmem:[%s17590_s1 + $0x204c] ss:$16 sps:$4 sm:$0xff]   ;;  %v13007_v60 = vld [vmem:[%s17590_s1 + $0x2040] ss:$16 sps:$4 sm:$0xff]  }
 0x3cf   :  { %8113 = vmatpush1.bf16.msra.mxu0 %v12915_v61  ;;  %8892 = vmatpush1.bf16.msra.mxu1 %v12918_v62  ;;  %v13010_v61 = vld [vmem:[%s17590_s1 + $0x2048] ss:$16 sps:$4 sm:$0xff]   ;;  %v13015_v62 = vld [vmem:[%s17590_s1 + $0x2064] ss:$16 sps:$4 sm:$0xff]  }
 0x3d0   :  { %8114 = vmatprep.subr.bf16.mxu0 %v12923_v63  ;;  %8893 = vmatprep.subr.bf16.mxu1 %v12926_v0  ;;  %v13018_v63 = vld [vmem:[%s17590_s1 + $0x206c] ss:$16 sps:$4 sm:$0xff]   ;;  %v13013_v0 = vld [vmem:[%s17590_s1 + $0x2060] ss:$16 sps:$4 sm:$0xff]  }
 0x3d3   :  { %8115 = vmatpush1.bf16.msra.mxu0 %v12921_v1  ;;  %8894 = vmatpush1.bf16.msra.mxu1 %v12924_v2  ;;  %v13016_v1 = vld [vmem:[%s17590_s1 + $0x2068] ss:$16 sps:$4 sm:$0xff]   ;;  %v13021_v2 = vld [vmem:[%s17590_s1 + $0x2084] ss:$16 sps:$4 sm:$0xff]  }
 0x3d4   :  { %8116 = vmatprep.subr.bf16.mxu0 %v12929_v3  ;;  %8895 = vmatprep.subr.bf16.mxu1 %v12932_v4  ;;  %v13024_v3 = vld [vmem:[%s17590_s1 + $0x208c] ss:$16 sps:$4 sm:$0xff]   ;;  %v13019_v4 = vld [vmem:[%s17590_s1 + $0x2080] ss:$16 sps:$4 sm:$0xff]  }
 0x3d7   :  { %8117 = vmatpush1.bf16.msra.mxu0 %v12927_v5  ;;  %8896 = vmatpush1.bf16.msra.mxu1 %v12930_v6  ;;  %v13022_v5 = vld [vmem:[%s17590_s1 + $0x2088] ss:$16 sps:$4 sm:$0xff]   ;;  %v13027_v6 = vld [vmem:[%s17590_s1 + $0x20a4] ss:$16 sps:$4 sm:$0xff]  }
 0x3d8   :  { %8118 = vmatprep.subr.bf16.mxu0 %v12935_v7  ;;  %8897 = vmatprep.subr.bf16.mxu1 %v12938_v8  ;;  %v13030_v7 = vld [vmem:[%s17590_s1 + $0x20ac] ss:$16 sps:$4 sm:$0xff]   ;;  %v13025_v8 = vld [vmem:[%s17590_s1 + $0x20a0] ss:$16 sps:$4 sm:$0xff]  }
 0x3db   :  { %8119 = vmatpush1.bf16.msra.mxu0 %v12933_v9  ;;  %8898 = vmatpush1.bf16.msra.mxu1 %v12936_v10  ;;  %v13028_v9 = vld [vmem:[%s17590_s1 + $0x20a8] ss:$16 sps:$4 sm:$0xff]   ;;  %v13033_v10 = vld [vmem:[%s17590_s1 + $0x20c4] ss:$16 sps:$4 sm:$0xff]  }
 0x3dc   :  { %8120 = vmatprep.subr.bf16.mxu0 %v12941_v12  ;;  %8899 = vmatprep.subr.bf16.mxu1 %v12944_v13  ;;  %v13036_v12 = vld [vmem:[%s17590_s1 + $0x20cc] ss:$16 sps:$4 sm:$0xff]   ;;  %v13031_v13 = vld [vmem:[%s17590_s1 + $0x20c0] ss:$16 sps:$4 sm:$0xff]  }
 0x3df   :  { %8121 = vmatpush1.bf16.msra.mxu0 %v12939_v15  ;;  %8900 = vmatpush1.bf16.msra.mxu1 %v12942_v11  ;;  %v13034_v15 = vld [vmem:[%s17590_s1 + $0x20c8] ss:$16 sps:$4 sm:$0xff]   ;;  %v13039_v11 = vld [vmem:[%s17590_s1 + $0x20e4] ss:$16 sps:$4 sm:$0xff]  }
 0x3e0   :  { %8122 = vmatprep.subr.bf16.mxu0 %v12947_v17  ;;  %8901 = vmatprep.subr.bf16.mxu1 %v12950_v14  ;;  %v13042_v17 = vld [vmem:[%s17590_s1 + $0x20ec] ss:$16 sps:$4 sm:$0xff]   ;;  %v13037_v14 = vld [vmem:[%s17590_s1 + $0x20e0] ss:$16 sps:$4 sm:$0xff]  }
 0x3e3   :  { %8123 = vmatpush1.bf16.msra.mxu0 %v12945_v19  ;;  %8902 = vmatpush1.bf16.msra.mxu1 %v12948_v20  ;;  %v13040_v19 = vld [vmem:[%s17590_s1 + $0x20e8] ss:$16 sps:$4 sm:$0xff]   ;;  %v13045_v20 = vld [vmem:[%s17590_s1 + $0x2104] ss:$16 sps:$4 sm:$0xff]  }
 0x3e4   :  { %8124 = vmatprep.subr.bf16.mxu0 %v12953_v16  ;;  %8903 = vmatprep.subr.bf16.mxu1 %v12956_v22  ;;  %v13048_v16 = vld [vmem:[%s17590_s1 + $0x210c] ss:$16 sps:$4 sm:$0xff]   ;;  %v13043_v22 = vld [vmem:[%s17590_s1 + $0x2100] ss:$16 sps:$4 sm:$0xff]  }
 0x3e7   :  { %8125 = vmatpush1.bf16.msra.mxu0 %v12951_v23  ;;  %8904 = vmatpush1.bf16.msra.mxu1 %v12954_v18  ;;  %v13046_v23 = vld [vmem:[%s17590_s1 + $0x2108] ss:$16 sps:$4 sm:$0xff]   ;;  %v13051_v18 = vld [vmem:[%s17590_s1 + $0x2124] ss:$16 sps:$4 sm:$0xff]  }
 0x3e8   :  { %8126 = vmatprep.subr.bf16.mxu0 %v12959_v25  ;;  %8905 = vmatprep.subr.bf16.mxu1 %v12962_v26  ;;  %v13054_v25 = vld [vmem:[%s17590_s1 + $0x212c] ss:$16 sps:$4 sm:$0xff]   ;;  %v13049_v26 = vld [vmem:[%s17590_s1 + $0x2120] ss:$16 sps:$4 sm:$0xff]  }
 0x3eb   :  { %8127 = vmatpush1.bf16.msra.mxu0 %v12957_v21  ;;  %8906 = vmatpush1.bf16.msra.mxu1 %v12960_v28  ;;  %v13052_v21 = vld [vmem:[%s17590_s1 + $0x2128] ss:$16 sps:$4 sm:$0xff]   ;;  %v13057_v28 = vld [vmem:[%s17590_s1 + $0x2144] ss:$16 sps:$4 sm:$0xff]  }
 0x3ec   :  { %8128 = vmatprep.subr.bf16.mxu0 %v12965_v29  ;;  %8907 = vmatprep.subr.bf16.mxu1 %v12968_v24  ;;  %v13060_v29 = vld [vmem:[%s17590_s1 + $0x214c] ss:$16 sps:$4 sm:$0xff]   ;;  %v13055_v24 = vld [vmem:[%s17590_s1 + $0x2140] ss:$16 sps:$4 sm:$0xff]  }
 0x3ef   :  { %8129 = vmatpush1.bf16.msra.mxu0 %v12963_v31  ;;  %8908 = vmatpush1.bf16.msra.mxu1 %v12966_v32  ;;  %v13058_v31 = vld [vmem:[%s17590_s1 + $0x2148] ss:$16 sps:$4 sm:$0xff]   ;;  %v13063_v32 = vld [vmem:[%s17590_s1 + $0x2164] ss:$16 sps:$4 sm:$0xff]  }
 0x3f0   :  { %8130 = vmatprep.subr.bf16.mxu0 %v12971_v27  ;;  %8909 = vmatprep.subr.bf16.mxu1 %v12974_v34  ;;  %v13066_v27 = vld [vmem:[%s17590_s1 + $0x216c] ss:$16 sps:$4 sm:$0xff]   ;;  %v13061_v34 = vld [vmem:[%s17590_s1 + $0x2160] ss:$16 sps:$4 sm:$0xff]  }
 0x3f3   :  { %8131 = vmatpush1.bf16.msra.mxu0 %v12969_v35  ;;  %8910 = vmatpush1.bf16.msra.mxu1 %v12972_v36  ;;  %v13064_v35 = vld [vmem:[%s17590_s1 + $0x2168] ss:$16 sps:$4 sm:$0xff]   ;;  %v13069_v36 = vld [vmem:[%s17590_s1 + $0x2184] ss:$16 sps:$4 sm:$0xff]  }
 0x3f4   :  { %8132 = vmatprep.subr.bf16.mxu0 %v12977_v37  ;;  %8911 = vmatprep.subr.bf16.mxu1 %v12980_v38  ;;  %v13072_v37 = vld [vmem:[%s17590_s1 + $0x218c] ss:$16 sps:$4 sm:$0xff]   ;;  %v13067_v38 = vld [vmem:[%s17590_s1 + $0x2180] ss:$16 sps:$4 sm:$0xff]  }
 0x3f7   :  { %8133 = vmatpush1.bf16.msra.mxu0 %v12975_v33  ;;  %8912 = vmatpush1.bf16.msra.mxu1 %v12978_v40  ;;  %v13070_v33 = vld [vmem:[%s17590_s1 + $0x2188] ss:$16 sps:$4 sm:$0xff]   ;;  %v13075_v40 = vld [vmem:[%s17590_s1 + $0x21a4] ss:$16 sps:$4 sm:$0xff]  }
 0x3f8   :  { %8134 = vmatprep.subr.bf16.mxu0 %v12983_v41  ;;  %8913 = vmatprep.subr.bf16.mxu1 %v12986_v30  ;;  %v13078_v41 = vld [vmem:[%s17590_s1 + $0x21ac] ss:$16 sps:$4 sm:$0xff]   ;;  %v13073_v30 = vld [vmem:[%s17590_s1 + $0x21a0] ss:$16 sps:$4 sm:$0xff]  }
 0x3fb   :  { %8135 = vmatpush1.bf16.msra.mxu0 %v12981_v43  ;;  %8914 = vmatpush1.bf16.msra.mxu1 %v12984_v44  ;;  %v13076_v43 = vld [vmem:[%s17590_s1 + $0x21a8] ss:$16 sps:$4 sm:$0xff]   ;;  %v13081_v44 = vld [vmem:[%s17590_s1 + $0x21c4] ss:$16 sps:$4 sm:$0xff]  }
 0x3fc   :  { %8136 = vmatprep.subr.bf16.mxu0 %v12989_v39  ;;  %8915 = vmatprep.subr.bf16.mxu1 %v12992_v46  ;;  %v13084_v39 = vld [vmem:[%s17590_s1 + $0x21cc] ss:$16 sps:$4 sm:$0xff]   ;;  %v13079_v46 = vld [vmem:[%s17590_s1 + $0x21c0] ss:$16 sps:$4 sm:$0xff]  }
 0x3ff   :  { %8137 = vmatpush1.bf16.msra.mxu0 %v12987_v47  ;;  %8916 = vmatpush1.bf16.msra.mxu1 %v12990_v42  ;;  %v13082_v47 = vld [vmem:[%s17590_s1 + $0x21c8] ss:$16 sps:$4 sm:$0xff]   ;;  %v13087_v42 = vld [vmem:[%s17590_s1 + $0x21e4] ss:$16 sps:$4 sm:$0xff]  }
 0x400   :  { %8147 = vmatprep.subr.bf16.mxu0 %v12997_v49  ;;  %8926 = vmatprep.subr.bf16.mxu1 %v13000_v50  ;;  %v13090_v49 = vld [vmem:[%s17590_s1 + $0x21ec] ss:$16 sps:$4 sm:$0xff]   ;;  %v13085_v50 = vld [vmem:[%s17590_s1 + $0x21e0] ss:$16 sps:$4 sm:$0xff]  }
 0x402   :  { %8139 = vmatmul.mubr.bf16.vlgmr.msra.gmra.mrb[0].mxu0 %v9909_v45  ;;  %8918 = vmatmul.mubr.bf16.vlgmr.msra.gmra.mrb[0].mxu1 %v9909_v45  ;;  %v13088_v45 = vld [vmem:[%s17590_s1 + $0x21e8] ss:$16 sps:$4 sm:$0xff]  }
 0x403   :  { %8148 = vmatpush1.bf16.msra.mxu0 %v12995_v52  ;;  %8927 = vmatpush1.bf16.msra.mxu1 %v12998_v53  ;;  %v13095_v52 = vld [vmem:[%s17590_s1 + $0x2204] ss:$16 sps:$4 sm:$0xff]   ;;  %v13098_v53 = vld [vmem:[%s17590_s1 + $0x220c] ss:$16 sps:$4 sm:$0xff]  }
 0x404   :  { %8149 = vmatprep.subr.bf16.mxu0 %v13003_v48  ;;  %8928 = vmatprep.subr.bf16.mxu1 %v13006_v54  ;;  %v9911_v48 = vcombine.low %v16666_v51, %v16666_v51  ;;  %v16867_v54 = vld [vmem:[%s17591_s0 + $0x88] sm:$0xff]  ;;  %v13101_v51 = vld [vmem:[%s17590_s1 + $0x2224] ss:$16 sps:$4 sm:$0xff]  }
 0x405   :  { %8179 = vmatprep.mubr.bf16.mxu0 %v9912_v55  ;;  %8958 = vmatprep.mubr.bf16.mxu1 %v9912_v55  ;;  %v13093_v55 = vld [vmem:[%s17590_s1 + $0x2200] ss:$16 sps:$4 sm:$0xff]  }
 0x407   :  { %8150 = vmatpush1.bf16.msra.mxu0 %v13001_v56  ;;  %8929 = vmatpush1.bf16.msra.mxu1 %v13004_v57  ;;  %v13096_v56 = vld [vmem:[%s17590_s1 + $0x2208] ss:$16 sps:$4 sm:$0xff]   ;;  %v13104_v57 = vld [vmem:[%s17590_s1 + $0x222c] ss:$16 sps:$4 sm:$0xff]  }
 0x408   :  { %8151 = vmatprep.subr.bf16.mxu0 %v13009_v58  ;;  %8930 = vmatprep.subr.bf16.mxu1 %v13012_v59  ;;  %v9914_v58 = vcombine.high %v16867_v54, %v16867_v54  ;;  %v13099_v59 = vld [vmem:[%s17590_s1 + $0x2220] ss:$16 sps:$4 sm:$0xff]  }
 0x40b   :  { %8152 = vmatpush1.bf16.msra.mxu0 %v13007_v60  ;;  %8931 = vmatpush1.bf16.msra.mxu1 %v13010_v61  ;;  %v13102_v60 = vld [vmem:[%s17590_s1 + $0x2228] ss:$16 sps:$4 sm:$0xff]   ;;  %v13107_v61 = vld [vmem:[%s17590_s1 + $0x2244] ss:$16 sps:$4 sm:$0xff]  }
 0x40c   :  { %8153 = vmatprep.subr.bf16.mxu0 %v13015_v62  ;;  %8932 = vmatprep.subr.bf16.mxu1 %v13018_v63  ;;  %v13110_v62 = vld [vmem:[%s17590_s1 + $0x224c] ss:$16 sps:$4 sm:$0xff]   ;;  %v13105_v63 = vld [vmem:[%s17590_s1 + $0x2240] ss:$16 sps:$4 sm:$0xff]  }
 0x40f   :  { %8154 = vmatpush1.bf16.msra.mxu0 %v13013_v0  ;;  %8933 = vmatpush1.bf16.msra.mxu1 %v13016_v1  ;;  %v13108_v0 = vld [vmem:[%s17590_s1 + $0x2248] ss:$16 sps:$4 sm:$0xff]   ;;  %v13113_v1 = vld [vmem:[%s17590_s1 + $0x2264] ss:$16 sps:$4 sm:$0xff]  }
 0x410   :  { %8155 = vmatprep.subr.bf16.mxu0 %v13021_v2  ;;  %8934 = vmatprep.subr.bf16.mxu1 %v13024_v3  ;;  %v13116_v2 = vld [vmem:[%s17590_s1 + $0x226c] ss:$16 sps:$4 sm:$0xff]   ;;  %v13111_v3 = vld [vmem:[%s17590_s1 + $0x2260] ss:$16 sps:$4 sm:$0xff]  }
 0x413   :  { %8156 = vmatpush1.bf16.msra.mxu0 %v13019_v4  ;;  %8935 = vmatpush1.bf16.msra.mxu1 %v13022_v5  ;;  %v13114_v4 = vld [vmem:[%s17590_s1 + $0x2268] ss:$16 sps:$4 sm:$0xff]   ;;  %v13119_v5 = vld [vmem:[%s17590_s1 + $0x2284] ss:$16 sps:$4 sm:$0xff]  }
 0x414   :  { %8157 = vmatprep.subr.bf16.mxu0 %v13027_v6  ;;  %8936 = vmatprep.subr.bf16.mxu1 %v13030_v7  ;;  %v13122_v6 = vld [vmem:[%s17590_s1 + $0x228c] ss:$16 sps:$4 sm:$0xff]   ;;  %v13117_v7 = vld [vmem:[%s17590_s1 + $0x2280] ss:$16 sps:$4 sm:$0xff]  }
 0x417   :  { %8158 = vmatpush1.bf16.msra.mxu0 %v13025_v8  ;;  %8937 = vmatpush1.bf16.msra.mxu1 %v13028_v9  ;;  %v13120_v8 = vld [vmem:[%s17590_s1 + $0x2288] ss:$16 sps:$4 sm:$0xff]   ;;  %v13125_v9 = vld [vmem:[%s17590_s1 + $0x22a4] ss:$16 sps:$4 sm:$0xff]  }
 0x418   :  { %8159 = vmatprep.subr.bf16.mxu0 %v13033_v10  ;;  %8938 = vmatprep.subr.bf16.mxu1 %v13036_v12  ;;  %v13128_v10 = vld [vmem:[%s17590_s1 + $0x22ac] ss:$16 sps:$4 sm:$0xff]   ;;  %v13123_v12 = vld [vmem:[%s17590_s1 + $0x22a0] ss:$16 sps:$4 sm:$0xff]  }
 0x41b   :  { %8160 = vmatpush1.bf16.msra.mxu0 %v13031_v13  ;;  %8939 = vmatpush1.bf16.msra.mxu1 %v13034_v15  ;;  %v13126_v13 = vld [vmem:[%s17590_s1 + $0x22a8] ss:$16 sps:$4 sm:$0xff]   ;;  %v13131_v15 = vld [vmem:[%s17590_s1 + $0x22c4] ss:$16 sps:$4 sm:$0xff]  }
 0x41c   :  { %8161 = vmatprep.subr.bf16.mxu0 %v13039_v11  ;;  %8940 = vmatprep.subr.bf16.mxu1 %v13042_v17  ;;  %v13134_v11 = vld [vmem:[%s17590_s1 + $0x22cc] ss:$16 sps:$4 sm:$0xff]   ;;  %v13129_v17 = vld [vmem:[%s17590_s1 + $0x22c0] ss:$16 sps:$4 sm:$0xff]  }
 0x41f   :  { %8162 = vmatpush1.bf16.msra.mxu0 %v13037_v14  ;;  %8941 = vmatpush1.bf16.msra.mxu1 %v13040_v19  ;;  %v13132_v14 = vld [vmem:[%s17590_s1 + $0x22c8] ss:$16 sps:$4 sm:$0xff]   ;;  %v13137_v19 = vld [vmem:[%s17590_s1 + $0x22e4] ss:$16 sps:$4 sm:$0xff]  }
 0x420   :  { %8163 = vmatprep.subr.bf16.mxu0 %v13045_v20  ;;  %8942 = vmatprep.subr.bf16.mxu1 %v13048_v16  ;;  %v13140_v20 = vld [vmem:[%s17590_s1 + $0x22ec] ss:$16 sps:$4 sm:$0xff]   ;;  %v13135_v16 = vld [vmem:[%s17590_s1 + $0x22e0] ss:$16 sps:$4 sm:$0xff]  }
 0x423   :  { %8164 = vmatpush1.bf16.msra.mxu0 %v13043_v22  ;;  %8943 = vmatpush1.bf16.msra.mxu1 %v13046_v23  ;;  %v13138_v22 = vld [vmem:[%s17590_s1 + $0x22e8] ss:$16 sps:$4 sm:$0xff]   ;;  %v13143_v23 = vld [vmem:[%s17590_s1 + $0x2304] ss:$16 sps:$4 sm:$0xff]  }
 0x424   :  { %8165 = vmatprep.subr.bf16.mxu0 %v13051_v18  ;;  %8944 = vmatprep.subr.bf16.mxu1 %v13054_v25  ;;  %v13146_v18 = vld [vmem:[%s17590_s1 + $0x230c] ss:$16 sps:$4 sm:$0xff]   ;;  %v13141_v25 = vld [vmem:[%s17590_s1 + $0x2300] ss:$16 sps:$4 sm:$0xff]  }
 0x427   :  { %8166 = vmatpush1.bf16.msra.mxu0 %v13049_v26  ;;  %8945 = vmatpush1.bf16.msra.mxu1 %v13052_v21  ;;  %v13144_v26 = vld [vmem:[%s17590_s1 + $0x2308] ss:$16 sps:$4 sm:$0xff]   ;;  %v13149_v21 = vld [vmem:[%s17590_s1 + $0x2324] ss:$16 sps:$4 sm:$0xff]  }
 0x428   :  { %8167 = vmatprep.subr.bf16.mxu0 %v13057_v28  ;;  %8946 = vmatprep.subr.bf16.mxu1 %v13060_v29  ;;  %v13152_v28 = vld [vmem:[%s17590_s1 + $0x232c] ss:$16 sps:$4 sm:$0xff]   ;;  %v13147_v29 = vld [vmem:[%s17590_s1 + $0x2320] ss:$16 sps:$4 sm:$0xff]  }
 0x42b   :  { %8168 = vmatpush1.bf16.msra.mxu0 %v13055_v24  ;;  %8947 = vmatpush1.bf16.msra.mxu1 %v13058_v31  ;;  %v13150_v24 = vld [vmem:[%s17590_s1 + $0x2328] ss:$16 sps:$4 sm:$0xff]   ;;  %v13155_v31 = vld [vmem:[%s17590_s1 + $0x2344] ss:$16 sps:$4 sm:$0xff]  }
 0x42c   :  { %8169 = vmatprep.subr.bf16.mxu0 %v13063_v32  ;;  %8948 = vmatprep.subr.bf16.mxu1 %v13066_v27  ;;  %v13158_v32 = vld [vmem:[%s17590_s1 + $0x234c] ss:$16 sps:$4 sm:$0xff]   ;;  %v13153_v27 = vld [vmem:[%s17590_s1 + $0x2340] ss:$16 sps:$4 sm:$0xff]  }
 0x42f   :  { %8170 = vmatpush1.bf16.msra.mxu0 %v13061_v34  ;;  %8949 = vmatpush1.bf16.msra.mxu1 %v13064_v35  ;;  %v13156_v34 = vld [vmem:[%s17590_s1 + $0x2348] ss:$16 sps:$4 sm:$0xff]   ;;  %v13161_v35 = vld [vmem:[%s17590_s1 + $0x2364] ss:$16 sps:$4 sm:$0xff]  }
 0x430   :  { %8171 = vmatprep.subr.bf16.mxu0 %v13069_v36  ;;  %8950 = vmatprep.subr.bf16.mxu1 %v13072_v37  ;;  %v13164_v36 = vld [vmem:[%s17590_s1 + $0x236c] ss:$16 sps:$4 sm:$0xff]   ;;  %v13159_v37 = vld [vmem:[%s17590_s1 + $0x2360] ss:$16 sps:$4 sm:$0xff]  }
 0x433   :  { %8172 = vmatpush1.bf16.msra.mxu0 %v13067_v38  ;;  %8951 = vmatpush1.bf16.msra.mxu1 %v13070_v33  ;;  %v13162_v38 = vld [vmem:[%s17590_s1 + $0x2368] ss:$16 sps:$4 sm:$0xff]   ;;  %v13167_v33 = vld [vmem:[%s17590_s1 + $0x2384] ss:$16 sps:$4 sm:$0xff]  }
 0x434   :  { %8173 = vmatprep.subr.bf16.mxu0 %v13075_v40  ;;  %8952 = vmatprep.subr.bf16.mxu1 %v13078_v41  ;;  %v13170_v40 = vld [vmem:[%s17590_s1 + $0x238c] ss:$16 sps:$4 sm:$0xff]   ;;  %v13165_v41 = vld [vmem:[%s17590_s1 + $0x2380] ss:$16 sps:$4 sm:$0xff]  }
 0x437   :  { %8174 = vmatpush1.bf16.msra.mxu0 %v13073_v30  ;;  %8953 = vmatpush1.bf16.msra.mxu1 %v13076_v43  ;;  %v13168_v30 = vld [vmem:[%s17590_s1 + $0x2388] ss:$16 sps:$4 sm:$0xff]   ;;  %v13173_v43 = vld [vmem:[%s17590_s1 + $0x23a4] ss:$16 sps:$4 sm:$0xff]  }
 0x438   :  { %8175 = vmatprep.subr.bf16.mxu0 %v13081_v44  ;;  %8954 = vmatprep.subr.bf16.mxu1 %v13084_v39  ;;  %v13176_v44 = vld [vmem:[%s17590_s1 + $0x23ac] ss:$16 sps:$4 sm:$0xff]   ;;  %v13171_v39 = vld [vmem:[%s17590_s1 + $0x23a0] ss:$16 sps:$4 sm:$0xff]  }
 0x43b   :  { %8176 = vmatpush1.bf16.msra.mxu0 %v13079_v46  ;;  %8955 = vmatpush1.bf16.msra.mxu1 %v13082_v47  ;;  %v13174_v46 = vld [vmem:[%s17590_s1 + $0x23a8] ss:$16 sps:$4 sm:$0xff]   ;;  %v13179_v47 = vld [vmem:[%s17590_s1 + $0x23c4] ss:$16 sps:$4 sm:$0xff]  }
 0x43c   :  { %8177 = vmatprep.subr.bf16.mxu0 %v13087_v42  ;;  %8956 = vmatprep.subr.bf16.mxu1 %v13090_v49  ;;  %v13182_v42 = vld [vmem:[%s17590_s1 + $0x23cc] ss:$16 sps:$4 sm:$0xff]   ;;  %v13177_v49 = vld [vmem:[%s17590_s1 + $0x23c0] ss:$16 sps:$4 sm:$0xff]  }
 0x43f   :  { %8178 = vmatpush1.bf16.msra.mxu0 %v13085_v50  ;;  %8957 = vmatpush1.bf16.msra.mxu1 %v13088_v45  ;;  %v13180_v50 = vld [vmem:[%s17590_s1 + $0x23c8] ss:$16 sps:$4 sm:$0xff]   ;;  %v13185_v45 = vld [vmem:[%s17590_s1 + $0x23e4] ss:$16 sps:$4 sm:$0xff]  }
 0x440   :  { %8188 = vmatprep.subr.bf16.mxu0 %v13095_v52  ;;  %8967 = vmatprep.subr.bf16.mxu1 %v13098_v53  ;;  %v13188_v52 = vld [vmem:[%s17590_s1 + $0x23ec] ss:$16 sps:$4 sm:$0xff]   ;;  %v13183_v53 = vld [vmem:[%s17590_s1 + $0x23e0] ss:$16 sps:$4 sm:$0xff]  }
 0x442   :  { %8180 = vmatmul.mubr.bf16.vlgmr.msra.gmra.mrb[0].mxu0 %v9911_v48  ;;  %8959 = vmatmul.mubr.bf16.vlgmr.msra.gmra.mrb[0].mxu1 %v9911_v48  ;;  %v13186_v48 = vld [vmem:[%s17590_s1 + $0x23e8] ss:$16 sps:$4 sm:$0xff]  }
 0x443   :  { %8189 = vmatpush1.bf16.msra.mxu0 %v13093_v55  ;;  %8968 = vmatpush1.bf16.msra.mxu1 %v13096_v56  ;;  %v13193_v55 = vld [vmem:[%s17590_s1 + $0x2404] ss:$16 sps:$4 sm:$0xff]   ;;  %v13196_v56 = vld [vmem:[%s17590_s1 + $0x240c] ss:$16 sps:$4 sm:$0xff]  }
 0x444   :  { %8190 = vmatprep.subr.bf16.mxu0 %v13101_v51  ;;  %8969 = vmatprep.subr.bf16.mxu1 %v13104_v57  ;;  %v9913_v51 = vcombine.low %v16867_v54, %v16867_v54  ;;  %v17068_v57 = vld [vmem:[%s17591_s0 + $0x90] sm:$0xff] }
 0x445   :  { %8220 = vmatprep.mubr.bf16.mxu0 %v9914_v58  ;;  %8999 = vmatprep.mubr.bf16.mxu1 %v9914_v58  ;;  %v13191_v58 = vld [vmem:[%s17590_s1 + $0x2400] ss:$16 sps:$4 sm:$0xff]   ;;  %v13199_v54 = vld [vmem:[%s17590_s1 + $0x2424] ss:$16 sps:$4 sm:$0xff]  }
 0x447   :  { %8191 = vmatpush1.bf16.msra.mxu0 %v13099_v59  ;;  %8970 = vmatpush1.bf16.msra.mxu1 %v13102_v60  ;;  %v13194_v59 = vld [vmem:[%s17590_s1 + $0x2408] ss:$16 sps:$4 sm:$0xff]   ;;  %v13202_v60 = vld [vmem:[%s17590_s1 + $0x242c] ss:$16 sps:$4 sm:$0xff]  }
 0x448   :  { %8192 = vmatprep.subr.bf16.mxu0 %v13107_v61  ;;  %8971 = vmatprep.subr.bf16.mxu1 %v13110_v62  ;;  %v9916_v61 = vcombine.high %v17068_v57, %v17068_v57  ;;  %v13197_v62 = vld [vmem:[%s17590_s1 + $0x2420] ss:$16 sps:$4 sm:$0xff]  }
 0x44b   :  { %8193 = vmatpush1.bf16.msra.mxu0 %v13105_v63  ;;  %8972 = vmatpush1.bf16.msra.mxu1 %v13108_v0  ;;  %v13200_v63 = vld [vmem:[%s17590_s1 + $0x2428] ss:$16 sps:$4 sm:$0xff]   ;;  %v13205_v0 = vld [vmem:[%s17590_s1 + $0x2444] ss:$16 sps:$4 sm:$0xff]  }
 0x44c   :  { %8194 = vmatprep.subr.bf16.mxu0 %v13113_v1  ;;  %8973 = vmatprep.subr.bf16.mxu1 %v13116_v2  ;;  %v13208_v1 = vld [vmem:[%s17590_s1 + $0x244c] ss:$16 sps:$4 sm:$0xff]   ;;  %v13203_v2 = vld [vmem:[%s17590_s1 + $0x2440] ss:$16 sps:$4 sm:$0xff]  }
 0x44f   :  { %8195 = vmatpush1.bf16.msra.mxu0 %v13111_v3  ;;  %8974 = vmatpush1.bf16.msra.mxu1 %v13114_v4  ;;  %v13206_v3 = vld [vmem:[%s17590_s1 + $0x2448] ss:$16 sps:$4 sm:$0xff]   ;;  %v13211_v4 = vld [vmem:[%s17590_s1 + $0x2464] ss:$16 sps:$4 sm:$0xff]  }
 0x450   :  { %8196 = vmatprep.subr.bf16.mxu0 %v13119_v5  ;;  %8975 = vmatprep.subr.bf16.mxu1 %v13122_v6  ;;  %v13214_v5 = vld [vmem:[%s17590_s1 + $0x246c] ss:$16 sps:$4 sm:$0xff]   ;;  %v13209_v6 = vld [vmem:[%s17590_s1 + $0x2460] ss:$16 sps:$4 sm:$0xff]  }
 0x453   :  { %8197 = vmatpush1.bf16.msra.mxu0 %v13117_v7  ;;  %8976 = vmatpush1.bf16.msra.mxu1 %v13120_v8  ;;  %v13212_v7 = vld [vmem:[%s17590_s1 + $0x2468] ss:$16 sps:$4 sm:$0xff]   ;;  %v13217_v8 = vld [vmem:[%s17590_s1 + $0x2484] ss:$16 sps:$4 sm:$0xff]  }
 0x454   :  { %8198 = vmatprep.subr.bf16.mxu0 %v13125_v9  ;;  %8977 = vmatprep.subr.bf16.mxu1 %v13128_v10  ;;  %v13220_v9 = vld [vmem:[%s17590_s1 + $0x248c] ss:$16 sps:$4 sm:$0xff]   ;;  %v13215_v10 = vld [vmem:[%s17590_s1 + $0x2480] ss:$16 sps:$4 sm:$0xff]  }
 0x457   :  { %8199 = vmatpush1.bf16.msra.mxu0 %v13123_v12  ;;  %8978 = vmatpush1.bf16.msra.mxu1 %v13126_v13  ;;  %v13218_v12 = vld [vmem:[%s17590_s1 + $0x2488] ss:$16 sps:$4 sm:$0xff]   ;;  %v13223_v13 = vld [vmem:[%s17590_s1 + $0x24a4] ss:$16 sps:$4 sm:$0xff]  }
 0x458   :  { %8200 = vmatprep.subr.bf16.mxu0 %v13131_v15  ;;  %8979 = vmatprep.subr.bf16.mxu1 %v13134_v11  ;;  %v13226_v15 = vld [vmem:[%s17590_s1 + $0x24ac] ss:$16 sps:$4 sm:$0xff]   ;;  %v13221_v11 = vld [vmem:[%s17590_s1 + $0x24a0] ss:$16 sps:$4 sm:$0xff]  }
 0x45b   :  { %8201 = vmatpush1.bf16.msra.mxu0 %v13129_v17  ;;  %8980 = vmatpush1.bf16.msra.mxu1 %v13132_v14  ;;  %v13224_v17 = vld [vmem:[%s17590_s1 + $0x24a8] ss:$16 sps:$4 sm:$0xff]   ;;  %v13229_v14 = vld [vmem:[%s17590_s1 + $0x24c4] ss:$16 sps:$4 sm:$0xff]  }
 0x45c   :  { %8202 = vmatprep.subr.bf16.mxu0 %v13137_v19  ;;  %8981 = vmatprep.subr.bf16.mxu1 %v13140_v20  ;;  %v13232_v19 = vld [vmem:[%s17590_s1 + $0x24cc] ss:$16 sps:$4 sm:$0xff]   ;;  %v13227_v20 = vld [vmem:[%s17590_s1 + $0x24c0] ss:$16 sps:$4 sm:$0xff]  }
 0x45f   :  { %8203 = vmatpush1.bf16.msra.mxu0 %v13135_v16  ;;  %8982 = vmatpush1.bf16.msra.mxu1 %v13138_v22  ;;  %v13230_v16 = vld [vmem:[%s17590_s1 + $0x24c8] ss:$16 sps:$4 sm:$0xff]   ;;  %v13235_v22 = vld [vmem:[%s17590_s1 + $0x24e4] ss:$16 sps:$4 sm:$0xff]  }
 0x460   :  { %8204 = vmatprep.subr.bf16.mxu0 %v13143_v23  ;;  %8983 = vmatprep.subr.bf16.mxu1 %v13146_v18  ;;  %v13238_v23 = vld [vmem:[%s17590_s1 + $0x24ec] ss:$16 sps:$4 sm:$0xff]   ;;  %v13233_v18 = vld [vmem:[%s17590_s1 + $0x24e0] ss:$16 sps:$4 sm:$0xff]  }
 0x463   :  { %8205 = vmatpush1.bf16.msra.mxu0 %v13141_v25  ;;  %8984 = vmatpush1.bf16.msra.mxu1 %v13144_v26  ;;  %v13236_v25 = vld [vmem:[%s17590_s1 + $0x24e8] ss:$16 sps:$4 sm:$0xff]   ;;  %v13241_v26 = vld [vmem:[%s17590_s1 + $0x2504] ss:$16 sps:$4 sm:$0xff]  }
 0x464   :  { %8206 = vmatprep.subr.bf16.mxu0 %v13149_v21  ;;  %8985 = vmatprep.subr.bf16.mxu1 %v13152_v28  ;;  %v13244_v21 = vld [vmem:[%s17590_s1 + $0x250c] ss:$16 sps:$4 sm:$0xff]   ;;  %v13239_v28 = vld [vmem:[%s17590_s1 + $0x2500] ss:$16 sps:$4 sm:$0xff]  }
 0x467   :  { %8207 = vmatpush1.bf16.msra.mxu0 %v13147_v29  ;;  %8986 = vmatpush1.bf16.msra.mxu1 %v13150_v24  ;;  %v13242_v29 = vld [vmem:[%s17590_s1 + $0x2508] ss:$16 sps:$4 sm:$0xff]   ;;  %v13247_v24 = vld [vmem:[%s17590_s1 + $0x2524] ss:$16 sps:$4 sm:$0xff]  }
 0x468   :  { %8208 = vmatprep.subr.bf16.mxu0 %v13155_v31  ;;  %8987 = vmatprep.subr.bf16.mxu1 %v13158_v32  ;;  %v13250_v31 = vld [vmem:[%s17590_s1 + $0x252c] ss:$16 sps:$4 sm:$0xff]   ;;  %v13245_v32 = vld [vmem:[%s17590_s1 + $0x2520] ss:$16 sps:$4 sm:$0xff]  }
 0x46b   :  { %8209 = vmatpush1.bf16.msra.mxu0 %v13153_v27  ;;  %8988 = vmatpush1.bf16.msra.mxu1 %v13156_v34  ;;  %v13248_v27 = vld [vmem:[%s17590_s1 + $0x2528] ss:$16 sps:$4 sm:$0xff]   ;;  %v13253_v34 = vld [vmem:[%s17590_s1 + $0x2544] ss:$16 sps:$4 sm:$0xff]  }
 0x46c   :  { %8210 = vmatprep.subr.bf16.mxu0 %v13161_v35  ;;  %8989 = vmatprep.subr.bf16.mxu1 %v13164_v36  ;;  %v13256_v35 = vld [vmem:[%s17590_s1 + $0x254c] ss:$16 sps:$4 sm:$0xff]   ;;  %v13251_v36 = vld [vmem:[%s17590_s1 + $0x2540] ss:$16 sps:$4 sm:$0xff]  }
 0x46f   :  { %8211 = vmatpush1.bf16.msra.mxu0 %v13159_v37  ;;  %8990 = vmatpush1.bf16.msra.mxu1 %v13162_v38  ;;  %v13254_v37 = vld [vmem:[%s17590_s1 + $0x2548] ss:$16 sps:$4 sm:$0xff]   ;;  %v13259_v38 = vld [vmem:[%s17590_s1 + $0x2564] ss:$16 sps:$4 sm:$0xff]  }
 0x470   :  { %8212 = vmatprep.subr.bf16.mxu0 %v13167_v33  ;;  %8991 = vmatprep.subr.bf16.mxu1 %v13170_v40  ;;  %v13262_v33 = vld [vmem:[%s17590_s1 + $0x256c] ss:$16 sps:$4 sm:$0xff]   ;;  %v13257_v40 = vld [vmem:[%s17590_s1 + $0x2560] ss:$16 sps:$4 sm:$0xff]  }
 0x473   :  { %8213 = vmatpush1.bf16.msra.mxu0 %v13165_v41  ;;  %8992 = vmatpush1.bf16.msra.mxu1 %v13168_v30  ;;  %v13260_v41 = vld [vmem:[%s17590_s1 + $0x2568] ss:$16 sps:$4 sm:$0xff]   ;;  %v13265_v30 = vld [vmem:[%s17590_s1 + $0x2584] ss:$16 sps:$4 sm:$0xff]  }
 0x474   :  { %8214 = vmatprep.subr.bf16.mxu0 %v13173_v43  ;;  %8993 = vmatprep.subr.bf16.mxu1 %v13176_v44  ;;  %v13268_v43 = vld [vmem:[%s17590_s1 + $0x258c] ss:$16 sps:$4 sm:$0xff]   ;;  %v13263_v44 = vld [vmem:[%s17590_s1 + $0x2580] ss:$16 sps:$4 sm:$0xff]  }
 0x477   :  { %8215 = vmatpush1.bf16.msra.mxu0 %v13171_v39  ;;  %8994 = vmatpush1.bf16.msra.mxu1 %v13174_v46  ;;  %v13266_v39 = vld [vmem:[%s17590_s1 + $0x2588] ss:$16 sps:$4 sm:$0xff]   ;;  %v13271_v46 = vld [vmem:[%s17590_s1 + $0x25a4] ss:$16 sps:$4 sm:$0xff]  }
 0x478   :  { %8216 = vmatprep.subr.bf16.mxu0 %v13179_v47  ;;  %8995 = vmatprep.subr.bf16.mxu1 %v13182_v42  ;;  %v13274_v47 = vld [vmem:[%s17590_s1 + $0x25ac] ss:$16 sps:$4 sm:$0xff]   ;;  %v13269_v42 = vld [vmem:[%s17590_s1 + $0x25a0] ss:$16 sps:$4 sm:$0xff]  }
 0x47b   :  { %8217 = vmatpush1.bf16.msra.mxu0 %v13177_v49  ;;  %8996 = vmatpush1.bf16.msra.mxu1 %v13180_v50  ;;  %v13272_v49 = vld [vmem:[%s17590_s1 + $0x25a8] ss:$16 sps:$4 sm:$0xff]   ;;  %v13277_v50 = vld [vmem:[%s17590_s1 + $0x25c4] ss:$16 sps:$4 sm:$0xff]  }
 0x47c   :  { %8218 = vmatprep.subr.bf16.mxu0 %v13185_v45  ;;  %8997 = vmatprep.subr.bf16.mxu1 %v13188_v52  ;;  %v13280_v45 = vld [vmem:[%s17590_s1 + $0x25cc] ss:$16 sps:$4 sm:$0xff]   ;;  %v13275_v52 = vld [vmem:[%s17590_s1 + $0x25c0] ss:$16 sps:$4 sm:$0xff]  }
 0x47f   :  { %8219 = vmatpush1.bf16.msra.mxu0 %v13183_v53  ;;  %8998 = vmatpush1.bf16.msra.mxu1 %v13186_v48  ;;  %v13278_v53 = vld [vmem:[%s17590_s1 + $0x25c8] ss:$16 sps:$4 sm:$0xff]   ;;  %v13283_v48 = vld [vmem:[%s17590_s1 + $0x25e4] ss:$16 sps:$4 sm:$0xff]  }
 0x480   :  { %8229 = vmatprep.subr.bf16.mxu0 %v13193_v55  ;;  %9008 = vmatprep.subr.bf16.mxu1 %v13196_v56  ;;  %v13286_v55 = vld [vmem:[%s17590_s1 + $0x25ec] ss:$16 sps:$4 sm:$0xff]   ;;  %v13281_v56 = vld [vmem:[%s17590_s1 + $0x25e0] ss:$16 sps:$4 sm:$0xff]  }
 0x482   :  { %8221 = vmatmul.mubr.bf16.vlgmr.msra.gmra.mrb[0].mxu0 %v9913_v51  ;;  %9000 = vmatmul.mubr.bf16.vlgmr.msra.gmra.mrb[0].mxu1 %v9913_v51  ;;  %v13284_v51 = vld [vmem:[%s17590_s1 + $0x25e8] ss:$16 sps:$4 sm:$0xff]  }
 0x483   :  { %8230 = vmatpush1.bf16.msra.mxu0 %v13191_v58  ;;  %9009 = vmatpush1.bf16.msra.mxu1 %v13194_v59  ;;  %v13291_v58 = vld [vmem:[%s17592_s3 + $0x4] ss:$12 sps:$4 sm:$0xff]   ;;  %v13316_v59 = vld [vmem:[%s17592_s3 + $0xc8] ss:$12 sps:$4 sm:$0xff]  }
 0x484   :  { %8231 = vmatprep.subr.bf16.mxu0 %v13199_v54  ;;  %9010 = vmatprep.subr.bf16.mxu1 %v13202_v60  ;;  %v9915_v54 = vcombine.low %v17068_v57, %v17068_v57  ;;  %v13289_v60 = vld [vmem:[%s17592_s3] ss:$12 sps:$4 sm:$0xff]  }
 0x485   :  { %8261 = vmatprep.mubr.bf16.mxu0 %v9916_v61  ;;  %9040 = vmatprep.mubr.bf16.mxu1 %v9916_v61  ;;  %v13317_v61 = vld [vmem:[%s17592_s3 + $0x8] ss:$12 sps:$4 sm:$0xff]   ;;  %v13321_v57 = vld [vmem:[%s17592_s3 + $0xe0] ss:$12 sps:$4 sm:$0xff]  }
 0x487   :  { %8232 = vmatpush1.bf16.msra.mxu0 %v13197_v62  ;;  %9011 = vmatpush1.bf16.msra.mxu1 %v13200_v63  ;;  %v13294_v62 = vld [vmem:[%s17592_s3 + $0x1c] ss:$12 sps:$4 sm:$0xff]   ;;  %v13292_v63 = vld [vmem:[%s17592_s3 + $0x18] ss:$12 sps:$4 sm:$0xff]  }
 0x488   :  { %8233 = vmatprep.subr.bf16.mxu0 %v13205_v0  ;;  %9012 = vmatprep.subr.bf16.mxu1 %v13208_v1  ;;  %v13322_v0 = vld [vmem:[%s17592_s3 + $0x20] ss:$12 sps:$4 sm:$0xff]  }
 0x489   :  { %v13297_v1 = vld [vmem:[%s17592_s3 + $0x34] ss:$12 sps:$4 sm:$0xff]  }
 0x48b   :  { %8234 = vmatpush1.bf16.msra.mxu0 %v13203_v2  ;;  %9013 = vmatpush1.bf16.msra.mxu1 %v13206_v3  ;;  %v13326_v2 = vld [vmem:[%s17592_s3 + $0xf8] ss:$12 sps:$4 sm:$0xff]   ;;  %v13295_v3 = vld [vmem:[%s17592_s3 + $0x30] ss:$12 sps:$4 sm:$0xff]  }
 0x48c   :  { %8235 = vmatprep.subr.bf16.mxu0 %v13211_v4  ;;  %9014 = vmatprep.subr.bf16.mxu1 %v13214_v5  ;;  %v13327_v4 = vld [vmem:[%s17592_s3 + $0x38] ss:$12 sps:$4 sm:$0xff]  }
 0x48d   :  { %v13300_v5 = vld [vmem:[%s17592_s3 + $0x4c] ss:$12 sps:$4 sm:$0xff]  }
 0x48f   :  { %8236 = vmatpush1.bf16.msra.mxu0 %v13209_v6  ;;  %9015 = vmatpush1.bf16.msra.mxu1 %v13212_v7  ;;  %v13331_v6 = vld [vmem:[%s17592_s3 + $0x110] ss:$12 sps:$4 sm:$0xff]   ;;  %v13298_v7 = vld [vmem:[%s17592_s3 + $0x48] ss:$12 sps:$4 sm:$0xff]  }
 0x490   :  { %8237 = vmatprep.subr.bf16.mxu0 %v13217_v8  ;;  %9016 = vmatprep.subr.bf16.mxu1 %v13220_v9  ;;  %v13332_v8 = vld [vmem:[%s17592_s3 + $0x50] ss:$12 sps:$4 sm:$0xff]  }
 0x491   :  { %v13303_v9 = vld [vmem:[%s17592_s3 + $0x64] ss:$12 sps:$4 sm:$0xff]  }
 0x493   :  { %8238 = vmatpush1.bf16.msra.mxu0 %v13215_v10  ;;  %9017 = vmatpush1.bf16.msra.mxu1 %v13218_v12  ;;  %v13336_v10 = vld [vmem:[%s17592_s3 + $0x128] ss:$12 sps:$4 sm:$0xff]   ;;  %v13301_v12 = vld [vmem:[%s17592_s3 + $0x60] ss:$12 sps:$4 sm:$0xff]  }
 0x494   :  { %8239 = vmatprep.subr.bf16.mxu0 %v13223_v13  ;;  %9018 = vmatprep.subr.bf16.mxu1 %v13226_v15  ;;  %v13337_v13 = vld [vmem:[%s17592_s3 + $0x68] ss:$12 sps:$4 sm:$0xff]  }
 0x495   :  { %v13306_v15 = vld [vmem:[%s17592_s3 + $0x7c] ss:$12 sps:$4 sm:$0xff]  }
 0x497   :  { %8240 = vmatpush1.bf16.msra.mxu0 %v13221_v11  ;;  %9019 = vmatpush1.bf16.msra.mxu1 %v13224_v17  ;;  %v13341_v11 = vld [vmem:[%s17592_s3 + $0x140] ss:$12 sps:$4 sm:$0xff]   ;;  %v13304_v17 = vld [vmem:[%s17592_s3 + $0x78] ss:$12 sps:$4 sm:$0xff]  }
 0x498   :  { %8241 = vmatprep.subr.bf16.mxu0 %v13229_v14  ;;  %9020 = vmatprep.subr.bf16.mxu1 %v13232_v19  ;;  %v13342_v14 = vld [vmem:[%s17592_s3 + $0x80] ss:$12 sps:$4 sm:$0xff]  }
 0x499   :  { %v13309_v19 = vld [vmem:[%s17592_s3 + $0x94] ss:$12 sps:$4 sm:$0xff]  }
 0x49b   :  { %8242 = vmatpush1.bf16.msra.mxu0 %v13227_v20  ;;  %9021 = vmatpush1.bf16.msra.mxu1 %v13230_v16  ;;  %v13346_v20 = vld [vmem:[%s17592_s3 + $0x158] ss:$12 sps:$4 sm:$0xff]   ;;  %v13307_v16 = vld [vmem:[%s17592_s3 + $0x90] ss:$12 sps:$4 sm:$0xff]  }
 0x49c   :  { %8243 = vmatprep.subr.bf16.mxu0 %v13235_v22  ;;  %9022 = vmatprep.subr.bf16.mxu1 %v13238_v23  ;;  %v13347_v22 = vld [vmem:[%s17592_s3 + $0x98] ss:$12 sps:$4 sm:$0xff]  }
 0x49d   :  { %v13312_v23 = vld [vmem:[%s17592_s3 + $0xac] ss:$12 sps:$4 sm:$0xff]  }
 0x49f   :  { %8244 = vmatpush1.bf16.msra.mxu0 %v13233_v18  ;;  %9023 = vmatpush1.bf16.msra.mxu1 %v13236_v25  ;;  %v13310_v18 = vld [vmem:[%s17592_s3 + $0xa8] ss:$12 sps:$4 sm:$0xff]   ;;  %v13315_v25 = vld [vmem:[%s17592_s3 + $0xc4] ss:$12 sps:$4 sm:$0xff]  }
 0x4a0   :  { %8245 = vmatprep.subr.bf16.mxu0 %v13241_v26  ;;  %9024 = vmatprep.subr.bf16.mxu1 %v13244_v21  ;;  %v13313_v26 = vld [vmem:[%s17592_s3 + $0xc0] ss:$12 sps:$4 sm:$0xff]   ;;  %v13320_v21 = vld [vmem:[%s17592_s3 + $0xdc] ss:$12 sps:$4 sm:$0xff]  }
 0x4a3   :  { %8246 = vmatpush1.bf16.msra.mxu0 %v13239_v28  ;;  %9025 = vmatpush1.bf16.msra.mxu1 %v13242_v29  ;;  %v13318_v28 = vld [vmem:[%s17592_s3 + $0xd8] ss:$12 sps:$4 sm:$0xff]   ;;  %v13325_v29 = vld [vmem:[%s17592_s3 + $0xf4] ss:$12 sps:$4 sm:$0xff]  }
 0x4a4   :  { %8247 = vmatprep.subr.bf16.mxu0 %v13247_v24  ;;  %9026 = vmatprep.subr.bf16.mxu1 %v13250_v31  ;;  %v13323_v24 = vld [vmem:[%s17592_s3 + $0xf0] ss:$12 sps:$4 sm:$0xff]   ;;  %v13330_v31 = vld [vmem:[%s17592_s3 + $0x10c] ss:$12 sps:$4 sm:$0xff]  }
 0x4a7   :  { %8248 = vmatpush1.bf16.msra.mxu0 %v13245_v32  ;;  %9027 = vmatpush1.bf16.msra.mxu1 %v13248_v27  ;;  %v13328_v32 = vld [vmem:[%s17592_s3 + $0x108] ss:$12 sps:$4 sm:$0xff]   ;;  %v13335_v27 = vld [vmem:[%s17592_s3 + $0x124] ss:$12 sps:$4 sm:$0xff]  }
 0x4a8   :  { %8249 = vmatprep.subr.bf16.mxu0 %v13253_v34  ;;  %9028 = vmatprep.subr.bf16.mxu1 %v13256_v35  ;;  %v13333_v34 = vld [vmem:[%s17592_s3 + $0x120] ss:$12 sps:$4 sm:$0xff]   ;;  %v13340_v35 = vld [vmem:[%s17592_s3 + $0x13c] ss:$12 sps:$4 sm:$0xff]  }
 0x4ab   :  { %8250 = vmatpush1.bf16.msra.mxu0 %v13251_v36  ;;  %9029 = vmatpush1.bf16.msra.mxu1 %v13254_v37  ;;  %v13338_v36 = vld [vmem:[%s17592_s3 + $0x138] ss:$12 sps:$4 sm:$0xff]   ;;  %v13345_v37 = vld [vmem:[%s17592_s3 + $0x154] ss:$12 sps:$4 sm:$0xff]  }
 0x4ac   :  { %8251 = vmatprep.subr.bf16.mxu0 %v13259_v38  ;;  %9030 = vmatprep.subr.bf16.mxu1 %v13262_v33  ;;  %v13343_v38 = vld [vmem:[%s17592_s3 + $0x150] ss:$12 sps:$4 sm:$0xff]   ;;  %v13350_v33 = vld [vmem:[%s17592_s3 + $0x16c] ss:$12 sps:$4 sm:$0xff]  }
 0x4af   :  { %8252 = vmatpush1.bf16.msra.mxu0 %v13257_v40  ;;  %9031 = vmatpush1.bf16.msra.mxu1 %v13260_v41  ;;  %v13351_v40 = vld [vmem:[%s17592_s3 + $0x170] ss:$12 sps:$4 sm:$0xff]   ;;  %v13348_v41 = vld [vmem:[%s17592_s3 + $0x168] ss:$12 sps:$4 sm:$0xff]  }
 0x4b0   :  { %8253 = vmatprep.subr.bf16.mxu0 %v13265_v30  ;;  %9032 = vmatprep.subr.bf16.mxu1 %v13268_v43  ;;  %v13352_v30 = vld [vmem:[%s17592_s3 + $0xb0] ss:$12 sps:$4 sm:$0xff]  }
 0x4b1   :  { %v13355_v43 = vld [vmem:[%s17592_s3 + $0x184] ss:$12 sps:$4 sm:$0xff]  }
 0x4b3   :  { %8254 = vmatpush1.bf16.msra.mxu0 %v13263_v44  ;;  %9033 = vmatpush1.bf16.msra.mxu1 %v13266_v39  ;;  %v13356_v44 = vld [vmem:[%s17592_s3 + $0x248] ss:$12 sps:$4 sm:$0xff]   ;;  %v1258_v39 = vlaneseq }
 0x4b4   :  { %8255 = vmatprep.subr.bf16.mxu0 %v13271_v46  ;;  %9034 = vmatprep.subr.bf16.mxu1 %v13274_v47 }
 0x4b5   :  { %v17410_v46 = vshrl.u32 %v1258_v39, 7  ;;  %v13402_v39 = vld [vmem:[%s17592_s3 + $0x288] ss:$12 sps:$4 sm:$0xff]  }
 0x4b7   :  { %8256 = vmatpush1.bf16.msra.mxu0 %v13269_v42  ;;  %9035 = vmatpush1.bf16.msra.mxu1 %v13272_v49  ;;  %v1260_v47 = vsub.s32 0, %v17410_v46  ;;  %v17416_v42 = vld [vmem:[%s17593_s2] sm:$0xf]  ;;  %v1264_v49 = vsub.s32 1, %v17410_v46 }
 0x4b8   :  { %8257 = vmatprep.subr.bf16.mxu0 %v13277_v50  ;;  %9036 = vmatprep.subr.bf16.mxu1 %v13280_v45  ;;  %v1272_v50 = vsub.s32 3, %v17410_v46 }
 0x4b9   :  { %v1261_v45 = vrot.slane %v17416_v42, %v1260_v47 }
 0x4bb   :  { %8258 = vmatpush1.bf16.msra.mxu0 %v13275_v52  ;;  %9037 = vmatpush1.bf16.msra.mxu1 %v13278_v53  ;;  %v1265_v52 = vrot.slane %v17416_v42, %v1264_v49  ;;  %v1273_v53 = vrot.slane %v17416_v42, %v1272_v50  ;;  %v13405_v50 = vld [vmem:[%s17592_s3 + $0x2a0] ss:$12 sps:$4 sm:$0xff]  }
 0x4bc   :  { %8259 = vmatprep.subr.bf16.mxu0 %v13283_v48  ;;  %9038 = vmatprep.subr.bf16.mxu1 %v13286_v55 }
 0x4bf   :  { %8260 = vmatpush1.bf16.msra.mxu0 %v13281_v56  ;;  %9039 = vmatpush1.bf16.msra.mxu1 %v13284_v51 }
 0x4c0   :  { %9710 = vmatprep.subr.bf16.mxu0 %v13291_v58  ;;  %11229 = vmatprep.subr.bf16.mxu1 %v13316_v59 }
 0x4c2   :  { %8262 = vmatmul.mubr.bf16.vlgmr.msra.gmra.mrb[0].mxu0 %v9915_v54  ;;  %9041 = vmatmul.mubr.bf16.vlgmr.msra.gmra.mrb[0].mxu1 %v9915_v54 }
 0x4c3   :  { %9711 = vmatpush1.bf16.msra.mxu0 %v13289_v60  ;;  %11230 = vmatpush3.bf16.msra.mxu1 %v13317_v61 }
 0x4c4   :  { %9712 = vmatprep.subr.bf16.mxu0 %v13294_v62  ;;  %11231 = vmatprep.subr.bf16.mxu1 %v13321_v57 }
 0x4c7   :  { %9713 = vmatpush1.bf16.msra.mxu0 %v13292_v63  ;;  %11232 = vmatpush3.bf16.msra.mxu1 %v13322_v0  ;;  %v13353_v0 = vld [vmem:[%s17592_s3 + $0x180] ss:$12 sps:$4 sm:$0xff]  }
 0x4c8   :  { %9714 = vmatprep.subr.bf16.mxu0 %v13297_v1  ;;  %11233 = vmatprep.subr.bf16.mxu1 %v13326_v2  ;;  %v13357_v1 = vld [vmem:[%s17592_s3 + $0x188] ss:$12 sps:$4 sm:$0xff]  }
 0x4cb   :  { %9715 = vmatpush1.bf16.msra.mxu0 %v13295_v3  ;;  %11234 = vmatpush3.bf16.msra.mxu1 %v13327_v4  ;;  %v13360_v3 = vld [vmem:[%s17592_s3 + $0x19c] ss:$12 sps:$4 sm:$0xff]   ;;  %v13361_v4 = vld [vmem:[%s17592_s3 + $0x260] ss:$12 sps:$4 sm:$0xff]  }
 0x4cc   :  { %9716 = vmatprep.subr.bf16.mxu0 %v13300_v5  ;;  %11235 = vmatprep.subr.bf16.mxu1 %v13331_v6  ;;  %v13358_v6 = vld [vmem:[%s17592_s3 + $0x198] ss:$12 sps:$4 sm:$0xff]  }
 0x4cf   :  { %9717 = vmatpush1.bf16.msra.mxu0 %v13298_v7  ;;  %11236 = vmatpush3.bf16.msra.mxu1 %v13332_v8  ;;  %v13362_v7 = vld [vmem:[%s17592_s3 + $0x1a0] ss:$12 sps:$4 sm:$0xff]  }
 0x4d0   :  { %9718 = vmatprep.subr.bf16.mxu0 %v13303_v9  ;;  %11237 = vmatprep.subr.bf16.mxu1 %v13336_v10  ;;  %v13365_v8 = vld [vmem:[%s17592_s3 + $0x1b4] ss:$12 sps:$4 sm:$0xff]   ;;  %v13366_v9 = vld [vmem:[%s17592_s3 + $0x278] ss:$12 sps:$4 sm:$0xff]   ;;  %v13363_v10 = vld [vmem:[%s17592_s3 + $0x1b0] ss:$12 sps:$4 sm:$0xff]  }
 0x4d3   :  { %9719 = vmatpush1.bf16.msra.mxu0 %v13301_v12  ;;  %11238 = vmatpush3.bf16.msra.mxu1 %v13337_v13  ;;  %v13367_v12 = vld [vmem:[%s17592_s3 + $0x1b8] ss:$12 sps:$4 sm:$0xff]  }
 0x4d4   :  { %9720 = vmatprep.subr.bf16.mxu0 %v13306_v15  ;;  %11239 = vmatprep.subr.bf16.mxu1 %v13341_v11  ;;  %v13370_v13 = vld [vmem:[%s17592_s3 + $0x1cc] ss:$12 sps:$4 sm:$0xff]   ;;  %v13371_v15 = vld [vmem:[%s17592_s3 + $0x290] ss:$12 sps:$4 sm:$0xff]   ;;  %v13368_v11 = vld [vmem:[%s17592_s3 + $0x1c8] ss:$12 sps:$4 sm:$0xff]  }
 0x4d7   :  { %9721 = vmatpush1.bf16.msra.mxu0 %v13304_v17  ;;  %11240 = vmatpush3.bf16.msra.mxu1 %v13342_v14  ;;  %v13372_v17 = vld [vmem:[%s17592_s3 + $0x1d0] ss:$12 sps:$4 sm:$0xff]  }
 0x4d8   :  { %9722 = vmatprep.subr.bf16.mxu0 %v13309_v19  ;;  %11241 = vmatprep.subr.bf16.mxu1 %v13346_v20  ;;  %v13375_v14 = vld [vmem:[%s17592_s3 + $0x1e4] ss:$12 sps:$4 sm:$0xff]   ;;  %v13376_v19 = vld [vmem:[%s17592_s3 + $0x2a8] ss:$12 sps:$4 sm:$0xff]   ;;  %v13373_v20 = vld [vmem:[%s17592_s3 + $0x1e0] ss:$12 sps:$4 sm:$0xff]  }
 0x4db   :  { %9723 = vmatpush1.bf16.msra.mxu0 %v13307_v16  ;;  %11242 = vmatpush3.bf16.msra.mxu1 %v13347_v22  ;;  %v13377_v16 = vld [vmem:[%s17592_s3 + $0x1e8] ss:$12 sps:$4 sm:$0xff]  }
 0x4dc   :  { %9724 = vmatprep.subr.bf16.mxu0 %v13312_v23  ;;  %11243 = vmatprep.subr.bf16.mxu1 %v13351_v40  ;;  %v13380_v22 = vld [vmem:[%s17592_s3 + $0x1fc] ss:$12 sps:$4 sm:$0xff]   ;;  %v13381_v23 = vld [vmem:[%s17592_s3 + $0x2c0] ss:$12 sps:$4 sm:$0xff]  }
 0x4dd   :  { %v13398_v40 = vld [vmem:[%s17592_s3 + $0x25c] ss:$12 sps:$4 sm:$0xff]  }
 0x4df   :  { %9725 = vmatpush1.bf16.msra.mxu0 %v13310_v18  ;;  %11244 = vmatpush3.bf16.msra.mxu1 %v13352_v30  ;;  %v13378_v18 = vld [vmem:[%s17592_s3 + $0x1f8] ss:$12 sps:$4 sm:$0xff]   ;;  %v13401_v30 = vld [vmem:[%s17592_s3 + $0x274] ss:$12 sps:$4 sm:$0xff]  }
 0x4e0   :  { %9726 = vmatprep.subr.bf16.mxu0 %v13315_v25  ;;  %11251 = vmatprep.subr.bf16.mxu1 %v13356_v44  ;;  %v13382_v25 = vld [vmem:[%s17592_s3 + $0x200] ss:$12 sps:$4 sm:$0xff]  }
 0x4e1   :  { %v13404_v44 = vld [vmem:[%s17592_s3 + $0x28c] ss:$12 sps:$4 sm:$0xff]  }
 0x4e3   :  { %9727 = vmatpush1.bf16.msra.mxu0 %v13313_v26  ;;  %v1268_v26 = vsub.s32 2, %v17410_v46 }
 0x4e4   :  { %9728 = vmatprep.subr.bf16.mxu0 %v13320_v21  ;;  %v13385_v21 = vld [vmem:[%s17592_s3 + $0x214] ss:$12 sps:$4 sm:$0xff]  }
 0x4e7   :  { %9729 = vmatpush1.bf16.msra.mxu0 %v13318_v28  ;;  %v13386_v28 = vld [vmem:[%s17592_s3 + $0x2d8] ss:$12 sps:$4 sm:$0xff]  }
 0x4e8   :  { %9730 = vmatprep.subr.bf16.mxu0 %v13325_v29  ;;  %v13383_v29 = vld [vmem:[%s17592_s3 + $0x210] ss:$12 sps:$4 sm:$0xff]  }
 0x4eb   :  { %9731 = vmatpush1.bf16.msra.mxu0 %v13323_v24  ;;  %v13387_v24 = vld [vmem:[%s17592_s3 + $0x218] ss:$12 sps:$4 sm:$0xff]  }
 0x4ec   :  { %9732 = vmatprep.subr.bf16.mxu0 %v13330_v31  ;;  %v1269_v31 = vrot.slane %v17416_v42, %v1268_v26  ;;  %v13407_v42 = vld [vmem:[%s17592_s3 + $0x2a4] ss:$12 sps:$4 sm:$0xff]  }
 0x4ef   :  { %9733 = vmatpush1.bf16.msra.mxu0 %v13328_v32  ;;  %v13390_v32 = vld [vmem:[%s17592_s3 + $0x22c] ss:$12 sps:$4 sm:$0xff]  }
 0x4f0   :  { %9734 = vmatprep.subr.bf16.mxu0 %v13335_v27  ;;  %v13391_v27 = vld [vmem:[%s17592_s3 + $0x2f0] ss:$12 sps:$4 sm:$0xff]  }
 0x4f3   :  { %9735 = vmatpush1.bf16.msra.mxu0 %v13333_v34  ;;  %v13388_v34 = vld [vmem:[%s17592_s3 + $0x228] ss:$12 sps:$4 sm:$0xff]  }
 0x4f4   :  { %9736 = vmatprep.subr.bf16.mxu0 %v13340_v35  ;;  %v13392_v35 = vld [vmem:[%s17592_s3 + $0x230] ss:$12 sps:$4 sm:$0xff]  }
 0x4f7   :  { %9737 = vmatpush1.bf16.msra.mxu0 %v13338_v36 }
 0x4f8   :  { %9738 = vmatprep.subr.bf16.mxu0 %v13345_v37  ;;  %v13395_v37 = vld [vmem:[%s17592_s3 + $0x244] ss:$12 sps:$4 sm:$0xff]  }
 0x4fb   :  { %9739 = vmatpush1.bf16.msra.mxu0 %v13343_v38  ;;  %v13393_v38 = vld [vmem:[%s17592_s3 + $0x240] ss:$12 sps:$4 sm:$0xff]  }
 0x4fc   :  { %9740 = vmatprep.subr.bf16.mxu0 %v13350_v33 }
 0x4ff   :  { %9741 = vmatpush1.bf16.msra.mxu0 %v13348_v41  ;;  %v13396_v41 = vld [vmem:[%s17592_s3 + $0x258] ss:$12 sps:$4 sm:$0xff]  }
 0x500   :  { %9751 = vmatprep.subr.bf16.mxu0 %v13355_v43  ;;  %v13399_v43 = vld [vmem:[%s17592_s3 + $0x270] ss:$12 sps:$4 sm:$0xff]  }
 0x595   :  { %v8263_v48 = vpop.f32.mrb[0].mxu0  ;;  %v17427_v55 = vpop.f32.mrb[0].mxu1 }
 0x596   :  { %v11273_v56 = vadd.f32 %v8263_v48, %v1261_v45  ;;  %v8265_v51 = vpop.f32.mrb[1].mxu0  ;;  %v9044_v58 = vpop.f32.mrb[1].mxu1  ;;  %v11275_v36 = vadd.f32 %v17427_v55, %v1269_v31  ;;  %v13410_v45 = vld [vmem:[%s17592_s3 + $0x2bc] ss:$12 sps:$4 sm:$0xff]   ;;  %v13416_v55 = vld [vmem:[%s17592_s3 + $0x2ec] ss:$12 sps:$4 sm:$0xff]  }
 0x597   :  { %v11274_v59 = vadd.f32 %v8265_v51, %v1265_v52  ;;  %v8267_v54 = vpop.f32.mrb[2].mxu0  ;;  %v9046_v60 = vpop.f32.mrb[2].mxu1  ;;  %v11276_v61 = vadd.f32 %v9044_v58, %v1273_v53  ;;  %v13408_v52 = vld [vmem:[%s17592_s3 + $0x2b8] ss:$12 sps:$4 sm:$0xff]   ;;  %v13413_v53 = vld [vmem:[%s17592_s3 + $0x2d4] ss:$12 sps:$4 sm:$0xff]  }
 0x598   :  { %v8268_v62 = vpop.f32.mrb[3].mxu0  ;;  %v9047_v57 = vpop.f32.mrb[3].mxu1  ;;  %v9049_v2 = vpack.c.bf16 %v11273_v56, %v11273_v56  ;;  %v9051_v33 = vpack.c.bf16 %v11275_v36, %v11275_v36  ;;  %v13411_v48 = vld [vmem:[%s17592_s3 + $0x2d0] ss:$12 sps:$4 sm:$0xff]   ;;  %v13414_v56 = vld [vmem:[%s17592_s3 + $0x2e8] ss:$12 sps:$4 sm:$0xff]  }
 0x599   :  { %v9050_v63 = vpack.c.bf16 %v11274_v59, %v11274_v59  ;;  %v9052_v5 = vpack.c.bf16 %v11276_v61, %v11276_v61  ;;  %v9181_v61 = vld [vmem:[%s17594_s4] sm:$0x7] }
 0x59a   :  { %v9194_v62 = vrot.slane %v9181_v61, %v1268_v26 }
 0x59b   :  { %9742 = vmatprep.mubr.bf16.mxu0 %v9050_v63  ;;  %9824 = vmatprep.mubr.bf16.mxu1 %v9050_v63 }
 0x59c   :  { %9743 = vmatmul.mubr.bf16.vlgmr.msra.gmra.mrb[4].mxu0 %v9049_v2  ;;  %9825 = vmatmul.mubr.bf16.vlgmr.msra.gmra.mrb[4].mxu1 %v9049_v2 }
 0x59d   :  { %9752 = vmatpush1.bf16.msra.mxu0 %v13353_v0  ;;  %11252 = vmatpush3.bf16.msra.mxu1 %v13357_v1 }
 0x59e   :  { %9783 = vmatprep.mubr.bf16.mxu0 %v9052_v5  ;;  %9864 = vmatprep.mubr.bf16.mxu1 %v9052_v5  ;;  %v9186_v5 = vrot.slane %v9181_v61, %v1260_v47 }
 0x59f   :  { %9753 = vmatprep.subr.bf16.mxu0 %v13360_v3  ;;  %11253 = vmatprep.subr.bf16.mxu1 %v13361_v4 }
 0x5a1   :  { %9754 = vmatpush1.bf16.msra.mxu0 %v13358_v6  ;;  %11254 = vmatpush3.bf16.msra.mxu1 %v13362_v7  ;;  %v9190_v6 = vrot.slane %v9181_v61, %v1264_v49 }
 0x5a2   :  { %9755 = vmatprep.subr.bf16.mxu0 %v13365_v8  ;;  %11255 = vmatprep.subr.bf16.mxu1 %v13366_v9 }
 0x5a5   :  { %9756 = vmatpush1.bf16.msra.mxu0 %v13363_v10  ;;  %11256 = vmatpush3.bf16.msra.mxu1 %v13367_v12 }
 0x5a6   :  { %9757 = vmatprep.subr.bf16.mxu0 %v13370_v13  ;;  %11257 = vmatprep.subr.bf16.mxu1 %v13371_v15 }
 0x5a9   :  { %9758 = vmatpush1.bf16.msra.mxu0 %v13368_v11  ;;  %11258 = vmatpush3.bf16.msra.mxu1 %v13372_v17 }
 0x5aa   :  { %9759 = vmatprep.subr.bf16.mxu0 %v13375_v14  ;;  %11259 = vmatprep.subr.bf16.mxu1 %v13376_v19 }
 0x5ad   :  { %9760 = vmatpush1.bf16.msra.mxu0 %v13373_v20  ;;  %11260 = vmatpush3.bf16.msra.mxu1 %v13377_v16 }
 0x5ae   :  { %9761 = vmatprep.subr.bf16.mxu0 %v13380_v22  ;;  %11261 = vmatprep.subr.bf16.mxu1 %v13381_v23 }
 0x5b1   :  { %9762 = vmatpush1.bf16.msra.mxu0 %v13378_v18  ;;  %11262 = vmatpush3.bf16.msra.mxu1 %v13382_v25 }
 0x5b2   :  { %9763 = vmatprep.subr.bf16.mxu0 %v13385_v21  ;;  %11263 = vmatprep.subr.bf16.mxu1 %v13386_v28 }
 0x5b5   :  { %9764 = vmatpush1.bf16.msra.mxu0 %v13383_v29  ;;  %11264 = vmatpush3.bf16.msra.mxu1 %v13387_v24 }
 0x5b6   :  { %9765 = vmatprep.subr.bf16.mxu0 %v13390_v32  ;;  %11265 = vmatprep.subr.bf16.mxu1 %v13391_v27 }
 0x5b9   :  { %9766 = vmatpush1.bf16.msra.mxu0 %v13388_v34  ;;  %11266 = vmatpush3.bf16.msra.mxu1 %v13392_v35 }
 0x5ba   :  { %9767 = vmatprep.subr.bf16.mxu0 %v13395_v37 }
 0x5bc   :  { %9865 = vmatmul.mubr.bf16.vlgmr.msra.gmra.mrb[8].mxu1 %v9051_v33 }
 0x5bd   :  { %9768 = vmatpush1.bf16.msra.mxu0 %v13393_v38 }
 0x5be   :  { %9769 = vmatprep.subr.bf16.mxu0 %v13398_v40 }
 0x5c1   :  { %9770 = vmatpush1.bf16.msra.mxu0 %v13396_v41 }
 0x5c2   :  { %9771 = vmatprep.subr.bf16.mxu0 %v13401_v30 }
 0x5c5   :  { %9772 = vmatpush1.bf16.msra.mxu0 %v13399_v43 }
 0x5c6   :  { %9773 = vmatprep.subr.bf16.mxu0 %v13404_v44 }
 0x5c9   :  { %9774 = vmatpush1.bf16.msra.mxu0 %v13402_v39 }
 0x5ca   :  { %9775 = vmatprep.subr.bf16.mxu0 %v13407_v42 }
 0x5cd   :  { %9776 = vmatpush1.bf16.msra.mxu0 %v13405_v50 }
 0x5ce   :  { %9777 = vmatprep.subr.bf16.mxu0 %v13410_v45 }
 0x5d1   :  { %9778 = vmatpush1.bf16.msra.mxu0 %v13408_v52 }
 0x5d2   :  { %9779 = vmatprep.subr.bf16.mxu0 %v13413_v53 }
 0x5d5   :  { %9780 = vmatpush1.bf16.msra.mxu0 %v13411_v48 }
 0x5d6   :  { %9781 = vmatprep.subr.bf16.mxu0 %v13416_v55 }
 0x5d9   :  { %9782 = vmatpush1.bf16.msra.mxu0 %v13414_v56 }
 0x5dc   :  { %9784 = vmatmul.mubr.bf16.vlgmr.msra.gmra.mrb[4].mxu0 %v9051_v33 }
 0x66f   :  { %v11245_v51 = vpop.f32.mrb[4].mxu1 }
 0x670   :  { %v11246_v58 = vpop.f32.mrb[5].mxu1 }
 0x671   :  { %v11247_v59 = vadd.f32 %v11246_v58, %v11245_v51  ;;  %v11248_v54 = vpop.f32.mrb[6].mxu1 }
 0x672   :  { %v11249_v60 = vpop.f32.mrb[7].mxu1 }
 0x673   :  { %v9827_v0 = vadd.f32 %v11247_v59, %v9194_v62 }
 0x68f   :  { %v11267_v57 = vpop.f32.mrb[8].mxu1 }
 0x690   :  { %v11268_v63 = vpop.f32.mrb[9].mxu1 }
 0x691   :  { %v11269_v1 = vadd.f32 %v11268_v63, %v11267_v57  ;;  %v11270_v2 = vpop.f32.mrb[10].mxu1 }
 0x692   :  { %v11271_v3 = vpop.f32.mrb[11].mxu1 }
 0x693   :  { %v9867_v4 = vadd.f32 %v11269_v1, %v9827_v0 }
 0x695   :  { %9874 = vst [vmem:[%s17595_s5 + $0x10] sm:$0xff] %v9867_v4 }
 0x6af   :  { %v9785_v7 = vpop.f32.mrb[4].mxu0 }
 0x6b0   :  { %v11277_v8 = vadd.f32 %v9785_v7, %v9186_v5  ;;  %v9787_v9 = vpop.f32.mrb[5].mxu0 }
 0x6b1   :  { %v11278_v10 = vadd.f32 %v9787_v9, %v9190_v6  ;;  %v9789_v12 = vpop.f32.mrb[6].mxu0 }
 0x6b2   :  { %9872 = vst [vmem:[%s17595_s5] sm:$0xff] %v11277_v8  ;;  %v9790_v13 = vpop.f32.mrb[7].mxu0 }
 0x6b3   :  { %9873 = vst [vmem:[%s17595_s5 + $0x8] sm:$0xff] %v11278_v10 }

</bundles_post_ra>
